<compile_context>
chip_gen: v6e
topology: v6e:2x2x1
jax: 0.10.0
libtpu: 0.0.40
codegen_flags: <defaults>
</compile_context>

<pallas_src>
import math

import jax
import jax.numpy as jnp
from jax.experimental import pallas as pl
from jax.experimental.pallas import tpu as pltpu

F32 = jnp.float32


# ---------------------------------------------------------------------------
# pallas_call plumbing
# ---------------------------------------------------------------------------
def _rep_spec(shape):
    """Whole-array block; same block index for every grid step."""
    n = len(shape)
    return pl.BlockSpec(tuple(shape), lambda i, _n=n: (0,) * _n)


def _batch_spec(shape):
    """Per-batch-element block (1, *rest) selected by the grid position."""
    n = len(shape)
    return pl.BlockSpec((1,) + tuple(shape[1:]),
                        lambda b, _n=n: (b,) + (0,) * (_n - 1))


def _call_full(kernel, out_shape, inputs):
    """grid=(1,): everything resident in VMEM (shapes here are tiny)."""
    multi = isinstance(out_shape, (list, tuple))
    outs = list(out_shape) if multi else [out_shape]
    return pl.pallas_call(
        kernel,
        out_shape=tuple(outs) if multi else out_shape,
        grid_spec=pltpu.PrefetchScalarGridSpec(
            num_scalar_prefetch=0,
            grid=(1,),
            in_specs=[_rep_spec(x.shape) for x in inputs],
            out_specs=([_rep_spec(o.shape) for o in outs] if multi
                       else _rep_spec(out_shape.shape)),
        ),
        compiler_params=pltpu.CompilerParams(
            dimension_semantics=("arbitrary",)),
    )(*inputs)


def _call_per_batch(kernel, out_shape, batched, shared):
    """grid=(B,): batch axis parallel (second TensorCore on v7x)."""
    B = batched[0].shape[0]
    return pl.pallas_call(
        kernel,
        out_shape=out_shape,
        grid_spec=pltpu.PrefetchScalarGridSpec(
            num_scalar_prefetch=0,
            grid=(B,),
            in_specs=([_batch_spec(x.shape) for x in batched]
                      + [_rep_spec(x.shape) for x in shared]),
            out_specs=_batch_spec(out_shape.shape),
        ),
        compiler_params=pltpu.CompilerParams(
            dimension_semantics=("parallel",)),
    )(*batched, *shared)


# ---------------------------------------------------------------------------
# in-kernel helpers (traced inside kernels)
# ---------------------------------------------------------------------------
def _ln(x, g, b):
    mu = jnp.mean(x, axis=-1, keepdims=True)
    var = jnp.mean(jnp.square(x - mu), axis=-1, keepdims=True)
    return (x - mu) * jax.lax.rsqrt(var + 1e-5) * g + b


def _attend(q, k, v, nhead):
    # q:(Sq,D), k/v:(Sk,D) already projected.  Heads are gathered into a
    # leading batch axis (layout-only stack) so scores / context are ONE
    # batched MXU contraction each, not a per-head matmul loop.
    Sq, D = q.shape
    dh = D // nhead

    def split(t):
        return jnp.stack([t[:, h * dh:(h + 1) * dh] for h in range(nhead)],
                         axis=0)                       # (H, S, dh)

    qh, kh, vh = split(q), split(k), split(v)
    s = jnp.einsum("hqd,hkd->hqk", qh, kh,
                   preferred_element_type=F32) * (1.0 / math.sqrt(dh))
    s = s - jnp.max(s, axis=-1, keepdims=True)
    p = jnp.exp(s)
    p = p * pl.reciprocal(jnp.sum(p, axis=-1, keepdims=True), approx=True)
    ctx = jnp.einsum("hqk,hkd->hqd", p, vh, preferred_element_type=F32)
    return jnp.concatenate([ctx[h] for h in range(nhead)], axis=-1)   # (Sq, D)


def _lstm_cell(gx, h, c, whh_t, H):
    # gx already contains x @ W_ih^T + b (hoisted out of the time loop).
    gates = gx + jnp.dot(h, whh_t, preferred_element_type=F32)
    sig = jax.nn.sigmoid(gates)   # full-width nonlinearities (one EUP pass)
    th = jnp.tanh(gates)
    i_g = sig[:, 0:H]
    f_g = sig[:, H:2 * H]
    g_g = th[:, 2 * H:3 * H]
    o_g = sig[:, 3 * H:4 * H]
    c_new = f_g * c + i_g * g_g
    h_new = o_g * jnp.tanh(c_new)
    return h_new, c_new


# ---------------------------------------------------------------------------
# kernels
# ---------------------------------------------------------------------------
def _embed_kernel(src_ref, w_ref, b_ref, pe_ref, o_ref):
    # Linear(1,d)*sqrt(d) + positional encoding, fused (pure VPU, no K=1
    # matmul).  w/b are pre-scaled by sqrt(d_model); pe is indexed by the
    # batch axis, faithful to the original PyTorch module.
    o_ref[...] = src_ref[...] * w_ref[...] + b_ref[...] + pe_ref[...]


def _make_encoder_layer_kernel(nhead):
    def kernel(x_ref, wqkv_ref, bqkv_ref, wo_ref, bo_ref,
               w1_ref, bf1_ref, w2_ref, bf2_ref,
               g1_ref, be1_ref, g2_ref, be2_ref, o_ref):
        x = x_ref[0]                                       # (S, D)
        D = x.shape[-1]
        qkv = jnp.dot(x, wqkv_ref[...],
                      preferred_element_type=F32) + bqkv_ref[...]
        sa = _attend(qkv[:, :D], qkv[:, D:2 * D], qkv[:, 2 * D:], nhead)
        sa = jnp.dot(sa, wo_ref[...], preferred_element_type=F32) + bo_ref[...]
        x1 = _ln(x + sa, g1_ref[...], be1_ref[...])
        h = jnp.maximum(
            jnp.dot(x1, w1_ref[...], preferred_element_type=F32) + bf1_ref[...],
            0.0)
        ff = jnp.dot(h, w2_ref[...], preferred_element_type=F32) + bf2_ref[...]
        o_ref[0] = _ln(x1 + ff, g2_ref[...], be2_ref[...])

    return kernel


def _make_decoder_layer_kernel(nhead):
    def kernel(x_ref, mem_ref,
               wqkv_ref, bqkv_ref, wos_ref, bos_ref,
               wq_ref, bq_ref, wkv_ref, bkv_ref, woc_ref, boc_ref,
               w1_ref, bf1_ref, w2_ref, bf2_ref,
               g1_ref, be1_ref, g2_ref, be2_ref, g3_ref, be3_ref, o_ref):
        x = x_ref[0]
        mem = mem_ref[0]
        D = x.shape[-1]
        # self-attention
        qkv = jnp.dot(x, wqkv_ref[...],
                      preferred_element_type=F32) + bqkv_ref[...]
        sa = _attend(qkv[:, :D], qkv[:, D:2 * D], qkv[:, 2 * D:], nhead)
        sa = jnp.dot(sa, wos_ref[...], preferred_element_type=F32) + bos_ref[...]
        x1 = _ln(x + sa, g1_ref[...], be1_ref[...])
        # cross-attention over encoder memory
        q = jnp.dot(x1, wq_ref[...], preferred_element_type=F32) + bq_ref[...]
        kv = jnp.dot(mem, wkv_ref[...], preferred_element_type=F32) + bkv_ref[...]
        ca = _attend(q, kv[:, :D], kv[:, D:], nhead)
        ca = jnp.dot(ca, woc_ref[...], preferred_element_type=F32) + boc_ref[...]
        x2 = _ln(x1 + ca, g2_ref[...], be2_ref[...])
        # feed-forward
        h = jnp.maximum(
            jnp.dot(x2, w1_ref[...], preferred_element_type=F32) + bf1_ref[...],
            0.0)
        ff = jnp.dot(h, w2_ref[...], preferred_element_type=F32) + bf2_ref[...]
        o_ref[0] = _ln(x2 + ff, g3_ref[...], be3_ref[...])

    return kernel


def _layernorm_kernel(x_ref, g_ref, b_ref, o_ref):
    o_ref[...] = _ln(x_ref[...], g_ref[...], b_ref[...])


def _make_bilstm_kernel(hidden, seq_len):
    H = hidden

    def kernel(x_ref, wih_f_ref, whh_f_ref, b_f_ref,
               wih_b_ref, whh_b_ref, b_b_ref, hf_ref, hb_ref):
        S, B, Din = x_ref.shape
        x2 = x_ref[...].reshape(S * B, Din)
        # input matmul hoisted out of the recurrence (one matmul / direction)
        gx_f = (jnp.dot(x2, wih_f_ref[...], preferred_element_type=F32)
                + b_f_ref[...]).reshape(S, B, 4 * H)
        gx_b = (jnp.dot(x2, wih_b_ref[...], preferred_element_type=F32)
                + b_b_ref[...]).reshape(S, B, 4 * H)
        whh_f = whh_f_ref[...]
        whh_b = whh_b_ref[...]
        hf = jnp.zeros((B, H), F32)
        cf = jnp.zeros((B, H), F32)
        hb = jnp.zeros((B, H), F32)
        cb = jnp.zeros((B, H), F32)
        for i in range(seq_len):          # fully unrolled: S is small & static
            tb = seq_len - 1 - i
            hf, cf = _lstm_cell(gx_f[i], hf, cf, whh_f, H)
            hb, cb = _lstm_cell(gx_b[tb], hb, cb, whh_b, H)
            hf_ref[i] = hf
            hb_ref[tb] = hb

    return kernel


def _make_latent_dec_lstm_kernel(d_model, seq_len):
    D = d_model

    def kernel(h_ref, wto_ref, bto_ref, wfrom_ref, bfrom_ref,
               wih_ref, whh_ref, bl_ref, o_ref):
        hcat = h_ref[...]                                           # (B, 2H)
        latent = jnp.dot(hcat, wto_ref[...],
                         preferred_element_type=F32) + bto_ref[...]
        dec_in = jnp.dot(latent, wfrom_ref[...],
                         preferred_element_type=F32) + bfrom_ref[...]
        # the decoder input is repeated over the sequence -> its gate
        # contribution is time-invariant; compute it exactly once.
        gx = jnp.dot(dec_in, wih_ref[...],
                     preferred_element_type=F32) + bl_ref[...]      # (B, 4D)
        whh = whh_ref[...]
        B = hcat.shape[0]
        h = jnp.zeros((B, D), F32)
        c = jnp.zeros((B, D), F32)
        for t in range(seq_len):
            h, c = _lstm_cell(gx, h, c, whh, D)
            o_ref[t] = h

    return kernel


def _make_uni_lstm_kernel(hidden, seq_len):
    H = hidden

    def kernel(x_ref, wih_ref, whh_ref, b_ref, o_ref):
        S, B, Din = x_ref.shape
        gx = (jnp.dot(x_ref[...].reshape(S * B, Din), wih_ref[...],
                      preferred_element_type=F32)
              + b_ref[...]).reshape(S, B, 4 * H)
        whh = whh_ref[...]
        h = jnp.zeros((B, H), F32)
        c = jnp.zeros((B, H), F32)
        for t in range(seq_len):
            h, c = _lstm_cell(gx[t], h, c, whh, H)
            o_ref[t] = h

    return kernel


def _final_kernel(y_ref, g_ref, b_ref, w_ref, bo_ref, o_ref):
    # decoder final LayerNorm + Linear(d_model, 1) as a lane reduction.
    y = _ln(y_ref[...], g_ref[...], b_ref[...])
    o_ref[...] = jnp.sum(y * w_ref[...], axis=-1, keepdims=True) + bo_ref[...]


# ---------------------------------------------------------------------------
# deterministic parameters (stored directly in kernel layout: all linear
# weights are (in_features, out_features), i.e. the transpose of PyTorch)
# ---------------------------------------------------------------------------
def positional_encoding(max_len, d_model):
    position = jnp.arange(max_len, dtype=F32)[:, None]
    div_term = jnp.exp(jnp.arange(0, d_model, 2, dtype=F32)
                       * (-math.log(10000.0) / d_model))
    pe = jnp.zeros((max_len, d_model), F32)
    pe = pe.at[:, 0::2].set(jnp.sin(position * div_term))
    pe = pe.at[:, 1::2].set(jnp.cos(position * div_term))
    return pe[:, None, :]                 # (max_len, 1, d_model)


class KeyGen:
    def __init__(self, seed):
        self.key = jax.random.PRNGKey(seed)

    def __call__(self):
        self.key, sub = jax.random.split(self.key)
        return sub


def _rnd(kg, shape, s=0.1):
    return jax.random.normal(kg(), shape, F32) * s


def _mha_self_p(kg, d):
    return {"w_qkv": _rnd(kg, (d, 3 * d)), "b_qkv": _rnd(kg, (1, 3 * d)),
            "w_o": _rnd(kg, (d, d)), "b_o": _rnd(kg, (1, d))}


def _mha_cross_p(kg, d):
    return {"w_q": _rnd(kg, (d, d)), "b_q": _rnd(kg, (1, d)),
            "w_kv": _rnd(kg, (d, 2 * d)), "b_kv": _rnd(kg, (1, 2 * d)),
            "w_oc": _rnd(kg, (d, d)), "b_oc": _rnd(kg, (1, d))}


def _enc_layer_p(kg, d, ff):
    p = _mha_self_p(kg, d)
    p.update({"w_ff1": _rnd(kg, (d, ff)), "b_ff1": _rnd(kg, (1, ff)),
              "w_ff2": _rnd(kg, (ff, d)), "b_ff2": _rnd(kg, (1, d)),
              "g1": jnp.ones((1, d), F32), "be1": jnp.zeros((1, d), F32),
              "g2": jnp.ones((1, d), F32), "be2": jnp.zeros((1, d), F32)})
    return p


def _dec_layer_p(kg, d, ff):
    p = _enc_layer_p(kg, d, ff)
    p.update(_mha_cross_p(kg, d))
    p.update({"g3": jnp.ones((1, d), F32), "be3": jnp.zeros((1, d), F32)})
    return p


def _bilstm_layer_p(kg, din, h):
    # bias = b_ih + b_hh combined (PyTorch gate order i, f, g, o)
    return {"w_ih_f": _rnd(kg, (din, 4 * h)), "w_hh_f": _rnd(kg, (h, 4 * h)),
            "b_f": _rnd(kg, (1, 4 * h)),
            "w_ih_b": _rnd(kg, (din, 4 * h)), "w_hh_b": _rnd(kg, (h, 4 * h)),
            "b_b": _rnd(kg, (1, 4 * h))}


def _unilstm_layer_p(kg, din, h):
    return {"w_ih": _rnd(kg, (din, 4 * h)), "w_hh": _rnd(kg, (h, 4 * h)),
            "b": _rnd(kg, (1, 4 * h))}


def init_params(seed, cfg):
    kg = KeyGen(seed)
    d, ff = cfg["d_model"], cfg["dim_feedforward"]
    H, L = cfg["lstm_hidden"], cfg["lstm_layers"]
    lat = cfg["latent_dim"]
    sd = math.sqrt(d)
    return {
        # Linear(1, d) with the *sqrt(d_model) scale folded into the weights
        "emb_w": _rnd(kg, (1, 1, d)) * sd,
        "emb_b": _rnd(kg, (1, 1, d)) * sd,
        "pe": positional_encoding(5000, d),
        "enc_layers": [_enc_layer_p(kg, d, ff)
                       for _ in range(cfg["num_encoder_layers"])],
        "enc_norm_g": jnp.ones((1, d), F32),
        "enc_norm_b": jnp.zeros((1, d), F32),
        "dec_layers": [_dec_layer_p(kg, d, ff)
                       for _ in range(cfg["num_decoder_layers"])],
        "dec_norm_g": jnp.ones((1, d), F32),
        "dec_norm_b": jnp.zeros((1, d), F32),
        "out_w": _rnd(kg, (1, d)),
        "out_b": _rnd(kg, (1, 1)),
        "to_latent_w": _rnd(kg, (2 * H, lat)),
        "to_latent_b": _rnd(kg, (1, lat)),
        "from_latent_w": _rnd(kg, (lat, 2 * H)),
        "from_latent_b": _rnd(kg, (1, 2 * H)),
        "lstm_enc": [_bilstm_layer_p(kg, d if l == 0 else 2 * H, H)
                     for l in range(L)],
        "lstm_dec": [_unilstm_layer_p(kg, 2 * H if l == 0 else d, d)
                     for l in range(L)],
    }


# ---------------------------------------------------------------------------
# full forward (jit-compiled at the call site)
# ---------------------------------------------------------------------------
def transformer_autoencoder5(src, params, cfg):
    B, S = src.shape
    d, nhead = cfg["d_model"], cfg["nhead"]
    H = cfg["lstm_hidden"]
    p = params

    # -- PulseEncoder: Linear(1,d)*sqrt(d) + PE (one fused kernel) -----------
    emb = _call_full(
        _embed_kernel,
        jax.ShapeDtypeStruct((B, S, d), F32),
        [src.reshape(B, S, 1), p["emb_w"], p["emb_b"], p["pe"][:B]],
    )

    enc_kernel = _make_encoder_layer_kernel(nhead)
    x = emb
    for lp in p["enc_layers"]:
        x = _call_per_batch(
            enc_kernel,
            jax.ShapeDtypeStruct((B, S, d), F32),
            [x],
            [lp["w_qkv"], lp["b_qkv"], lp["w_o"], lp["b_o"],
             lp["w_ff1"], lp["b_ff1"], lp["w_ff2"], lp["b_ff2"],
             lp["g1"], lp["be1"], lp["g2"], lp["be2"]],
        )
    memory = _call_full(
        _layernorm_kernel,
        jax.ShapeDtypeStruct((B * S, d), F32),
        [x.reshape(B * S, d), p["enc_norm_g"], p["enc_norm_b"]],
    ).reshape(B, S, d)

    # -- bidirectional LSTM encoder (both directions in one kernel) ----------
    bilstm_kernel = _make_bilstm_kernel(H, S)
    x_tm = jnp.transpose(memory, (1, 0, 2))                # (S, B, d)
    hf_seq = hb_seq = None
    for lp in p["lstm_enc"]:
        hf_seq, hb_seq = _call_full(
            bilstm_kernel,
            (jax.ShapeDtypeStruct((S, B, H), F32),
             jax.ShapeDtypeStruct((S, B, H), F32)),
            [x_tm, lp["w_ih_f"], lp["w_hh_f"], lp["b_f"],
             lp["w_ih_b"], lp["w_hh_b"], lp["b_b"]],
        )
        x_tm = jnp.concatenate([hf_seq, hb_seq], axis=-1)  # next layer input
    # NOTE: the module's self_attention(lstm_output) result is never used
    # downstream (dead code in the PyTorch forward); it is dropped here.
    hlast = jnp.concatenate([hf_seq[S - 1], hb_seq[0]], axis=-1)   # (B, 2H)

    # -- to_latent -> from_latent -> repeat over seq -> LSTM decoder ---------
    lp0 = p["lstm_dec"][0]
    dec_tm = _call_full(
        _make_latent_dec_lstm_kernel(d, S),
        jax.ShapeDtypeStruct((S, B, d), F32),
        [hlast, p["to_latent_w"], p["to_latent_b"],
         p["from_latent_w"], p["from_latent_b"],
         lp0["w_ih"], lp0["w_hh"], lp0["b"]],
    )
    if len(p["lstm_dec"]) > 1:
        uni_kernel = _make_uni_lstm_kernel(d, S)
        for lp in p["lstm_dec"][1:]:
            dec_tm = _call_full(
                uni_kernel,
                jax.ShapeDtypeStruct((S, B, d), F32),
                [dec_tm, lp["w_ih"], lp["w_hh"], lp["b"]],
            )
    decoded = jnp.transpose(dec_tm, (1, 0, 2))             # (B, S, d)

    # -- PulseDecoder: transformer decoder + final LN + Linear(d,1) ----------
    dec_kernel = _make_decoder_layer_kernel(nhead)
    y = decoded
    for lp in p["dec_layers"]:
        y = _call_per_batch(
            dec_kernel,
            jax.ShapeDtypeStruct((B, S, d), F32),
            [y, memory],
            [lp["w_qkv"], lp["b_qkv"], lp["w_o"], lp["b_o"],
             lp["w_q"], lp["b_q"], lp["w_kv"], lp["b_kv"],
             lp["w_oc"], lp["b_oc"],
             lp["w_ff1"], lp["b_ff1"], lp["w_ff2"], lp["b_ff2"],
             lp["g1"], lp["be1"], lp["g2"], lp["be2"], lp["g3"], lp["be3"]],
        )
    out = _call_full(
        _final_kernel,
        jax.ShapeDtypeStruct((B * S, 1), F32),
        [y.reshape(B * S, d), p["dec_norm_g"], p["dec_norm_b"],
         p["out_w"], p["out_b"]],
    )
    return out.reshape(B, S)


if __name__ == "__main__":
    cfg = dict(
        d_model=32,
        nhead=4,
        num_encoder_layers=2,
        num_decoder_layers=2,
        latent_dim=8,
        lstm_hidden=16,
        lstm_layers=1,
        dim_feedforward=64,
    )
    # TODO(synk): dropout layers are treated as identity (eval-mode semantics).

    params = init_params(0, cfg)

    key = jax.random.PRNGKey(0)
    B, S = 2, 8
    src = jax.random.normal(key, (B, S), F32)

    fwd = jax.jit(lambda s, p: transformer_autoencoder5(s, p, cfg))
    out = jax.block_until_ready(fwd(src, params))
    assert out.shape == (B, S), out.shape
    assert bool(jnp.all(jnp.isfinite(out)))
    print("KERNEL_OK")
</pallas_src>

<mosaic_0001>
module attributes {stable_mosaic.version = 11 : i64} {
  func.func @_embed_kernel(%arg0: i32, %arg1: memref<2x8x1xf32, #tpu.memory_space<vmem>>, %arg2: memref<1x1x32xf32, #tpu.memory_space<vmem>>, %arg3: memref<1x1x32xf32, #tpu.memory_space<vmem>>, %arg4: memref<2x1x32xf32, #tpu.memory_space<vmem>>, %arg5: memref<2x8x32xf32, #tpu.memory_space<vmem>>) attributes {dimension_semantics = [#tpu.dimension_semantics<arbitrary>], iteration_bounds = array<i64: 1>, scalar_prefetch = 0 : i64, scratch_operands = 0 : i64, tpu.core_type = #tpu.core_type<tc>, window_params = [{pipeline_mode = #tpu.pipeline_mode<synchronous>, transform_indices = @transform_0, window_bounds = array<i64: 2, 8, 1>}, {pipeline_mode = #tpu.pipeline_mode<synchronous>, transform_indices = @transform_1, window_bounds = array<i64: 1, 1, 32>}, {pipeline_mode = #tpu.pipeline_mode<synchronous>, transform_indices = @transform_2, window_bounds = array<i64: 1, 1, 32>}, {pipeline_mode = #tpu.pipeline_mode<synchronous>, transform_indices = @transform_3, window_bounds = array<i64: 2, 1, 32>}, {pipeline_mode = #tpu.pipeline_mode<synchronous>, transform_indices = @transform_4, window_bounds = array<i64: 2, 8, 32>}]} {
    %c0 = arith.constant 0 : index
    %c0_0 = arith.constant 0 : index
    %c0_1 = arith.constant 0 : index
    %0 = vector.load %arg1[%c0, %c0_0, %c0_1] : memref<2x8x1xf32, #tpu.memory_space<vmem>>, vector<2x8x1xf32>
    %c0_2 = arith.constant 0 : index
    %c0_3 = arith.constant 0 : index
    %c0_4 = arith.constant 0 : index
    %1 = vector.load %arg2[%c0_2, %c0_3, %c0_4] : memref<1x1x32xf32, #tpu.memory_space<vmem>>, vector<1x1x32xf32>
    %2 = vector.broadcast %0 : vector<2x8x1xf32> to vector<2x8x32xf32>
    %3 = vector.broadcast %1 : vector<1x1x32xf32> to vector<2x8x32xf32>
    %4 = arith.mulf %2, %3 : vector<2x8x32xf32>
    %c0_5 = arith.constant 0 : index
    %c0_6 = arith.constant 0 : index
    %c0_7 = arith.constant 0 : index
    %5 = vector.load %arg3[%c0_5, %c0_6, %c0_7] : memref<1x1x32xf32, #tpu.memory_space<vmem>>, vector<1x1x32xf32>
    %6 = vector.broadcast %5 : vector<1x1x32xf32> to vector<2x8x32xf32>
    %7 = arith.addf %4, %6 : vector<2x8x32xf32>
    %c0_8 = arith.constant 0 : index
    %c0_9 = arith.constant 0 : index
    %c0_10 = arith.constant 0 : index
    %8 = vector.load %arg4[%c0_8, %c0_9, %c0_10] : memref<2x1x32xf32, #tpu.memory_space<vmem>>, vector<2x1x32xf32>
    %9 = vector.broadcast %8 : vector<2x1x32xf32> to vector<2x8x32xf32>
    %10 = arith.addf %7, %9 : vector<2x8x32xf32>
    %c0_11 = arith.constant 0 : index
    %c0_12 = arith.constant 0 : index
    %c0_13 = arith.constant 0 : index
    %11 = vector.load %arg5[%c0_11, %c0_12, %c0_13] : memref<2x8x32xf32, #tpu.memory_space<vmem>>, vector<2x8x32xf32>
    tpu.vector_store %arg5[%c0_11, %c0_12, %c0_13], %10 {strides = array<i32>} : memref<2x8x32xf32, #tpu.memory_space<vmem>>, vector<2x8x32xf32>,
    return
  }
  func.func @transform_0(%arg0: i32) -> (i32, i32, i32) {
    %c0_i32 = arith.constant 0 : i32
    %c0_i32_0 = arith.constant 0 : i32
    %c0_i32_1 = arith.constant 0 : i32
    %c0_i32_2 = arith.constant 0 : i32
    return %c0_i32, %c0_i32_0, %c0_i32_1 : i32, i32, i32
  }
  func.func @transform_1(%arg0: i32) -> (i32, i32, i32) {
    %c0_i32 = arith.constant 0 : i32
    %c0_i32_0 = arith.constant 0 : i32
    %c0_i32_1 = arith.constant 0 : i32
    %c0_i32_2 = arith.constant 0 : i32
    return %c0_i32, %c0_i32_0, %c0_i32_1 : i32, i32, i32
  }
  func.func @transform_2(%arg0: i32) -> (i32, i32, i32) {
    %c0_i32 = arith.constant 0 : i32
    %c0_i32_0 = arith.constant 0 : i32
    %c0_i32_1 = arith.constant 0 : i32
    %c0_i32_2 = arith.constant 0 : i32
    return %c0_i32, %c0_i32_0, %c0_i32_1 : i32, i32, i32
  }
  func.func @transform_3(%arg0: i32) -> (i32, i32, i32) {
    %c0_i32 = arith.constant 0 : i32
    %c0_i32_0 = arith.constant 0 : i32
    %c0_i32_1 = arith.constant 0 : i32
    %c0_i32_2 = arith.constant 0 : i32
    return %c0_i32, %c0_i32_0, %c0_i32_1 : i32, i32, i32
  }
  func.func @transform_4(%arg0: i32) -> (i32, i32, i32) {
    %c0_i32 = arith.constant 0 : i32
    %c0_i32_0 = arith.constant 0 : i32
    %c0_i32_1 = arith.constant 0 : i32
    %c0_i32_2 = arith.constant 0 : i32
    return %c0_i32, %c0_i32_0, %c0_i32_1 : i32, i32, i32
  }
}

module attributes {stable_mosaic.version = 11 : i64} {
  func.func @_layernorm_kernel(%arg0: i32, %arg1: memref<16x32xf32, #tpu.memory_space<vmem>>, %arg2: memref<1x32xf32, #tpu.memory_space<vmem>>, %arg3: memref<1x32xf32, #tpu.memory_space<vmem>>, %arg4: memref<16x32xf32, #tpu.memory_space<vmem>>) attributes {dimension_semantics = [#tpu.dimension_semantics<arbitrary>], iteration_bounds = array<i64: 1>, scalar_prefetch = 0 : i64, scratch_operands = 0 : i64, tpu.core_type = #tpu.core_type<tc>, window_params = [{pipeline_mode = #tpu.pipeline_mode<synchronous>, transform_indices = @transform_0, window_bounds = array<i64: 16, 32>}, {pipeline_mode = #tpu.pipeline_mode<synchronous>, transform_indices = @transform_1, window_bounds = array<i64: 1, 32>}, {pipeline_mode = #tpu.pipeline_mode<synchronous>, transform_indices = @transform_2, window_bounds = array<i64: 1, 32>}, {pipeline_mode = #tpu.pipeline_mode<synchronous>, transform_indices = @transform_3, window_bounds = array<i64: 16, 32>}]} {
    %c0 = arith.constant 0 : index
    %c0_0 = arith.constant 0 : index
    %0 = vector.load %arg1[%c0, %c0_0] : memref<16x32xf32, #tpu.memory_space<vmem>>, vector<16x32xf32>
    %c0_1 = arith.constant 0 : index
    %c0_2 = arith.constant 0 : index
    %1 = vector.load %arg2[%c0_1, %c0_2] : memref<1x32xf32, #tpu.memory_space<vmem>>, vector<1x32xf32>
    %c0_3 = arith.constant 0 : index
    %c0_4 = arith.constant 0 : index
    %2 = vector.load %arg3[%c0_3, %c0_4] : memref<1x32xf32, #tpu.memory_space<vmem>>, vector<1x32xf32>
    %cst = arith.constant dense<0.000000e+00> : vector<16xf32>
    %3 = vector.multi_reduction <add>, %0, %cst [1] : vector<16x32xf32> to vector<16xf32>
    %4 = vector.shape_cast %3 : vector<16xf32> to vector<16x1xf32>
    %cst_5 = arith.constant 3.200000e+01 : f32
    %5 = vector.broadcast %cst_5 : f32 to vector<16x1xf32>
    %6 = arith.divf %4, %5 : vector<16x1xf32>
    %7 = vector.broadcast %6 : vector<16x1xf32> to vector<16x32xf32>
    %8 = arith.subf %0, %7 : vector<16x32xf32>
    %9 = arith.mulf %8, %8 : vector<16x32xf32>
    %cst_6 = arith.constant dense<0.000000e+00> : vector<16xf32>
    %10 = vector.multi_reduction <add>, %9, %cst_6 [1] : vector<16x32xf32> to vector<16xf32>
    %11 = vector.shape_cast %10 : vector<16xf32> to vector<16x1xf32>
    %cst_7 = arith.constant 3.200000e+01 : f32
    %12 = vector.broadcast %cst_7 : f32 to vector<16x1xf32>
    %13 = arith.divf %11, %12 : vector<16x1xf32>
    %14 = vector.broadcast %6 : vector<16x1xf32> to vector<16x32xf32>
    %15 = arith.subf %0, %14 : vector<16x32xf32>
    %cst_8 = arith.constant 9.99999974E-6 : f32
    %16 = vector.broadcast %cst_8 : f32 to vector<16x1xf32>
    %17 = arith.addf %13, %16 : vector<16x1xf32>
    %18 = math.rsqrt %17 : vector<16x1xf32>
    %19 = vector.broadcast %18 : vector<16x1xf32> to vector<16x32xf32>
    %20 = arith.mulf %15, %19 : vector<16x32xf32>
    %21 = vector.broadcast %1 : vector<1x32xf32> to vector<16x32xf32>
    %22 = arith.mulf %20, %21 : vector<16x32xf32>
    %23 = vector.broadcast %2 : vector<1x32xf32> to vector<16x32xf32>
    %24 = arith.addf %22, %23 : vector<16x32xf32>
    %c0_9 = arith.constant 0 : index
    %c0_10 = arith.constant 0 : index
    %25 = vector.load %arg4[%c0_9, %c0_10] : memref<16x32xf32, #tpu.memory_space<vmem>>, vector<16x32xf32>
    tpu.vector_store %arg4[%c0_9, %c0_10], %24 {strides = array<i32>} : memref<16x32xf32, #tpu.memory_space<vmem>>, vector<16x32xf32>,
    return
  }
  func.func @transform_0(%arg0: i32) -> (i32, i32) {
    %c0_i32 = arith.constant 0 : i32
    %c0_i32_0 = arith.constant 0 : i32
    %c0_i32_1 = arith.constant 0 : i32
    return %c0_i32, %c0_i32_0 : i32, i32
  }
  func.func @transform_1(%arg0: i32) -> (i32, i32) {
    %c0_i32 = arith.constant 0 : i32
    %c0_i32_0 = arith.constant 0 : i32
    %c0_i32_1 = arith.constant 0 : i32
    return %c0_i32, %c0_i32_0 : i32, i32
  }
  func.func @transform_2(%arg0: i32) -> (i32, i32) {
    %c0_i32 = arith.constant 0 : i32
    %c0_i32_0 = arith.constant 0 : i32
    %c0_i32_1 = arith.constant 0 : i32
    return %c0_i32, %c0_i32_0 : i32, i32
  }
  func.func @transform_3(%arg0: i32) -> (i32, i32) {
    %c0_i32 = arith.constant 0 : i32
    %c0_i32_0 = arith.constant 0 : i32
    %c0_i32_1 = arith.constant 0 : i32
    return %c0_i32, %c0_i32_0 : i32, i32
  }
}

module attributes {stable_mosaic.version = 11 : i64} {
  func.func @kernel(%arg0: i32, %arg1: memref<1x8x32xf32, #tpu.memory_space<vmem>>, %arg2: memref<32x96xf32, #tpu.memory_space<vmem>>, %arg3: memref<1x96xf32, #tpu.memory_space<vmem>>, %arg4: memref<32x32xf32, #tpu.memory_space<vmem>>, %arg5: memref<1x32xf32, #tpu.memory_space<vmem>>, %arg6: memref<32x64xf32, #tpu.memory_space<vmem>>, %arg7: memref<1x64xf32, #tpu.memory_space<vmem>>, %arg8: memref<64x32xf32, #tpu.memory_space<vmem>>, %arg9: memref<1x32xf32, #tpu.memory_space<vmem>>, %arg10: memref<1x32xf32, #tpu.memory_space<vmem>>, %arg11: memref<1x32xf32, #tpu.memory_space<vmem>>, %arg12: memref<1x32xf32, #tpu.memory_space<vmem>>, %arg13: memref<1x32xf32, #tpu.memory_space<vmem>>, %arg14: memref<1x8x32xf32, #tpu.memory_space<vmem>>) attributes {dimension_semantics = [#tpu.dimension_semantics<parallel>], iteration_bounds = array<i64: 2>, scalar_prefetch = 0 : i64, scratch_operands = 0 : i64, tpu.core_type = #tpu.core_type<tc>, window_params = [{transform_indices = @transform_0, window_bounds = array<i64: 1, 8, 32>}, {pipeline_mode = #tpu.pipeline_mode<synchronous>, transform_indices = @transform_1, window_bounds = array<i64: 32, 96>}, {pipeline_mode = #tpu.pipeline_mode<synchronous>, transform_indices = @transform_2, window_bounds = array<i64: 1, 96>}, {pipeline_mode = #tpu.pipeline_mode<synchronous>, transform_indices = @transform_3, window_bounds = array<i64: 32, 32>}, {pipeline_mode = #tpu.pipeline_mode<synchronous>, transform_indices = @transform_4, window_bounds = array<i64: 1, 32>}, {pipeline_mode = #tpu.pipeline_mode<synchronous>, transform_indices = @transform_5, window_bounds = array<i64: 32, 64>}, {pipeline_mode = #tpu.pipeline_mode<synchronous>, transform_indices = @transform_6, window_bounds = array<i64: 1, 64>}, {pipeline_mode = #tpu.pipeline_mode<synchronous>, transform_indices = @transform_7, window_bounds = array<i64: 64, 32>}, {pipeline_mode = #tpu.pipeline_mode<synchronous>, transform_indices = @transform_8, window_bounds = array<i64: 1, 32>}, {pipeline_mode = #tpu.pipeline_mode<synchronous>, transform_indices = @transform_9, window_bounds = array<i64: 1, 32>}, {pipeline_mode = #tpu.pipeline_mode<synchronous>, transform_indices = @transform_10, window_bounds = array<i64: 1, 32>}, {pipeline_mode = #tpu.pipeline_mode<synchronous>, transform_indices = @transform_11, window_bounds = array<i64: 1, 32>}, {pipeline_mode = #tpu.pipeline_mode<synchronous>, transform_indices = @transform_12, window_bounds = array<i64: 1, 32>}, {transform_indices = @transform_13, window_bounds = array<i64: 1, 8, 32>}]} {
    %c0 = arith.constant 0 : index
    %c0_0 = arith.constant 0 : index
    %c0_1 = arith.constant 0 : index
    %0 = vector.load %arg1[%c0, %c0_0, %c0_1] : memref<1x8x32xf32, #tpu.memory_space<vmem>>, vector<1x8x32xf32>
    %1 = vector.shape_cast %0 : vector<1x8x32xf32> to vector<8x32xf32>
    %c0_2 = arith.constant 0 : index
    %c0_3 = arith.constant 0 : index
    %2 = vector.load %arg2[%c0_2, %c0_3] : memref<32x96xf32, #tpu.memory_space<vmem>>, vector<32x96xf32>
    %cst = arith.constant dense<0.000000e+00> : vector<8x96xf32>
    %3 = tpu.matmul %1, %2, %cst {dimension_numbers = #tpu.dot_dimension_numbers<[1], [0], [0], [1], [0, 0, 1, 1], [], []>} : vector<8x32xf32>, vector<32x96xf32>, vector<8x96xf32> -> vector<8x96xf32>
    %c0_4 = arith.constant 0 : index
    %c0_5 = arith.constant 0 : index
    %4 = vector.load %arg3[%c0_4, %c0_5] : memref<1x96xf32, #tpu.memory_space<vmem>>, vector<1x96xf32>
    %5 = vector.broadcast %4 : vector<1x96xf32> to vector<8x96xf32>
    %6 = arith.addf %3, %5 : vector<8x96xf32>
    %7 = vector.extract_strided_slice %6 {offsets = [0, 0], sizes = [8, 32], strides = [1, 1]} : vector<8x96xf32> to vector<8x32xf32>
    %8 = vector.extract_strided_slice %6 {offsets = [0, 32], sizes = [8, 32], strides = [1, 1]} : vector<8x96xf32> to vector<8x32xf32>
    %9 = vector.extract_strided_slice %6 {offsets = [0, 64], sizes = [8, 32], strides = [1, 1]} : vector<8x96xf32> to vector<8x32xf32>
    %10 = vector.extract_strided_slice %7 {offsets = [0, 0], sizes = [8, 8], strides = [1, 1]} : vector<8x32xf32> to vector<8x8xf32>
    %11 = vector.extract_strided_slice %7 {offsets = [0, 8], sizes = [8, 8], strides = [1, 1]} : vector<8x32xf32> to vector<8x8xf32>
    %12 = vector.extract_strided_slice %7 {offsets = [0, 16], sizes = [8, 8], strides = [1, 1]} : vector<8x32xf32> to vector<8x8xf32>
    %13 = vector.extract_strided_slice %7 {offsets = [0, 24], sizes = [8, 8], strides = [1, 1]} : vector<8x32xf32> to vector<8x8xf32>
    %14 = vector.shape_cast %10 : vector<8x8xf32> to vector<1x8x8xf32>
    %15 = vector.shape_cast %11 : vector<8x8xf32> to vector<1x8x8xf32>
    %16 = vector.shape_cast %12 : vector<8x8xf32> to vector<1x8x8xf32>
    %17 = vector.shape_cast %13 : vector<8x8xf32> to vector<1x8x8xf32>
    %18 = tpu.concatenate %14, %15, %16, %17 in 0 : vector<1x8x8xf32>, vector<1x8x8xf32>, vector<1x8x8xf32>, vector<1x8x8xf32> -> vector<4x8x8xf32>
    %19 = vector.extract_strided_slice %8 {offsets = [0, 0], sizes = [8, 8], strides = [1, 1]} : vector<8x32xf32> to vector<8x8xf32>
    %20 = vector.extract_strided_slice %8 {offsets = [0, 8], sizes = [8, 8], strides = [1, 1]} : vector<8x32xf32> to vector<8x8xf32>
    %21 = vector.extract_strided_slice %8 {offsets = [0, 16], sizes = [8, 8], strides = [1, 1]} : vector<8x32xf32> to vector<8x8xf32>
    %22 = vector.extract_strided_slice %8 {offsets = [0, 24], sizes = [8, 8], strides = [1, 1]} : vector<8x32xf32> to vector<8x8xf32>
    %23 = vector.shape_cast %19 : vector<8x8xf32> to vector<1x8x8xf32>
    %24 = vector.shape_cast %20 : vector<8x8xf32> to vector<1x8x8xf32>
    %25 = vector.shape_cast %21 : vector<8x8xf32> to vector<1x8x8xf32>
    %26 = vector.shape_cast %22 : vector<8x8xf32> to vector<1x8x8xf32>
    %27 = tpu.concatenate %23, %24, %25, %26 in 0 : vector<1x8x8xf32>, vector<1x8x8xf32>, vector<1x8x8xf32>, vector<1x8x8xf32> -> vector<4x8x8xf32>
    %28 = vector.extract_strided_slice %9 {offsets = [0, 0], sizes = [8, 8], strides = [1, 1]} : vector<8x32xf32> to vector<8x8xf32>
    %29 = vector.extract_strided_slice %9 {offsets = [0, 8], sizes = [8, 8], strides = [1, 1]} : vector<8x32xf32> to vector<8x8xf32>
    %30 = vector.extract_strided_slice %9 {offsets = [0, 16], sizes = [8, 8], strides = [1, 1]} : vector<8x32xf32> to vector<8x8xf32>
    %31 = vector.extract_strided_slice %9 {offsets = [0, 24], sizes = [8, 8], strides = [1, 1]} : vector<8x32xf32> to vector<8x8xf32>
    %32 = vector.shape_cast %28 : vector<8x8xf32> to vector<1x8x8xf32>
    %33 = vector.shape_cast %29 : vector<8x8xf32> to vector<1x8x8xf32>
    %34 = vector.shape_cast %30 : vector<8x8xf32> to vector<1x8x8xf32>
    %35 = vector.shape_cast %31 : vector<8x8xf32> to vector<1x8x8xf32>
    %36 = tpu.concatenate %32, %33, %34, %35 in 0 : vector<1x8x8xf32>, vector<1x8x8xf32>, vector<1x8x8xf32>, vector<1x8x8xf32> -> vector<4x8x8xf32>
    "tpu.trace_start"() <{level = 10 : i32, message = "hqd,hkd->hqk"}> : () -> ()
    %cst_6 = arith.constant dense<0.000000e+00> : vector<4x8x8xf32>
    %37 = tpu.matmul %18, %27, %cst_6 {dimension_numbers = #tpu.dot_dimension_numbers<[2], [2], [1], [1], [0, 0, 0, 1, 1, 1], [0], [0]>} : vector<4x8x8xf32>, vector<4x8x8xf32>, vector<4x8x8xf32> -> vector<4x8x8xf32>
    "tpu.trace_stop"() : () -> ()
    %cst_7 = arith.constant 0.353553385 : f32
    %38 = vector.broadcast %cst_7 : f32 to vector<4x8x8xf32>
    %39 = arith.mulf %37, %38 : vector<4x8x8xf32>
    %cst_8 = arith.constant dense<0xFF800000> : vector<4x8xf32>
    %40 = vector.multi_reduction <maximumf>, %39, %cst_8 [2] : vector<4x8x8xf32> to vector<4x8xf32>
    %41 = vector.shape_cast %40 : vector<4x8xf32> to vector<4x8x1xf32>
    %42 = vector.broadcast %41 : vector<4x8x1xf32> to vector<4x8x8xf32>
    %43 = arith.subf %39, %42 : vector<4x8x8xf32>
    %44 = math.exp %43 : vector<4x8x8xf32>
    %cst_9 = arith.constant dense<0.000000e+00> : vector<4x8xf32>
    %45 = vector.multi_reduction <add>, %44, %cst_9 [2] : vector<4x8x8xf32> to vector<4x8xf32>
    %46 = vector.shape_cast %45 : vector<4x8xf32> to vector<4x8x1xf32>
    %47 = tpu.reciprocal %46 {approx = true} : vector<4x8x1xf32> -> vector<4x8x1xf32>
    %48 = vector.broadcast %47 : vector<4x8x1xf32> to vector<4x8x8xf32>
    %49 = arith.mulf %44, %48 : vector<4x8x8xf32>
    "tpu.trace_start"() <{level = 10 : i32, message = "hqk,hkd->hqd"}> : () -> ()
    %cst_10 = arith.constant dense<0.000000e+00> : vector<4x8x8xf32>
    %50 = tpu.matmul %49, %36, %cst_10 {dimension_numbers = #tpu.dot_dimension_numbers<[2], [1], [1], [2], [0, 0, 0, 1, 1, 2], [0], [0]>} : vector<4x8x8xf32>, vector<4x8x8xf32>, vector<4x8x8xf32> -> vector<4x8x8xf32>
    "tpu.trace_stop"() : () -> ()
    %51 = vector.extract_strided_slice %50 {offsets = [0, 0, 0], sizes = [1, 8, 8], strides = [1, 1, 1]} : vector<4x8x8xf32> to vector<1x8x8xf32>
    %52 = vector.shape_cast %51 : vector<1x8x8xf32> to vector<8x8xf32>
    %53 = vector.extract_strided_slice %50 {offsets = [1, 0, 0], sizes = [1, 8, 8], strides = [1, 1, 1]} : vector<4x8x8xf32> to vector<1x8x8xf32>
    %54 = vector.shape_cast %53 : vector<1x8x8xf32> to vector<8x8xf32>
    %55 = vector.extract_strided_slice %50 {offsets = [2, 0, 0], sizes = [1, 8, 8], strides = [1, 1, 1]} : vector<4x8x8xf32> to vector<1x8x8xf32>
    %56 = vector.shape_cast %55 : vector<1x8x8xf32> to vector<8x8xf32>
    %57 = vector.extract_strided_slice %50 {offsets = [3, 0, 0], sizes = [1, 8, 8], strides = [1, 1, 1]} : vector<4x8x8xf32> to vector<1x8x8xf32>
    %58 = vector.shape_cast %57 : vector<1x8x8xf32> to vector<8x8xf32>
    %59 = tpu.concatenate %52, %54, %56, %58 in 1 : vector<8x8xf32>, vector<8x8xf32>, vector<8x8xf32>, vector<8x8xf32> -> vector<8x32xf32>
    %c0_11 = arith.constant 0 : index
    %c0_12 = arith.constant 0 : index
    %60 = vector.load %arg4[%c0_11, %c0_12] : memref<32x32xf32, #tpu.memory_space<vmem>>, vector<32x32xf32>
    %cst_13 = arith.constant dense<0.000000e+00> : vector<8x32xf32>
    %61 = tpu.matmul %59, %60, %cst_13 {dimension_numbers = #tpu.dot_dimension_numbers<[1], [0], [0], [1], [0, 0, 1, 1], [], []>} : vector<8x32xf32>, vector<32x32xf32>, vector<8x32xf32> -> vector<8x32xf32>
    %c0_14 = arith.constant 0 : index
    %c0_15 = arith.constant 0 : index
    %62 = vector.load %arg5[%c0_14, %c0_15] : memref<1x32xf32, #tpu.memory_space<vmem>>, vector<1x32xf32>
    %63 = vector.broadcast %62 : vector<1x32xf32> to vector<8x32xf32>
    %64 = arith.addf %61, %63 : vector<8x32xf32>
    %65 = arith.addf %1, %64 : vector<8x32xf32>
    %c0_16 = arith.constant 0 : index
    %c0_17 = arith.constant 0 : index
    %66 = vector.load %arg10[%c0_16, %c0_17] : memref<1x32xf32, #tpu.memory_space<vmem>>, vector<1x32xf32>
    %c0_18 = arith.constant 0 : index
    %c0_19 = arith.constant 0 : index
    %67 = vector.load %arg11[%c0_18, %c0_19] : memref<1x32xf32, #tpu.memory_space<vmem>>, vector<1x32xf32>
    %cst_20 = arith.constant dense<0.000000e+00> : vector<8xf32>
    %68 = vector.multi_reduction <add>, %65, %cst_20 [1] : vector<8x32xf32> to vector<8xf32>
    %69 = vector.shape_cast %68 : vector<8xf32> to vector<8x1xf32>
    %cst_21 = arith.constant 3.200000e+01 : f32
    %70 = vector.broadcast %cst_21 : f32 to vector<8x1xf32>
    %71 = arith.divf %69, %70 : vector<8x1xf32>
    %72 = vector.broadcast %71 : vector<8x1xf32> to vector<8x32xf32>
    %73 = arith.subf %65, %72 : vector<8x32xf32>
    %74 = arith.mulf %73, %73 : vector<8x32xf32>
    %cst_22 = arith.constant dense<0.000000e+00> : vector<8xf32>
    %75 = vector.multi_reduction <add>, %74, %cst_22 [1] : vector<8x32xf32> to vector<8xf32>
    %76 = vector.shape_cast %75 : vector<8xf32> to vector<8x1xf32>
    %cst_23 = arith.constant 3.200000e+01 : f32
    %77 = vector.broadcast %cst_23 : f32 to vector<8x1xf32>
    %78 = arith.divf %76, %77 : vector<8x1xf32>
    %79 = vector.broadcast %71 : vector<8x1xf32> to vector<8x32xf32>
    %80 = arith.subf %65, %79 : vector<8x32xf32>
    %cst_24 = arith.constant 9.99999974E-6 : f32
    %81 = vector.broadcast %cst_24 : f32 to vector<8x1xf32>
    %82 = arith.addf %78, %81 : vector<8x1xf32>
    %83 = math.rsqrt %82 : vector<8x1xf32>
    %84 = vector.broadcast %83 : vector<8x1xf32> to vector<8x32xf32>
    %85 = arith.mulf %80, %84 : vector<8x32xf32>
    %86 = vector.broadcast %66 : vector<1x32xf32> to vector<8x32xf32>
    %87 = arith.mulf %85, %86 : vector<8x32xf32>
    %88 = vector.broadcast %67 : vector<1x32xf32> to vector<8x32xf32>
    %89 = arith.addf %87, %88 : vector<8x32xf32>
    %c0_25 = arith.constant 0 : index
    %c0_26 = arith.constant 0 : index
    %90 = vector.load %arg6[%c0_25, %c0_26] : memref<32x64xf32, #tpu.memory_space<vmem>>, vector<32x64xf32>
    %cst_27 = arith.constant dense<0.000000e+00> : vector<8x64xf32>
    %91 = tpu.matmul %89, %90, %cst_27 {dimension_numbers = #tpu.dot_dimension_numbers<[1], [0], [0], [1], [0, 0, 1, 1], [], []>} : vector<8x32xf32>, vector<32x64xf32>, vector<8x64xf32> -> vector<8x64xf32>
    %c0_28 = arith.constant 0 : index
    %c0_29 = arith.constant 0 : index
    %92 = vector.load %arg7[%c0_28, %c0_29] : memref<1x64xf32, #tpu.memory_space<vmem>>, vector<1x64xf32>
    %93 = vector.broadcast %92 : vector<1x64xf32> to vector<8x64xf32>
    %94 = arith.addf %91, %93 : vector<8x64xf32>
    %cst_30 = arith.constant 0.000000e+00 : f32
    %95 = vector.broadcast %cst_30 : f32 to vector<8x64xf32>
    %96 = arith.maximumf %94, %95 : vector<8x64xf32>
    %c0_31 = arith.constant 0 : index
    %c0_32 = arith.constant 0 : index
    %97 = vector.load %arg8[%c0_31, %c0_32] : memref<64x32xf32, #tpu.memory_space<vmem>>, vector<64x32xf32>
    %cst_33 = arith.constant dense<0.000000e+00> : vector<8x32xf32>
    %98 = tpu.matmul %96, %97, %cst_33 {dimension_numbers = #tpu.dot_dimension_numbers<[1], [0], [0], [1], [0, 0, 1, 1], [], []>} : vector<8x64xf32>, vector<64x32xf32>, vector<8x32xf32> -> vector<8x32xf32>
    %c0_34 = arith.constant 0 : index
    %c0_35 = arith.constant 0 : index
    %99 = vector.load %arg9[%c0_34, %c0_35] : memref<1x32xf32, #tpu.memory_space<vmem>>, vector<1x32xf32>
    %100 = vector.broadcast %99 : vector<1x32xf32> to vector<8x32xf32>
    %101 = arith.addf %98, %100 : vector<8x32xf32>
    %102 = arith.addf %89, %101 : vector<8x32xf32>
    %c0_36 = arith.constant 0 : index
    %c0_37 = arith.constant 0 : index
    %103 = vector.load %arg12[%c0_36, %c0_37] : memref<1x32xf32, #tpu.memory_space<vmem>>, vector<1x32xf32>
    %c0_38 = arith.constant 0 : index
    %c0_39 = arith.constant 0 : index
    %104 = vector.load %arg13[%c0_38, %c0_39] : memref<1x32xf32, #tpu.memory_space<vmem>>, vector<1x32xf32>
    %cst_40 = arith.constant dense<0.000000e+00> : vector<8xf32>
    %105 = vector.multi_reduction <add>, %102, %cst_40 [1] : vector<8x32xf32> to vector<8xf32>
    %106 = vector.shape_cast %105 : vector<8xf32> to vector<8x1xf32>
    %cst_41 = arith.constant 3.200000e+01 : f32
    %107 = vector.broadcast %cst_41 : f32 to vector<8x1xf32>
    %108 = arith.divf %106, %107 : vector<8x1xf32>
    %109 = vector.broadcast %108 : vector<8x1xf32> to vector<8x32xf32>
    %110 = arith.subf %102, %109 : vector<8x32xf32>
    %111 = arith.mulf %110, %110 : vector<8x32xf32>
    %cst_42 = arith.constant dense<0.000000e+00> : vector<8xf32>
    %112 = vector.multi_reduction <add>, %111, %cst_42 [1] : vector<8x32xf32> to vector<8xf32>
    %113 = vector.shape_cast %112 : vector<8xf32> to vector<8x1xf32>
    %cst_43 = arith.constant 3.200000e+01 : f32
    %114 = vector.broadcast %cst_43 : f32 to vector<8x1xf32>
    %115 = arith.divf %113, %114 : vector<8x1xf32>
    %116 = vector.broadcast %108 : vector<8x1xf32> to vector<8x32xf32>
    %117 = arith.subf %102, %116 : vector<8x32xf32>
    %cst_44 = arith.constant 9.99999974E-6 : f32
    %118 = vector.broadcast %cst_44 : f32 to vector<8x1xf32>
    %119 = arith.addf %115, %118 : vector<8x1xf32>
    %120 = math.rsqrt %119 : vector<8x1xf32>
    %121 = vector.broadcast %120 : vector<8x1xf32> to vector<8x32xf32>
    %122 = arith.mulf %117, %121 : vector<8x32xf32>
    %123 = vector.broadcast %103 : vector<1x32xf32> to vector<8x32xf32>
    %124 = arith.mulf %122, %123 : vector<8x32xf32>
    %125 = vector.broadcast %104 : vector<1x32xf32> to vector<8x32xf32>
    %126 = arith.addf %124, %125 : vector<8x32xf32>
    %c0_45 = arith.constant 0 : index
    %c0_46 = arith.constant 0 : index
    %c0_47 = arith.constant 0 : index
    %127 = vector.load %arg14[%c0_45, %c0_46, %c0_47] : memref<1x8x32xf32, #tpu.memory_space<vmem>>, vector<1x8x32xf32>
    %128 = vector.shape_cast %127 : vector<1x8x32xf32> to vector<8x32xf32>
    %129 = vector.shape_cast %126 : vector<8x32xf32> to vector<1x8x32xf32>
    tpu.vector_store %arg14[%c0_45, %c0_46, %c0_47], %129 {strides = array<i32>} : memref<1x8x32xf32, #tpu.memory_space<vmem>>, vector<1x8x32xf32>,
    return
  }
  func.func @transform_0(%arg0: i32) -> (i32, i32, i32) {
    %c0_i32 = arith.constant 0 : i32
    %c0_i32_0 = arith.constant 0 : i32
    %c0_i32_1 = arith.constant 0 : i32
    return %arg0, %c0_i32, %c0_i32_0 : i32, i32, i32
  }
  func.func @transform_1(%arg0: i32) -> (i32, i32) {
    %c0_i32 = arith.constant 0 : i32
    %c0_i32_0 = arith.constant 0 : i32
    %c0_i32_1 = arith.constant 0 : i32
    return %c0_i32, %c0_i32_0 : i32, i32
  }
  func.func @transform_2(%arg0: i32) -> (i32, i32) {
    %c0_i32 = arith.constant 0 : i32
    %c0_i32_0 = arith.constant 0 : i32
    %c0_i32_1 = arith.constant 0 : i32
    return %c0_i32, %c0_i32_0 : i32, i32
  }
  func.func @transform_3(%arg0: i32) -> (i32, i32) {
    %c0_i32 = arith.constant 0 : i32
    %c0_i32_0 = arith.constant 0 : i32
    %c0_i32_1 = arith.constant 0 : i32
    return %c0_i32, %c0_i32_0 : i32, i32
  }
  func.func @transform_4(%arg0: i32) -> (i32, i32) {
    %c0_i32 = arith.constant 0 : i32
    %c0_i32_0 = arith.constant 0 : i32
    %c0_i32_1 = arith.constant 0 : i32
    return %c0_i32, %c0_i32_0 : i32, i32
  }
  func.func @transform_5(%arg0: i32) -> (i32, i32) {
    %c0_i32 = arith.constant 0 : i32
    %c0_i32_0 = arith.constant 0 : i32
    %c0_i32_1 = arith.constant 0 : i32
    return %c0_i32, %c0_i32_0 : i32, i32
  }
  func.func @transform_6(%arg0: i32) -> (i32, i32) {
    %c0_i32 = arith.constant 0 : i32
    %c0_i32_0 = arith.constant 0 : i32
    %c0_i32_1 = arith.constant 0 : i32
    return %c0_i32, %c0_i32_0 : i32, i32
  }
  func.func @transform_7(%arg0: i32) -> (i32, i32) {
    %c0_i32 = arith.constant 0 : i32
    %c0_i32_0 = arith.constant 0 : i32
    %c0_i32_1 = arith.constant 0 : i32
    return %c0_i32, %c0_i32_0 : i32, i32
  }
  func.func @transform_8(%arg0: i32) -> (i32, i32) {
    %c0_i32 = arith.constant 0 : i32
    %c0_i32_0 = arith.constant 0 : i32
    %c0_i32_1 = arith.constant 0 : i32
    return %c0_i32, %c0_i32_0 : i32, i32
  }
  func.func @transform_9(%arg0: i32) -> (i32, i32) {
    %c0_i32 = arith.constant 0 : i32
    %c0_i32_0 = arith.constant 0 : i32
    %c0_i32_1 = arith.constant 0 : i32
    return %c0_i32, %c0_i32_0 : i32, i32
  }
  func.func @transform_10(%arg0: i32) -> (i32, i32) {
    %c0_i32 = arith.constant 0 : i32
    %c0_i32_0 = arith.constant 0 : i32
    %c0_i32_1 = arith.constant 0 : i32
    return %c0_i32, %c0_i32_0 : i32, i32
  }
  func.func @transform_11(%arg0: i32) -> (i32, i32) {
    %c0_i32 = arith.constant 0 : i32
    %c0_i32_0 = arith.constant 0 : i32
    %c0_i32_1 = arith.constant 0 : i32
    return %c0_i32, %c0_i32_0 : i32, i32
  }
  func.func @transform_12(%arg0: i32) -> (i32, i32) {
    %c0_i32 = arith.constant 0 : i32
    %c0_i32_0 = arith.constant 0 : i32
    %c0_i32_1 = arith.constant 0 : i32
    return %c0_i32, %c0_i32_0 : i32, i32
  }
  func.func @transform_13(%arg0: i32) -> (i32, i32, i32) {
    %c0_i32 = arith.constant 0 : i32
    %c0_i32_0 = arith.constant 0 : i32
    %c0_i32_1 = arith.constant 0 : i32
    return %arg0, %c0_i32, %c0_i32_0 : i32, i32, i32
  }
}

module attributes {stable_mosaic.version = 11 : i64} {
  func.func @kernel(%arg0: i32, %arg1: memref<8x2x32xf32, #tpu.memory_space<vmem>>, %arg2: memref<32x64xf32, #tpu.memory_space<vmem>>, %arg3: memref<16x64xf32, #tpu.memory_space<vmem>>, %arg4: memref<1x64xf32, #tpu.memory_space<vmem>>, %arg5: memref<32x64xf32, #tpu.memory_space<vmem>>, %arg6: memref<16x64xf32, #tpu.memory_space<vmem>>, %arg7: memref<1x64xf32, #tpu.memory_space<vmem>>, %arg8: memref<8x2x16xf32, #tpu.memory_space<vmem>>, %arg9: memref<8x2x16xf32, #tpu.memory_space<vmem>>) attributes {dimension_semantics = [#tpu.dimension_semantics<arbitrary>], iteration_bounds = array<i64: 1>, scalar_prefetch = 0 : i64, scratch_operands = 0 : i64, tpu.core_type = #tpu.core_type<tc>, window_params = [{pipeline_mode = #tpu.pipeline_mode<synchronous>, transform_indices = @transform_0, window_bounds = array<i64: 8, 2, 32>}, {pipeline_mode = #tpu.pipeline_mode<synchronous>, transform_indices = @transform_1, window_bounds = array<i64: 32, 64>}, {pipeline_mode = #tpu.pipeline_mode<synchronous>, transform_indices = @transform_2, window_bounds = array<i64: 16, 64>}, {pipeline_mode = #tpu.pipeline_mode<synchronous>, transform_indices = @transform_3, window_bounds = array<i64: 1, 64>}, {pipeline_mode = #tpu.pipeline_mode<synchronous>, transform_indices = @transform_4, window_bounds = array<i64: 32, 64>}, {pipeline_mode = #tpu.pipeline_mode<synchronous>, transform_indices = @transform_5, window_bounds = array<i64: 16, 64>}, {pipeline_mode = #tpu.pipeline_mode<synchronous>, transform_indices = @transform_6, window_bounds = array<i64: 1, 64>}, {pipeline_mode = #tpu.pipeline_mode<synchronous>, transform_indices = @transform_7, window_bounds = array<i64: 8, 2, 16>}, {pipeline_mode = #tpu.pipeline_mode<synchronous>, transform_indices = @transform_8, window_bounds = array<i64: 8, 2, 16>}]} {
    %c0 = arith.constant 0 : index
    %c0_0 = arith.constant 0 : index
    %c0_1 = arith.constant 0 : index
    %0 = vector.load %arg1[%c0, %c0_0, %c0_1] : memref<8x2x32xf32, #tpu.memory_space<vmem>>, vector<8x2x32xf32>
    %1 = vector.shape_cast %0 : vector<8x2x32xf32> to vector<16x32xf32>
    %c0_2 = arith.constant 0 : index
    %c0_3 = arith.constant 0 : index
    %2 = vector.load %arg2[%c0_2, %c0_3] : memref<32x64xf32, #tpu.memory_space<vmem>>, vector<32x64xf32>
    %cst = arith.constant dense<0.000000e+00> : vector<16x64xf32>
    %3 = tpu.matmul %1, %2, %cst {dimension_numbers = #tpu.dot_dimension_numbers<[1], [0], [0], [1], [0, 0, 1, 1], [], []>} : vector<16x32xf32>, vector<32x64xf32>, vector<16x64xf32> -> vector<16x64xf32>
    %c0_4 = arith.constant 0 : index
    %c0_5 = arith.constant 0 : index
    %4 = vector.load %arg4[%c0_4, %c0_5] : memref<1x64xf32, #tpu.memory_space<vmem>>, vector<1x64xf32>
    %5 = vector.broadcast %4 : vector<1x64xf32> to vector<16x64xf32>
    %6 = arith.addf %3, %5 : vector<16x64xf32>
    %7 = vector.shape_cast %6 : vector<16x64xf32> to vector<8x2x64xf32>
    %c0_6 = arith.constant 0 : index
    %c0_7 = arith.constant 0 : index
    %8 = vector.load %arg5[%c0_6, %c0_7] : memref<32x64xf32, #tpu.memory_space<vmem>>, vector<32x64xf32>
    %cst_8 = arith.constant dense<0.000000e+00> : vector<16x64xf32>
    %9 = tpu.matmul %1, %8, %cst_8 {dimension_numbers = #tpu.dot_dimension_numbers<[1], [0], [0], [1], [0, 0, 1, 1], [], []>} : vector<16x32xf32>, vector<32x64xf32>, vector<16x64xf32> -> vector<16x64xf32>
    %c0_9 = arith.constant 0 : index
    %c0_10 = arith.constant 0 : index
    %10 = vector.load %arg7[%c0_9, %c0_10] : memref<1x64xf32, #tpu.memory_space<vmem>>, vector<1x64xf32>
    %11 = vector.broadcast %10 : vector<1x64xf32> to vector<16x64xf32>
    %12 = arith.addf %9, %11 : vector<16x64xf32>
    %13 = vector.shape_cast %12 : vector<16x64xf32> to vector<8x2x64xf32>
    %c0_11 = arith.constant 0 : index
    %c0_12 = arith.constant 0 : index
    %14 = vector.load %arg3[%c0_11, %c0_12] : memref<16x64xf32, #tpu.memory_space<vmem>>, vector<16x64xf32>
    %c0_13 = arith.constant 0 : index
    %c0_14 = arith.constant 0 : index
    %15 = vector.load %arg6[%c0_13, %c0_14] : memref<16x64xf32, #tpu.memory_space<vmem>>, vector<16x64xf32>
    %cst_15 = arith.constant 0.000000e+00 : f32
    %16 = vector.broadcast %cst_15 : f32 to vector<2x16xf32>
    %cst_16 = arith.constant 0.000000e+00 : f32
    %17 = vector.broadcast %cst_16 : f32 to vector<2x16xf32>
    %cst_17 = arith.constant 0.000000e+00 : f32
    %18 = vector.broadcast %cst_17 : f32 to vector<2x16xf32>
    %cst_18 = arith.constant 0.000000e+00 : f32
    %19 = vector.broadcast %cst_18 : f32 to vector<2x16xf32>
    %20 = vector.extract_strided_slice %7 {offsets = [0, 0, 0], sizes = [1, 2, 64], strides = [1, 1, 1]} : vector<8x2x64xf32> to vector<1x2x64xf32>
    %21 = vector.shape_cast %20 : vector<1x2x64xf32> to vector<2x64xf32>
    %cst_19 = arith.constant dense<0.000000e+00> : vector<2x64xf32>
    %22 = tpu.matmul %16, %14, %cst_19 {dimension_numbers = #tpu.dot_dimension_numbers<[1], [0], [0], [1], [0, 0, 1, 1], [], []>} : vector<2x16xf32>, vector<16x64xf32>, vector<2x64xf32> -> vector<2x64xf32>
    %23 = arith.addf %21, %22 : vector<2x64xf32>
    %24 = arith.negf %23 : vector<2x64xf32>
    %25 = math.exp %24 : vector<2x64xf32>
    %cst_20 = arith.constant 1.000000e+00 : f32
    %26 = vector.broadcast %cst_20 : f32 to vector<2x64xf32>
    %27 = arith.addf %26, %25 : vector<2x64xf32>
    %28 = arith.divf %26, %27 : vector<2x64xf32>
    %29 = math.tanh %23 : vector<2x64xf32>
    %30 = vector.extract_strided_slice %28 {offsets = [0, 0], sizes = [2, 16], strides = [1, 1]} : vector<2x64xf32> to vector<2x16xf32>
    %31 = vector.extract_strided_slice %28 {offsets = [0, 16], sizes = [2, 16], strides = [1, 1]} : vector<2x64xf32> to vector<2x16xf32>
    %32 = vector.extract_strided_slice %29 {offsets = [0, 32], sizes = [2, 16], strides = [1, 1]} : vector<2x64xf32> to vector<2x16xf32>
    %33 = vector.extract_strided_slice %28 {offsets = [0, 48], sizes = [2, 16], strides = [1, 1]} : vector<2x64xf32> to vector<2x16xf32>
    %34 = arith.mulf %31, %17 : vector<2x16xf32>
    %35 = arith.mulf %30, %32 : vector<2x16xf32>
    %36 = arith.addf %34, %35 : vector<2x16xf32>
    %37 = math.tanh %36 : vector<2x16xf32>
    %38 = arith.mulf %33, %37 : vector<2x16xf32>
    %39 = vector.extract_strided_slice %13 {offsets = [7, 0, 0], sizes = [1, 2, 64], strides = [1, 1, 1]} : vector<8x2x64xf32> to vector<1x2x64xf32>
    %40 = vector.shape_cast %39 : vector<1x2x64xf32> to vector<2x64xf32>
    %cst_21 = arith.constant dense<0.000000e+00> : vector<2x64xf32>
    %41 = tpu.matmul %18, %15, %cst_21 {dimension_numbers = #tpu.dot_dimension_numbers<[1], [0], [0], [1], [0, 0, 1, 1], [], []>} : vector<2x16xf32>, vector<16x64xf32>, vector<2x64xf32> -> vector<2x64xf32>
    %42 = arith.addf %40, %41 : vector<2x64xf32>
    %43 = arith.negf %42 : vector<2x64xf32>
    %44 = math.exp %43 : vector<2x64xf32>
    %cst_22 = arith.constant 1.000000e+00 : f32
    %45 = vector.broadcast %cst_22 : f32 to vector<2x64xf32>
    %46 = arith.addf %45, %44 : vector<2x64xf32>
    %47 = arith.divf %45, %46 : vector<2x64xf32>
    %48 = math.tanh %42 : vector<2x64xf32>
    %49 = vector.extract_strided_slice %47 {offsets = [0, 0], sizes = [2, 16], strides = [1, 1]} : vector<2x64xf32> to vector<2x16xf32>
    %50 = vector.extract_strided_slice %47 {offsets = [0, 16], sizes = [2, 16], strides = [1, 1]} : vector<2x64xf32> to vector<2x16xf32>
    %51 = vector.extract_strided_slice %48 {offsets = [0, 32], sizes = [2, 16], strides = [1, 1]} : vector<2x64xf32> to vector<2x16xf32>
    %52 = vector.extract_strided_slice %47 {offsets = [0, 48], sizes = [2, 16], strides = [1, 1]} : vector<2x64xf32> to vector<2x16xf32>
    %53 = arith.mulf %50, %19 : vector<2x16xf32>
    %54 = arith.mulf %49, %51 : vector<2x16xf32>
    %55 = arith.addf %53, %54 : vector<2x16xf32>
    %56 = math.tanh %55 : vector<2x16xf32>
    %57 = arith.mulf %52, %56 : vector<2x16xf32>
    %c0_23 = arith.constant 0 : index
    %c0_24 = arith.constant 0 : index
    %c0_25 = arith.constant 0 : index
    %58 = vector.load %arg8[%c0_23, %c0_24, %c0_25] : memref<8x2x16xf32, #tpu.memory_space<vmem>>, vector<1x2x16xf32>
    %59 = vector.shape_cast %58 : vector<1x2x16xf32> to vector<2x16xf32>
    %60 = vector.shape_cast %38 : vector<2x16xf32> to vector<1x2x16xf32>
    tpu.vector_store %arg8[%c0_23, %c0_24, %c0_25], %60 {strides = array<i32>} : memref<8x2x16xf32, #tpu.memory_space<vmem>>, vector<1x2x16xf32>,
    %c7 = arith.constant 7 : index
    %c0_26 = arith.constant 0 : index
    %c0_27 = arith.constant 0 : index
    %61 = vector.load %arg9[%c7, %c0_26, %c0_27] : memref<8x2x16xf32, #tpu.memory_space<vmem>>, vector<1x2x16xf32>
    %62 = vector.shape_cast %61 : vector<1x2x16xf32> to vector<2x16xf32>
    %63 = vector.shape_cast %57 : vector<2x16xf32> to vector<1x2x16xf32>
    tpu.vector_store %arg9[%c7, %c0_26, %c0_27], %63 {strides = array<i32>} : memref<8x2x16xf32, #tpu.memory_space<vmem>>, vector<1x2x16xf32>,
    %64 = vector.extract_strided_slice %7 {offsets = [1, 0, 0], sizes = [1, 2, 64], strides = [1, 1, 1]} : vector<8x2x64xf32> to vector<1x2x64xf32>
    %65 = vector.shape_cast %64 : vector<1x2x64xf32> to vector<2x64xf32>
    %cst_28 = arith.constant dense<0.000000e+00> : vector<2x64xf32>
    %66 = tpu.matmul %38, %14, %cst_28 {dimension_numbers = #tpu.dot_dimension_numbers<[1], [0], [0], [1], [0, 0, 1, 1], [], []>} : vector<2x16xf32>, vector<16x64xf32>, vector<2x64xf32> -> vector<2x64xf32>
    %67 = arith.addf %65, %66 : vector<2x64xf32>
    %68 = arith.negf %67 : vector<2x64xf32>
    %69 = math.exp %68 : vector<2x64xf32>
    %cst_29 = arith.constant 1.000000e+00 : f32
    %70 = vector.broadcast %cst_29 : f32 to vector<2x64xf32>
    %71 = arith.addf %70, %69 : vector<2x64xf32>
    %72 = arith.divf %70, %71 : vector<2x64xf32>
    %73 = math.tanh %67 : vector<2x64xf32>
    %74 = vector.extract_strided_slice %72 {offsets = [0, 0], sizes = [2, 16], strides = [1, 1]} : vector<2x64xf32> to vector<2x16xf32>
    %75 = vector.extract_strided_slice %72 {offsets = [0, 16], sizes = [2, 16], strides = [1, 1]} : vector<2x64xf32> to vector<2x16xf32>
    %76 = vector.extract_strided_slice %73 {offsets = [0, 32], sizes = [2, 16], strides = [1, 1]} : vector<2x64xf32> to vector<2x16xf32>
    %77 = vector.extract_strided_slice %72 {offsets = [0, 48], sizes = [2, 16], strides = [1, 1]} : vector<2x64xf32> to vector<2x16xf32>
    %78 = arith.mulf %75, %36 : vector<2x16xf32>
    %79 = arith.mulf %74, %76 : vector<2x16xf32>
    %80 = arith.addf %78, %79 : vector<2x16xf32>
    %81 = math.tanh %80 : vector<2x16xf32>
    %82 = arith.mulf %77, %81 : vector<2x16xf32>
    %83 = vector.extract_strided_slice %13 {offsets = [6, 0, 0], sizes = [1, 2, 64], strides = [1, 1, 1]} : vector<8x2x64xf32> to vector<1x2x64xf32>
    %84 = vector.shape_cast %83 : vector<1x2x64xf32> to vector<2x64xf32>
    %cst_30 = arith.constant dense<0.000000e+00> : vector<2x64xf32>
    %85 = tpu.matmul %57, %15, %cst_30 {dimension_numbers = #tpu.dot_dimension_numbers<[1], [0], [0], [1], [0, 0, 1, 1], [], []>} : vector<2x16xf32>, vector<16x64xf32>, vector<2x64xf32> -> vector<2x64xf32>
    %86 = arith.addf %84, %85 : vector<2x64xf32>
    %87 = arith.negf %86 : vector<2x64xf32>
    %88 = math.exp %87 : vector<2x64xf32>
    %cst_31 = arith.constant 1.000000e+00 : f32
    %89 = vector.broadcast %cst_31 : f32 to vector<2x64xf32>
    %90 = arith.addf %89, %88 : vector<2x64xf32>
    %91 = arith.divf %89, %90 : vector<2x64xf32>
    %92 = math.tanh %86 : vector<2x64xf32>
    %93 = vector.extract_strided_slice %91 {offsets = [0, 0], sizes = [2, 16], strides = [1, 1]} : vector<2x64xf32> to vector<2x16xf32>
    %94 = vector.extract_strided_slice %91 {offsets = [0, 16], sizes = [2, 16], strides = [1, 1]} : vector<2x64xf32> to vector<2x16xf32>
    %95 = vector.extract_strided_slice %92 {offsets = [0, 32], sizes = [2, 16], strides = [1, 1]} : vector<2x64xf32> to vector<2x16xf32>
    %96 = vector.extract_strided_slice %91 {offsets = [0, 48], sizes = [2, 16], strides = [1, 1]} : vector<2x64xf32> to vector<2x16xf32>
    %97 = arith.mulf %94, %55 : vector<2x16xf32>
    %98 = arith.mulf %93, %95 : vector<2x16xf32>
    %99 = arith.addf %97, %98 : vector<2x16xf32>
    %100 = math.tanh %99 : vector<2x16xf32>
    %101 = arith.mulf %96, %100 : vector<2x16xf32>
    %c1 = arith.constant 1 : index
    %c0_32 = arith.constant 0 : index
    %c0_33 = arith.constant 0 : index
    %102 = vector.load %arg8[%c1, %c0_32, %c0_33] : memref<8x2x16xf32, #tpu.memory_space<vmem>>, vector<1x2x16xf32>
    %103 = vector.shape_cast %102 : vector<1x2x16xf32> to vector<2x16xf32>
    %104 = vector.shape_cast %82 : vector<2x16xf32> to vector<1x2x16xf32>
    tpu.vector_store %arg8[%c1, %c0_32, %c0_33], %104 {strides = array<i32>} : memref<8x2x16xf32, #tpu.memory_space<vmem>>, vector<1x2x16xf32>,
    %c6 = arith.constant 6 : index
    %c0_34 = arith.constant 0 : index
    %c0_35 = arith.constant 0 : index
    %105 = vector.load %arg9[%c6, %c0_34, %c0_35] : memref<8x2x16xf32, #tpu.memory_space<vmem>>, vector<1x2x16xf32>
    %106 = vector.shape_cast %105 : vector<1x2x16xf32> to vector<2x16xf32>
    %107 = vector.shape_cast %101 : vector<2x16xf32> to vector<1x2x16xf32>
    tpu.vector_store %arg9[%c6, %c0_34, %c0_35], %107 {strides = array<i32>} : memref<8x2x16xf32, #tpu.memory_space<vmem>>, vector<1x2x16xf32>,
    %108 = vector.extract_strided_slice %7 {offsets = [2, 0, 0], sizes = [1, 2, 64], strides = [1, 1, 1]} : vector<8x2x64xf32> to vector<1x2x64xf32>
    %109 = vector.shape_cast %108 : vector<1x2x64xf32> to vector<2x64xf32>
    %cst_36 = arith.constant dense<0.000000e+00> : vector<2x64xf32>
    %110 = tpu.matmul %82, %14, %cst_36 {dimension_numbers = #tpu.dot_dimension_numbers<[1], [0], [0], [1], [0, 0, 1, 1], [], []>} : vector<2x16xf32>, vector<16x64xf32>, vector<2x64xf32> -> vector<2x64xf32>
    %111 = arith.addf %109, %110 : vector<2x64xf32>
    %112 = arith.negf %111 : vector<2x64xf32>
    %113 = math.exp %112 : vector<2x64xf32>
    %cst_37 = arith.constant 1.000000e+00 : f32
    %114 = vector.broadcast %cst_37 : f32 to vector<2x64xf32>
    %115 = arith.addf %114, %113 : vector<2x64xf32>
    %116 = arith.divf %114, %115 : vector<2x64xf32>
    %117 = math.tanh %111 : vector<2x64xf32>
    %118 = vector.extract_strided_slice %116 {offsets = [0, 0], sizes = [2, 16], strides = [1, 1]} : vector<2x64xf32> to vector<2x16xf32>
    %119 = vector.extract_strided_slice %116 {offsets = [0, 16], sizes = [2, 16], strides = [1, 1]} : vector<2x64xf32> to vector<2x16xf32>
    %120 = vector.extract_strided_slice %117 {offsets = [0, 32], sizes = [2, 16], strides = [1, 1]} : vector<2x64xf32> to vector<2x16xf32>
    %121 = vector.extract_strided_slice %116 {offsets = [0, 48], sizes = [2, 16], strides = [1, 1]} : vector<2x64xf32> to vector<2x16xf32>
    %122 = arith.mulf %119, %80 : vector<2x16xf32>
    %123 = arith.mulf %118, %120 : vector<2x16xf32>
    %124 = arith.addf %122, %123 : vector<2x16xf32>
    %125 = math.tanh %124 : vector<2x16xf32>
    %126 = arith.mulf %121, %125 : vector<2x16xf32>
    %127 = vector.extract_strided_slice %13 {offsets = [5, 0, 0], sizes = [1, 2, 64], strides = [1, 1, 1]} : vector<8x2x64xf32> to vector<1x2x64xf32>
    %128 = vector.shape_cast %127 : vector<1x2x64xf32> to vector<2x64xf32>
    %cst_38 = arith.constant dense<0.000000e+00> : vector<2x64xf32>
    %129 = tpu.matmul %101, %15, %cst_38 {dimension_numbers = #tpu.dot_dimension_numbers<[1], [0], [0], [1], [0, 0, 1, 1], [], []>} : vector<2x16xf32>, vector<16x64xf32>, vector<2x64xf32> -> vector<2x64xf32>
    %130 = arith.addf %128, %129 : vector<2x64xf32>
    %131 = arith.negf %130 : vector<2x64xf32>
    %132 = math.exp %131 : vector<2x64xf32>
    %cst_39 = arith.constant 1.000000e+00 : f32
    %133 = vector.broadcast %cst_39 : f32 to vector<2x64xf32>
    %134 = arith.addf %133, %132 : vector<2x64xf32>
    %135 = arith.divf %133, %134 : vector<2x64xf32>
    %136 = math.tanh %130 : vector<2x64xf32>
    %137 = vector.extract_strided_slice %135 {offsets = [0, 0], sizes = [2, 16], strides = [1, 1]} : vector<2x64xf32> to vector<2x16xf32>
    %138 = vector.extract_strided_slice %135 {offsets = [0, 16], sizes = [2, 16], strides = [1, 1]} : vector<2x64xf32> to vector<2x16xf32>
    %139 = vector.extract_strided_slice %136 {offsets = [0, 32], sizes = [2, 16], strides = [1, 1]} : vector<2x64xf32> to vector<2x16xf32>
    %140 = vector.extract_strided_slice %135 {offsets = [0, 48], sizes = [2, 16], strides = [1, 1]} : vector<2x64xf32> to vector<2x16xf32>
    %141 = arith.mulf %138, %99 : vector<2x16xf32>
    %142 = arith.mulf %137, %139 : vector<2x16xf32>
    %143 = arith.addf %141, %142 : vector<2x16xf32>
    %144 = math.tanh %143 : vector<2x16xf32>
    %145 = arith.mulf %140, %144 : vector<2x16xf32>
    %c2 = arith.constant 2 : index
    %c0_40 = arith.constant 0 : index
    %c0_41 = arith.constant 0 : index
    %146 = vector.load %arg8[%c2, %c0_40, %c0_41] : memref<8x2x16xf32, #tpu.memory_space<vmem>>, vector<1x2x16xf32>
    %147 = vector.shape_cast %146 : vector<1x2x16xf32> to vector<2x16xf32>
    %148 = vector.shape_cast %126 : vector<2x16xf32> to vector<1x2x16xf32>
    tpu.vector_store %arg8[%c2, %c0_40, %c0_41], %148 {strides = array<i32>} : memref<8x2x16xf32, #tpu.memory_space<vmem>>, vector<1x2x16xf32>,
    %c5 = arith.constant 5 : index
    %c0_42 = arith.constant 0 : index
    %c0_43 = arith.constant 0 : index
    %149 = vector.load %arg9[%c5, %c0_42, %c0_43] : memref<8x2x16xf32, #tpu.memory_space<vmem>>, vector<1x2x16xf32>
    %150 = vector.shape_cast %149 : vector<1x2x16xf32> to vector<2x16xf32>
    %151 = vector.shape_cast %145 : vector<2x16xf32> to vector<1x2x16xf32>
    tpu.vector_store %arg9[%c5, %c0_42, %c0_43], %151 {strides = array<i32>} : memref<8x2x16xf32, #tpu.memory_space<vmem>>, vector<1x2x16xf32>,
    %152 = vector.extract_strided_slice %7 {offsets = [3, 0, 0], sizes = [1, 2, 64], strides = [1, 1, 1]} : vector<8x2x64xf32> to vector<1x2x64xf32>
    %153 = vector.shape_cast %152 : vector<1x2x64xf32> to vector<2x64xf32>
    %cst_44 = arith.constant dense<0.000000e+00> : vector<2x64xf32>
    %154 = tpu.matmul %126, %14, %cst_44 {dimension_numbers = #tpu.dot_dimension_numbers<[1], [0], [0], [1], [0, 0, 1, 1], [], []>} : vector<2x16xf32>, vector<16x64xf32>, vector<2x64xf32> -> vector<2x64xf32>
    %155 = arith.addf %153, %154 : vector<2x64xf32>
    %156 = arith.negf %155 : vector<2x64xf32>
    %157 = math.exp %156 : vector<2x64xf32>
    %cst_45 = arith.constant 1.000000e+00 : f32
    %158 = vector.broadcast %cst_45 : f32 to vector<2x64xf32>
    %159 = arith.addf %158, %157 : vector<2x64xf32>
    %160 = arith.divf %158, %159 : vector<2x64xf32>
    %161 = math.tanh %155 : vector<2x64xf32>
    %162 = vector.extract_strided_slice %160 {offsets = [0, 0], sizes = [2, 16], strides = [1, 1]} : vector<2x64xf32> to vector<2x16xf32>
    %163 = vector.extract_strided_slice %160 {offsets = [0, 16], sizes = [2, 16], strides = [1, 1]} : vector<2x64xf32> to vector<2x16xf32>
    %164 = vector.extract_strided_slice %161 {offsets = [0, 32], sizes = [2, 16], strides = [1, 1]} : vector<2x64xf32> to vector<2x16xf32>
    %165 = vector.extract_strided_slice %160 {offsets = [0, 48], sizes = [2, 16], strides = [1, 1]} : vector<2x64xf32> to vector<2x16xf32>
    %166 = arith.mulf %163, %124 : vector<2x16xf32>
    %167 = arith.mulf %162, %164 : vector<2x16xf32>
    %168 = arith.addf %166, %167 : vector<2x16xf32>
    %169 = math.tanh %168 : vector<2x16xf32>
    %170 = arith.mulf %165, %169 : vector<2x16xf32>
    %171 = vector.extract_strided_slice %13 {offsets = [4, 0, 0], sizes = [1, 2, 64], strides = [1, 1, 1]} : vector<8x2x64xf32> to vector<1x2x64xf32>
    %172 = vector.shape_cast %171 : vector<1x2x64xf32> to vector<2x64xf32>
    %cst_46 = arith.constant dense<0.000000e+00> : vector<2x64xf32>
    %173 = tpu.matmul %145, %15, %cst_46 {dimension_numbers = #tpu.dot_dimension_numbers<[1], [0], [0], [1], [0, 0, 1, 1], [], []>} : vector<2x16xf32>, vector<16x64xf32>, vector<2x64xf32> -> vector<2x64xf32>
    %174 = arith.addf %172, %173 : vector<2x64xf32>
    %175 = arith.negf %174 : vector<2x64xf32>
    %176 = math.exp %175 : vector<2x64xf32>
    %cst_47 = arith.constant 1.000000e+00 : f32
    %177 = vector.broadcast %cst_47 : f32 to vector<2x64xf32>
    %178 = arith.addf %177, %176 : vector<2x64xf32>
    %179 = arith.divf %177, %178 : vector<2x64xf32>
    %180 = math.tanh %174 : vector<2x64xf32>
    %181 = vector.extract_strided_slice %179 {offsets = [0, 0], sizes = [2, 16], strides = [1, 1]} : vector<2x64xf32> to vector<2x16xf32>
    %182 = vector.extract_strided_slice %179 {offsets = [0, 16], sizes = [2, 16], strides = [1, 1]} : vector<2x64xf32> to vector<2x16xf32>
    %183 = vector.extract_strided_slice %180 {offsets = [0, 32], sizes = [2, 16], strides = [1, 1]} : vector<2x64xf32> to vector<2x16xf32>
    %184 = vector.extract_strided_slice %179 {offsets = [0, 48], sizes = [2, 16], strides = [1, 1]} : vector<2x64xf32> to vector<2x16xf32>
    %185 = arith.mulf %182, %143 : vector<2x16xf32>
    %186 = arith.mulf %181, %183 : vector<2x16xf32>
    %187 = arith.addf %185, %186 : vector<2x16xf32>
    %188 = math.tanh %187 : vector<2x16xf32>
    %189 = arith.mulf %184, %188 : vector<2x16xf32>
    %c3 = arith.constant 3 : index
    %c0_48 = arith.constant 0 : index
    %c0_49 = arith.constant 0 : index
    %190 = vector.load %arg8[%c3, %c0_48, %c0_49] : memref<8x2x16xf32, #tpu.memory_space<vmem>>, vector<1x2x16xf32>
    %191 = vector.shape_cast %190 : vector<1x2x16xf32> to vector<2x16xf32>
    %192 = vector.shape_cast %170 : vector<2x16xf32> to vector<1x2x16xf32>
    tpu.vector_store %arg8[%c3, %c0_48, %c0_49], %192 {strides = array<i32>} : memref<8x2x16xf32, #tpu.memory_space<vmem>>, vector<1x2x16xf32>,
    %c4 = arith.constant 4 : index
    %c0_50 = arith.constant 0 : index
    %c0_51 = arith.constant 0 : index
    %193 = vector.load %arg9[%c4, %c0_50, %c0_51] : memref<8x2x16xf32, #tpu.memory_space<vmem>>, vector<1x2x16xf32>
    %194 = vector.shape_cast %193 : vector<1x2x16xf32> to vector<2x16xf32>
    %195 = vector.shape_cast %189 : vector<2x16xf32> to vector<1x2x16xf32>
    tpu.vector_store %arg9[%c4, %c0_50, %c0_51], %195 {strides = array<i32>} : memref<8x2x16xf32, #tpu.memory_space<vmem>>, vector<1x2x16xf32>,
    %196 = vector.extract_strided_slice %7 {offsets = [4, 0, 0], sizes = [1, 2, 64], strides = [1, 1, 1]} : vector<8x2x64xf32> to vector<1x2x64xf32>
    %197 = vector.shape_cast %196 : vector<1x2x64xf32> to vector<2x64xf32>
    %cst_52 = arith.constant dense<0.000000e+00> : vector<2x64xf32>
    %198 = tpu.matmul %170, %14, %cst_52 {dimension_numbers = #tpu.dot_dimension_numbers<[1], [0], [0], [1], [0, 0, 1, 1], [], []>} : vector<2x16xf32>, vector<16x64xf32>, vector<2x64xf32> -> vector<2x64xf32>
    %199 = arith.addf %197, %198 : vector<2x64xf32>
    %200 = arith.negf %199 : vector<2x64xf32>
    %201 = math.exp %200 : vector<2x64xf32>
    %cst_53 = arith.constant 1.000000e+00 : f32
    %202 = vector.broadcast %cst_53 : f32 to vector<2x64xf32>
    %203 = arith.addf %202, %201 : vector<2x64xf32>
    %204 = arith.divf %202, %203 : vector<2x64xf32>
    %205 = math.tanh %199 : vector<2x64xf32>
    %206 = vector.extract_strided_slice %204 {offsets = [0, 0], sizes = [2, 16], strides = [1, 1]} : vector<2x64xf32> to vector<2x16xf32>
    %207 = vector.extract_strided_slice %204 {offsets = [0, 16], sizes = [2, 16], strides = [1, 1]} : vector<2x64xf32> to vector<2x16xf32>
    %208 = vector.extract_strided_slice %205 {offsets = [0, 32], sizes = [2, 16], strides = [1, 1]} : vector<2x64xf32> to vector<2x16xf32>
    %209 = vector.extract_strided_slice %204 {offsets = [0, 48], sizes = [2, 16], strides = [1, 1]} : vector<2x64xf32> to vector<2x16xf32>
    %210 = arith.mulf %207, %168 : vector<2x16xf32>
    %211 = arith.mulf %206, %208 : vector<2x16xf32>
    %212 = arith.addf %210, %211 : vector<2x16xf32>
    %213 = math.tanh %212 : vector<2x16xf32>
    %214 = arith.mulf %209, %213 : vector<2x16xf32>
    %215 = vector.extract_strided_slice %13 {offsets = [3, 0, 0], sizes = [1, 2, 64], strides = [1, 1, 1]} : vector<8x2x64xf32> to vector<1x2x64xf32>
    %216 = vector.shape_cast %215 : vector<1x2x64xf32> to vector<2x64xf32>
    %cst_54 = arith.constant dense<0.000000e+00> : vector<2x64xf32>
    %217 = tpu.matmul %189, %15, %cst_54 {dimension_numbers = #tpu.dot_dimension_numbers<[1], [0], [0], [1], [0, 0, 1, 1], [], []>} : vector<2x16xf32>, vector<16x64xf32>, vector<2x64xf32> -> vector<2x64xf32>
    %218 = arith.addf %216, %217 : vector<2x64xf32>
    %219 = arith.negf %218 : vector<2x64xf32>
    %220 = math.exp %219 : vector<2x64xf32>
    %cst_55 = arith.constant 1.000000e+00 : f32
    %221 = vector.broadcast %cst_55 : f32 to vector<2x64xf32>
    %222 = arith.addf %221, %220 : vector<2x64xf32>
    %223 = arith.divf %221, %222 : vector<2x64xf32>
    %224 = math.tanh %218 : vector<2x64xf32>
    %225 = vector.extract_strided_slice %223 {offsets = [0, 0], sizes = [2, 16], strides = [1, 1]} : vector<2x64xf32> to vector<2x16xf32>
    %226 = vector.extract_strided_slice %223 {offsets = [0, 16], sizes = [2, 16], strides = [1, 1]} : vector<2x64xf32> to vector<2x16xf32>
    %227 = vector.extract_strided_slice %224 {offsets = [0, 32], sizes = [2, 16], strides = [1, 1]} : vector<2x64xf32> to vector<2x16xf32>
    %228 = vector.extract_strided_slice %223 {offsets = [0, 48], sizes = [2, 16], strides = [1, 1]} : vector<2x64xf32> to vector<2x16xf32>
    %229 = arith.mulf %226, %187 : vector<2x16xf32>
    %230 = arith.mulf %225, %227 : vector<2x16xf32>
    %231 = arith.addf %229, %230 : vector<2x16xf32>
    %232 = math.tanh %231 : vector<2x16xf32>
    %233 = arith.mulf %228, %232 : vector<2x16xf32>
    %c4_56 = arith.constant 4 : index
    %c0_57 = arith.constant 0 : index
    %c0_58 = arith.constant 0 : index
    %234 = vector.load %arg8[%c4_56, %c0_57, %c0_58] : memref<8x2x16xf32, #tpu.memory_space<vmem>>, vector<1x2x16xf32>
    %235 = vector.shape_cast %234 : vector<1x2x16xf32> to vector<2x16xf32>
    %236 = vector.shape_cast %214 : vector<2x16xf32> to vector<1x2x16xf32>
    tpu.vector_store %arg8[%c4_56, %c0_57, %c0_58], %236 {strides = array<i32>} : memref<8x2x16xf32, #tpu.memory_space<vmem>>, vector<1x2x16xf32>,
    %c3_59 = arith.constant 3 : index
    %c0_60 = arith.constant 0 : index
    %c0_61 = arith.constant 0 : index
    %237 = vector.load %arg9[%c3_59, %c0_60, %c0_61] : memref<8x2x16xf32, #tpu.memory_space<vmem>>, vector<1x2x16xf32>
    %238 = vector.shape_cast %237 : vector<1x2x16xf32> to vector<2x16xf32>
    %239 = vector.shape_cast %233 : vector<2x16xf32> to vector<1x2x16xf32>
    tpu.vector_store %arg9[%c3_59, %c0_60, %c0_61], %239 {strides = array<i32>} : memref<8x2x16xf32, #tpu.memory_space<vmem>>, vector<1x2x16xf32>,
    %240 = vector.extract_strided_slice %7 {offsets = [5, 0, 0], sizes = [1, 2, 64], strides = [1, 1, 1]} : vector<8x2x64xf32> to vector<1x2x64xf32>
    %241 = vector.shape_cast %240 : vector<1x2x64xf32> to vector<2x64xf32>
    %cst_62 = arith.constant dense<0.000000e+00> : vector<2x64xf32>
    %242 = tpu.matmul %214, %14, %cst_62 {dimension_numbers = #tpu.dot_dimension_numbers<[1], [0], [0], [1], [0, 0, 1, 1], [], []>} : vector<2x16xf32>, vector<16x64xf32>, vector<2x64xf32> -> vector<2x64xf32>
    %243 = arith.addf %241, %242 : vector<2x64xf32>
    %244 = arith.negf %243 : vector<2x64xf32>
    %245 = math.exp %244 : vector<2x64xf32>
    %cst_63 = arith.constant 1.000000e+00 : f32
    %246 = vector.broadcast %cst_63 : f32 to vector<2x64xf32>
    %247 = arith.addf %246, %245 : vector<2x64xf32>
    %248 = arith.divf %246, %247 : vector<2x64xf32>
    %249 = math.tanh %243 : vector<2x64xf32>
    %250 = vector.extract_strided_slice %248 {offsets = [0, 0], sizes = [2, 16], strides = [1, 1]} : vector<2x64xf32> to vector<2x16xf32>
    %251 = vector.extract_strided_slice %248 {offsets = [0, 16], sizes = [2, 16], strides = [1, 1]} : vector<2x64xf32> to vector<2x16xf32>
    %252 = vector.extract_strided_slice %249 {offsets = [0, 32], sizes = [2, 16], strides = [1, 1]} : vector<2x64xf32> to vector<2x16xf32>
    %253 = vector.extract_strided_slice %248 {offsets = [0, 48], sizes = [2, 16], strides = [1, 1]} : vector<2x64xf32> to vector<2x16xf32>
    %254 = arith.mulf %251, %212 : vector<2x16xf32>
    %255 = arith.mulf %250, %252 : vector<2x16xf32>
    %256 = arith.addf %254, %255 : vector<2x16xf32>
    %257 = math.tanh %256 : vector<2x16xf32>
    %258 = arith.mulf %253, %257 : vector<2x16xf32>
    %259 = vector.extract_strided_slice %13 {offsets = [2, 0, 0], sizes = [1, 2, 64], strides = [1, 1, 1]} : vector<8x2x64xf32> to vector<1x2x64xf32>
    %260 = vector.shape_cast %259 : vector<1x2x64xf32> to vector<2x64xf32>
    %cst_64 = arith.constant dense<0.000000e+00> : vector<2x64xf32>
    %261 = tpu.matmul %233, %15, %cst_64 {dimension_numbers = #tpu.dot_dimension_numbers<[1], [0], [0], [1], [0, 0, 1, 1], [], []>} : vector<2x16xf32>, vector<16x64xf32>, vector<2x64xf32> -> vector<2x64xf32>
    %262 = arith.addf %260, %261 : vector<2x64xf32>
    %263 = arith.negf %262 : vector<2x64xf32>
    %264 = math.exp %263 : vector<2x64xf32>
    %cst_65 = arith.constant 1.000000e+00 : f32
    %265 = vector.broadcast %cst_65 : f32 to vector<2x64xf32>
    %266 = arith.addf %265, %264 : vector<2x64xf32>
    %267 = arith.divf %265, %266 : vector<2x64xf32>
    %268 = math.tanh %262 : vector<2x64xf32>
    %269 = vector.extract_strided_slice %267 {offsets = [0, 0], sizes = [2, 16], strides = [1, 1]} : vector<2x64xf32> to vector<2x16xf32>
    %270 = vector.extract_strided_slice %267 {offsets = [0, 16], sizes = [2, 16], strides = [1, 1]} : vector<2x64xf32> to vector<2x16xf32>
    %271 = vector.extract_strided_slice %268 {offsets = [0, 32], sizes = [2, 16], strides = [1, 1]} : vector<2x64xf32> to vector<2x16xf32>
    %272 = vector.extract_strided_slice %267 {offsets = [0, 48], sizes = [2, 16], strides = [1, 1]} : vector<2x64xf32> to vector<2x16xf32>
    %273 = arith.mulf %270, %231 : vector<2x16xf32>
    %274 = arith.mulf %269, %271 : vector<2x16xf32>
    %275 = arith.addf %273, %274 : vector<2x16xf32>
    %276 = math.tanh %275 : vector<2x16xf32>
    %277 = arith.mulf %272, %276 : vector<2x16xf32>
    %c5_66 = arith.constant 5 : index
    %c0_67 = arith.constant 0 : index
    %c0_68 = arith.constant 0 : index
    %278 = vector.load %arg8[%c5_66, %c0_67, %c0_68] : memref<8x2x16xf32, #tpu.memory_space<vmem>>, vector<1x2x16xf32>
    %279 = vector.shape_cast %278 : vector<1x2x16xf32> to vector<2x16xf32>
    %280 = vector.shape_cast %258 : vector<2x16xf32> to vector<1x2x16xf32>
    tpu.vector_store %arg8[%c5_66, %c0_67, %c0_68], %280 {strides = array<i32>} : memref<8x2x16xf32, #tpu.memory_space<vmem>>, vector<1x2x16xf32>,
    %c2_69 = arith.constant 2 : index
    %c0_70 = arith.constant 0 : index
    %c0_71 = arith.constant 0 : index
    %281 = vector.load %arg9[%c2_69, %c0_70, %c0_71] : memref<8x2x16xf32, #tpu.memory_space<vmem>>, vector<1x2x16xf32>
    %282 = vector.shape_cast %281 : vector<1x2x16xf32> to vector<2x16xf32>
    %283 = vector.shape_cast %277 : vector<2x16xf32> to vector<1x2x16xf32>
    tpu.vector_store %arg9[%c2_69, %c0_70, %c0_71], %283 {strides = array<i32>} : memref<8x2x16xf32, #tpu.memory_space<vmem>>, vector<1x2x16xf32>,
    %284 = vector.extract_strided_slice %7 {offsets = [6, 0, 0], sizes = [1, 2, 64], strides = [1, 1, 1]} : vector<8x2x64xf32> to vector<1x2x64xf32>
    %285 = vector.shape_cast %284 : vector<1x2x64xf32> to vector<2x64xf32>
    %cst_72 = arith.constant dense<0.000000e+00> : vector<2x64xf32>
    %286 = tpu.matmul %258, %14, %cst_72 {dimension_numbers = #tpu.dot_dimension_numbers<[1], [0], [0], [1], [0, 0, 1, 1], [], []>} : vector<2x16xf32>, vector<16x64xf32>, vector<2x64xf32> -> vector<2x64xf32>
    %287 = arith.addf %285, %286 : vector<2x64xf32>
    %288 = arith.negf %287 : vector<2x64xf32>
    %289 = math.exp %288 : vector<2x64xf32>
    %cst_73 = arith.constant 1.000000e+00 : f32
    %290 = vector.broadcast %cst_73 : f32 to vector<2x64xf32>
    %291 = arith.addf %290, %289 : vector<2x64xf32>
    %292 = arith.divf %290, %291 : vector<2x64xf32>
    %293 = math.tanh %287 : vector<2x64xf32>
    %294 = vector.extract_strided_slice %292 {offsets = [0, 0], sizes = [2, 16], strides = [1, 1]} : vector<2x64xf32> to vector<2x16xf32>
    %295 = vector.extract_strided_slice %292 {offsets = [0, 16], sizes = [2, 16], strides = [1, 1]} : vector<2x64xf32> to vector<2x16xf32>
    %296 = vector.extract_strided_slice %293 {offsets = [0, 32], sizes = [2, 16], strides = [1, 1]} : vector<2x64xf32> to vector<2x16xf32>
    %297 = vector.extract_strided_slice %292 {offsets = [0, 48], sizes = [2, 16], strides = [1, 1]} : vector<2x64xf32> to vector<2x16xf32>
    %298 = arith.mulf %295, %256 : vector<2x16xf32>
    %299 = arith.mulf %294, %296 : vector<2x16xf32>
    %300 = arith.addf %298, %299 : vector<2x16xf32>
    %301 = math.tanh %300 : vector<2x16xf32>
    %302 = arith.mulf %297, %301 : vector<2x16xf32>
    %303 = vector.extract_strided_slice %13 {offsets = [1, 0, 0], sizes = [1, 2, 64], strides = [1, 1, 1]} : vector<8x2x64xf32> to vector<1x2x64xf32>
    %304 = vector.shape_cast %303 : vector<1x2x64xf32> to vector<2x64xf32>
    %cst_74 = arith.constant dense<0.000000e+00> : vector<2x64xf32>
    %305 = tpu.matmul %277, %15, %cst_74 {dimension_numbers = #tpu.dot_dimension_numbers<[1], [0], [0], [1], [0, 0, 1, 1], [], []>} : vector<2x16xf32>, vector<16x64xf32>, vector<2x64xf32> -> vector<2x64xf32>
    %306 = arith.addf %304, %305 : vector<2x64xf32>
    %307 = arith.negf %306 : vector<2x64xf32>
    %308 = math.exp %307 : vector<2x64xf32>
    %cst_75 = arith.constant 1.000000e+00 : f32
    %309 = vector.broadcast %cst_75 : f32 to vector<2x64xf32>
    %310 = arith.addf %309, %308 : vector<2x64xf32>
    %311 = arith.divf %309, %310 : vector<2x64xf32>
    %312 = math.tanh %306 : vector<2x64xf32>
    %313 = vector.extract_strided_slice %311 {offsets = [0, 0], sizes = [2, 16], strides = [1, 1]} : vector<2x64xf32> to vector<2x16xf32>
    %314 = vector.extract_strided_slice %311 {offsets = [0, 16], sizes = [2, 16], strides = [1, 1]} : vector<2x64xf32> to vector<2x16xf32>
    %315 = vector.extract_strided_slice %312 {offsets = [0, 32], sizes = [2, 16], strides = [1, 1]} : vector<2x64xf32> to vector<2x16xf32>
    %316 = vector.extract_strided_slice %311 {offsets = [0, 48], sizes = [2, 16], strides = [1, 1]} : vector<2x64xf32> to vector<2x16xf32>
    %317 = arith.mulf %314, %275 : vector<2x16xf32>
    %318 = arith.mulf %313, %315 : vector<2x16xf32>
    %319 = arith.addf %317, %318 : vector<2x16xf32>
    %320 = math.tanh %319 : vector<2x16xf32>
    %321 = arith.mulf %316, %320 : vector<2x16xf32>
    %c6_76 = arith.constant 6 : index
    %c0_77 = arith.constant 0 : index
    %c0_78 = arith.constant 0 : index
    %322 = vector.load %arg8[%c6_76, %c0_77, %c0_78] : memref<8x2x16xf32, #tpu.memory_space<vmem>>, vector<1x2x16xf32>
    %323 = vector.shape_cast %322 : vector<1x2x16xf32> to vector<2x16xf32>
    %324 = vector.shape_cast %302 : vector<2x16xf32> to vector<1x2x16xf32>
    tpu.vector_store %arg8[%c6_76, %c0_77, %c0_78], %324 {strides = array<i32>} : memref<8x2x16xf32, #tpu.memory_space<vmem>>, vector<1x2x16xf32>,
    %c1_79 = arith.constant 1 : index
    %c0_80 = arith.constant 0 : index
    %c0_81 = arith.constant 0 : index
    %325 = vector.load %arg9[%c1_79, %c0_80, %c0_81] : memref<8x2x16xf32, #tpu.memory_space<vmem>>, vector<1x2x16xf32>
    %326 = vector.shape_cast %325 : vector<1x2x16xf32> to vector<2x16xf32>
    %327 = vector.shape_cast %321 : vector<2x16xf32> to vector<1x2x16xf32>
    tpu.vector_store %arg9[%c1_79, %c0_80, %c0_81], %327 {strides = array<i32>} : memref<8x2x16xf32, #tpu.memory_space<vmem>>, vector<1x2x16xf32>,
    %328 = vector.extract_strided_slice %7 {offsets = [7, 0, 0], sizes = [1, 2, 64], strides = [1, 1, 1]} : vector<8x2x64xf32> to vector<1x2x64xf32>
    %329 = vector.shape_cast %328 : vector<1x2x64xf32> to vector<2x64xf32>
    %cst_82 = arith.constant dense<0.000000e+00> : vector<2x64xf32>
    %330 = tpu.matmul %302, %14, %cst_82 {dimension_numbers = #tpu.dot_dimension_numbers<[1], [0], [0], [1], [0, 0, 1, 1], [], []>} : vector<2x16xf32>, vector<16x64xf32>, vector<2x64xf32> -> vector<2x64xf32>
    %331 = arith.addf %329, %330 : vector<2x64xf32>
    %332 = arith.negf %331 : vector<2x64xf32>
    %333 = math.exp %332 : vector<2x64xf32>
    %cst_83 = arith.constant 1.000000e+00 : f32
    %334 = vector.broadcast %cst_83 : f32 to vector<2x64xf32>
    %335 = arith.addf %334, %333 : vector<2x64xf32>
    %336 = arith.divf %334, %335 : vector<2x64xf32>
    %337 = math.tanh %331 : vector<2x64xf32>
    %338 = vector.extract_strided_slice %336 {offsets = [0, 0], sizes = [2, 16], strides = [1, 1]} : vector<2x64xf32> to vector<2x16xf32>
    %339 = vector.extract_strided_slice %336 {offsets = [0, 16], sizes = [2, 16], strides = [1, 1]} : vector<2x64xf32> to vector<2x16xf32>
    %340 = vector.extract_strided_slice %337 {offsets = [0, 32], sizes = [2, 16], strides = [1, 1]} : vector<2x64xf32> to vector<2x16xf32>
    %341 = vector.extract_strided_slice %336 {offsets = [0, 48], sizes = [2, 16], strides = [1, 1]} : vector<2x64xf32> to vector<2x16xf32>
    %342 = arith.mulf %339, %300 : vector<2x16xf32>
    %343 = arith.mulf %338, %340 : vector<2x16xf32>
    %344 = arith.addf %342, %343 : vector<2x16xf32>
    %345 = math.tanh %344 : vector<2x16xf32>
    %346 = arith.mulf %341, %345 : vector<2x16xf32>
    %347 = vector.extract_strided_slice %13 {offsets = [0, 0, 0], sizes = [1, 2, 64], strides = [1, 1, 1]} : vector<8x2x64xf32> to vector<1x2x64xf32>
    %348 = vector.shape_cast %347 : vector<1x2x64xf32> to vector<2x64xf32>
    %cst_84 = arith.constant dense<0.000000e+00> : vector<2x64xf32>
    %349 = tpu.matmul %321, %15, %cst_84 {dimension_numbers = #tpu.dot_dimension_numbers<[1], [0], [0], [1], [0, 0, 1, 1], [], []>} : vector<2x16xf32>, vector<16x64xf32>, vector<2x64xf32> -> vector<2x64xf32>
    %350 = arith.addf %348, %349 : vector<2x64xf32>
    %351 = arith.negf %350 : vector<2x64xf32>
    %352 = math.exp %351 : vector<2x64xf32>
    %cst_85 = arith.constant 1.000000e+00 : f32
    %353 = vector.broadcast %cst_85 : f32 to vector<2x64xf32>
    %354 = arith.addf %353, %352 : vector<2x64xf32>
    %355 = arith.divf %353, %354 : vector<2x64xf32>
    %356 = math.tanh %350 : vector<2x64xf32>
    %357 = vector.extract_strided_slice %355 {offsets = [0, 0], sizes = [2, 16], strides = [1, 1]} : vector<2x64xf32> to vector<2x16xf32>
    %358 = vector.extract_strided_slice %355 {offsets = [0, 16], sizes = [2, 16], strides = [1, 1]} : vector<2x64xf32> to vector<2x16xf32>
    %359 = vector.extract_strided_slice %356 {offsets = [0, 32], sizes = [2, 16], strides = [1, 1]} : vector<2x64xf32> to vector<2x16xf32>
    %360 = vector.extract_strided_slice %355 {offsets = [0, 48], sizes = [2, 16], strides = [1, 1]} : vector<2x64xf32> to vector<2x16xf32>
    %361 = arith.mulf %358, %319 : vector<2x16xf32>
    %362 = arith.mulf %357, %359 : vector<2x16xf32>
    %363 = arith.addf %361, %362 : vector<2x16xf32>
    %364 = math.tanh %363 : vector<2x16xf32>
    %365 = arith.mulf %360, %364 : vector<2x16xf32>
    %c7_86 = arith.constant 7 : index
    %c0_87 = arith.constant 0 : index
    %c0_88 = arith.constant 0 : index
    %366 = vector.load %arg8[%c7_86, %c0_87, %c0_88] : memref<8x2x16xf32, #tpu.memory_space<vmem>>, vector<1x2x16xf32>
    %367 = vector.shape_cast %366 : vector<1x2x16xf32> to vector<2x16xf32>
    %368 = vector.shape_cast %346 : vector<2x16xf32> to vector<1x2x16xf32>
    tpu.vector_store %arg8[%c7_86, %c0_87, %c0_88], %368 {strides = array<i32>} : memref<8x2x16xf32, #tpu.memory_space<vmem>>, vector<1x2x16xf32>,
    %c0_89 = arith.constant 0 : index
    %c0_90 = arith.constant 0 : index
    %c0_91 = arith.constant 0 : index
    %369 = vector.load %arg9[%c0_89, %c0_90, %c0_91] : memref<8x2x16xf32, #tpu.memory_space<vmem>>, vector<1x2x16xf32>
    %370 = vector.shape_cast %369 : vector<1x2x16xf32> to vector<2x16xf32>
    %371 = vector.shape_cast %365 : vector<2x16xf32> to vector<1x2x16xf32>
    tpu.vector_store %arg9[%c0_89, %c0_90, %c0_91], %371 {strides = array<i32>} : memref<8x2x16xf32, #tpu.memory_space<vmem>>, vector<1x2x16xf32>,
    return
  }
  func.func @transform_0(%arg0: i32) -> (i32, i32, i32) {
    %c0_i32 = arith.constant 0 : i32
    %c0_i32_0 = arith.constant 0 : i32
    %c0_i32_1 = arith.constant 0 : i32
    %c0_i32_2 = arith.constant 0 : i32
    return %c0_i32, %c0_i32_0, %c0_i32_1 : i32, i32, i32
  }
  func.func @transform_1(%arg0: i32) -> (i32, i32) {
    %c0_i32 = arith.constant 0 : i32
    %c0_i32_0 = arith.constant 0 : i32
    %c0_i32_1 = arith.constant 0 : i32
    return %c0_i32, %c0_i32_0 : i32, i32
  }
  func.func @transform_2(%arg0: i32) -> (i32, i32) {
    %c0_i32 = arith.constant 0 : i32
    %c0_i32_0 = arith.constant 0 : i32
    %c0_i32_1 = arith.constant 0 : i32
    return %c0_i32, %c0_i32_0 : i32, i32
  }
  func.func @transform_3(%arg0: i32) -> (i32, i32) {
    %c0_i32 = arith.constant 0 : i32
    %c0_i32_0 = arith.constant 0 : i32
    %c0_i32_1 = arith.constant 0 : i32
    return %c0_i32, %c0_i32_0 : i32, i32
  }
  func.func @transform_4(%arg0: i32) -> (i32, i32) {
    %c0_i32 = arith.constant 0 : i32
    %c0_i32_0 = arith.constant 0 : i32
    %c0_i32_1 = arith.constant 0 : i32
    return %c0_i32, %c0_i32_0 : i32, i32
  }
  func.func @transform_5(%arg0: i32) -> (i32, i32) {
    %c0_i32 = arith.constant 0 : i32
    %c0_i32_0 = arith.constant 0 : i32
    %c0_i32_1 = arith.constant 0 : i32
    return %c0_i32, %c0_i32_0 : i32, i32
  }
  func.func @transform_6(%arg0: i32) -> (i32, i32) {
    %c0_i32 = arith.constant 0 : i32
    %c0_i32_0 = arith.constant 0 : i32
    %c0_i32_1 = arith.constant 0 : i32
    return %c0_i32, %c0_i32_0 : i32, i32
  }
  func.func @transform_7(%arg0: i32) -> (i32, i32, i32) {
    %c0_i32 = arith.constant 0 : i32
    %c0_i32_0 = arith.constant 0 : i32
    %c0_i32_1 = arith.constant 0 : i32
    %c0_i32_2 = arith.constant 0 : i32
    return %c0_i32, %c0_i32_0, %c0_i32_1 : i32, i32, i32
  }
  func.func @transform_8(%arg0: i32) -> (i32, i32, i32) {
    %c0_i32 = arith.constant 0 : i32
    %c0_i32_0 = arith.constant 0 : i32
    %c0_i32_1 = arith.constant 0 : i32
    %c0_i32_2 = arith.constant 0 : i32
    return %c0_i32, %c0_i32_0, %c0_i32_1 : i32, i32, i32
  }
}

module attributes {stable_mosaic.version = 11 : i64} {
  func.func @kernel(%arg0: i32, %arg1: memref<2x32xf32, #tpu.memory_space<vmem>>, %arg2: memref<32x8xf32, #tpu.memory_space<vmem>>, %arg3: memref<1x8xf32, #tpu.memory_space<vmem>>, %arg4: memref<8x32xf32, #tpu.memory_space<vmem>>, %arg5: memref<1x32xf32, #tpu.memory_space<vmem>>, %arg6: memref<32x128xf32, #tpu.memory_space<vmem>>, %arg7: memref<32x128xf32, #tpu.memory_space<vmem>>, %arg8: memref<1x128xf32, #tpu.memory_space<vmem>>, %arg9: memref<8x2x32xf32, #tpu.memory_space<vmem>>) attributes {dimension_semantics = [#tpu.dimension_semantics<arbitrary>], iteration_bounds = array<i64: 1>, scalar_prefetch = 0 : i64, scratch_operands = 0 : i64, tpu.core_type = #tpu.core_type<tc>, window_params = [{pipeline_mode = #tpu.pipeline_mode<synchronous>, transform_indices = @transform_0, window_bounds = array<i64: 2, 32>}, {pipeline_mode = #tpu.pipeline_mode<synchronous>, transform_indices = @transform_1, window_bounds = array<i64: 32, 8>}, {pipeline_mode = #tpu.pipeline_mode<synchronous>, transform_indices = @transform_2, window_bounds = array<i64: 1, 8>}, {pipeline_mode = #tpu.pipeline_mode<synchronous>, transform_indices = @transform_3, window_bounds = array<i64: 8, 32>}, {pipeline_mode = #tpu.pipeline_mode<synchronous>, transform_indices = @transform_4, window_bounds = array<i64: 1, 32>}, {pipeline_mode = #tpu.pipeline_mode<synchronous>, transform_indices = @transform_5, window_bounds = array<i64: 32, 128>}, {pipeline_mode = #tpu.pipeline_mode<synchronous>, transform_indices = @transform_6, window_bounds = array<i64: 32, 128>}, {pipeline_mode = #tpu.pipeline_mode<synchronous>, transform_indices = @transform_7, window_bounds = array<i64: 1, 128>}, {pipeline_mode = #tpu.pipeline_mode<synchronous>, transform_indices = @transform_8, window_bounds = array<i64: 8, 2, 32>}]} {
    %c0 = arith.constant 0 : index
    %c0_0 = arith.constant 0 : index
    %0 = vector.load %arg1[%c0, %c0_0] : memref<2x32xf32, #tpu.memory_space<vmem>>, vector<2x32xf32>
    %c0_1 = arith.constant 0 : index
    %c0_2 = arith.constant 0 : index
    %1 = vector.load %arg2[%c0_1, %c0_2] : memref<32x8xf32, #tpu.memory_space<vmem>>, vector<32x8xf32>
    %cst = arith.constant dense<0.000000e+00> : vector<2x8xf32>
    %2 = tpu.matmul %0, %1, %cst {dimension_numbers = #tpu.dot_dimension_numbers<[1], [0], [0], [1], [0, 0, 1, 1], [], []>} : vector<2x32xf32>, vector<32x8xf32>, vector<2x8xf32> -> vector<2x8xf32>
    %c0_3 = arith.constant 0 : index
    %c0_4 = arith.constant 0 : index
    %3 = vector.load %arg3[%c0_3, %c0_4] : memref<1x8xf32, #tpu.memory_space<vmem>>, vector<1x8xf32>
    %4 = vector.broadcast %3 : vector<1x8xf32> to vector<2x8xf32>
    %5 = arith.addf %2, %4 : vector<2x8xf32>
    %c0_5 = arith.constant 0 : index
    %c0_6 = arith.constant 0 : index
    %6 = vector.load %arg4[%c0_5, %c0_6] : memref<8x32xf32, #tpu.memory_space<vmem>>, vector<8x32xf32>
    %cst_7 = arith.constant dense<0.000000e+00> : vector<2x32xf32>
    %7 = tpu.matmul %5, %6, %cst_7 {dimension_numbers = #tpu.dot_dimension_numbers<[1], [0], [0], [1], [0, 0, 1, 1], [], []>} : vector<2x8xf32>, vector<8x32xf32>, vector<2x32xf32> -> vector<2x32xf32>
    %c0_8 = arith.constant 0 : index
    %c0_9 = arith.constant 0 : index
    %8 = vector.load %arg5[%c0_8, %c0_9] : memref<1x32xf32, #tpu.memory_space<vmem>>, vector<1x32xf32>
    %9 = vector.broadcast %8 : vector<1x32xf32> to vector<2x32xf32>
    %10 = arith.addf %7, %9 : vector<2x32xf32>
    %c0_10 = arith.constant 0 : index
    %c0_11 = arith.constant 0 : index
    %11 = vector.load %arg6[%c0_10, %c0_11] : memref<32x128xf32, #tpu.memory_space<vmem>>, vector<32x128xf32>
    %cst_12 = arith.constant dense<0.000000e+00> : vector<2x128xf32>
    %12 = tpu.matmul %10, %11, %cst_12 {dimension_numbers = #tpu.dot_dimension_numbers<[1], [0], [0], [1], [0, 0, 1, 1], [], []>} : vector<2x32xf32>, vector<32x128xf32>, vector<2x128xf32> -> vector<2x128xf32>
    %c0_13 = arith.constant 0 : index
    %c0_14 = arith.constant 0 : index
    %13 = vector.load %arg8[%c0_13, %c0_14] : memref<1x128xf32, #tpu.memory_space<vmem>>, vector<1x128xf32>
    %14 = vector.broadcast %13 : vector<1x128xf32> to vector<2x128xf32>
    %15 = arith.addf %12, %14 : vector<2x128xf32>
    %c0_15 = arith.constant 0 : index
    %c0_16 = arith.constant 0 : index
    %16 = vector.load %arg7[%c0_15, %c0_16] : memref<32x128xf32, #tpu.memory_space<vmem>>, vector<32x128xf32>
    %cst_17 = arith.constant 0.000000e+00 : f32
    %17 = vector.broadcast %cst_17 : f32 to vector<2x32xf32>
    %cst_18 = arith.constant 0.000000e+00 : f32
    %18 = vector.broadcast %cst_18 : f32 to vector<2x32xf32>
    %cst_19 = arith.constant dense<0.000000e+00> : vector<2x128xf32>
    %19 = tpu.matmul %17, %16, %cst_19 {dimension_numbers = #tpu.dot_dimension_numbers<[1], [0], [0], [1], [0, 0, 1, 1], [], []>} : vector<2x32xf32>, vector<32x128xf32>, vector<2x128xf32> -> vector<2x128xf32>
    %20 = arith.addf %15, %19 : vector<2x128xf32>
    %21 = arith.negf %20 : vector<2x128xf32>
    %22 = math.exp %21 : vector<2x128xf32>
    %cst_20 = arith.constant 1.000000e+00 : f32
    %23 = vector.broadcast %cst_20 : f32 to vector<2x128xf32>
    %24 = arith.addf %23, %22 : vector<2x128xf32>
    %25 = arith.divf %23, %24 : vector<2x128xf32>
    %26 = math.tanh %20 : vector<2x128xf32>
    %27 = vector.extract_strided_slice %25 {offsets = [0, 0], sizes = [2, 32], strides = [1, 1]} : vector<2x128xf32> to vector<2x32xf32>
    %28 = vector.extract_strided_slice %25 {offsets = [0, 32], sizes = [2, 32], strides = [1, 1]} : vector<2x128xf32> to vector<2x32xf32>
    %29 = vector.extract_strided_slice %26 {offsets = [0, 64], sizes = [2, 32], strides = [1, 1]} : vector<2x128xf32> to vector<2x32xf32>
    %30 = vector.extract_strided_slice %25 {offsets = [0, 96], sizes = [2, 32], strides = [1, 1]} : vector<2x128xf32> to vector<2x32xf32>
    %31 = arith.mulf %28, %18 : vector<2x32xf32>
    %32 = arith.mulf %27, %29 : vector<2x32xf32>
    %33 = arith.addf %31, %32 : vector<2x32xf32>
    %34 = math.tanh %33 : vector<2x32xf32>
    %35 = arith.mulf %30, %34 : vector<2x32xf32>
    %c0_21 = arith.constant 0 : index
    %c0_22 = arith.constant 0 : index
    %c0_23 = arith.constant 0 : index
    %36 = vector.load %arg9[%c0_21, %c0_22, %c0_23] : memref<8x2x32xf32, #tpu.memory_space<vmem>>, vector<1x2x32xf32>
    %37 = vector.shape_cast %36 : vector<1x2x32xf32> to vector<2x32xf32>
    %38 = vector.shape_cast %35 : vector<2x32xf32> to vector<1x2x32xf32>
    tpu.vector_store %arg9[%c0_21, %c0_22, %c0_23], %38 {strides = array<i32>} : memref<8x2x32xf32, #tpu.memory_space<vmem>>, vector<1x2x32xf32>,
    %cst_24 = arith.constant dense<0.000000e+00> : vector<2x128xf32>
    %39 = tpu.matmul %35, %16, %cst_24 {dimension_numbers = #tpu.dot_dimension_numbers<[1], [0], [0], [1], [0, 0, 1, 1], [], []>} : vector<2x32xf32>, vector<32x128xf32>, vector<2x128xf32> -> vector<2x128xf32>
    %40 = arith.addf %15, %39 : vector<2x128xf32>
    %41 = arith.negf %40 : vector<2x128xf32>
    %42 = math.exp %41 : vector<2x128xf32>
    %cst_25 = arith.constant 1.000000e+00 : f32
    %43 = vector.broadcast %cst_25 : f32 to vector<2x128xf32>
    %44 = arith.addf %43, %42 : vector<2x128xf32>
    %45 = arith.divf %43, %44 : vector<2x128xf32>
    %46 = math.tanh %40 : vector<2x128xf32>
    %47 = vector.extract_strided_slice %45 {offsets = [0, 0], sizes = [2, 32], strides = [1, 1]} : vector<2x128xf32> to vector<2x32xf32>
    %48 = vector.extract_strided_slice %45 {offsets = [0, 32], sizes = [2, 32], strides = [1, 1]} : vector<2x128xf32> to vector<2x32xf32>
    %49 = vector.extract_strided_slice %46 {offsets = [0, 64], sizes = [2, 32], strides = [1, 1]} : vector<2x128xf32> to vector<2x32xf32>
    %50 = vector.extract_strided_slice %45 {offsets = [0, 96], sizes = [2, 32], strides = [1, 1]} : vector<2x128xf32> to vector<2x32xf32>
    %51 = arith.mulf %48, %33 : vector<2x32xf32>
    %52 = arith.mulf %47, %49 : vector<2x32xf32>
    %53 = arith.addf %51, %52 : vector<2x32xf32>
    %54 = math.tanh %53 : vector<2x32xf32>
    %55 = arith.mulf %50, %54 : vector<2x32xf32>
    %c1 = arith.constant 1 : index
    %c0_26 = arith.constant 0 : index
    %c0_27 = arith.constant 0 : index
    %56 = vector.load %arg9[%c1, %c0_26, %c0_27] : memref<8x2x32xf32, #tpu.memory_space<vmem>>, vector<1x2x32xf32>
    %57 = vector.shape_cast %56 : vector<1x2x32xf32> to vector<2x32xf32>
    %58 = vector.shape_cast %55 : vector<2x32xf32> to vector<1x2x32xf32>
    tpu.vector_store %arg9[%c1, %c0_26, %c0_27], %58 {strides = array<i32>} : memref<8x2x32xf32, #tpu.memory_space<vmem>>, vector<1x2x32xf32>,
    %cst_28 = arith.constant dense<0.000000e+00> : vector<2x128xf32>
    %59 = tpu.matmul %55, %16, %cst_28 {dimension_numbers = #tpu.dot_dimension_numbers<[1], [0], [0], [1], [0, 0, 1, 1], [], []>} : vector<2x32xf32>, vector<32x128xf32>, vector<2x128xf32> -> vector<2x128xf32>
    %60 = arith.addf %15, %59 : vector<2x128xf32>
    %61 = arith.negf %60 : vector<2x128xf32>
    %62 = math.exp %61 : vector<2x128xf32>
    %cst_29 = arith.constant 1.000000e+00 : f32
    %63 = vector.broadcast %cst_29 : f32 to vector<2x128xf32>
    %64 = arith.addf %63, %62 : vector<2x128xf32>
    %65 = arith.divf %63, %64 : vector<2x128xf32>
    %66 = math.tanh %60 : vector<2x128xf32>
    %67 = vector.extract_strided_slice %65 {offsets = [0, 0], sizes = [2, 32], strides = [1, 1]} : vector<2x128xf32> to vector<2x32xf32>
    %68 = vector.extract_strided_slice %65 {offsets = [0, 32], sizes = [2, 32], strides = [1, 1]} : vector<2x128xf32> to vector<2x32xf32>
    %69 = vector.extract_strided_slice %66 {offsets = [0, 64], sizes = [2, 32], strides = [1, 1]} : vector<2x128xf32> to vector<2x32xf32>
    %70 = vector.extract_strided_slice %65 {offsets = [0, 96], sizes = [2, 32], strides = [1, 1]} : vector<2x128xf32> to vector<2x32xf32>
    %71 = arith.mulf %68, %53 : vector<2x32xf32>
    %72 = arith.mulf %67, %69 : vector<2x32xf32>
    %73 = arith.addf %71, %72 : vector<2x32xf32>
    %74 = math.tanh %73 : vector<2x32xf32>
    %75 = arith.mulf %70, %74 : vector<2x32xf32>
    %c2 = arith.constant 2 : index
    %c0_30 = arith.constant 0 : index
    %c0_31 = arith.constant 0 : index
    %76 = vector.load %arg9[%c2, %c0_30, %c0_31] : memref<8x2x32xf32, #tpu.memory_space<vmem>>, vector<1x2x32xf32>
    %77 = vector.shape_cast %76 : vector<1x2x32xf32> to vector<2x32xf32>
    %78 = vector.shape_cast %75 : vector<2x32xf32> to vector<1x2x32xf32>
    tpu.vector_store %arg9[%c2, %c0_30, %c0_31], %78 {strides = array<i32>} : memref<8x2x32xf32, #tpu.memory_space<vmem>>, vector<1x2x32xf32>,
    %cst_32 = arith.constant dense<0.000000e+00> : vector<2x128xf32>
    %79 = tpu.matmul %75, %16, %cst_32 {dimension_numbers = #tpu.dot_dimension_numbers<[1], [0], [0], [1], [0, 0, 1, 1], [], []>} : vector<2x32xf32>, vector<32x128xf32>, vector<2x128xf32> -> vector<2x128xf32>
    %80 = arith.addf %15, %79 : vector<2x128xf32>
    %81 = arith.negf %80 : vector<2x128xf32>
    %82 = math.exp %81 : vector<2x128xf32>
    %cst_33 = arith.constant 1.000000e+00 : f32
    %83 = vector.broadcast %cst_33 : f32 to vector<2x128xf32>
    %84 = arith.addf %83, %82 : vector<2x128xf32>
    %85 = arith.divf %83, %84 : vector<2x128xf32>
    %86 = math.tanh %80 : vector<2x128xf32>
    %87 = vector.extract_strided_slice %85 {offsets = [0, 0], sizes = [2, 32], strides = [1, 1]} : vector<2x128xf32> to vector<2x32xf32>
    %88 = vector.extract_strided_slice %85 {offsets = [0, 32], sizes = [2, 32], strides = [1, 1]} : vector<2x128xf32> to vector<2x32xf32>
    %89 = vector.extract_strided_slice %86 {offsets = [0, 64], sizes = [2, 32], strides = [1, 1]} : vector<2x128xf32> to vector<2x32xf32>
    %90 = vector.extract_strided_slice %85 {offsets = [0, 96], sizes = [2, 32], strides = [1, 1]} : vector<2x128xf32> to vector<2x32xf32>
    %91 = arith.mulf %88, %73 : vector<2x32xf32>
    %92 = arith.mulf %87, %89 : vector<2x32xf32>
    %93 = arith.addf %91, %92 : vector<2x32xf32>
    %94 = math.tanh %93 : vector<2x32xf32>
    %95 = arith.mulf %90, %94 : vector<2x32xf32>
    %c3 = arith.constant 3 : index
    %c0_34 = arith.constant 0 : index
    %c0_35 = arith.constant 0 : index
    %96 = vector.load %arg9[%c3, %c0_34, %c0_35] : memref<8x2x32xf32, #tpu.memory_space<vmem>>, vector<1x2x32xf32>
    %97 = vector.shape_cast %96 : vector<1x2x32xf32> to vector<2x32xf32>
    %98 = vector.shape_cast %95 : vector<2x32xf32> to vector<1x2x32xf32>
    tpu.vector_store %arg9[%c3, %c0_34, %c0_35], %98 {strides = array<i32>} : memref<8x2x32xf32, #tpu.memory_space<vmem>>, vector<1x2x32xf32>,
    %cst_36 = arith.constant dense<0.000000e+00> : vector<2x128xf32>
    %99 = tpu.matmul %95, %16, %cst_36 {dimension_numbers = #tpu.dot_dimension_numbers<[1], [0], [0], [1], [0, 0, 1, 1], [], []>} : vector<2x32xf32>, vector<32x128xf32>, vector<2x128xf32> -> vector<2x128xf32>
    %100 = arith.addf %15, %99 : vector<2x128xf32>
    %101 = arith.negf %100 : vector<2x128xf32>
    %102 = math.exp %101 : vector<2x128xf32>
    %cst_37 = arith.constant 1.000000e+00 : f32
    %103 = vector.broadcast %cst_37 : f32 to vector<2x128xf32>
    %104 = arith.addf %103, %102 : vector<2x128xf32>
    %105 = arith.divf %103, %104 : vector<2x128xf32>
    %106 = math.tanh %100 : vector<2x128xf32>
    %107 = vector.extract_strided_slice %105 {offsets = [0, 0], sizes = [2, 32], strides = [1, 1]} : vector<2x128xf32> to vector<2x32xf32>
    %108 = vector.extract_strided_slice %105 {offsets = [0, 32], sizes = [2, 32], strides = [1, 1]} : vector<2x128xf32> to vector<2x32xf32>
    %109 = vector.extract_strided_slice %106 {offsets = [0, 64], sizes = [2, 32], strides = [1, 1]} : vector<2x128xf32> to vector<2x32xf32>
    %110 = vector.extract_strided_slice %105 {offsets = [0, 96], sizes = [2, 32], strides = [1, 1]} : vector<2x128xf32> to vector<2x32xf32>
    %111 = arith.mulf %108, %93 : vector<2x32xf32>
    %112 = arith.mulf %107, %109 : vector<2x32xf32>
    %113 = arith.addf %111, %112 : vector<2x32xf32>
    %114 = math.tanh %113 : vector<2x32xf32>
    %115 = arith.mulf %110, %114 : vector<2x32xf32>
    %c4 = arith.constant 4 : index
    %c0_38 = arith.constant 0 : index
    %c0_39 = arith.constant 0 : index
    %116 = vector.load %arg9[%c4, %c0_38, %c0_39] : memref<8x2x32xf32, #tpu.memory_space<vmem>>, vector<1x2x32xf32>
    %117 = vector.shape_cast %116 : vector<1x2x32xf32> to vector<2x32xf32>
    %118 = vector.shape_cast %115 : vector<2x32xf32> to vector<1x2x32xf32>
    tpu.vector_store %arg9[%c4, %c0_38, %c0_39], %118 {strides = array<i32>} : memref<8x2x32xf32, #tpu.memory_space<vmem>>, vector<1x2x32xf32>,
    %cst_40 = arith.constant dense<0.000000e+00> : vector<2x128xf32>
    %119 = tpu.matmul %115, %16, %cst_40 {dimension_numbers = #tpu.dot_dimension_numbers<[1], [0], [0], [1], [0, 0, 1, 1], [], []>} : vector<2x32xf32>, vector<32x128xf32>, vector<2x128xf32> -> vector<2x128xf32>
    %120 = arith.addf %15, %119 : vector<2x128xf32>
    %121 = arith.negf %120 : vector<2x128xf32>
    %122 = math.exp %121 : vector<2x128xf32>
    %cst_41 = arith.constant 1.000000e+00 : f32
    %123 = vector.broadcast %cst_41 : f32 to vector<2x128xf32>
    %124 = arith.addf %123, %122 : vector<2x128xf32>
    %125 = arith.divf %123, %124 : vector<2x128xf32>
    %126 = math.tanh %120 : vector<2x128xf32>
    %127 = vector.extract_strided_slice %125 {offsets = [0, 0], sizes = [2, 32], strides = [1, 1]} : vector<2x128xf32> to vector<2x32xf32>
    %128 = vector.extract_strided_slice %125 {offsets = [0, 32], sizes = [2, 32], strides = [1, 1]} : vector<2x128xf32> to vector<2x32xf32>
    %129 = vector.extract_strided_slice %126 {offsets = [0, 64], sizes = [2, 32], strides = [1, 1]} : vector<2x128xf32> to vector<2x32xf32>
    %130 = vector.extract_strided_slice %125 {offsets = [0, 96], sizes = [2, 32], strides = [1, 1]} : vector<2x128xf32> to vector<2x32xf32>
    %131 = arith.mulf %128, %113 : vector<2x32xf32>
    %132 = arith.mulf %127, %129 : vector<2x32xf32>
    %133 = arith.addf %131, %132 : vector<2x32xf32>
    %134 = math.tanh %133 : vector<2x32xf32>
    %135 = arith.mulf %130, %134 : vector<2x32xf32>
    %c5 = arith.constant 5 : index
    %c0_42 = arith.constant 0 : index
    %c0_43 = arith.constant 0 : index
    %136 = vector.load %arg9[%c5, %c0_42, %c0_43] : memref<8x2x32xf32, #tpu.memory_space<vmem>>, vector<1x2x32xf32>
    %137 = vector.shape_cast %136 : vector<1x2x32xf32> to vector<2x32xf32>
    %138 = vector.shape_cast %135 : vector<2x32xf32> to vector<1x2x32xf32>
    tpu.vector_store %arg9[%c5, %c0_42, %c0_43], %138 {strides = array<i32>} : memref<8x2x32xf32, #tpu.memory_space<vmem>>, vector<1x2x32xf32>,
    %cst_44 = arith.constant dense<0.000000e+00> : vector<2x128xf32>
    %139 = tpu.matmul %135, %16, %cst_44 {dimension_numbers = #tpu.dot_dimension_numbers<[1], [0], [0], [1], [0, 0, 1, 1], [], []>} : vector<2x32xf32>, vector<32x128xf32>, vector<2x128xf32> -> vector<2x128xf32>
    %140 = arith.addf %15, %139 : vector<2x128xf32>
    %141 = arith.negf %140 : vector<2x128xf32>
    %142 = math.exp %141 : vector<2x128xf32>
    %cst_45 = arith.constant 1.000000e+00 : f32
    %143 = vector.broadcast %cst_45 : f32 to vector<2x128xf32>
    %144 = arith.addf %143, %142 : vector<2x128xf32>
    %145 = arith.divf %143, %144 : vector<2x128xf32>
    %146 = math.tanh %140 : vector<2x128xf32>
    %147 = vector.extract_strided_slice %145 {offsets = [0, 0], sizes = [2, 32], strides = [1, 1]} : vector<2x128xf32> to vector<2x32xf32>
    %148 = vector.extract_strided_slice %145 {offsets = [0, 32], sizes = [2, 32], strides = [1, 1]} : vector<2x128xf32> to vector<2x32xf32>
    %149 = vector.extract_strided_slice %146 {offsets = [0, 64], sizes = [2, 32], strides = [1, 1]} : vector<2x128xf32> to vector<2x32xf32>
    %150 = vector.extract_strided_slice %145 {offsets = [0, 96], sizes = [2, 32], strides = [1, 1]} : vector<2x128xf32> to vector<2x32xf32>
    %151 = arith.mulf %148, %133 : vector<2x32xf32>
    %152 = arith.mulf %147, %149 : vector<2x32xf32>
    %153 = arith.addf %151, %152 : vector<2x32xf32>
    %154 = math.tanh %153 : vector<2x32xf32>
    %155 = arith.mulf %150, %154 : vector<2x32xf32>
    %c6 = arith.constant 6 : index
    %c0_46 = arith.constant 0 : index
    %c0_47 = arith.constant 0 : index
    %156 = vector.load %arg9[%c6, %c0_46, %c0_47] : memref<8x2x32xf32, #tpu.memory_space<vmem>>, vector<1x2x32xf32>
    %157 = vector.shape_cast %156 : vector<1x2x32xf32> to vector<2x32xf32>
    %158 = vector.shape_cast %155 : vector<2x32xf32> to vector<1x2x32xf32>
    tpu.vector_store %arg9[%c6, %c0_46, %c0_47], %158 {strides = array<i32>} : memref<8x2x32xf32, #tpu.memory_space<vmem>>, vector<1x2x32xf32>,
    %cst_48 = arith.constant dense<0.000000e+00> : vector<2x128xf32>
    %159 = tpu.matmul %155, %16, %cst_48 {dimension_numbers = #tpu.dot_dimension_numbers<[1], [0], [0], [1], [0, 0, 1, 1], [], []>} : vector<2x32xf32>, vector<32x128xf32>, vector<2x128xf32> -> vector<2x128xf32>
    %160 = arith.addf %15, %159 : vector<2x128xf32>
    %161 = arith.negf %160 : vector<2x128xf32>
    %162 = math.exp %161 : vector<2x128xf32>
    %cst_49 = arith.constant 1.000000e+00 : f32
    %163 = vector.broadcast %cst_49 : f32 to vector<2x128xf32>
    %164 = arith.addf %163, %162 : vector<2x128xf32>
    %165 = arith.divf %163, %164 : vector<2x128xf32>
    %166 = math.tanh %160 : vector<2x128xf32>
    %167 = vector.extract_strided_slice %165 {offsets = [0, 0], sizes = [2, 32], strides = [1, 1]} : vector<2x128xf32> to vector<2x32xf32>
    %168 = vector.extract_strided_slice %165 {offsets = [0, 32], sizes = [2, 32], strides = [1, 1]} : vector<2x128xf32> to vector<2x32xf32>
    %169 = vector.extract_strided_slice %166 {offsets = [0, 64], sizes = [2, 32], strides = [1, 1]} : vector<2x128xf32> to vector<2x32xf32>
    %170 = vector.extract_strided_slice %165 {offsets = [0, 96], sizes = [2, 32], strides = [1, 1]} : vector<2x128xf32> to vector<2x32xf32>
    %171 = arith.mulf %168, %153 : vector<2x32xf32>
    %172 = arith.mulf %167, %169 : vector<2x32xf32>
    %173 = arith.addf %171, %172 : vector<2x32xf32>
    %174 = math.tanh %173 : vector<2x32xf32>
    %175 = arith.mulf %170, %174 : vector<2x32xf32>
    %c7 = arith.constant 7 : index
    %c0_50 = arith.constant 0 : index
    %c0_51 = arith.constant 0 : index
    %176 = vector.load %arg9[%c7, %c0_50, %c0_51] : memref<8x2x32xf32, #tpu.memory_space<vmem>>, vector<1x2x32xf32>
    %177 = vector.shape_cast %176 : vector<1x2x32xf32> to vector<2x32xf32>
    %178 = vector.shape_cast %175 : vector<2x32xf32> to vector<1x2x32xf32>
    tpu.vector_store %arg9[%c7, %c0_50, %c0_51], %178 {strides = array<i32>} : memref<8x2x32xf32, #tpu.memory_space<vmem>>, vector<1x2x32xf32>,
    return
  }
  func.func @transform_0(%arg0: i32) -> (i32, i32) {
    %c0_i32 = arith.constant 0 : i32
    %c0_i32_0 = arith.constant 0 : i32
    %c0_i32_1 = arith.constant 0 : i32
    return %c0_i32, %c0_i32_0 : i32, i32
  }
  func.func @transform_1(%arg0: i32) -> (i32, i32) {
    %c0_i32 = arith.constant 0 : i32
    %c0_i32_0 = arith.constant 0 : i32
    %c0_i32_1 = arith.constant 0 : i32
    return %c0_i32, %c0_i32_0 : i32, i32
  }
  func.func @transform_2(%arg0: i32) -> (i32, i32) {
    %c0_i32 = arith.constant 0 : i32
    %c0_i32_0 = arith.constant 0 : i32
    %c0_i32_1 = arith.constant 0 : i32
    return %c0_i32, %c0_i32_0 : i32, i32
  }
  func.func @transform_3(%arg0: i32) -> (i32, i32) {
    %c0_i32 = arith.constant 0 : i32
    %c0_i32_0 = arith.constant 0 : i32
    %c0_i32_1 = arith.constant 0 : i32
    return %c0_i32, %c0_i32_0 : i32, i32
  }
  func.func @transform_4(%arg0: i32) -> (i32, i32) {
    %c0_i32 = arith.constant 0 : i32
    %c0_i32_0 = arith.constant 0 : i32
    %c0_i32_1 = arith.constant 0 : i32
    return %c0_i32, %c0_i32_0 : i32, i32
  }
  func.func @transform_5(%arg0: i32) -> (i32, i32) {
    %c0_i32 = arith.constant 0 : i32
    %c0_i32_0 = arith.constant 0 : i32
    %c0_i32_1 = arith.constant 0 : i32
    return %c0_i32, %c0_i32_0 : i32, i32
  }
  func.func @transform_6(%arg0: i32) -> (i32, i32) {
    %c0_i32 = arith.constant 0 : i32
    %c0_i32_0 = arith.constant 0 : i32
    %c0_i32_1 = arith.constant 0 : i32
    return %c0_i32, %c0_i32_0 : i32, i32
  }
  func.func @transform_7(%arg0: i32) -> (i32, i32) {
    %c0_i32 = arith.constant 0 : i32
    %c0_i32_0 = arith.constant 0 : i32
    %c0_i32_1 = arith.constant 0 : i32
    return %c0_i32, %c0_i32_0 : i32, i32
  }
  func.func @transform_8(%arg0: i32) -> (i32, i32, i32) {
    %c0_i32 = arith.constant 0 : i32
    %c0_i32_0 = arith.constant 0 : i32
    %c0_i32_1 = arith.constant 0 : i32
    %c0_i32_2 = arith.constant 0 : i32
    return %c0_i32, %c0_i32_0, %c0_i32_1 : i32, i32, i32
  }
}

module attributes {stable_mosaic.version = 11 : i64} {
  func.func @kernel(%arg0: i32, %arg1: memref<1x8x32xf32, #tpu.memory_space<vmem>>, %arg2: memref<1x8x32xf32, #tpu.memory_space<vmem>>, %arg3: memref<32x96xf32, #tpu.memory_space<vmem>>, %arg4: memref<1x96xf32, #tpu.memory_space<vmem>>, %arg5: memref<32x32xf32, #tpu.memory_space<vmem>>, %arg6: memref<1x32xf32, #tpu.memory_space<vmem>>, %arg7: memref<32x32xf32, #tpu.memory_space<vmem>>, %arg8: memref<1x32xf32, #tpu.memory_space<vmem>>, %arg9: memref<32x64xf32, #tpu.memory_space<vmem>>, %arg10: memref<1x64xf32, #tpu.memory_space<vmem>>, %arg11: memref<32x32xf32, #tpu.memory_space<vmem>>, %arg12: memref<1x32xf32, #tpu.memory_space<vmem>>, %arg13: memref<32x64xf32, #tpu.memory_space<vmem>>, %arg14: memref<1x64xf32, #tpu.memory_space<vmem>>, %arg15: memref<64x32xf32, #tpu.memory_space<vmem>>, %arg16: memref<1x32xf32, #tpu.memory_space<vmem>>, %arg17: memref<1x32xf32, #tpu.memory_space<vmem>>, %arg18: memref<1x32xf32, #tpu.memory_space<vmem>>, %arg19: memref<1x32xf32, #tpu.memory_space<vmem>>, %arg20: memref<1x32xf32, #tpu.memory_space<vmem>>, %arg21: memref<1x32xf32, #tpu.memory_space<vmem>>, %arg22: memref<1x32xf32, #tpu.memory_space<vmem>>, %arg23: memref<1x8x32xf32, #tpu.memory_space<vmem>>) attributes {dimension_semantics = [#tpu.dimension_semantics<parallel>], iteration_bounds = array<i64: 2>, scalar_prefetch = 0 : i64, scratch_operands = 0 : i64, tpu.core_type = #tpu.core_type<tc>, window_params = [{transform_indices = @transform_0, window_bounds = array<i64: 1, 8, 32>}, {transform_indices = @transform_1, window_bounds = array<i64: 1, 8, 32>}, {pipeline_mode = #tpu.pipeline_mode<synchronous>, transform_indices = @transform_2, window_bounds = array<i64: 32, 96>}, {pipeline_mode = #tpu.pipeline_mode<synchronous>, transform_indices = @transform_3, window_bounds = array<i64: 1, 96>}, {pipeline_mode = #tpu.pipeline_mode<synchronous>, transform_indices = @transform_4, window_bounds = array<i64: 32, 32>}, {pipeline_mode = #tpu.pipeline_mode<synchronous>, transform_indices = @transform_5, window_bounds = array<i64: 1, 32>}, {pipeline_mode = #tpu.pipeline_mode<synchronous>, transform_indices = @transform_6, window_bounds = array<i64: 32, 32>}, {pipeline_mode = #tpu.pipeline_mode<synchronous>, transform_indices = @transform_7, window_bounds = array<i64: 1, 32>}, {pipeline_mode = #tpu.pipeline_mode<synchronous>, transform_indices = @transform_8, window_bounds = array<i64: 32, 64>}, {pipeline_mode = #tpu.pipeline_mode<synchronous>, transform_indices = @transform_9, window_bounds = array<i64: 1, 64>}, {pipeline_mode = #tpu.pipeline_mode<synchronous>, transform_indices = @transform_10, window_bounds = array<i64: 32, 32>}, {pipeline_mode = #tpu.pipeline_mode<synchronous>, transform_indices = @transform_11, window_bounds = array<i64: 1, 32>}, {pipeline_mode = #tpu.pipeline_mode<synchronous>, transform_indices = @transform_12, window_bounds = array<i64: 32, 64>}, {pipeline_mode = #tpu.pipeline_mode<synchronous>, transform_indices = @transform_13, window_bounds = array<i64: 1, 64>}, {pipeline_mode = #tpu.pipeline_mode<synchronous>, transform_indices = @transform_14, window_bounds = array<i64: 64, 32>}, {pipeline_mode = #tpu.pipeline_mode<synchronous>, transform_indices = @transform_15, window_bounds = array<i64: 1, 32>}, {pipeline_mode = #tpu.pipeline_mode<synchronous>, transform_indices = @transform_16, window_bounds = array<i64: 1, 32>}, {pipeline_mode = #tpu.pipeline_mode<synchronous>, transform_indices = @transform_17, window_bounds = array<i64: 1, 32>}, {pipeline_mode = #tpu.pipeline_mode<synchronous>, transform_indices = @transform_18, window_bounds = array<i64: 1, 32>}, {pipeline_mode = #tpu.pipeline_mode<synchronous>, transform_indices = @transform_19, window_bounds = array<i64: 1, 32>}, {pipeline_mode = #tpu.pipeline_mode<synchronous>, transform_indices = @transform_20, window_bounds = array<i64: 1, 32>}, {pipeline_mode = #tpu.pipeline_mode<synchronous>, transform_indices = @transform_21, window_bounds = array<i64: 1, 32>}, {transform_indices = @transform_22, window_bounds = array<i64: 1, 8, 32>}]} {
    %c0 = arith.constant 0 : index
    %c0_0 = arith.constant 0 : index
    %c0_1 = arith.constant 0 : index
    %0 = vector.load %arg1[%c0, %c0_0, %c0_1] : memref<1x8x32xf32, #tpu.memory_space<vmem>>, vector<1x8x32xf32>
    %1 = vector.shape_cast %0 : vector<1x8x32xf32> to vector<8x32xf32>
    %c0_2 = arith.constant 0 : index
    %c0_3 = arith.constant 0 : index
    %c0_4 = arith.constant 0 : index
    %2 = vector.load %arg2[%c0_2, %c0_3, %c0_4] : memref<1x8x32xf32, #tpu.memory_space<vmem>>, vector<1x8x32xf32>
    %3 = vector.shape_cast %2 : vector<1x8x32xf32> to vector<8x32xf32>
    %c0_5 = arith.constant 0 : index
    %c0_6 = arith.constant 0 : index
    %4 = vector.load %arg3[%c0_5, %c0_6] : memref<32x96xf32, #tpu.memory_space<vmem>>, vector<32x96xf32>
    %cst = arith.constant dense<0.000000e+00> : vector<8x96xf32>
    %5 = tpu.matmul %1, %4, %cst {dimension_numbers = #tpu.dot_dimension_numbers<[1], [0], [0], [1], [0, 0, 1, 1], [], []>} : vector<8x32xf32>, vector<32x96xf32>, vector<8x96xf32> -> vector<8x96xf32>
    %c0_7 = arith.constant 0 : index
    %c0_8 = arith.constant 0 : index
    %6 = vector.load %arg4[%c0_7, %c0_8] : memref<1x96xf32, #tpu.memory_space<vmem>>, vector<1x96xf32>
    %7 = vector.broadcast %6 : vector<1x96xf32> to vector<8x96xf32>
    %8 = arith.addf %5, %7 : vector<8x96xf32>
    %9 = vector.extract_strided_slice %8 {offsets = [0, 0], sizes = [8, 32], strides = [1, 1]} : vector<8x96xf32> to vector<8x32xf32>
    %10 = vector.extract_strided_slice %8 {offsets = [0, 32], sizes = [8, 32], strides = [1, 1]} : vector<8x96xf32> to vector<8x32xf32>
    %11 = vector.extract_strided_slice %8 {offsets = [0, 64], sizes = [8, 32], strides = [1, 1]} : vector<8x96xf32> to vector<8x32xf32>
    %12 = vector.extract_strided_slice %9 {offsets = [0, 0], sizes = [8, 8], strides = [1, 1]} : vector<8x32xf32> to vector<8x8xf32>
    %13 = vector.extract_strided_slice %9 {offsets = [0, 8], sizes = [8, 8], strides = [1, 1]} : vector<8x32xf32> to vector<8x8xf32>
    %14 = vector.extract_strided_slice %9 {offsets = [0, 16], sizes = [8, 8], strides = [1, 1]} : vector<8x32xf32> to vector<8x8xf32>
    %15 = vector.extract_strided_slice %9 {offsets = [0, 24], sizes = [8, 8], strides = [1, 1]} : vector<8x32xf32> to vector<8x8xf32>
    %16 = vector.shape_cast %12 : vector<8x8xf32> to vector<1x8x8xf32>
    %17 = vector.shape_cast %13 : vector<8x8xf32> to vector<1x8x8xf32>
    %18 = vector.shape_cast %14 : vector<8x8xf32> to vector<1x8x8xf32>
    %19 = vector.shape_cast %15 : vector<8x8xf32> to vector<1x8x8xf32>
    %20 = tpu.concatenate %16, %17, %18, %19 in 0 : vector<1x8x8xf32>, vector<1x8x8xf32>, vector<1x8x8xf32>, vector<1x8x8xf32> -> vector<4x8x8xf32>
    %21 = vector.extract_strided_slice %10 {offsets = [0, 0], sizes = [8, 8], strides = [1, 1]} : vector<8x32xf32> to vector<8x8xf32>
    %22 = vector.extract_strided_slice %10 {offsets = [0, 8], sizes = [8, 8], strides = [1, 1]} : vector<8x32xf32> to vector<8x8xf32>
    %23 = vector.extract_strided_slice %10 {offsets = [0, 16], sizes = [8, 8], strides = [1, 1]} : vector<8x32xf32> to vector<8x8xf32>
    %24 = vector.extract_strided_slice %10 {offsets = [0, 24], sizes = [8, 8], strides = [1, 1]} : vector<8x32xf32> to vector<8x8xf32>
    %25 = vector.shape_cast %21 : vector<8x8xf32> to vector<1x8x8xf32>
    %26 = vector.shape_cast %22 : vector<8x8xf32> to vector<1x8x8xf32>
    %27 = vector.shape_cast %23 : vector<8x8xf32> to vector<1x8x8xf32>
    %28 = vector.shape_cast %24 : vector<8x8xf32> to vector<1x8x8xf32>
    %29 = tpu.concatenate %25, %26, %27, %28 in 0 : vector<1x8x8xf32>, vector<1x8x8xf32>, vector<1x8x8xf32>, vector<1x8x8xf32> -> vector<4x8x8xf32>
    %30 = vector.extract_strided_slice %11 {offsets = [0, 0], sizes = [8, 8], strides = [1, 1]} : vector<8x32xf32> to vector<8x8xf32>
    %31 = vector.extract_strided_slice %11 {offsets = [0, 8], sizes = [8, 8], strides = [1, 1]} : vector<8x32xf32> to vector<8x8xf32>
    %32 = vector.extract_strided_slice %11 {offsets = [0, 16], sizes = [8, 8], strides = [1, 1]} : vector<8x32xf32> to vector<8x8xf32>
    %33 = vector.extract_strided_slice %11 {offsets = [0, 24], sizes = [8, 8], strides = [1, 1]} : vector<8x32xf32> to vector<8x8xf32>
    %34 = vector.shape_cast %30 : vector<8x8xf32> to vector<1x8x8xf32>
    %35 = vector.shape_cast %31 : vector<8x8xf32> to vector<1x8x8xf32>
    %36 = vector.shape_cast %32 : vector<8x8xf32> to vector<1x8x8xf32>
    %37 = vector.shape_cast %33 : vector<8x8xf32> to vector<1x8x8xf32>
    %38 = tpu.concatenate %34, %35, %36, %37 in 0 : vector<1x8x8xf32>, vector<1x8x8xf32>, vector<1x8x8xf32>, vector<1x8x8xf32> -> vector<4x8x8xf32>
    "tpu.trace_start"() <{level = 10 : i32, message = "hqd,hkd->hqk"}> : () -> ()
    %cst_9 = arith.constant dense<0.000000e+00> : vector<4x8x8xf32>
    %39 = tpu.matmul %20, %29, %cst_9 {dimension_numbers = #tpu.dot_dimension_numbers<[2], [2], [1], [1], [0, 0, 0, 1, 1, 1], [0], [0]>} : vector<4x8x8xf32>, vector<4x8x8xf32>, vector<4x8x8xf32> -> vector<4x8x8xf32>
    "tpu.trace_stop"() : () -> ()
    %cst_10 = arith.constant 0.353553385 : f32
    %40 = vector.broadcast %cst_10 : f32 to vector<4x8x8xf32>
    %41 = arith.mulf %39, %40 : vector<4x8x8xf32>
    %cst_11 = arith.constant dense<0xFF800000> : vector<4x8xf32>
    %42 = vector.multi_reduction <maximumf>, %41, %cst_11 [2] : vector<4x8x8xf32> to vector<4x8xf32>
    %43 = vector.shape_cast %42 : vector<4x8xf32> to vector<4x8x1xf32>
    %44 = vector.broadcast %43 : vector<4x8x1xf32> to vector<4x8x8xf32>
    %45 = arith.subf %41, %44 : vector<4x8x8xf32>
    %46 = math.exp %45 : vector<4x8x8xf32>
    %cst_12 = arith.constant dense<0.000000e+00> : vector<4x8xf32>
    %47 = vector.multi_reduction <add>, %46, %cst_12 [2] : vector<4x8x8xf32> to vector<4x8xf32>
    %48 = vector.shape_cast %47 : vector<4x8xf32> to vector<4x8x1xf32>
    %49 = tpu.reciprocal %48 {approx = true} : vector<4x8x1xf32> -> vector<4x8x1xf32>
    %50 = vector.broadcast %49 : vector<4x8x1xf32> to vector<4x8x8xf32>
    %51 = arith.mulf %46, %50 : vector<4x8x8xf32>
    "tpu.trace_start"() <{level = 10 : i32, message = "hqk,hkd->hqd"}> : () -> ()
    %cst_13 = arith.constant dense<0.000000e+00> : vector<4x8x8xf32>
    %52 = tpu.matmul %51, %38, %cst_13 {dimension_numbers = #tpu.dot_dimension_numbers<[2], [1], [1], [2], [0, 0, 0, 1, 1, 2], [0], [0]>} : vector<4x8x8xf32>, vector<4x8x8xf32>, vector<4x8x8xf32> -> vector<4x8x8xf32>
    "tpu.trace_stop"() : () -> ()
    %53 = vector.extract_strided_slice %52 {offsets = [0, 0, 0], sizes = [1, 8, 8], strides = [1, 1, 1]} : vector<4x8x8xf32> to vector<1x8x8xf32>
    %54 = vector.shape_cast %53 : vector<1x8x8xf32> to vector<8x8xf32>
    %55 = vector.extract_strided_slice %52 {offsets = [1, 0, 0], sizes = [1, 8, 8], strides = [1, 1, 1]} : vector<4x8x8xf32> to vector<1x8x8xf32>
    %56 = vector.shape_cast %55 : vector<1x8x8xf32> to vector<8x8xf32>
    %57 = vector.extract_strided_slice %52 {offsets = [2, 0, 0], sizes = [1, 8, 8], strides = [1, 1, 1]} : vector<4x8x8xf32> to vector<1x8x8xf32>
    %58 = vector.shape_cast %57 : vector<1x8x8xf32> to vector<8x8xf32>
    %59 = vector.extract_strided_slice %52 {offsets = [3, 0, 0], sizes = [1, 8, 8], strides = [1, 1, 1]} : vector<4x8x8xf32> to vector<1x8x8xf32>
    %60 = vector.shape_cast %59 : vector<1x8x8xf32> to vector<8x8xf32>
    %61 = tpu.concatenate %54, %56, %58, %60 in 1 : vector<8x8xf32>, vector<8x8xf32>, vector<8x8xf32>, vector<8x8xf32> -> vector<8x32xf32>
    %c0_14 = arith.constant 0 : index
    %c0_15 = arith.constant 0 : index
    %62 = vector.load %arg5[%c0_14, %c0_15] : memref<32x32xf32, #tpu.memory_space<vmem>>, vector<32x32xf32>
    %cst_16 = arith.constant dense<0.000000e+00> : vector<8x32xf32>
    %63 = tpu.matmul %61, %62, %cst_16 {dimension_numbers = #tpu.dot_dimension_numbers<[1], [0], [0], [1], [0, 0, 1, 1], [], []>} : vector<8x32xf32>, vector<32x32xf32>, vector<8x32xf32> -> vector<8x32xf32>
    %c0_17 = arith.constant 0 : index
    %c0_18 = arith.constant 0 : index
    %64 = vector.load %arg6[%c0_17, %c0_18] : memref<1x32xf32, #tpu.memory_space<vmem>>, vector<1x32xf32>
    %65 = vector.broadcast %64 : vector<1x32xf32> to vector<8x32xf32>
    %66 = arith.addf %63, %65 : vector<8x32xf32>
    %67 = arith.addf %1, %66 : vector<8x32xf32>
    %c0_19 = arith.constant 0 : index
    %c0_20 = arith.constant 0 : index
    %68 = vector.load %arg17[%c0_19, %c0_20] : memref<1x32xf32, #tpu.memory_space<vmem>>, vector<1x32xf32>
    %c0_21 = arith.constant 0 : index
    %c0_22 = arith.constant 0 : index
    %69 = vector.load %arg18[%c0_21, %c0_22] : memref<1x32xf32, #tpu.memory_space<vmem>>, vector<1x32xf32>
    %cst_23 = arith.constant dense<0.000000e+00> : vector<8xf32>
    %70 = vector.multi_reduction <add>, %67, %cst_23 [1] : vector<8x32xf32> to vector<8xf32>
    %71 = vector.shape_cast %70 : vector<8xf32> to vector<8x1xf32>
    %cst_24 = arith.constant 3.200000e+01 : f32
    %72 = vector.broadcast %cst_24 : f32 to vector<8x1xf32>
    %73 = arith.divf %71, %72 : vector<8x1xf32>
    %74 = vector.broadcast %73 : vector<8x1xf32> to vector<8x32xf32>
    %75 = arith.subf %67, %74 : vector<8x32xf32>
    %76 = arith.mulf %75, %75 : vector<8x32xf32>
    %cst_25 = arith.constant dense<0.000000e+00> : vector<8xf32>
    %77 = vector.multi_reduction <add>, %76, %cst_25 [1] : vector<8x32xf32> to vector<8xf32>
    %78 = vector.shape_cast %77 : vector<8xf32> to vector<8x1xf32>
    %cst_26 = arith.constant 3.200000e+01 : f32
    %79 = vector.broadcast %cst_26 : f32 to vector<8x1xf32>
    %80 = arith.divf %78, %79 : vector<8x1xf32>
    %81 = vector.broadcast %73 : vector<8x1xf32> to vector<8x32xf32>
    %82 = arith.subf %67, %81 : vector<8x32xf32>
    %cst_27 = arith.constant 9.99999974E-6 : f32
    %83 = vector.broadcast %cst_27 : f32 to vector<8x1xf32>
    %84 = arith.addf %80, %83 : vector<8x1xf32>
    %85 = math.rsqrt %84 : vector<8x1xf32>
    %86 = vector.broadcast %85 : vector<8x1xf32> to vector<8x32xf32>
    %87 = arith.mulf %82, %86 : vector<8x32xf32>
    %88 = vector.broadcast %68 : vector<1x32xf32> to vector<8x32xf32>
    %89 = arith.mulf %87, %88 : vector<8x32xf32>
    %90 = vector.broadcast %69 : vector<1x32xf32> to vector<8x32xf32>
    %91 = arith.addf %89, %90 : vector<8x32xf32>
    %c0_28 = arith.constant 0 : index
    %c0_29 = arith.constant 0 : index
    %92 = vector.load %arg7[%c0_28, %c0_29] : memref<32x32xf32, #tpu.memory_space<vmem>>, vector<32x32xf32>
    %cst_30 = arith.constant dense<0.000000e+00> : vector<8x32xf32>
    %93 = tpu.matmul %91, %92, %cst_30 {dimension_numbers = #tpu.dot_dimension_numbers<[1], [0], [0], [1], [0, 0, 1, 1], [], []>} : vector<8x32xf32>, vector<32x32xf32>, vector<8x32xf32> -> vector<8x32xf32>
    %c0_31 = arith.constant 0 : index
    %c0_32 = arith.constant 0 : index
    %94 = vector.load %arg8[%c0_31, %c0_32] : memref<1x32xf32, #tpu.memory_space<vmem>>, vector<1x32xf32>
    %95 = vector.broadcast %94 : vector<1x32xf32> to vector<8x32xf32>
    %96 = arith.addf %93, %95 : vector<8x32xf32>
    %c0_33 = arith.constant 0 : index
    %c0_34 = arith.constant 0 : index
    %97 = vector.load %arg9[%c0_33, %c0_34] : memref<32x64xf32, #tpu.memory_space<vmem>>, vector<32x64xf32>
    %cst_35 = arith.constant dense<0.000000e+00> : vector<8x64xf32>
    %98 = tpu.matmul %3, %97, %cst_35 {dimension_numbers = #tpu.dot_dimension_numbers<[1], [0], [0], [1], [0, 0, 1, 1], [], []>} : vector<8x32xf32>, vector<32x64xf32>, vector<8x64xf32> -> vector<8x64xf32>
    %c0_36 = arith.constant 0 : index
    %c0_37 = arith.constant 0 : index
    %99 = vector.load %arg10[%c0_36, %c0_37] : memref<1x64xf32, #tpu.memory_space<vmem>>, vector<1x64xf32>
    %100 = vector.broadcast %99 : vector<1x64xf32> to vector<8x64xf32>
    %101 = arith.addf %98, %100 : vector<8x64xf32>
    %102 = vector.extract_strided_slice %101 {offsets = [0, 0], sizes = [8, 32], strides = [1, 1]} : vector<8x64xf32> to vector<8x32xf32>
    %103 = vector.extract_strided_slice %101 {offsets = [0, 32], sizes = [8, 32], strides = [1, 1]} : vector<8x64xf32> to vector<8x32xf32>
    %104 = vector.extract_strided_slice %96 {offsets = [0, 0], sizes = [8, 8], strides = [1, 1]} : vector<8x32xf32> to vector<8x8xf32>
    %105 = vector.extract_strided_slice %96 {offsets = [0, 8], sizes = [8, 8], strides = [1, 1]} : vector<8x32xf32> to vector<8x8xf32>
    %106 = vector.extract_strided_slice %96 {offsets = [0, 16], sizes = [8, 8], strides = [1, 1]} : vector<8x32xf32> to vector<8x8xf32>
    %107 = vector.extract_strided_slice %96 {offsets = [0, 24], sizes = [8, 8], strides = [1, 1]} : vector<8x32xf32> to vector<8x8xf32>
    %108 = vector.shape_cast %104 : vector<8x8xf32> to vector<1x8x8xf32>
    %109 = vector.shape_cast %105 : vector<8x8xf32> to vector<1x8x8xf32>
    %110 = vector.shape_cast %106 : vector<8x8xf32> to vector<1x8x8xf32>
    %111 = vector.shape_cast %107 : vector<8x8xf32> to vector<1x8x8xf32>
    %112 = tpu.concatenate %108, %109, %110, %111 in 0 : vector<1x8x8xf32>, vector<1x8x8xf32>, vector<1x8x8xf32>, vector<1x8x8xf32> -> vector<4x8x8xf32>
    %113 = vector.extract_strided_slice %102 {offsets = [0, 0], sizes = [8, 8], strides = [1, 1]} : vector<8x32xf32> to vector<8x8xf32>
    %114 = vector.extract_strided_slice %102 {offsets = [0, 8], sizes = [8, 8], strides = [1, 1]} : vector<8x32xf32> to vector<8x8xf32>
    %115 = vector.extract_strided_slice %102 {offsets = [0, 16], sizes = [8, 8], strides = [1, 1]} : vector<8x32xf32> to vector<8x8xf32>
    %116 = vector.extract_strided_slice %102 {offsets = [0, 24], sizes = [8, 8], strides = [1, 1]} : vector<8x32xf32> to vector<8x8xf32>
    %117 = vector.shape_cast %113 : vector<8x8xf32> to vector<1x8x8xf32>
    %118 = vector.shape_cast %114 : vector<8x8xf32> to vector<1x8x8xf32>
    %119 = vector.shape_cast %115 : vector<8x8xf32> to vector<1x8x8xf32>
    %120 = vector.shape_cast %116 : vector<8x8xf32> to vector<1x8x8xf32>
    %121 = tpu.concatenate %117, %118, %119, %120 in 0 : vector<1x8x8xf32>, vector<1x8x8xf32>, vector<1x8x8xf32>, vector<1x8x8xf32> -> vector<4x8x8xf32>
    %122 = vector.extract_strided_slice %103 {offsets = [0, 0], sizes = [8, 8], strides = [1, 1]} : vector<8x32xf32> to vector<8x8xf32>
    %123 = vector.extract_strided_slice %103 {offsets = [0, 8], sizes = [8, 8], strides = [1, 1]} : vector<8x32xf32> to vector<8x8xf32>
    %124 = vector.extract_strided_slice %103 {offsets = [0, 16], sizes = [8, 8], strides = [1, 1]} : vector<8x32xf32> to vector<8x8xf32>
    %125 = vector.extract_strided_slice %103 {offsets = [0, 24], sizes = [8, 8], strides = [1, 1]} : vector<8x32xf32> to vector<8x8xf32>
    %126 = vector.shape_cast %122 : vector<8x8xf32> to vector<1x8x8xf32>
    %127 = vector.shape_cast %123 : vector<8x8xf32> to vector<1x8x8xf32>
    %128 = vector.shape_cast %124 : vector<8x8xf32> to vector<1x8x8xf32>
    %129 = vector.shape_cast %125 : vector<8x8xf32> to vector<1x8x8xf32>
    %130 = tpu.concatenate %126, %127, %128, %129 in 0 : vector<1x8x8xf32>, vector<1x8x8xf32>, vector<1x8x8xf32>, vector<1x8x8xf32> -> vector<4x8x8xf32>
    "tpu.trace_start"() <{level = 10 : i32, message = "hqd,hkd->hqk"}> : () -> ()
    %cst_38 = arith.constant dense<0.000000e+00> : vector<4x8x8xf32>
    %131 = tpu.matmul %112, %121, %cst_38 {dimension_numbers = #tpu.dot_dimension_numbers<[2], [2], [1], [1], [0, 0, 0, 1, 1, 1], [0], [0]>} : vector<4x8x8xf32>, vector<4x8x8xf32>, vector<4x8x8xf32> -> vector<4x8x8xf32>
    "tpu.trace_stop"() : () -> ()
    %cst_39 = arith.constant 0.353553385 : f32
    %132 = vector.broadcast %cst_39 : f32 to vector<4x8x8xf32>
    %133 = arith.mulf %131, %132 : vector<4x8x8xf32>
    %cst_40 = arith.constant dense<0xFF800000> : vector<4x8xf32>
    %134 = vector.multi_reduction <maximumf>, %133, %cst_40 [2] : vector<4x8x8xf32> to vector<4x8xf32>
    %135 = vector.shape_cast %134 : vector<4x8xf32> to vector<4x8x1xf32>
    %136 = vector.broadcast %135 : vector<4x8x1xf32> to vector<4x8x8xf32>
    %137 = arith.subf %133, %136 : vector<4x8x8xf32>
    %138 = math.exp %137 : vector<4x8x8xf32>
    %cst_41 = arith.constant dense<0.000000e+00> : vector<4x8xf32>
    %139 = vector.multi_reduction <add>, %138, %cst_41 [2] : vector<4x8x8xf32> to vector<4x8xf32>
    %140 = vector.shape_cast %139 : vector<4x8xf32> to vector<4x8x1xf32>
    %141 = tpu.reciprocal %140 {approx = true} : vector<4x8x1xf32> -> vector<4x8x1xf32>
    %142 = vector.broadcast %141 : vector<4x8x1xf32> to vector<4x8x8xf32>
    %143 = arith.mulf %138, %142 : vector<4x8x8xf32>
    "tpu.trace_start"() <{level = 10 : i32, message = "hqk,hkd->hqd"}> : () -> ()
    %cst_42 = arith.constant dense<0.000000e+00> : vector<4x8x8xf32>
    %144 = tpu.matmul %143, %130, %cst_42 {dimension_numbers = #tpu.dot_dimension_numbers<[2], [1], [1], [2], [0, 0, 0, 1, 1, 2], [0], [0]>} : vector<4x8x8xf32>, vector<4x8x8xf32>, vector<4x8x8xf32> -> vector<4x8x8xf32>
    "tpu.trace_stop"() : () -> ()
    %145 = vector.extract_strided_slice %144 {offsets = [0, 0, 0], sizes = [1, 8, 8], strides = [1, 1, 1]} : vector<4x8x8xf32> to vector<1x8x8xf32>
    %146 = vector.shape_cast %145 : vector<1x8x8xf32> to vector<8x8xf32>
    %147 = vector.extract_strided_slice %144 {offsets = [1, 0, 0], sizes = [1, 8, 8], strides = [1, 1, 1]} : vector<4x8x8xf32> to vector<1x8x8xf32>
    %148 = vector.shape_cast %147 : vector<1x8x8xf32> to vector<8x8xf32>
    %149 = vector.extract_strided_slice %144 {offsets = [2, 0, 0], sizes = [1, 8, 8], strides = [1, 1, 1]} : vector<4x8x8xf32> to vector<1x8x8xf32>
    %150 = vector.shape_cast %149 : vector<1x8x8xf32> to vector<8x8xf32>
    %151 = vector.extract_strided_slice %144 {offsets = [3, 0, 0], sizes = [1, 8, 8], strides = [1, 1, 1]} : vector<4x8x8xf32> to vector<1x8x8xf32>
    %152 = vector.shape_cast %151 : vector<1x8x8xf32> to vector<8x8xf32>
    %153 = tpu.concatenate %146, %148, %150, %152 in 1 : vector<8x8xf32>, vector<8x8xf32>, vector<8x8xf32>, vector<8x8xf32> -> vector<8x32xf32>
    %c0_43 = arith.constant 0 : index
    %c0_44 = arith.constant 0 : index
    %154 = vector.load %arg11[%c0_43, %c0_44] : memref<32x32xf32, #tpu.memory_space<vmem>>, vector<32x32xf32>
    %cst_45 = arith.constant dense<0.000000e+00> : vector<8x32xf32>
    %155 = tpu.matmul %153, %154, %cst_45 {dimension_numbers = #tpu.dot_dimension_numbers<[1], [0], [0], [1], [0, 0, 1, 1], [], []>} : vector<8x32xf32>, vector<32x32xf32>, vector<8x32xf32> -> vector<8x32xf32>
    %c0_46 = arith.constant 0 : index
    %c0_47 = arith.constant 0 : index
    %156 = vector.load %arg12[%c0_46, %c0_47] : memref<1x32xf32, #tpu.memory_space<vmem>>, vector<1x32xf32>
    %157 = vector.broadcast %156 : vector<1x32xf32> to vector<8x32xf32>
    %158 = arith.addf %155, %157 : vector<8x32xf32>
    %159 = arith.addf %91, %158 : vector<8x32xf32>
    %c0_48 = arith.constant 0 : index
    %c0_49 = arith.constant 0 : index
    %160 = vector.load %arg19[%c0_48, %c0_49] : memref<1x32xf32, #tpu.memory_space<vmem>>, vector<1x32xf32>
    %c0_50 = arith.constant 0 : index
    %c0_51 = arith.constant 0 : index
    %161 = vector.load %arg20[%c0_50, %c0_51] : memref<1x32xf32, #tpu.memory_space<vmem>>, vector<1x32xf32>
    %cst_52 = arith.constant dense<0.000000e+00> : vector<8xf32>
    %162 = vector.multi_reduction <add>, %159, %cst_52 [1] : vector<8x32xf32> to vector<8xf32>
    %163 = vector.shape_cast %162 : vector<8xf32> to vector<8x1xf32>
    %cst_53 = arith.constant 3.200000e+01 : f32
    %164 = vector.broadcast %cst_53 : f32 to vector<8x1xf32>
    %165 = arith.divf %163, %164 : vector<8x1xf32>
    %166 = vector.broadcast %165 : vector<8x1xf32> to vector<8x32xf32>
    %167 = arith.subf %159, %166 : vector<8x32xf32>
    %168 = arith.mulf %167, %167 : vector<8x32xf32>
    %cst_54 = arith.constant dense<0.000000e+00> : vector<8xf32>
    %169 = vector.multi_reduction <add>, %168, %cst_54 [1] : vector<8x32xf32> to vector<8xf32>
    %170 = vector.shape_cast %169 : vector<8xf32> to vector<8x1xf32>
    %cst_55 = arith.constant 3.200000e+01 : f32
    %171 = vector.broadcast %cst_55 : f32 to vector<8x1xf32>
    %172 = arith.divf %170, %171 : vector<8x1xf32>
    %173 = vector.broadcast %165 : vector<8x1xf32> to vector<8x32xf32>
    %174 = arith.subf %159, %173 : vector<8x32xf32>
    %cst_56 = arith.constant 9.99999974E-6 : f32
    %175 = vector.broadcast %cst_56 : f32 to vector<8x1xf32>
    %176 = arith.addf %172, %175 : vector<8x1xf32>
    %177 = math.rsqrt %176 : vector<8x1xf32>
    %178 = vector.broadcast %177 : vector<8x1xf32> to vector<8x32xf32>
    %179 = arith.mulf %174, %178 : vector<8x32xf32>
    %180 = vector.broadcast %160 : vector<1x32xf32> to vector<8x32xf32>
    %181 = arith.mulf %179, %180 : vector<8x32xf32>
    %182 = vector.broadcast %161 : vector<1x32xf32> to vector<8x32xf32>
    %183 = arith.addf %181, %182 : vector<8x32xf32>
    %c0_57 = arith.constant 0 : index
    %c0_58 = arith.constant 0 : index
    %184 = vector.load %arg13[%c0_57, %c0_58] : memref<32x64xf32, #tpu.memory_space<vmem>>, vector<32x64xf32>
    %cst_59 = arith.constant dense<0.000000e+00> : vector<8x64xf32>
    %185 = tpu.matmul %183, %184, %cst_59 {dimension_numbers = #tpu.dot_dimension_numbers<[1], [0], [0], [1], [0, 0, 1, 1], [], []>} : vector<8x32xf32>, vector<32x64xf32>, vector<8x64xf32> -> vector<8x64xf32>
    %c0_60 = arith.constant 0 : index
    %c0_61 = arith.constant 0 : index
    %186 = vector.load %arg14[%c0_60, %c0_61] : memref<1x64xf32, #tpu.memory_space<vmem>>, vector<1x64xf32>
    %187 = vector.broadcast %186 : vector<1x64xf32> to vector<8x64xf32>
    %188 = arith.addf %185, %187 : vector<8x64xf32>
    %cst_62 = arith.constant 0.000000e+00 : f32
    %189 = vector.broadcast %cst_62 : f32 to vector<8x64xf32>
    %190 = arith.maximumf %188, %189 : vector<8x64xf32>
    %c0_63 = arith.constant 0 : index
    %c0_64 = arith.constant 0 : index
    %191 = vector.load %arg15[%c0_63, %c0_64] : memref<64x32xf32, #tpu.memory_space<vmem>>, vector<64x32xf32>
    %cst_65 = arith.constant dense<0.000000e+00> : vector<8x32xf32>
    %192 = tpu.matmul %190, %191, %cst_65 {dimension_numbers = #tpu.dot_dimension_numbers<[1], [0], [0], [1], [0, 0, 1, 1], [], []>} : vector<8x64xf32>, vector<64x32xf32>, vector<8x32xf32> -> vector<8x32xf32>
    %c0_66 = arith.constant 0 : index
    %c0_67 = arith.constant 0 : index
    %193 = vector.load %arg16[%c0_66, %c0_67] : memref<1x32xf32, #tpu.memory_space<vmem>>, vector<1x32xf32>
    %194 = vector.broadcast %193 : vector<1x32xf32> to vector<8x32xf32>
    %195 = arith.addf %192, %194 : vector<8x32xf32>
    %196 = arith.addf %183, %195 : vector<8x32xf32>
    %c0_68 = arith.constant 0 : index
    %c0_69 = arith.constant 0 : index
    %197 = vector.load %arg21[%c0_68, %c0_69] : memref<1x32xf32, #tpu.memory_space<vmem>>, vector<1x32xf32>
    %c0_70 = arith.constant 0 : index
    %c0_71 = arith.constant 0 : index
    %198 = vector.load %arg22[%c0_70, %c0_71] : memref<1x32xf32, #tpu.memory_space<vmem>>, vector<1x32xf32>
    %cst_72 = arith.constant dense<0.000000e+00> : vector<8xf32>
    %199 = vector.multi_reduction <add>, %196, %cst_72 [1] : vector<8x32xf32> to vector<8xf32>
    %200 = vector.shape_cast %199 : vector<8xf32> to vector<8x1xf32>
    %cst_73 = arith.constant 3.200000e+01 : f32
    %201 = vector.broadcast %cst_73 : f32 to vector<8x1xf32>
    %202 = arith.divf %200, %201 : vector<8x1xf32>
    %203 = vector.broadcast %202 : vector<8x1xf32> to vector<8x32xf32>
    %204 = arith.subf %196, %203 : vector<8x32xf32>
    %205 = arith.mulf %204, %204 : vector<8x32xf32>
    %cst_74 = arith.constant dense<0.000000e+00> : vector<8xf32>
    %206 = vector.multi_reduction <add>, %205, %cst_74 [1] : vector<8x32xf32> to vector<8xf32>
    %207 = vector.shape_cast %206 : vector<8xf32> to vector<8x1xf32>
    %cst_75 = arith.constant 3.200000e+01 : f32
    %208 = vector.broadcast %cst_75 : f32 to vector<8x1xf32>
    %209 = arith.divf %207, %208 : vector<8x1xf32>
    %210 = vector.broadcast %202 : vector<8x1xf32> to vector<8x32xf32>
    %211 = arith.subf %196, %210 : vector<8x32xf32>
    %cst_76 = arith.constant 9.99999974E-6 : f32
    %212 = vector.broadcast %cst_76 : f32 to vector<8x1xf32>
    %213 = arith.addf %209, %212 : vector<8x1xf32>
    %214 = math.rsqrt %213 : vector<8x1xf32>
    %215 = vector.broadcast %214 : vector<8x1xf32> to vector<8x32xf32>
    %216 = arith.mulf %211, %215 : vector<8x32xf32>
    %217 = vector.broadcast %197 : vector<1x32xf32> to vector<8x32xf32>
    %218 = arith.mulf %216, %217 : vector<8x32xf32>
    %219 = vector.broadcast %198 : vector<1x32xf32> to vector<8x32xf32>
    %220 = arith.addf %218, %219 : vector<8x32xf32>
    %c0_77 = arith.constant 0 : index
    %c0_78 = arith.constant 0 : index
    %c0_79 = arith.constant 0 : index
    %221 = vector.load %arg23[%c0_77, %c0_78, %c0_79] : memref<1x8x32xf32, #tpu.memory_space<vmem>>, vector<1x8x32xf32>
    %222 = vector.shape_cast %221 : vector<1x8x32xf32> to vector<8x32xf32>
    %223 = vector.shape_cast %220 : vector<8x32xf32> to vector<1x8x32xf32>
    tpu.vector_store %arg23[%c0_77, %c0_78, %c0_79], %223 {strides = array<i32>} : memref<1x8x32xf32, #tpu.memory_space<vmem>>, vector<1x8x32xf32>,
    return
  }
  func.func @transform_0(%arg0: i32) -> (i32, i32, i32) {
    %c0_i32 = arith.constant 0 : i32
    %c0_i32_0 = arith.constant 0 : i32
    %c0_i32_1 = arith.constant 0 : i32
    return %arg0, %c0_i32, %c0_i32_0 : i32, i32, i32
  }
  func.func @transform_1(%arg0: i32) -> (i32, i32, i32) {
    %c0_i32 = arith.constant 0 : i32
    %c0_i32_0 = arith.constant 0 : i32
    %c0_i32_1 = arith.constant 0 : i32
    return %arg0, %c0_i32, %c0_i32_0 : i32, i32, i32
  }
  func.func @transform_2(%arg0: i32) -> (i32, i32) {
    %c0_i32 = arith.constant 0 : i32
    %c0_i32_0 = arith.constant 0 : i32
    %c0_i32_1 = arith.constant 0 : i32
    return %c0_i32, %c0_i32_0 : i32, i32
  }
  func.func @transform_3(%arg0: i32) -> (i32, i32) {
    %c0_i32 = arith.constant 0 : i32
    %c0_i32_0 = arith.constant 0 : i32
    %c0_i32_1 = arith.constant 0 : i32
    return %c0_i32, %c0_i32_0 : i32, i32
  }
  func.func @transform_4(%arg0: i32) -> (i32, i32) {
    %c0_i32 = arith.constant 0 : i32
    %c0_i32_0 = arith.constant 0 : i32
    %c0_i32_1 = arith.constant 0 : i32
    return %c0_i32, %c0_i32_0 : i32, i32
  }
  func.func @transform_5(%arg0: i32) -> (i32, i32) {
    %c0_i32 = arith.constant 0 : i32
    %c0_i32_0 = arith.constant 0 : i32
    %c0_i32_1 = arith.constant 0 : i32
    return %c0_i32, %c0_i32_0 : i32, i32
  }
  func.func @transform_6(%arg0: i32) -> (i32, i32) {
    %c0_i32 = arith.constant 0 : i32
    %c0_i32_0 = arith.constant 0 : i32
    %c0_i32_1 = arith.constant 0 : i32
    return %c0_i32, %c0_i32_0 : i32, i32
  }
  func.func @transform_7(%arg0: i32) -> (i32, i32) {
    %c0_i32 = arith.constant 0 : i32
    %c0_i32_0 = arith.constant 0 : i32
    %c0_i32_1 = arith.constant 0 : i32
    return %c0_i32, %c0_i32_0 : i32, i32
  }
  func.func @transform_8(%arg0: i32) -> (i32, i32) {
    %c0_i32 = arith.constant 0 : i32
    %c0_i32_0 = arith.constant 0 : i32
    %c0_i32_1 = arith.constant 0 : i32
    return %c0_i32, %c0_i32_0 : i32, i32
  }
  func.func @transform_9(%arg0: i32) -> (i32, i32) {
    %c0_i32 = arith.constant 0 : i32
    %c0_i32_0 = arith.constant 0 : i32
    %c0_i32_1 = arith.constant 0 : i32
    return %c0_i32, %c0_i32_0 : i32, i32
  }
  func.func @transform_10(%arg0: i32) -> (i32, i32) {
    %c0_i32 = arith.constant 0 : i32
    %c0_i32_0 = arith.constant 0 : i32
    %c0_i32_1 = arith.constant 0 : i32
    return %c0_i32, %c0_i32_0 : i32, i32
  }
  func.func @transform_11(%arg0: i32) -> (i32, i32) {
    %c0_i32 = arith.constant 0 : i32
    %c0_i32_0 = arith.constant 0 : i32
    %c0_i32_1 = arith.constant 0 : i32
    return %c0_i32, %c0_i32_0 : i32, i32
  }
  func.func @transform_12(%arg0: i32) -> (i32, i32) {
    %c0_i32 = arith.constant 0 : i32
    %c0_i32_0 = arith.constant 0 : i32
    %c0_i32_1 = arith.constant 0 : i32
    return %c0_i32, %c0_i32_0 : i32, i32
  }
  func.func @transform_13(%arg0: i32) -> (i32, i32) {
    %c0_i32 = arith.constant 0 : i32
    %c0_i32_0 = arith.constant 0 : i32
    %c0_i32_1 = arith.constant 0 : i32
    return %c0_i32, %c0_i32_0 : i32, i32
  }
  func.func @transform_14(%arg0: i32) -> (i32, i32) {
    %c0_i32 = arith.constant 0 : i32
    %c0_i32_0 = arith.constant 0 : i32
    %c0_i32_1 = arith.constant 0 : i32
    return %c0_i32, %c0_i32_0 : i32, i32
  }
  func.func @transform_15(%arg0: i32) -> (i32, i32) {
    %c0_i32 = arith.constant 0 : i32
    %c0_i32_0 = arith.constant 0 : i32
    %c0_i32_1 = arith.constant 0 : i32
    return %c0_i32, %c0_i32_0 : i32, i32
  }
  func.func @transform_16(%arg0: i32) -> (i32, i32) {
    %c0_i32 = arith.constant 0 : i32
    %c0_i32_0 = arith.constant 0 : i32
    %c0_i32_1 = arith.constant 0 : i32
    return %c0_i32, %c0_i32_0 : i32, i32
  }
  func.func @transform_17(%arg0: i32) -> (i32, i32) {
    %c0_i32 = arith.constant 0 : i32
    %c0_i32_0 = arith.constant 0 : i32
    %c0_i32_1 = arith.constant 0 : i32
    return %c0_i32, %c0_i32_0 : i32, i32
  }
  func.func @transform_18(%arg0: i32) -> (i32, i32) {
    %c0_i32 = arith.constant 0 : i32
    %c0_i32_0 = arith.constant 0 : i32
    %c0_i32_1 = arith.constant 0 : i32
    return %c0_i32, %c0_i32_0 : i32, i32
  }
  func.func @transform_19(%arg0: i32) -> (i32, i32) {
    %c0_i32 = arith.constant 0 : i32
    %c0_i32_0 = arith.constant 0 : i32
    %c0_i32_1 = arith.constant 0 : i32
    return %c0_i32, %c0_i32_0 : i32, i32
  }
  func.func @transform_20(%arg0: i32) -> (i32, i32) {
    %c0_i32 = arith.constant 0 : i32
    %c0_i32_0 = arith.constant 0 : i32
    %c0_i32_1 = arith.constant 0 : i32
    return %c0_i32, %c0_i32_0 : i32, i32
  }
  func.func @transform_21(%arg0: i32) -> (i32, i32) {
    %c0_i32 = arith.constant 0 : i32
    %c0_i32_0 = arith.constant 0 : i32
    %c0_i32_1 = arith.constant 0 : i32
    return %c0_i32, %c0_i32_0 : i32, i32
  }
  func.func @transform_22(%arg0: i32) -> (i32, i32, i32) {
    %c0_i32 = arith.constant 0 : i32
    %c0_i32_0 = arith.constant 0 : i32
    %c0_i32_1 = arith.constant 0 : i32
    return %arg0, %c0_i32, %c0_i32_0 : i32, i32, i32
  }
}

module attributes {stable_mosaic.version = 11 : i64} {
  func.func @kernel(%arg0: i32, %arg1: memref<1x8x32xf32, #tpu.memory_space<vmem>>, %arg2: memref<1x8x32xf32, #tpu.memory_space<vmem>>, %arg3: memref<32x96xf32, #tpu.memory_space<vmem>>, %arg4: memref<1x96xf32, #tpu.memory_space<vmem>>, %arg5: memref<32x32xf32, #tpu.memory_space<vmem>>, %arg6: memref<1x32xf32, #tpu.memory_space<vmem>>, %arg7: memref<32x32xf32, #tpu.memory_space<vmem>>, %arg8: memref<1x32xf32, #tpu.memory_space<vmem>>, %arg9: memref<32x64xf32, #tpu.memory_space<vmem>>, %arg10: memref<1x64xf32, #tpu.memory_space<vmem>>, %arg11: memref<32x32xf32, #tpu.memory_space<vmem>>, %arg12: memref<1x32xf32, #tpu.memory_space<vmem>>, %arg13: memref<32x64xf32, #tpu.memory_space<vmem>>, %arg14: memref<1x64xf32, #tpu.memory_space<vmem>>, %arg15: memref<64x32xf32, #tpu.memory_space<vmem>>, %arg16: memref<1x32xf32, #tpu.memory_space<vmem>>, %arg17: memref<1x32xf32, #tpu.memory_space<vmem>>, %arg18: memref<1x32xf32, #tpu.memory_space<vmem>>, %arg19: memref<1x32xf32, #tpu.memory_space<vmem>>, %arg20: memref<1x32xf32, #tpu.memory_space<vmem>>, %arg21: memref<1x32xf32, #tpu.memory_space<vmem>>, %arg22: memref<1x32xf32, #tpu.memory_space<vmem>>, %arg23: memref<1x8x32xf32, #tpu.memory_space<vmem>>) attributes {dimension_semantics = [#tpu.dimension_semantics<parallel>], iteration_bounds = array<i64: 2>, scalar_prefetch = 0 : i64, scratch_operands = 0 : i64, tpu.core_type = #tpu.core_type<tc>, window_params = [{transform_indices = @transform_0, window_bounds = array<i64: 1, 8, 32>}, {transform_indices = @transform_1, window_bounds = array<i64: 1, 8, 32>}, {pipeline_mode = #tpu.pipeline_mode<synchronous>, transform_indices = @transform_2, window_bounds = array<i64: 32, 96>}, {pipeline_mode = #tpu.pipeline_mode<synchronous>, transform_indices = @transform_3, window_bounds = array<i64: 1, 96>}, {pipeline_mode = #tpu.pipeline_mode<synchronous>, transform_indices = @transform_4, window_bounds = array<i64: 32, 32>}, {pipeline_mode = #tpu.pipeline_mode<synchronous>, transform_indices = @transform_5, window_bounds = array<i64: 1, 32>}, {pipeline_mode = #tpu.pipeline_mode<synchronous>, transform_indices = @transform_6, window_bounds = array<i64: 32, 32>}, {pipeline_mode = #tpu.pipeline_mode<synchronous>, transform_indices = @transform_7, window_bounds = array<i64: 1, 32>}, {pipeline_mode = #tpu.pipeline_mode<synchronous>, transform_indices = @transform_8, window_bounds = array<i64: 32, 64>}, {pipeline_mode = #tpu.pipeline_mode<synchronous>, transform_indices = @transform_9, window_bounds = array<i64: 1, 64>}, {pipeline_mode = #tpu.pipeline_mode<synchronous>, transform_indices = @transform_10, window_bounds = array<i64: 32, 32>}, {pipeline_mode = #tpu.pipeline_mode<synchronous>, transform_indices = @transform_11, window_bounds = array<i64: 1, 32>}, {pipeline_mode = #tpu.pipeline_mode<synchronous>, transform_indices = @transform_12, window_bounds = array<i64: 32, 64>}, {pipeline_mode = #tpu.pipeline_mode<synchronous>, transform_indices = @transform_13, window_bounds = array<i64: 1, 64>}, {pipeline_mode = #tpu.pipeline_mode<synchronous>, transform_indices = @transform_14, window_bounds = array<i64: 64, 32>}, {pipeline_mode = #tpu.pipeline_mode<synchronous>, transform_indices = @transform_15, window_bounds = array<i64: 1, 32>}, {pipeline_mode = #tpu.pipeline_mode<synchronous>, transform_indices = @transform_16, window_bounds = array<i64: 1, 32>}, {pipeline_mode = #tpu.pipeline_mode<synchronous>, transform_indices = @transform_17, window_bounds = array<i64: 1, 32>}, {pipeline_mode = #tpu.pipeline_mode<synchronous>, transform_indices = @transform_18, window_bounds = array<i64: 1, 32>}, {pipeline_mode = #tpu.pipeline_mode<synchronous>, transform_indices = @transform_19, window_bounds = array<i64: 1, 32>}, {pipeline_mode = #tpu.pipeline_mode<synchronous>, transform_indices = @transform_20, window_bounds = array<i64: 1, 32>}, {pipeline_mode = #tpu.pipeline_mode<synchronous>, transform_indices = @transform_21, window_bounds = array<i64: 1, 32>}, {transform_indices = @transform_22, window_bounds = array<i64: 1, 8, 32>}]} {
    %c0 = arith.constant 0 : index
    %c0_0 = arith.constant 0 : index
    %c0_1 = arith.constant 0 : index
    %0 = vector.load %arg1[%c0, %c0_0, %c0_1] : memref<1x8x32xf32, #tpu.memory_space<vmem>>, vector<1x8x32xf32>
    %1 = vector.shape_cast %0 : vector<1x8x32xf32> to vector<8x32xf32>
    %c0_2 = arith.constant 0 : index
    %c0_3 = arith.constant 0 : index
    %c0_4 = arith.constant 0 : index
    %2 = vector.load %arg2[%c0_2, %c0_3, %c0_4] : memref<1x8x32xf32, #tpu.memory_space<vmem>>, vector<1x8x32xf32>
    %3 = vector.shape_cast %2 : vector<1x8x32xf32> to vector<8x32xf32>
    %c0_5 = arith.constant 0 : index
    %c0_6 = arith.constant 0 : index
    %4 = vector.load %arg3[%c0_5, %c0_6] : memref<32x96xf32, #tpu.memory_space<vmem>>, vector<32x96xf32>
    %cst = arith.constant dense<0.000000e+00> : vector<8x96xf32>
    %5 = tpu.matmul %1, %4, %cst {dimension_numbers = #tpu.dot_dimension_numbers<[1], [0], [0], [1], [0, 0, 1, 1], [], []>} : vector<8x32xf32>, vector<32x96xf32>, vector<8x96xf32> -> vector<8x96xf32>
    %c0_7 = arith.constant 0 : index
    %c0_8 = arith.constant 0 : index
    %6 = vector.load %arg4[%c0_7, %c0_8] : memref<1x96xf32, #tpu.memory_space<vmem>>, vector<1x96xf32>
    %7 = vector.broadcast %6 : vector<1x96xf32> to vector<8x96xf32>
    %8 = arith.addf %5, %7 : vector<8x96xf32>
    %9 = vector.extract_strided_slice %8 {offsets = [0, 0], sizes = [8, 32], strides = [1, 1]} : vector<8x96xf32> to vector<8x32xf32>
    %10 = vector.extract_strided_slice %8 {offsets = [0, 32], sizes = [8, 32], strides = [1, 1]} : vector<8x96xf32> to vector<8x32xf32>
    %11 = vector.extract_strided_slice %8 {offsets = [0, 64], sizes = [8, 32], strides = [1, 1]} : vector<8x96xf32> to vector<8x32xf32>
    %12 = vector.extract_strided_slice %9 {offsets = [0, 0], sizes = [8, 8], strides = [1, 1]} : vector<8x32xf32> to vector<8x8xf32>
    %13 = vector.extract_strided_slice %9 {offsets = [0, 8], sizes = [8, 8], strides = [1, 1]} : vector<8x32xf32> to vector<8x8xf32>
    %14 = vector.extract_strided_slice %9 {offsets = [0, 16], sizes = [8, 8], strides = [1, 1]} : vector<8x32xf32> to vector<8x8xf32>
    %15 = vector.extract_strided_slice %9 {offsets = [0, 24], sizes = [8, 8], strides = [1, 1]} : vector<8x32xf32> to vector<8x8xf32>
    %16 = vector.shape_cast %12 : vector<8x8xf32> to vector<1x8x8xf32>
    %17 = vector.shape_cast %13 : vector<8x8xf32> to vector<1x8x8xf32>
    %18 = vector.shape_cast %14 : vector<8x8xf32> to vector<1x8x8xf32>
    %19 = vector.shape_cast %15 : vector<8x8xf32> to vector<1x8x8xf32>
    %20 = tpu.concatenate %16, %17, %18, %19 in 0 : vector<1x8x8xf32>, vector<1x8x8xf32>, vector<1x8x8xf32>, vector<1x8x8xf32> -> vector<4x8x8xf32>
    %21 = vector.extract_strided_slice %10 {offsets = [0, 0], sizes = [8, 8], strides = [1, 1]} : vector<8x32xf32> to vector<8x8xf32>
    %22 = vector.extract_strided_slice %10 {offsets = [0, 8], sizes = [8, 8], strides = [1, 1]} : vector<8x32xf32> to vector<8x8xf32>
    %23 = vector.extract_strided_slice %10 {offsets = [0, 16], sizes = [8, 8], strides = [1, 1]} : vector<8x32xf32> to vector<8x8xf32>
    %24 = vector.extract_strided_slice %10 {offsets = [0, 24], sizes = [8, 8], strides = [1, 1]} : vector<8x32xf32> to vector<8x8xf32>
    %25 = vector.shape_cast %21 : vector<8x8xf32> to vector<1x8x8xf32>
    %26 = vector.shape_cast %22 : vector<8x8xf32> to vector<1x8x8xf32>
    %27 = vector.shape_cast %23 : vector<8x8xf32> to vector<1x8x8xf32>
    %28 = vector.shape_cast %24 : vector<8x8xf32> to vector<1x8x8xf32>
    %29 = tpu.concatenate %25, %26, %27, %28 in 0 : vector<1x8x8xf32>, vector<1x8x8xf32>, vector<1x8x8xf32>, vector<1x8x8xf32> -> vector<4x8x8xf32>
    %30 = vector.extract_strided_slice %11 {offsets = [0, 0], sizes = [8, 8], strides = [1, 1]} : vector<8x32xf32> to vector<8x8xf32>
    %31 = vector.extract_strided_slice %11 {offsets = [0, 8], sizes = [8, 8], strides = [1, 1]} : vector<8x32xf32> to vector<8x8xf32>
    %32 = vector.extract_strided_slice %11 {offsets = [0, 16], sizes = [8, 8], strides = [1, 1]} : vector<8x32xf32> to vector<8x8xf32>
    %33 = vector.extract_strided_slice %11 {offsets = [0, 24], sizes = [8, 8], strides = [1, 1]} : vector<8x32xf32> to vector<8x8xf32>
    %34 = vector.shape_cast %30 : vector<8x8xf32> to vector<1x8x8xf32>
    %35 = vector.shape_cast %31 : vector<8x8xf32> to vector<1x8x8xf32>
    %36 = vector.shape_cast %32 : vector<8x8xf32> to vector<1x8x8xf32>
    %37 = vector.shape_cast %33 : vector<8x8xf32> to vector<1x8x8xf32>
    %38 = tpu.concatenate %34, %35, %36, %37 in 0 : vector<1x8x8xf32>, vector<1x8x8xf32>, vector<1x8x8xf32>, vector<1x8x8xf32> -> vector<4x8x8xf32>
    "tpu.trace_start"() <{level = 10 : i32, message = "hqd,hkd->hqk"}> : () -> ()
    %cst_9 = arith.constant dense<0.000000e+00> : vector<4x8x8xf32>
    %39 = tpu.matmul %20, %29, %cst_9 {dimension_numbers = #tpu.dot_dimension_numbers<[2], [2], [1], [1], [0, 0, 0, 1, 1, 1], [0], [0]>} : vector<4x8x8xf32>, vector<4x8x8xf32>, vector<4x8x8xf32> -> vector<4x8x8xf32>
    "tpu.trace_stop"() : () -> ()
    %cst_10 = arith.constant 0.353553385 : f32
    %40 = vector.broadcast %cst_10 : f32 to vector<4x8x8xf32>
    %41 = arith.mulf %39, %40 : vector<4x8x8xf32>
    %cst_11 = arith.constant dense<0xFF800000> : vector<4x8xf32>
    %42 = vector.multi_reduction <maximumf>, %41, %cst_11 [2] : vector<4x8x8xf32> to vector<4x8xf32>
    %43 = vector.shape_cast %42 : vector<4x8xf32> to vector<4x8x1xf32>
    %44 = vector.broadcast %43 : vector<4x8x1xf32> to vector<4x8x8xf32>
    %45 = arith.subf %41, %44 : vector<4x8x8xf32>
    %46 = math.exp %45 : vector<4x8x8xf32>
    %cst_12 = arith.constant dense<0.000000e+00> : vector<4x8xf32>
    %47 = vector.multi_reduction <add>, %46, %cst_12 [2] : vector<4x8x8xf32> to vector<4x8xf32>
    %48 = vector.shape_cast %47 : vector<4x8xf32> to vector<4x8x1xf32>
    %49 = tpu.reciprocal %48 {approx = true} : vector<4x8x1xf32> -> vector<4x8x1xf32>
    %50 = vector.broadcast %49 : vector<4x8x1xf32> to vector<4x8x8xf32>
    %51 = arith.mulf %46, %50 : vector<4x8x8xf32>
    "tpu.trace_start"() <{level = 10 : i32, message = "hqk,hkd->hqd"}> : () -> ()
    %cst_13 = arith.constant dense<0.000000e+00> : vector<4x8x8xf32>
    %52 = tpu.matmul %51, %38, %cst_13 {dimension_numbers = #tpu.dot_dimension_numbers<[2], [1], [1], [2], [0, 0, 0, 1, 1, 2], [0], [0]>} : vector<4x8x8xf32>, vector<4x8x8xf32>, vector<4x8x8xf32> -> vector<4x8x8xf32>
    "tpu.trace_stop"() : () -> ()
    %53 = vector.extract_strided_slice %52 {offsets = [0, 0, 0], sizes = [1, 8, 8], strides = [1, 1, 1]} : vector<4x8x8xf32> to vector<1x8x8xf32>
    %54 = vector.shape_cast %53 : vector<1x8x8xf32> to vector<8x8xf32>
    %55 = vector.extract_strided_slice %52 {offsets = [1, 0, 0], sizes = [1, 8, 8], strides = [1, 1, 1]} : vector<4x8x8xf32> to vector<1x8x8xf32>
    %56 = vector.shape_cast %55 : vector<1x8x8xf32> to vector<8x8xf32>
    %57 = vector.extract_strided_slice %52 {offsets = [2, 0, 0], sizes = [1, 8, 8], strides = [1, 1, 1]} : vector<4x8x8xf32> to vector<1x8x8xf32>
    %58 = vector.shape_cast %57 : vector<1x8x8xf32> to vector<8x8xf32>
    %59 = vector.extract_strided_slice %52 {offsets = [3, 0, 0], sizes = [1, 8, 8], strides = [1, 1, 1]} : vector<4x8x8xf32> to vector<1x8x8xf32>
    %60 = vector.shape_cast %59 : vector<1x8x8xf32> to vector<8x8xf32>
    %61 = tpu.concatenate %54, %56, %58, %60 in 1 : vector<8x8xf32>, vector<8x8xf32>, vector<8x8xf32>, vector<8x8xf32> -> vector<8x32xf32>
    %c0_14 = arith.constant 0 : index
    %c0_15 = arith.constant 0 : index
    %62 = vector.load %arg5[%c0_14, %c0_15] : memref<32x32xf32, #tpu.memory_space<vmem>>, vector<32x32xf32>
    %cst_16 = arith.constant dense<0.000000e+00> : vector<8x32xf32>
    %63 = tpu.matmul %61, %62, %cst_16 {dimension_numbers = #tpu.dot_dimension_numbers<[1], [0], [0], [1], [0, 0, 1, 1], [], []>} : vector<8x32xf32>, vector<32x32xf32>, vector<8x32xf32> -> vector<8x32xf32>
    %c0_17 = arith.constant 0 : index
    %c0_18 = arith.constant 0 : index
    %64 = vector.load %arg6[%c0_17, %c0_18] : memref<1x32xf32, #tpu.memory_space<vmem>>, vector<1x32xf32>
    %65 = vector.broadcast %64 : vector<1x32xf32> to vector<8x32xf32>
    %66 = arith.addf %63, %65 : vector<8x32xf32>
    %67 = arith.addf %1, %66 : vector<8x32xf32>
    %c0_19 = arith.constant 0 : index
    %c0_20 = arith.constant 0 : index
    %68 = vector.load %arg17[%c0_19, %c0_20] : memref<1x32xf32, #tpu.memory_space<vmem>>, vector<1x32xf32>
    %c0_21 = arith.constant 0 : index
    %c0_22 = arith.constant 0 : index
    %69 = vector.load %arg18[%c0_21, %c0_22] : memref<1x32xf32, #tpu.memory_space<vmem>>, vector<1x32xf32>
    %cst_23 = arith.constant dense<0.000000e+00> : vector<8xf32>
    %70 = vector.multi_reduction <add>, %67, %cst_23 [1] : vector<8x32xf32> to vector<8xf32>
    %71 = vector.shape_cast %70 : vector<8xf32> to vector<8x1xf32>
    %cst_24 = arith.constant 3.200000e+01 : f32
    %72 = vector.broadcast %cst_24 : f32 to vector<8x1xf32>
    %73 = arith.divf %71, %72 : vector<8x1xf32>
    %74 = vector.broadcast %73 : vector<8x1xf32> to vector<8x32xf32>
    %75 = arith.subf %67, %74 : vector<8x32xf32>
    %76 = arith.mulf %75, %75 : vector<8x32xf32>
    %cst_25 = arith.constant dense<0.000000e+00> : vector<8xf32>
    %77 = vector.multi_reduction <add>, %76, %cst_25 [1] : vector<8x32xf32> to vector<8xf32>
    %78 = vector.shape_cast %77 : vector<8xf32> to vector<8x1xf32>
    %cst_26 = arith.constant 3.200000e+01 : f32
    %79 = vector.broadcast %cst_26 : f32 to vector<8x1xf32>
    %80 = arith.divf %78, %79 : vector<8x1xf32>
    %81 = vector.broadcast %73 : vector<8x1xf32> to vector<8x32xf32>
    %82 = arith.subf %67, %81 : vector<8x32xf32>
    %cst_27 = arith.constant 9.99999974E-6 : f32
    %83 = vector.broadcast %cst_27 : f32 to vector<8x1xf32>
    %84 = arith.addf %80, %83 : vector<8x1xf32>
    %85 = math.rsqrt %84 : vector<8x1xf32>
    %86 = vector.broadcast %85 : vector<8x1xf32> to vector<8x32xf32>
    %87 = arith.mulf %82, %86 : vector<8x32xf32>
    %88 = vector.broadcast %68 : vector<1x32xf32> to vector<8x32xf32>
    %89 = arith.mulf %87, %88 : vector<8x32xf32>
    %90 = vector.broadcast %69 : vector<1x32xf32> to vector<8x32xf32>
    %91 = arith.addf %89, %90 : vector<8x32xf32>
    %c0_28 = arith.constant 0 : index
    %c0_29 = arith.constant 0 : index
    %92 = vector.load %arg7[%c0_28, %c0_29] : memref<32x32xf32, #tpu.memory_space<vmem>>, vector<32x32xf32>
    %cst_30 = arith.constant dense<0.000000e+00> : vector<8x32xf32>
    %93 = tpu.matmul %91, %92, %cst_30 {dimension_numbers = #tpu.dot_dimension_numbers<[1], [0], [0], [1], [0, 0, 1, 1], [], []>} : vector<8x32xf32>, vector<32x32xf32>, vector<8x32xf32> -> vector<8x32xf32>
    %c0_31 = arith.constant 0 : index
    %c0_32 = arith.constant 0 : index
    %94 = vector.load %arg8[%c0_31, %c0_32] : memref<1x32xf32, #tpu.memory_space<vmem>>, vector<1x32xf32>
    %95 = vector.broadcast %94 : vector<1x32xf32> to vector<8x32xf32>
    %96 = arith.addf %93, %95 : vector<8x32xf32>
    %c0_33 = arith.constant 0 : index
    %c0_34 = arith.constant 0 : index
    %97 = vector.load %arg9[%c0_33, %c0_34] : memref<32x64xf32, #tpu.memory_space<vmem>>, vector<32x64xf32>
    %cst_35 = arith.constant dense<0.000000e+00> : vector<8x64xf32>
    %98 = tpu.matmul %3, %97, %cst_35 {dimension_numbers = #tpu.dot_dimension_numbers<[1], [0], [0], [1], [0, 0, 1, 1], [], []>} : vector<8x32xf32>, vector<32x64xf32>, vector<8x64xf32> -> vector<8x64xf32>
    %c0_36 = arith.constant 0 : index
    %c0_37 = arith.constant 0 : index
    %99 = vector.load %arg10[%c0_36, %c0_37] : memref<1x64xf32, #tpu.memory_space<vmem>>, vector<1x64xf32>
    %100 = vector.broadcast %99 : vector<1x64xf32> to vector<8x64xf32>
    %101 = arith.addf %98, %100 : vector<8x64xf32>
    %102 = vector.extract_strided_slice %101 {offsets = [0, 0], sizes = [8, 32], strides = [1, 1]} : vector<8x64xf32> to vector<8x32xf32>
    %103 = vector.extract_strided_slice %101 {offsets = [0, 32], sizes = [8, 32], strides = [1, 1]} : vector<8x64xf32> to vector<8x32xf32>
    %104 = vector.extract_strided_slice %96 {offsets = [0, 0], sizes = [8, 8], strides = [1, 1]} : vector<8x32xf32> to vector<8x8xf32>
    %105 = vector.extract_strided_slice %96 {offsets = [0, 8], sizes = [8, 8], strides = [1, 1]} : vector<8x32xf32> to vector<8x8xf32>
    %106 = vector.extract_strided_slice %96 {offsets = [0, 16], sizes = [8, 8], strides = [1, 1]} : vector<8x32xf32> to vector<8x8xf32>
    %107 = vector.extract_strided_slice %96 {offsets = [0, 24], sizes = [8, 8], strides = [1, 1]} : vector<8x32xf32> to vector<8x8xf32>
    %108 = vector.shape_cast %104 : vector<8x8xf32> to vector<1x8x8xf32>
    %109 = vector.shape_cast %105 : vector<8x8xf32> to vector<1x8x8xf32>
    %110 = vector.shape_cast %106 : vector<8x8xf32> to vector<1x8x8xf32>
    %111 = vector.shape_cast %107 : vector<8x8xf32> to vector<1x8x8xf32>
    %112 = tpu.concatenate %108, %109, %110, %111 in 0 : vector<1x8x8xf32>, vector<1x8x8xf32>, vector<1x8x8xf32>, vector<1x8x8xf32> -> vector<4x8x8xf32>
    %113 = vector.extract_strided_slice %102 {offsets = [0, 0], sizes = [8, 8], strides = [1, 1]} : vector<8x32xf32> to vector<8x8xf32>
    %114 = vector.extract_strided_slice %102 {offsets = [0, 8], sizes = [8, 8], strides = [1, 1]} : vector<8x32xf32> to vector<8x8xf32>
    %115 = vector.extract_strided_slice %102 {offsets = [0, 16], sizes = [8, 8], strides = [1, 1]} : vector<8x32xf32> to vector<8x8xf32>
    %116 = vector.extract_strided_slice %102 {offsets = [0, 24], sizes = [8, 8], strides = [1, 1]} : vector<8x32xf32> to vector<8x8xf32>
    %117 = vector.shape_cast %113 : vector<8x8xf32> to vector<1x8x8xf32>
    %118 = vector.shape_cast %114 : vector<8x8xf32> to vector<1x8x8xf32>
    %119 = vector.shape_cast %115 : vector<8x8xf32> to vector<1x8x8xf32>
    %120 = vector.shape_cast %116 : vector<8x8xf32> to vector<1x8x8xf32>
    %121 = tpu.concatenate %117, %118, %119, %120 in 0 : vector<1x8x8xf32>, vector<1x8x8xf32>, vector<1x8x8xf32>, vector<1x8x8xf32> -> vector<4x8x8xf32>
    %122 = vector.extract_strided_slice %103 {offsets = [0, 0], sizes = [8, 8], strides = [1, 1]} : vector<8x32xf32> to vector<8x8xf32>
    %123 = vector.extract_strided_slice %103 {offsets = [0, 8], sizes = [8, 8], strides = [1, 1]} : vector<8x32xf32> to vector<8x8xf32>
    %124 = vector.extract_strided_slice %103 {offsets = [0, 16], sizes = [8, 8], strides = [1, 1]} : vector<8x32xf32> to vector<8x8xf32>
    %125 = vector.extract_strided_slice %103 {offsets = [0, 24], sizes = [8, 8], strides = [1, 1]} : vector<8x32xf32> to vector<8x8xf32>
    %126 = vector.shape_cast %122 : vector<8x8xf32> to vector<1x8x8xf32>
    %127 = vector.shape_cast %123 : vector<8x8xf32> to vector<1x8x8xf32>
    %128 = vector.shape_cast %124 : vector<8x8xf32> to vector<1x8x8xf32>
    %129 = vector.shape_cast %125 : vector<8x8xf32> to vector<1x8x8xf32>
    %130 = tpu.concatenate %126, %127, %128, %129 in 0 : vector<1x8x8xf32>, vector<1x8x8xf32>, vector<1x8x8xf32>, vector<1x8x8xf32> -> vector<4x8x8xf32>
    "tpu.trace_start"() <{level = 10 : i32, message = "hqd,hkd->hqk"}> : () -> ()
    %cst_38 = arith.constant dense<0.000000e+00> : vector<4x8x8xf32>
    %131 = tpu.matmul %112, %121, %cst_38 {dimension_numbers = #tpu.dot_dimension_numbers<[2], [2], [1], [1], [0, 0, 0, 1, 1, 1], [0], [0]>} : vector<4x8x8xf32>, vector<4x8x8xf32>, vector<4x8x8xf32> -> vector<4x8x8xf32>
    "tpu.trace_stop"() : () -> ()
    %cst_39 = arith.constant 0.353553385 : f32
    %132 = vector.broadcast %cst_39 : f32 to vector<4x8x8xf32>
    %133 = arith.mulf %131, %132 : vector<4x8x8xf32>
    %cst_40 = arith.constant dense<0xFF800000> : vector<4x8xf32>
    %134 = vector.multi_reduction <maximumf>, %133, %cst_40 [2] : vector<4x8x8xf32> to vector<4x8xf32>
    %135 = vector.shape_cast %134 : vector<4x8xf32> to vector<4x8x1xf32>
    %136 = vector.broadcast %135 : vector<4x8x1xf32> to vector<4x8x8xf32>
    %137 = arith.subf %133, %136 : vector<4x8x8xf32>
    %138 = math.exp %137 : vector<4x8x8xf32>
    %cst_41 = arith.constant dense<0.000000e+00> : vector<4x8xf32>
    %139 = vector.multi_reduction <add>, %138, %cst_41 [2] : vector<4x8x8xf32> to vector<4x8xf32>
    %140 = vector.shape_cast %139 : vector<4x8xf32> to vector<4x8x1xf32>
    %141 = tpu.reciprocal %140 {approx = true} : vector<4x8x1xf32> -> vector<4x8x1xf32>
    %142 = vector.broadcast %141 : vector<4x8x1xf32> to vector<4x8x8xf32>
    %143 = arith.mulf %138, %142 : vector<4x8x8xf32>
    "tpu.trace_start"() <{level = 10 : i32, message = "hqk,hkd->hqd"}> : () -> ()
    %cst_42 = arith.constant dense<0.000000e+00> : vector<4x8x8xf32>
    %144 = tpu.matmul %143, %130, %cst_42 {dimension_numbers = #tpu.dot_dimension_numbers<[2], [1], [1], [2], [0, 0, 0, 1, 1, 2], [0], [0]>} : vector<4x8x8xf32>, vector<4x8x8xf32>, vector<4x8x8xf32> -> vector<4x8x8xf32>
    "tpu.trace_stop"() : () -> ()
    %145 = vector.extract_strided_slice %144 {offsets = [0, 0, 0], sizes = [1, 8, 8], strides = [1, 1, 1]} : vector<4x8x8xf32> to vector<1x8x8xf32>
    %146 = vector.shape_cast %145 : vector<1x8x8xf32> to vector<8x8xf32>
    %147 = vector.extract_strided_slice %144 {offsets = [1, 0, 0], sizes = [1, 8, 8], strides = [1, 1, 1]} : vector<4x8x8xf32> to vector<1x8x8xf32>
    %148 = vector.shape_cast %147 : vector<1x8x8xf32> to vector<8x8xf32>
    %149 = vector.extract_strided_slice %144 {offsets = [2, 0, 0], sizes = [1, 8, 8], strides = [1, 1, 1]} : vector<4x8x8xf32> to vector<1x8x8xf32>
    %150 = vector.shape_cast %149 : vector<1x8x8xf32> to vector<8x8xf32>
    %151 = vector.extract_strided_slice %144 {offsets = [3, 0, 0], sizes = [1, 8, 8], strides = [1, 1, 1]} : vector<4x8x8xf32> to vector<1x8x8xf32>
    %152 = vector.shape_cast %151 : vector<1x8x8xf32> to vector<8x8xf32>
    %153 = tpu.concatenate %146, %148, %150, %152 in 1 : vector<8x8xf32>, vector<8x8xf32>, vector<8x8xf32>, vector<8x8xf32> -> vector<8x32xf32>
    %c0_43 = arith.constant 0 : index
    %c0_44 = arith.constant 0 : index
    %154 = vector.load %arg11[%c0_43, %c0_44] : memref<32x32xf32, #tpu.memory_space<vmem>>, vector<32x32xf32>
    %cst_45 = arith.constant dense<0.000000e+00> : vector<8x32xf32>
    %155 = tpu.matmul %153, %154, %cst_45 {dimension_numbers = #tpu.dot_dimension_numbers<[1], [0], [0], [1], [0, 0, 1, 1], [], []>} : vector<8x32xf32>, vector<32x32xf32>, vector<8x32xf32> -> vector<8x32xf32>
    %c0_46 = arith.constant 0 : index
    %c0_47 = arith.constant 0 : index
    %156 = vector.load %arg12[%c0_46, %c0_47] : memref<1x32xf32, #tpu.memory_space<vmem>>, vector<1x32xf32>
    %157 = vector.broadcast %156 : vector<1x32xf32> to vector<8x32xf32>
    %158 = arith.addf %155, %157 : vector<8x32xf32>
    %159 = arith.addf %91, %158 : vector<8x32xf32>
    %c0_48 = arith.constant 0 : index
    %c0_49 = arith.constant 0 : index
    %160 = vector.load %arg19[%c0_48, %c0_49] : memref<1x32xf32, #tpu.memory_space<vmem>>, vector<1x32xf32>
    %c0_50 = arith.constant 0 : index
    %c0_51 = arith.constant 0 : index
    %161 = vector.load %arg20[%c0_50, %c0_51] : memref<1x32xf32, #tpu.memory_space<vmem>>, vector<1x32xf32>
    %cst_52 = arith.constant dense<0.000000e+00> : vector<8xf32>
    %162 = vector.multi_reduction <add>, %159, %cst_52 [1] : vector<8x32xf32> to vector<8xf32>
    %163 = vector.shape_cast %162 : vector<8xf32> to vector<8x1xf32>
    %cst_53 = arith.constant 3.200000e+01 : f32
    %164 = vector.broadcast %cst_53 : f32 to vector<8x1xf32>
    %165 = arith.divf %163, %164 : vector<8x1xf32>
    %166 = vector.broadcast %165 : vector<8x1xf32> to vector<8x32xf32>
    %167 = arith.subf %159, %166 : vector<8x32xf32>
    %168 = arith.mulf %167, %167 : vector<8x32xf32>
    %cst_54 = arith.constant dense<0.000000e+00> : vector<8xf32>
    %169 = vector.multi_reduction <add>, %168, %cst_54 [1] : vector<8x32xf32> to vector<8xf32>
    %170 = vector.shape_cast %169 : vector<8xf32> to vector<8x1xf32>
    %cst_55 = arith.constant 3.200000e+01 : f32
    %171 = vector.broadcast %cst_55 : f32 to vector<8x1xf32>
    %172 = arith.divf %170, %171 : vector<8x1xf32>
    %173 = vector.broadcast %165 : vector<8x1xf32> to vector<8x32xf32>
    %174 = arith.subf %159, %173 : vector<8x32xf32>
    %cst_56 = arith.constant 9.99999974E-6 : f32
    %175 = vector.broadcast %cst_56 : f32 to vector<8x1xf32>
    %176 = arith.addf %172, %175 : vector<8x1xf32>
    %177 = math.rsqrt %176 : vector<8x1xf32>
    %178 = vector.broadcast %177 : vector<8x1xf32> to vector<8x32xf32>
    %179 = arith.mulf %174, %178 : vector<8x32xf32>
    %180 = vector.broadcast %160 : vector<1x32xf32> to vector<8x32xf32>
    %181 = arith.mulf %179, %180 : vector<8x32xf32>
    %182 = vector.broadcast %161 : vector<1x32xf32> to vector<8x32xf32>
    %183 = arith.addf %181, %182 : vector<8x32xf32>
    %c0_57 = arith.constant 0 : index
    %c0_58 = arith.constant 0 : index
    %184 = vector.load %arg13[%c0_57, %c0_58] : memref<32x64xf32, #tpu.memory_space<vmem>>, vector<32x64xf32>
    %cst_59 = arith.constant dense<0.000000e+00> : vector<8x64xf32>
    %185 = tpu.matmul %183, %184, %cst_59 {dimension_numbers = #tpu.dot_dimension_numbers<[1], [0], [0], [1], [0, 0, 1, 1], [], []>} : vector<8x32xf32>, vector<32x64xf32>, vector<8x64xf32> -> vector<8x64xf32>
    %c0_60 = arith.constant 0 : index
    %c0_61 = arith.constant 0 : index
    %186 = vector.load %arg14[%c0_60, %c0_61] : memref<1x64xf32, #tpu.memory_space<vmem>>, vector<1x64xf32>
    %187 = vector.broadcast %186 : vector<1x64xf32> to vector<8x64xf32>
    %188 = arith.addf %185, %187 : vector<8x64xf32>
    %cst_62 = arith.constant 0.000000e+00 : f32
    %189 = vector.broadcast %cst_62 : f32 to vector<8x64xf32>
    %190 = arith.maximumf %188, %189 : vector<8x64xf32>
    %c0_63 = arith.constant 0 : index
    %c0_64 = arith.constant 0 : index
    %191 = vector.load %arg15[%c0_63, %c0_64] : memref<64x32xf32, #tpu.memory_space<vmem>>, vector<64x32xf32>
    %cst_65 = arith.constant dense<0.000000e+00> : vector<8x32xf32>
    %192 = tpu.matmul %190, %191, %cst_65 {dimension_numbers = #tpu.dot_dimension_numbers<[1], [0], [0], [1], [0, 0, 1, 1], [], []>} : vector<8x64xf32>, vector<64x32xf32>, vector<8x32xf32> -> vector<8x32xf32>
    %c0_66 = arith.constant 0 : index
    %c0_67 = arith.constant 0 : index
    %193 = vector.load %arg16[%c0_66, %c0_67] : memref<1x32xf32, #tpu.memory_space<vmem>>, vector<1x32xf32>
    %194 = vector.broadcast %193 : vector<1x32xf32> to vector<8x32xf32>
    %195 = arith.addf %192, %194 : vector<8x32xf32>
    %196 = arith.addf %183, %195 : vector<8x32xf32>
    %c0_68 = arith.constant 0 : index
    %c0_69 = arith.constant 0 : index
    %197 = vector.load %arg21[%c0_68, %c0_69] : memref<1x32xf32, #tpu.memory_space<vmem>>, vector<1x32xf32>
    %c0_70 = arith.constant 0 : index
    %c0_71 = arith.constant 0 : index
    %198 = vector.load %arg22[%c0_70, %c0_71] : memref<1x32xf32, #tpu.memory_space<vmem>>, vector<1x32xf32>
    %cst_72 = arith.constant dense<0.000000e+00> : vector<8xf32>
    %199 = vector.multi_reduction <add>, %196, %cst_72 [1] : vector<8x32xf32> to vector<8xf32>
    %200 = vector.shape_cast %199 : vector<8xf32> to vector<8x1xf32>
    %cst_73 = arith.constant 3.200000e+01 : f32
    %201 = vector.broadcast %cst_73 : f32 to vector<8x1xf32>
    %202 = arith.divf %200, %201 : vector<8x1xf32>
    %203 = vector.broadcast %202 : vector<8x1xf32> to vector<8x32xf32>
    %204 = arith.subf %196, %203 : vector<8x32xf32>
    %205 = arith.mulf %204, %204 : vector<8x32xf32>
    %cst_74 = arith.constant dense<0.000000e+00> : vector<8xf32>
    %206 = vector.multi_reduction <add>, %205, %cst_74 [1] : vector<8x32xf32> to vector<8xf32>
    %207 = vector.shape_cast %206 : vector<8xf32> to vector<8x1xf32>
    %cst_75 = arith.constant 3.200000e+01 : f32
    %208 = vector.broadcast %cst_75 : f32 to vector<8x1xf32>
    %209 = arith.divf %207, %208 : vector<8x1xf32>
    %210 = vector.broadcast %202 : vector<8x1xf32> to vector<8x32xf32>
    %211 = arith.subf %196, %210 : vector<8x32xf32>
    %cst_76 = arith.constant 9.99999974E-6 : f32
    %212 = vector.broadcast %cst_76 : f32 to vector<8x1xf32>
    %213 = arith.addf %209, %212 : vector<8x1xf32>
    %214 = math.rsqrt %213 : vector<8x1xf32>
    %215 = vector.broadcast %214 : vector<8x1xf32> to vector<8x32xf32>
    %216 = arith.mulf %211, %215 : vector<8x32xf32>
    %217 = vector.broadcast %197 : vector<1x32xf32> to vector<8x32xf32>
    %218 = arith.mulf %216, %217 : vector<8x32xf32>
    %219 = vector.broadcast %198 : vector<1x32xf32> to vector<8x32xf32>
    %220 = arith.addf %218, %219 : vector<8x32xf32>
    %c0_77 = arith.constant 0 : index
    %c0_78 = arith.constant 0 : index
    %c0_79 = arith.constant 0 : index
    %221 = vector.load %arg23[%c0_77, %c0_78, %c0_79] : memref<1x8x32xf32, #tpu.memory_space<vmem>>, vector<1x8x32xf32>
    %222 = vector.shape_cast %221 : vector<1x8x32xf32> to vector<8x32xf32>
    %223 = vector.shape_cast %220 : vector<8x32xf32> to vector<1x8x32xf32>
    tpu.vector_store %arg23[%c0_77, %c0_78, %c0_79], %223 {strides = array<i32>} : memref<1x8x32xf32, #tpu.memory_space<vmem>>, vector<1x8x32xf32>,
    return
  }
  func.func @transform_0(%arg0: i32) -> (i32, i32, i32) {
    %c0_i32 = arith.constant 0 : i32
    %c0_i32_0 = arith.constant 0 : i32
    %c0_i32_1 = arith.constant 0 : i32
    return %arg0, %c0_i32, %c0_i32_0 : i32, i32, i32
  }
  func.func @transform_1(%arg0: i32) -> (i32, i32, i32) {
    %c0_i32 = arith.constant 0 : i32
    %c0_i32_0 = arith.constant 0 : i32
    %c0_i32_1 = arith.constant 0 : i32
    return %arg0, %c0_i32, %c0_i32_0 : i32, i32, i32
  }
  func.func @transform_2(%arg0: i32) -> (i32, i32) {
    %c0_i32 = arith.constant 0 : i32
    %c0_i32_0 = arith.constant 0 : i32
    %c0_i32_1 = arith.constant 0 : i32
    return %c0_i32, %c0_i32_0 : i32, i32
  }
  func.func @transform_3(%arg0: i32) -> (i32, i32) {
    %c0_i32 = arith.constant 0 : i32
    %c0_i32_0 = arith.constant 0 : i32
    %c0_i32_1 = arith.constant 0 : i32
    return %c0_i32, %c0_i32_0 : i32, i32
  }
  func.func @transform_4(%arg0: i32) -> (i32, i32) {
    %c0_i32 = arith.constant 0 : i32
    %c0_i32_0 = arith.constant 0 : i32
    %c0_i32_1 = arith.constant 0 : i32
    return %c0_i32, %c0_i32_0 : i32, i32
  }
  func.func @transform_5(%arg0: i32) -> (i32, i32) {
    %c0_i32 = arith.constant 0 : i32
    %c0_i32_0 = arith.constant 0 : i32
    %c0_i32_1 = arith.constant 0 : i32
    return %c0_i32, %c0_i32_0 : i32, i32
  }
  func.func @transform_6(%arg0: i32) -> (i32, i32) {
    %c0_i32 = arith.constant 0 : i32
    %c0_i32_0 = arith.constant 0 : i32
    %c0_i32_1 = arith.constant 0 : i32
    return %c0_i32, %c0_i32_0 : i32, i32
  }
  func.func @transform_7(%arg0: i32) -> (i32, i32) {
    %c0_i32 = arith.constant 0 : i32
    %c0_i32_0 = arith.constant 0 : i32
    %c0_i32_1 = arith.constant 0 : i32
    return %c0_i32, %c0_i32_0 : i32, i32
  }
  func.func @transform_8(%arg0: i32) -> (i32, i32) {
    %c0_i32 = arith.constant 0 : i32
    %c0_i32_0 = arith.constant 0 : i32
    %c0_i32_1 = arith.constant 0 : i32
    return %c0_i32, %c0_i32_0 : i32, i32
  }
  func.func @transform_9(%arg0: i32) -> (i32, i32) {
    %c0_i32 = arith.constant 0 : i32
    %c0_i32_0 = arith.constant 0 : i32
    %c0_i32_1 = arith.constant 0 : i32
    return %c0_i32, %c0_i32_0 : i32, i32
  }
  func.func @transform_10(%arg0: i32) -> (i32, i32) {
    %c0_i32 = arith.constant 0 : i32
    %c0_i32_0 = arith.constant 0 : i32
    %c0_i32_1 = arith.constant 0 : i32
    return %c0_i32, %c0_i32_0 : i32, i32
  }
  func.func @transform_11(%arg0: i32) -> (i32, i32) {
    %c0_i32 = arith.constant 0 : i32
    %c0_i32_0 = arith.constant 0 : i32
    %c0_i32_1 = arith.constant 0 : i32
    return %c0_i32, %c0_i32_0 : i32, i32
  }
  func.func @transform_12(%arg0: i32) -> (i32, i32) {
    %c0_i32 = arith.constant 0 : i32
    %c0_i32_0 = arith.constant 0 : i32
    %c0_i32_1 = arith.constant 0 : i32
    return %c0_i32, %c0_i32_0 : i32, i32
  }
  func.func @transform_13(%arg0: i32) -> (i32, i32) {
    %c0_i32 = arith.constant 0 : i32
    %c0_i32_0 = arith.constant 0 : i32
    %c0_i32_1 = arith.constant 0 : i32
    return %c0_i32, %c0_i32_0 : i32, i32
  }
  func.func @transform_14(%arg0: i32) -> (i32, i32) {
    %c0_i32 = arith.constant 0 : i32
    %c0_i32_0 = arith.constant 0 : i32
    %c0_i32_1 = arith.constant 0 : i32
    return %c0_i32, %c0_i32_0 : i32, i32
  }
  func.func @transform_15(%arg0: i32) -> (i32, i32) {
    %c0_i32 = arith.constant 0 : i32
    %c0_i32_0 = arith.constant 0 : i32
    %c0_i32_1 = arith.constant 0 : i32
    return %c0_i32, %c0_i32_0 : i32, i32
  }
  func.func @transform_16(%arg0: i32) -> (i32, i32) {
    %c0_i32 = arith.constant 0 : i32
    %c0_i32_0 = arith.constant 0 : i32
    %c0_i32_1 = arith.constant 0 : i32
    return %c0_i32, %c0_i32_0 : i32, i32
  }
  func.func @transform_17(%arg0: i32) -> (i32, i32) {
    %c0_i32 = arith.constant 0 : i32
    %c0_i32_0 = arith.constant 0 : i32
    %c0_i32_1 = arith.constant 0 : i32
    return %c0_i32, %c0_i32_0 : i32, i32
  }
  func.func @transform_18(%arg0: i32) -> (i32, i32) {
    %c0_i32 = arith.constant 0 : i32
    %c0_i32_0 = arith.constant 0 : i32
    %c0_i32_1 = arith.constant 0 : i32
    return %c0_i32, %c0_i32_0 : i32, i32
  }
  func.func @transform_19(%arg0: i32) -> (i32, i32) {
    %c0_i32 = arith.constant 0 : i32
    %c0_i32_0 = arith.constant 0 : i32
    %c0_i32_1 = arith.constant 0 : i32
    return %c0_i32, %c0_i32_0 : i32, i32
  }
  func.func @transform_20(%arg0: i32) -> (i32, i32) {
    %c0_i32 = arith.constant 0 : i32
    %c0_i32_0 = arith.constant 0 : i32
    %c0_i32_1 = arith.constant 0 : i32
    return %c0_i32, %c0_i32_0 : i32, i32
  }
  func.func @transform_21(%arg0: i32) -> (i32, i32) {
    %c0_i32 = arith.constant 0 : i32
    %c0_i32_0 = arith.constant 0 : i32
    %c0_i32_1 = arith.constant 0 : i32
    return %c0_i32, %c0_i32_0 : i32, i32
  }
  func.func @transform_22(%arg0: i32) -> (i32, i32, i32) {
    %c0_i32 = arith.constant 0 : i32
    %c0_i32_0 = arith.constant 0 : i32
    %c0_i32_1 = arith.constant 0 : i32
    return %arg0, %c0_i32, %c0_i32_0 : i32, i32, i32
  }
}

module attributes {stable_mosaic.version = 11 : i64} {
  func.func @_final_kernel(%arg0: i32, %arg1: memref<16x32xf32, #tpu.memory_space<vmem>>, %arg2: memref<1x32xf32, #tpu.memory_space<vmem>>, %arg3: memref<1x32xf32, #tpu.memory_space<vmem>>, %arg4: memref<1x32xf32, #tpu.memory_space<vmem>>, %arg5: memref<1x1xf32, #tpu.memory_space<vmem>>, %arg6: memref<16x1xf32, #tpu.memory_space<vmem>>) attributes {dimension_semantics = [#tpu.dimension_semantics<arbitrary>], iteration_bounds = array<i64: 1>, scalar_prefetch = 0 : i64, scratch_operands = 0 : i64, tpu.core_type = #tpu.core_type<tc>, window_params = [{pipeline_mode = #tpu.pipeline_mode<synchronous>, transform_indices = @transform_0, window_bounds = array<i64: 16, 32>}, {pipeline_mode = #tpu.pipeline_mode<synchronous>, transform_indices = @transform_1, window_bounds = array<i64: 1, 32>}, {pipeline_mode = #tpu.pipeline_mode<synchronous>, transform_indices = @transform_2, window_bounds = array<i64: 1, 32>}, {pipeline_mode = #tpu.pipeline_mode<synchronous>, transform_indices = @transform_3, window_bounds = array<i64: 1, 32>}, {pipeline_mode = #tpu.pipeline_mode<synchronous>, transform_indices = @transform_4, window_bounds = array<i64: 1, 1>}, {pipeline_mode = #tpu.pipeline_mode<synchronous>, transform_indices = @transform_5, window_bounds = array<i64: 16, 1>}]} {
    %c0 = arith.constant 0 : index
    %c0_0 = arith.constant 0 : index
    %0 = vector.load %arg1[%c0, %c0_0] : memref<16x32xf32, #tpu.memory_space<vmem>>, vector<16x32xf32>
    %c0_1 = arith.constant 0 : index
    %c0_2 = arith.constant 0 : index
    %1 = vector.load %arg2[%c0_1, %c0_2] : memref<1x32xf32, #tpu.memory_space<vmem>>, vector<1x32xf32>
    %c0_3 = arith.constant 0 : index
    %c0_4 = arith.constant 0 : index
    %2 = vector.load %arg3[%c0_3, %c0_4] : memref<1x32xf32, #tpu.memory_space<vmem>>, vector<1x32xf32>
    %cst = arith.constant dense<0.000000e+00> : vector<16xf32>
    %3 = vector.multi_reduction <add>, %0, %cst [1] : vector<16x32xf32> to vector<16xf32>
    %4 = vector.shape_cast %3 : vector<16xf32> to vector<16x1xf32>
    %cst_5 = arith.constant 3.200000e+01 : f32
    %5 = vector.broadcast %cst_5 : f32 to vector<16x1xf32>
    %6 = arith.divf %4, %5 : vector<16x1xf32>
    %7 = vector.broadcast %6 : vector<16x1xf32> to vector<16x32xf32>
    %8 = arith.subf %0, %7 : vector<16x32xf32>
    %9 = arith.mulf %8, %8 : vector<16x32xf32>
    %cst_6 = arith.constant dense<0.000000e+00> : vector<16xf32>
    %10 = vector.multi_reduction <add>, %9, %cst_6 [1] : vector<16x32xf32> to vector<16xf32>
    %11 = vector.shape_cast %10 : vector<16xf32> to vector<16x1xf32>
    %cst_7 = arith.constant 3.200000e+01 : f32
    %12 = vector.broadcast %cst_7 : f32 to vector<16x1xf32>
    %13 = arith.divf %11, %12 : vector<16x1xf32>
    %14 = vector.broadcast %6 : vector<16x1xf32> to vector<16x32xf32>
    %15 = arith.subf %0, %14 : vector<16x32xf32>
    %cst_8 = arith.constant 9.99999974E-6 : f32
    %16 = vector.broadcast %cst_8 : f32 to vector<16x1xf32>
    %17 = arith.addf %13, %16 : vector<16x1xf32>
    %18 = math.rsqrt %17 : vector<16x1xf32>
    %19 = vector.broadcast %18 : vector<16x1xf32> to vector<16x32xf32>
    %20 = arith.mulf %15, %19 : vector<16x32xf32>
    %21 = vector.broadcast %1 : vector<1x32xf32> to vector<16x32xf32>
    %22 = arith.mulf %20, %21 : vector<16x32xf32>
    %23 = vector.broadcast %2 : vector<1x32xf32> to vector<16x32xf32>
    %24 = arith.addf %22, %23 : vector<16x32xf32>
    %c0_9 = arith.constant 0 : index
    %c0_10 = arith.constant 0 : index
    %25 = vector.load %arg4[%c0_9, %c0_10] : memref<1x32xf32, #tpu.memory_space<vmem>>, vector<1x32xf32>
    %26 = vector.broadcast %25 : vector<1x32xf32> to vector<16x32xf32>
    %27 = arith.mulf %24, %26 : vector<16x32xf32>
    %cst_11 = arith.constant dense<0.000000e+00> : vector<16xf32>
    %28 = vector.multi_reduction <add>, %27, %cst_11 [1] : vector<16x32xf32> to vector<16xf32>
    %29 = vector.shape_cast %28 : vector<16xf32> to vector<16x1xf32>
    %c0_12 = arith.constant 0 : index
    %c0_13 = arith.constant 0 : index
    %30 = vector.load %arg5[%c0_12, %c0_13] : memref<1x1xf32, #tpu.memory_space<vmem>>, vector<1x1xf32>
    %31 = vector.broadcast %30 : vector<1x1xf32> to vector<16x1xf32>
    %32 = arith.addf %29, %31 : vector<16x1xf32>
    %c0_14 = arith.constant 0 : index
    %c0_15 = arith.constant 0 : index
    %33 = vector.load %arg6[%c0_14, %c0_15] : memref<16x1xf32, #tpu.memory_space<vmem>>, vector<16x1xf32>
    tpu.vector_store %arg6[%c0_14, %c0_15], %32 {strides = array<i32>} : memref<16x1xf32, #tpu.memory_space<vmem>>, vector<16x1xf32>,
    return
  }
  func.func @transform_0(%arg0: i32) -> (i32, i32) {
    %c0_i32 = arith.constant 0 : i32
    %c0_i32_0 = arith.constant 0 : i32
    %c0_i32_1 = arith.constant 0 : i32
    return %c0_i32, %c0_i32_0 : i32, i32
  }
  func.func @transform_1(%arg0: i32) -> (i32, i32) {
    %c0_i32 = arith.constant 0 : i32
    %c0_i32_0 = arith.constant 0 : i32
    %c0_i32_1 = arith.constant 0 : i32
    return %c0_i32, %c0_i32_0 : i32, i32
  }
  func.func @transform_2(%arg0: i32) -> (i32, i32) {
    %c0_i32 = arith.constant 0 : i32
    %c0_i32_0 = arith.constant 0 : i32
    %c0_i32_1 = arith.constant 0 : i32
    return %c0_i32, %c0_i32_0 : i32, i32
  }
  func.func @transform_3(%arg0: i32) -> (i32, i32) {
    %c0_i32 = arith.constant 0 : i32
    %c0_i32_0 = arith.constant 0 : i32
    %c0_i32_1 = arith.constant 0 : i32
    return %c0_i32, %c0_i32_0 : i32, i32
  }
  func.func @transform_4(%arg0: i32) -> (i32, i32) {
    %c0_i32 = arith.constant 0 : i32
    %c0_i32_0 = arith.constant 0 : i32
    %c0_i32_1 = arith.constant 0 : i32
    return %c0_i32, %c0_i32_0 : i32, i32
  }
  func.func @transform_5(%arg0: i32) -> (i32, i32) {
    %c0_i32 = arith.constant 0 : i32
    %c0_i32_0 = arith.constant 0 : i32
    %c0_i32_1 = arith.constant 0 : i32
    return %c0_i32, %c0_i32_0 : i32, i32
  }
}

</mosaic_0001>

<bundles_post_ra>
// kernel: _lambda_.9
= control target key start
LH: loop header
LB: loop body
LE: loop exit
PB: predicated region body
PF: predicated region fallthrough
CT: control target
= control target key end

     0   :  { %v76_v0 = vmov 0   ;;  %vm63_vm0 = vcmask 261120   ;;  %s126_s0 = inlined_call_operand.vmem [shape: f32[2,8,1], index: 0, kind: input, shape index: {}]   ;;  %s127_s1 = inlined_call_operand.vmem [shape: f32[1,1,32], index: 1, kind: input, shape index: {}]   ;;  %s128_s2 = inlined_call_operand.vmem [shape: f32[1,1,32], index: 2, kind: input, shape index: {}]   ;;  %s129_s3 = inlined_call_operand.vmem [shape: f32[2,1,32], index: 3, kind: input, shape index: {}]   ;;  %s130_s4 = inlined_call_operand.vmem [shape: f32[2,8,32], index: 4, kind: output, shape index: {}]  }
   0x1   :  { %75 = vset.pattern.permute.xlu0 %v76_v0  ;;  %v17_v1 = vld [vmem:[%s126_s0] sm:$0xff]  ;;  %v18_v2 = vld [vmem:[%s126_s0 + $0x8] sm:$0xff] }
   0x2   :  { %22 = vperm.xlu0 %75, %v17_v1   ;;  %v70_v3 = vld [vmem:[%s127_s1] ss:$0 sm:$0xff]  ;;  %v73_v12 = vld [vmem:[%s129_s3 + $0x1] ss:$0 sm:$0xff] }
   0x3   :  { %v71_v4 = vld [vmem:[%s128_s2] ss:$0 sm:$0xff] }
   0x4   :  { %v72_v7 = vld [vmem:[%s129_s3] ss:$0 sm:$0xff] }
   0x6   :  { %27 = vperm.xlu0 %75, %v18_v2  }
  0x7d   :  { %v23_v5 = vpop.permute.xlu0 %22 }
  0x7e   :  { %v36_v6 = vmul.f32 %v70_v3, %v23_v5 }
  0x80   :  { %v45_v8 = vadd.f32 %v71_v4, %v36_v6 }
  0x81   :  { %v28_v9 = vpop.permute.xlu0 %27 }
  0x82   :  { %v61_v10 = vadd.f32 %v72_v7, %v45_v8  ;;  %v37_v11 = vmul.f32 %v70_v3, %v28_v9 }
  0x84   :  { %64 = vst.msk [vmem:[%s130_s4] sm:$0xff] %vm63_vm0, %v61_v10  ;;  %v46_v13 = vadd.f32 %v71_v4, %v37_v11 }
  0x86   :  { %v62_v14 = vadd.f32 %v73_v12, %v46_v13 }
  0x88   :  { %65 = vst.msk [vmem:[%s130_s4 + $0x8] sm:$0xff] %vm63_vm0, %v62_v14 }

// kernel: _lambda_.12
= control target key start
LH: loop header
LB: loop body
LE: loop exit
PB: predicated region body
PF: predicated region fallthrough
CT: control target
= control target key end

     0   :  { %vm18_vm0 = vcmask 261120   ;;  %s118_s0 = inlined_call_operand.vmem [shape: f32[16,32], index: 0, kind: input, shape index: {}]   ;;  %s119_s1 = inlined_call_operand.vmem [shape: f32[1,32], index: 1, kind: input, shape index: {}]   ;;  %s120_s2 = inlined_call_operand.vmem [shape: f32[1,32], index: 2, kind: input, shape index: {}]   ;;  %s121_s3 = inlined_call_operand.vmem [shape: f32[16,32], index: 3, kind: output, shape index: {}]  }
   0x1   :  { %v14_v0 = vld [vmem:[%s118_s0] sm:$0xff]  ;;  %v15_v1 = vld [vmem:[%s118_s0 + $0x8] sm:$0xff] }
   0x2   :  { %v19_v2 = vsel %vm18_vm0, %v14_v0, 0.0  ;;  %v22_v3 = vsel %vm18_vm0, %v15_v1, 0.0  ;;  %v68_v21 = vld [vmem:[%s119_s1] ss:$0 sm:$0xff] }
   0x3   :  { %20 = vadd.xlane.f32.xlu0 %v19_v2  ;;  %v69_v23 = vld [vmem:[%s120_s2] ss:$0 sm:$0xff] }
   0x7   :  { %23 = vadd.xlane.f32.xlu0 %v22_v3 }
  0x8c   :  { %v21_v4 = vpop.xlane.xlu0 %20 }
  0x8d   :  { %v26_v5 = vmul.f32 0.03125, %v21_v4 }
  0x8f   :  { %v28_v6 = vsub.f32 %v14_v0, %v26_v5 }
  0x90   :  { %v24_v7 = vpop.xlane.xlu0 %23 }
  0x91   :  { %v27_v8 = vmul.f32 0.03125, %v24_v7  ;;  %v30_v9 = vmul.f32 %v28_v6, %v28_v6 }
  0x93   :  { %v29_v10 = vsub.f32 %v15_v1, %v27_v8  ;;  %v32_v11 = vsel %vm18_vm0, %v30_v9, 0.0 }
  0x94   :  { %33 = vadd.xlane.f32.xlu1 %v32_v11 }
  0x95   :  { %v31_v12 = vmul.f32 %v29_v10, %v29_v10 }
  0x97   :  { %v35_v13 = vsel %vm18_vm0, %v31_v12, 0.0 }
  0x98   :  { %36 = vadd.xlane.f32.xlu1 %v35_v13 }
 0x11d   :  { %v34_v14 = vpop.xlane.xlu1 %33 }
 0x11e   :  { %v38_v15 = vmul.f32 0.03125, %v34_v14 }
 0x120   :  { %v40_v16 = vadd.f32 1e-05, %v38_v15 }
 0x121   :  { %v37_v17 = vpop.xlane.xlu1 %36 }
 0x122   :  { %70 = vrsqrt.f32 %v40_v16  ;;  %v39_v18 = vmul.f32 0.03125, %v37_v17 }
 0x124   :  { %v41_v19 = vadd.f32 1e-05, %v39_v18 }
 0x126   :  { %72 = vrsqrt.f32 %v41_v19 }
 0x12f   :  { %v71_v20 = vpop.eup %70 }
 0x130   :  { %v44_v22 = vmul.f32 %v71_v20, %v28_v6 }
 0x132   :  { %v52_v24 = vmul.f32 %v68_v21, %v44_v22 }
 0x133   :  { %v73_v25 = vpop.eup %72 }
 0x134   :  { %v60_v26 = vadd.f32 %v69_v23, %v52_v24  ;;  %v45_v27 = vmul.f32 %v73_v25, %v29_v10 }
 0x136   :  { %62 = vst.msk [vmem:[%s121_s3] sm:$0xff] %vm18_vm0, %v60_v26  ;;  %v53_v28 = vmul.f32 %v68_v21, %v45_v27 }
 0x138   :  { %v61_v29 = vadd.f32 %v69_v23, %v53_v28 }
 0x13a   :  { %63 = vst.msk [vmem:[%s121_s3 + $0x8] sm:$0xff] %vm18_vm0, %v61_v29 }

// kernel: _lambda_.10
= control target key start
LH: loop header
LB: loop body
LE: loop exit
PB: predicated region body
PF: predicated region fallthrough
CT: control target
= control target key end

     0   :  { %s1867_s25 = smov 0   ;;  %s2074_s0 = inlined_call_operand.vmem [shape: f32[2,8,32], index: 0, kind: input, shape index: {}]   ;;  %s2075_s1 = inlined_call_operand.vmem [shape: f32[32,96], index: 1, kind: input, shape index: {}]   ;;  %s2076_s2 = inlined_call_operand.vmem [shape: f32[1,96], index: 2, kind: input, shape index: {}]   ;;  %s2077_s3 = inlined_call_operand.vmem [shape: f32[32,32], index: 3, kind: input, shape index: {}]   ;;  %s2078_s4 = inlined_call_operand.vmem [shape: f32[1,32], index: 4, kind: input, shape index: {}]   ;;  %s2079_s5 = inlined_call_operand.vmem [shape: f32[32,64], index: 5, kind: input, shape index: {}]   ;;  %s2080_s6 = inlined_call_operand.vmem [shape: f32[1,64], index: 6, kind: input, shape index: {}]   ;;  %s2081_s7 = inlined_call_operand.vmem [shape: f32[64,32], index: 7, kind: input, shape index: {}]   ;;  %s2082_s8 = inlined_call_operand.vmem [shape: f32[1,32], index: 8, kind: input, shape index: {}]   ;;  %s2083_s9 = inlined_call_operand.vmem [shape: f32[1,32], index: 9, kind: input, shape index: {}]   ;;  %s2084_s10 = inlined_call_operand.vmem [shape: f32[1,32], index: 10, kind: input, shape index: {}]   ;;  %s2085_s11 = inlined_call_operand.vmem [shape: f32[1,32], index: 11, kind: input, shape index: {}]   ;;  %s2086_s12 = inlined_call_operand.vmem [shape: f32[1,32], index: 12, kind: input, shape index: {}]   ;;  %s2087_s13 = inlined_call_operand.vmem [shape: f32[2,8,32], index: 13, kind: output, shape index: {}]  }
   0x1 LB: > { %s1576_s26 = sadd.s32 4294967295, %s1785_s25   ;;  %p1580_p0 = scmp.ge.s32.totalorder %s1785_s25, 1  ;;  %s1785_s25 = sphi %s1867_s25, %s23_s25  }
   0x2   : > { %p386_p1 = scmp.lt.s32.totalorder %s1785_s25, 3 }
   0x4   : > { %p387_p2 = pnand %p1580_p0, %p386_p1 }
   0x5   : > { %p428_p3 = scmp.lt.s32.totalorder (!%p387_p2), %s1576_s26, 1  ;;  %s1789_s24 = smov (!%p387_p2), 104  }
   0x6   : > { %390 = sbr.rel (%p387_p2) target bundleno = 2478 (0x9ae), region = 72  ;;  %s1790_s27 = smov (!%p387_p2), 120  }
   0x7   : > { %s1791_s28 = smov (!%p387_p2), 96   ;;  %s1792_s29 = smov (!%p387_p2), 112  }
   0x8   : > { %s1793_s30 = smov (!%p387_p2), 64   ;;  %s1794_s23 = smov (!%p387_p2), 8  }
   0xb   : > { %v440_v0 = vld [vmem:[%s2075_s1 + $0x18] sm:$0xff]  ;;  %v1787_v1 = vmov 0.0   ;;  %v439_v2 = vld [vmem:[%s2075_s1 + $0x10] sm:$0xff]  ;;  %vm1788_vm0 = vmmov 0   ;;  %s2089_s26 = smov (!%p428_p3, %s1576_s26), 1  ;;  %v438_v3 = vld [vmem:[%s2075_s1 + $0x8] sm:$0xff] }
   0xc   : > { %1649 = vmatprep.subr.mxu1 %v1787_v1  ;;  %1657 = vmatprep.mubr.msk.f32.mxu1 %vm1788_vm0, %v1787_v1  ;;  %s1581_s16 = sshll.u32 %s2089_s26, 3  ;;  %v437_v4 = vld [vmem:[%s2075_s1] sm:$0xff]  ;;  %vm448_vm1 = vcmask 261120   ;;  %vm531_vm2 = vcmask 64512   ;;  %vm1199_vm3 = vcmask 130048   ;;  %vm1201_vm4 = vcmask 195584  }
   0xd   : > { %1650 = vmatpush3.msra.mxu1 %v440_v0  ;;  %1670 = vmatprep.subr.mxu0 %v1787_v1  ;;  %s431_s21 = scalar_lea.vmem %s2074_s0, %s1581_s16  ;;  %v1583_v6 = vld [vmem:[%s2076_s2] ss:$0 sm:$0xff]  ;;  %vm1418_vm5 = vcmask 523264  }
   0xe   : > { %1651 = vmatprep.subr.mxu1 %v1787_v1  ;;  %1672 = vmatprep.mubr.msk.f32.mxu0 %vm1788_vm0, %v1787_v1  ;;  %v1903_v5 = vld [vmem:[%s431_s21] sm:$0xff] }
   0xf   : > { %1652 = vmatpush3.msra.mxu1 %v439_v2 }
  0x10   : > { %1653 = vmatprep.subr.mxu1 %v1787_v1 }
  0x11   : > { %1654 = vmatpush3.msra.mxu1 %v438_v3 }
  0x12   : > { %1655 = vmatprep.subr.mxu1 %v1787_v1 }
  0x13   : > { %1656 = vmatpush3.msra.mxu1 %v437_v4 }
  0x14   : > { %1658 = vmatmul.mubr.msk.f32.vlgmr.msra.gmra.mxu1 %vm448_vm1, %v1903_v5  ;;  %1660 = vmatprep.subr.mxu1 %v1787_v1 }
  0x15   : > { %1662 = vmatprep.mubr.msk.f32.mxu1 %vm1788_vm0, %v1787_v1 }
  0xd4   : > { %v518_v7 = vpop.f32.mrf.mxu1 }
  0xd5   : > { %v519_v8 = vadd.f32 %v1583_v6, %v518_v7  ;;  %v1206_v7 = vld [vmem:[%s2077_s3 + $0x18] sm:$0xff] }
  0xd6   : > { %v1659_v9 = vpop.f32.mrf.mxu1 }
  0xd7   : > { %527 = vrot.lane.b32.xlu1 %v519_v8, %s1789_s24  ;;  %523 = vrot.lane.b32.xlu0 %v519_v8, %s1790_s27  ;;  %s1795_s24 = smov 24   ;;  %s1796_s27 = smov 16  }
  0xdb   : > { %529 = vrot.lane.b32.xlu1 %v519_v8, %s1791_s28  ;;  %525 = vrot.lane.b32.xlu0 %v519_v8, %s1792_s29 }
 0x149   : > { %v1914_v10 = vpop.permute.xlu1 %527  ;;  %v524_v11 = vpop.permute.xlu0 %523 }
 0x14a   : > { %606 = vrot.lane.b32.xlu0 %v524_v11, %s1791_s28 }
 0x14d   : > { %v530_v12 = vpop.permute.xlu1 %529  ;;  %v1916_v13 = vpop.permute.xlu0 %525 }
 0x14e   : > { %1661 = vmatpush3.xpose.msk.msra.mxu1 %vm531_vm2, %v530_v12  ;;  %758 = vrot.lane.b32.xlu0 %v1914_v10, %s1791_s28  ;;  %v1203_v12 = vld [vmem:[%s2077_s3] sm:$0xff] }
 0x14f   : > { %682 = vrot.lane.b32.xlu1 %v1916_v13, %s1791_s28  ;;  %1665 = vmatprep.subr.mxu1 %v1787_v1 }
 0x151   : > { %1663 = vmatmul.mubr.msk.f32.vlgmr.msra.gmra.mxu1 %vm531_vm2, %v519_v8 }
 0x152   : > { %1667 = vmatprep.mubr.msk.f32.mxu1 %vm1788_vm0, %v1787_v1 }
 0x1bc   : > { %v607_v14 = vpop.permute.xlu0 %606 }
 0x1bd   : > { %1666 = vmatpush3.xpose.msk.msra.mxu1 %vm531_vm2, %v607_v14 }
 0x1be   : > { %1675 = vmatprep.subr.mxu1 %v1787_v1 }
 0x1c0   : > { %1668 = vmatmul.mubr.msk.f32.vlgmr.msra.gmra.mxu1 %vm531_vm2, %v524_v11  ;;  %v759_v15 = vpop.permute.xlu0 %758 }
 0x1c1   : > { %v683_v16 = vpop.permute.xlu1 %682  ;;  %1676 = vmatpush3.xpose.msk.msra.mxu1 %vm531_vm2, %v759_v15  ;;  %1677 = vmatprep.mubr.msk.f32.mxu1 %vm1788_vm0, %v1787_v1 }
 0x1c2   : > { %1671 = vmatpush3.xpose.msk.msra.mxu0 %vm531_vm2, %v683_v16  ;;  %1685 = vmatprep.subr.mxu1 %v1787_v1 }
 0x1c3   : > { %1680 = vmatprep.subr.mxu0 %v1787_v1 }
 0x1c4   : > { %1678 = vmatmul.mubr.msk.f32.vlgmr.msra.gmra.mxu1 %vm531_vm2, %v1914_v10 }
 0x1c5   : > { %1673 = vmatmul.mubr.msk.f32.vlgmr.msra.gmra.mxu0 %vm531_vm2, %v1916_v13  ;;  %1687 = vmatprep.mubr.msk.f32.mxu1 %vm1788_vm0, %v1787_v1 }
 0x1c6   : > { %1682 = vmatprep.mubr.msk.f32.mxu0 %vm1788_vm0, %v1787_v1 }
 0x211   : > { %v602_v17 = vpop.f32.mrf.mxu1 }
 0x212   : > { %v834_v18 = vmul.f32 0.35355338, %v602_v17 }
 0x213   : > { %v1664_v19 = vpop.f32.mrf.mxu1 }
 0x214   : > { %v838_v20 = vsel %vm531_vm2, %v834_v18, -inf }
 0x215   : > { %839 = vmax.xlane.f32.xlu1 %v838_v20 }
 0x280   : > { %v678_v21 = vpop.f32.mrf.mxu1 }
 0x281   : > { %v835_v22 = vmul.f32 0.35355338, %v678_v21 }
 0x282   : > { %v1669_v23 = vpop.f32.mrf.mxu1 }
 0x283   : > { %v841_v24 = vsel %vm531_vm2, %v835_v22, -inf }
 0x284   : > { %842 = vmax.xlane.f32.xlu0 %v841_v24  ;;  %v830_v25 = vpop.f32.mrf.mxu1 }
 0x285   : > { %v754_v26 = vpop.f32.mrf.mxu0  ;;  %v837_v27 = vmul.f32 0.35355338, %v830_v25  ;;  %v1597_v25 = vld [vmem:[%s2078_s4] ss:$0 sm:$0xff] }
 0x286   : > { %v836_v28 = vmul.f32 0.35355338, %v754_v26  ;;  %v1679_v29 = vpop.f32.mrf.mxu1 }
 0x287   : > { %v1674_v30 = vpop.f32.mrf.mxu0  ;;  %v847_v31 = vsel %vm531_vm2, %v837_v27, -inf }
 0x288   : > { %v844_v32 = vsel %vm531_vm2, %v836_v28, -inf  ;;  %848 = vmax.xlane.f32.xlu1 %v847_v31 }
 0x289   : > { %845 = vmax.xlane.f32.xlu0 %v844_v32 }
 0x299   : > { %958 = vrot.lane.b32.xlu1 %v524_v11, %s1793_s30  ;;  %v1204_v11 = vld [vmem:[%s2077_s3 + $0x8] sm:$0xff] }
 0x29e   : > { %v840_v33 = vpop.xlane.xlu1 %839 }
 0x29f   : > { %882 = vrot.lane.b32.xlu0 %v519_v8, %s1793_s30  ;;  %v850_v34 = vsub.f32 %v834_v18, %v840_v33 }
 0x2a1   : > { %v854_v35 = vmul.f32 1.442695, %v850_v34 }
 0x2a3   : > { %1759 = vpow2.f32 %v854_v35 }
 0x2b0   : > { %v1760_v36 = vpop.eup %1759 }
 0x2b1   : > { %v862_v37 = vsel %vm531_vm2, %v1760_v36, 0.0 }
 0x2be   : > { %863 = vadd.xlane.f32.xlu0 %v862_v37  ;;  %v1319_v37 = vld [vmem:[%s2079_s5 + $0x8] sm:$0xff] }
 0x30d   : > { %v843_v38 = vpop.xlane.xlu0 %842 }
 0x30e   : > { %v851_v39 = vsub.f32 %v835_v22, %v843_v38  ;;  %v1318_v38 = vld [vmem:[%s2079_s5] sm:$0xff] }
 0x310   : > { %v856_v40 = vmul.f32 1.442695, %v851_v39  ;;  %v1410_v39 = vld [vmem:[%s2081_s7 + $0x38] sm:$0xff] }
 0x311   : > { %v849_v41 = vpop.xlane.xlu1 %848 }
 0x312   : > { %1761 = vpow2.f32 %v856_v40  ;;  %v846_v42 = vpop.xlane.xlu0 %845  ;;  %v853_v43 = vsub.f32 %v837_v27, %v849_v41  ;;  %v1409_v40 = vld [vmem:[%s2081_s7 + $0x30] sm:$0xff]  ;;  %v1408_v41 = vld [vmem:[%s2081_s7 + $0x28] sm:$0xff] }
 0x313   : > { %v852_v44 = vsub.f32 %v836_v28, %v846_v42  ;;  %v1407_v42 = vld [vmem:[%s2081_s7 + $0x20] sm:$0xff] }
 0x314   : > { %v860_v45 = vmul.f32 1.442695, %v853_v43  ;;  %v1406_v43 = vld [vmem:[%s2081_s7 + $0x18] sm:$0xff] }
 0x315   : > { %v858_v46 = vmul.f32 1.442695, %v852_v44  ;;  %v959_v47 = vpop.permute.xlu1 %958 }
 0x316   : > { %1763 = vpow2.f32 %v860_v45  ;;  %v883_v48 = vpop.permute.xlu0 %882  ;;  %1686 = vmatpush3.msra.mxu1 %v959_v47 }
 0x317   : > { %1765 = vpow2.f32 %v858_v46  ;;  %1681 = vmatpush3.msra.mxu0 %v883_v48  ;;  %1695 = vmatprep.subr.mxu1 %v1787_v1  ;;  %v1599_v48 = vld [vmem:[%s2083_s9] ss:$0 sm:$0xff] }
 0x318   : > { %1690 = vmatprep.subr.mxu0 %v1787_v1 }
 0x31f   : > { %v1762_v49 = vpop.eup %1761 }
 0x320   : > { %v865_v50 = vsel %vm531_vm2, %v1762_v49, 0.0 }
 0x321   : > { %866 = vadd.xlane.f32.xlu1 %v865_v50  ;;  %v1600_v50 = vld [vmem:[%s2084_s10] ss:$0 sm:$0xff] }
 0x323   : > { %v1764_v51 = vpop.eup %1763 }
 0x324   : > { %v1766_v52 = vpop.eup %1765  ;;  %v871_v53 = vsel %vm531_vm2, %v1764_v51, 0.0 }
 0x325   : > { %v868_v54 = vsel %vm531_vm2, %v1766_v52, 0.0  ;;  %872 = vadd.xlane.f32.xlu1 %v871_v53  ;;  %v1405_v53 = vld [vmem:[%s2081_s7 + $0x10] sm:$0xff] }
 0x326   : > { %869 = vadd.xlane.f32.xlu0 %v868_v54  ;;  %v1404_v54 = vld [vmem:[%s2081_s7 + $0x8] sm:$0xff] }
 0x336   : > { %1034 = vrot.lane.b32.xlu1 %v1916_v13, %s1793_s30 }
 0x33c   : > { %1110 = vrot.lane.b32.xlu0 %v1914_v10, %s1793_s30  ;;  %v1205_v10 = vld [vmem:[%s2077_s3 + $0x10] sm:$0xff] }
 0x347   : > { %v864_v55 = vpop.xlane.xlu0 %863 }
 0x348   : > { %1767 = vrcp.f32 %v864_v55  ;;  %v1403_v55 = vld [vmem:[%s2081_s7] sm:$0xff] }
 0x355   : > { %v1768_v56 = vpop.eup %1767 }
 0x356   : > { %v878_v57 = vmul.f32 %v1768_v56, %v1760_v36  ;;  %v1321_v36 = vld [vmem:[%s2079_s5 + $0x18] sm:$0xff]  ;;  %v1601_v56 = vld [vmem:[%s2080_s6] ss:$0 sm:$0xff] }
 0x358   : > { %1683 = vmatmul.mubr.msk.f32.vlgmr.msra.gmra.mxu0 %vm531_vm2, %v878_v57 }
 0x359   : > { %1692 = vmatprep.mubr.msk.f32.mxu0 %vm1788_vm0, %v1787_v1 }
 0x3aa   : > { %v867_v58 = vpop.xlane.xlu1 %866 }
 0x3ab   : > { %1769 = vrcp.f32 %v867_v58 }
 0x3ae   : > { %v873_v59 = vpop.xlane.xlu1 %872 }
 0x3af   : > { %v870_v60 = vpop.xlane.xlu0 %869  ;;  %1771 = vrcp.f32 %v873_v59 }
 0x3b0   : > { %1773 = vrcp.f32 %v870_v60 }
 0x3b2   : > { %v1035_v61 = vpop.permute.xlu1 %1034 }
 0x3b3   : > { %1691 = vmatpush3.msra.mxu0 %v1035_v61  ;;  %v1111_v0 = vpop.permute.xlu0 %1110  ;;  %v1603_v61 = vld [vmem:[%s2082_s8] ss:$0 sm:$0xff] }
 0x3b4   : > { %1700 = vmatprep.subr.mxu0 %v1787_v1 }
 0x3b8   : > { %v1770_v62 = vpop.eup %1769 }
 0x3b9   : > { %v879_v63 = vmul.f32 %v1770_v62, %v1762_v49 }
 0x3bb   : > { %1688 = vmatmul.mubr.msk.f32.vlgmr.msra.gmra.mxu1 %vm531_vm2, %v879_v63 }
 0x3bc   : > { %v1772_v2 = vpop.eup %1771  ;;  %1696 = vmatpush3.msra.mxu1 %v1111_v0  ;;  %1697 = vmatprep.mubr.msk.f32.mxu1 %vm1788_vm0, %v1787_v1 }
 0x3bd   : > { %v1774_v3 = vpop.eup %1773  ;;  %v881_v4 = vmul.f32 %v1772_v2, %v1764_v51  ;;  %1711 = vmatprep.subr.mxu1 %v1787_v1 }
 0x3be   : > { %v880_v6 = vmul.f32 %v1774_v3, %v1766_v52 }
 0x3bf   : > { %1698 = vmatmul.mubr.msk.f32.vlgmr.msra.gmra.mxu1 %vm531_vm2, %v881_v4 }
 0x3c0   : > { %1693 = vmatmul.mubr.msk.f32.vlgmr.msra.gmra.mxu0 %vm531_vm2, %v880_v6  ;;  %1719 = vmatprep.mubr.msk.f32.mxu1 %vm1788_vm0, %v1787_v1 }
 0x3c1   : > { %1708 = vmatprep.mubr.msk.f32.mxu0 %vm1788_vm0, %v1787_v1  ;;  %1701 = vmatpush3.msra.mxu0 %v1206_v7 }
 0x3c2   : > { %1702 = vmatprep.subr.mxu0 %v1787_v1  ;;  %1712 = vmatpush3.msra.mxu1 %v1321_v36 }
 0x3c3   : > { %1703 = vmatpush3.msra.mxu0 %v1205_v10  ;;  %1713 = vmatprep.subr.mxu1 %v1787_v1 }
 0x3c4   : > { %1704 = vmatprep.subr.mxu0 %v1787_v1 }
 0x3c5   : > { %1705 = vmatpush3.msra.mxu0 %v1204_v11 }
 0x3c6   : > { %1706 = vmatprep.subr.mxu0 %v1787_v1 }
 0x3c7   : > { %1707 = vmatpush3.msra.mxu0 %v1203_v12 }
 0x3c8   : > { %1722 = vmatprep.subr.mxu0 %v1787_v1 }
 0x418   : > { %v954_v8 = vpop.f32.mrf.mxu0 }
 0x41a   : > { %v1684_v9 = vpop.f32.mrf.mxu0 }
 0x47b   : > { %v1030_v13 = vpop.f32.mrf.mxu1 }
 0x47c   : > { %1187 = vrot.lane.b32.xlu1 %v1030_v13, %s1794_s23  ;;  %v1605_v13 = vld [vmem:[%s2085_s11] ss:$0 sm:$0xff] }
 0x47d   : > { %v1689_v14 = vpop.f32.mrf.mxu1 }
 0x47f   : > { %v1182_v15 = vpop.f32.mrf.mxu1 }
 0x480   : > { %v1106_v16 = vpop.f32.mrf.mxu0  ;;  %1195 = vrot.lane.b32.xlu1 %v1182_v15, %s1795_s24  ;;  %v1606_v15 = vld [vmem:[%s2086_s12] ss:$0 sm:$0xff]  ;;  %s435_s24 = scalar_lea.vmem %s2087_s13, %s1581_s16 }
 0x481   : > { %1191 = vrot.lane.b32.xlu0 %v1106_v16, %s1796_s27  ;;  %v1699_v17 = vpop.f32.mrf.mxu1 }
 0x482   : > { %v1694_v18 = vpop.f32.mrf.mxu0 }
 0x4ee   : > { %v1188_v19 = vpop.permute.xlu1 %1187 }
 0x4ef   : > { %v1198_v21 = vsel %vm531_vm2, %v954_v8, %v1188_v19 }
 0x4f2   : > { %v1196_v20 = vpop.permute.xlu1 %1195 }
 0x4f3   : > { %v1192_v22 = vpop.permute.xlu0 %1191 }
 0x4f4   : > { %v1200_v23 = vsel %vm1199_vm3, %v1198_v21, %v1192_v22 }
 0x4f5   : > { %v1202_v24 = vsel %vm1201_vm4, %v1200_v23, %v1196_v20 }
 0x4f6   : > { %1709 = vmatmul.mubr.msk.f32.vlgmr.msra.gmra.mxu0 %vm448_vm1, %v1202_v24 }
 0x4f7   : > { %1738 = vmatprep.mubr.msk.f32.mxu0 %vm1788_vm0, %v1787_v1  ;;  %1723 = vmatpush3.msra.mxu0 %v1410_v39 }
 0x4f8   : > { %1724 = vmatprep.subr.mxu0 %v1787_v1 }
 0x4f9   : > { %1725 = vmatpush3.msra.mxu0 %v1409_v40 }
 0x4fa   : > { %1726 = vmatprep.subr.mxu0 %v1787_v1 }
 0x4fb   : > { %1727 = vmatpush3.msra.mxu0 %v1408_v41 }
 0x4fc   : > { %1728 = vmatprep.subr.mxu0 %v1787_v1 }
 0x4fd   : > { %1729 = vmatpush3.msra.mxu0 %v1407_v42 }
 0x4fe   : > { %1730 = vmatprep.subr.mxu0 %v1787_v1 }
 0x4ff   : > { %1731 = vmatpush3.msra.mxu0 %v1406_v43 }
 0x500   : > { %1732 = vmatprep.subr.mxu0 %v1787_v1 }
 0x501   : > { %1733 = vmatpush3.msra.mxu0 %v1405_v53 }
 0x502   : > { %1734 = vmatprep.subr.mxu0 %v1787_v1 }
 0x503   : > { %1735 = vmatpush3.msra.mxu0 %v1404_v54 }
 0x504   : > { %1736 = vmatprep.subr.mxu0 %v1787_v1 }
 0x505   : > { %1737 = vmatpush3.msra.mxu0 %v1403_v55 }
 0x5b6   : > { %v1283_v26 = vpop.f32.mrf.mxu0 }
 0x5b7   : > { %v1284_v27 = vadd.f32 %v1597_v25, %v1283_v26 }
 0x5b8   : > { %v1710_v28 = vpop.f32.mrf.mxu0 }
 0x5b9   : > { %v1287_v29 = vadd.f32 %v1284_v27, %v1903_v5  ;;  %v1320_v5 = vld [vmem:[%s2079_s5 + $0x10] sm:$0xff] }
 0x5ba   : > { %1714 = vmatpush3.msra.mxu1 %v1320_v5 }
 0x5bb   : > { %v1290_v30 = vsel %vm448_vm1, %v1287_v29, 0.0  ;;  %1715 = vmatprep.subr.mxu1 %v1787_v1 }
 0x5bc   : > { %1291 = vadd.xlane.f32.xlu0 %v1290_v30  ;;  %1716 = vmatpush3.msra.mxu1 %v1319_v37 }
 0x5bd   : > { %1717 = vmatprep.subr.mxu1 %v1787_v1 }
 0x5be   : > { %1718 = vmatpush3.msra.mxu1 %v1318_v38 }
 0x645   : > { %v1292_v31 = vpop.xlane.xlu0 %1291 }
 0x646   : > { %v1294_v32 = vmul.f32 0.03125, %v1292_v31 }
 0x648   : > { %v1295_v33 = vsub.f32 %v1287_v29, %v1294_v32 }
 0x64a   : > { %v1296_v34 = vmul.f32 %v1295_v33, %v1295_v33 }
 0x64c   : > { %v1297_v35 = vsel %vm448_vm1, %v1296_v34, 0.0 }
 0x64d   : > { %1298 = vadd.xlane.f32.xlu1 %v1297_v35 }
 0x6d6   : > { %v1299_v44 = vpop.xlane.xlu1 %1298 }
 0x6d7   : > { %v1300_v45 = vmul.f32 0.03125, %v1299_v44 }
 0x6d9   : > { %v1301_v46 = vadd.f32 1e-05, %v1300_v45 }
 0x6db   : > { %1775 = vrsqrt.f32 %v1301_v46 }
 0x6e8   : > { %v1776_v47 = vpop.eup %1775 }
 0x6e9   : > { %v1303_v49 = vmul.f32 %v1776_v47, %v1295_v33 }
 0x6eb   : > { %v1310_v51 = vmul.f32 %v1599_v48, %v1303_v49 }
 0x6ed   : > { %v1317_v52 = vadd.f32 %v1600_v50, %v1310_v51 }
 0x6ef   : > { %1720 = vmatmul.mubr.msk.f32.vlgmr.msra.gmra.mxu1 %vm448_vm1, %v1317_v52 }
 0x7af   : > { %v1398_v57 = vpop.f32.mrf.mxu1 }
 0x7b0   : > { %v1399_v58 = vadd.f32 %v1601_v56, %v1398_v57 }
 0x7b1   : > { %v1721_v59 = vpop.f32.mrf.mxu1 }
 0x7b2   : > { %v1402_v60 = vmax.f32 %v1399_v58, 0.0 }
 0x7b4   : > { %1739 = vmatmul.mubr.msk.f32.vlgmr.msra.gmra.mxu0 %vm1418_vm5, %v1402_v60 }
 0x874   : > { %v1488_v1 = vpop.f32.mrf.mxu0 }
 0x875   : > { %v1489_v62 = vadd.f32 %v1603_v61, %v1488_v1 }
 0x876   : > { %v1740_v63 = vpop.f32.mrf.mxu0 }
 0x877   : > { %v1492_v0 = vadd.f32 %v1489_v62, %v1317_v52 }
 0x879   : > { %v1495_v2 = vsel %vm448_vm1, %v1492_v0, 0.0 }
 0x87a   : > { %1496 = vadd.xlane.f32.xlu0 %v1495_v2 }
 0x903   : > { %v1497_v3 = vpop.xlane.xlu0 %1496 }
 0x904   : > { %v1498_v4 = vmul.f32 0.03125, %v1497_v3 }
 0x906   : > { %v1499_v6 = vsub.f32 %v1492_v0, %v1498_v4 }
 0x908   : > { %v1500_v7 = vmul.f32 %v1499_v6, %v1499_v6 }
 0x90a   : > { %v1501_v8 = vsel %vm448_vm1, %v1500_v7, 0.0 }
 0x90b   : > { %1502 = vadd.xlane.f32.xlu0 %v1501_v8 }
 0x994   : > { %v1503_v9 = vpop.xlane.xlu0 %1502 }
 0x995   : > { %v1504_v10 = vmul.f32 0.03125, %v1503_v9 }
 0x997   : > { %v1505_v11 = vadd.f32 1e-05, %v1504_v10 }
 0x999   : > { %1777 = vrsqrt.f32 %v1505_v11 }
 0x9a6   : > { %v1778_v12 = vpop.eup %1777 }
 0x9a7   : > { %v1507_v14 = vmul.f32 %v1778_v12, %v1499_v6 }
 0x9a9   : > { %v1514_v16 = vmul.f32 %v1605_v13, %v1507_v14 }
 0x9ab   : > { %v1521_v17 = vadd.f32 %v1606_v15, %v1514_v16 }
 0x9ad   : > { %1522 = vst.msk [vmem:[%s435_s24] sm:$0xff] %vm448_vm1, %v1521_v17 }
 0x9ae PF: > { %s23_s25 = sadd.s32 1, %s1785_s25  }
 0x9af   : > { %p20_p4 = scmp.ge.s32.totalorder %s23_s25, 4  }
 0x9b1   :  { %22 = sbr.rel (!%p20_p4) target bundleno = 1 (0x1), region = 102 }

// kernel: _lambda_.14
= control target key start
LH: loop header
LB: loop body
LE: loop exit
PB: predicated region body
PF: predicated region fallthrough
CT: control target
= control target key end

     0   :  { %v1377_v0 = vmov 0.0   ;;  %vm1378_vm0 = vmmov 0   ;;  %vm41_vm1 = vcmask 261120   ;;  %vm123_vm2 = vcmask 64512   ;;  %s1379_s10 = smov 64   ;;  %s1664_s1 = inlined_call_operand.vmem [shape: f32[32,8], index: 1, kind: input, shape index: {}]   ;;  %s1665_s0 = inlined_call_operand.vmem [shape: f32[2,32], index: 0, kind: input, shape index: {}]   ;;  %s1666_s3 = inlined_call_operand.vmem [shape: f32[8,32], index: 3, kind: input, shape index: {}]   ;;  %s1667_s6 = inlined_call_operand.vmem [shape: f32[32,128], index: 6, kind: input, shape index: {}]   ;;  %s1668_s2 = inlined_call_operand.vmem [shape: f32[1,8], index: 2, kind: input, shape index: {}]   ;;  %s1669_s5 = inlined_call_operand.vmem [shape: f32[32,128], index: 5, kind: input, shape index: {}]   ;;  %s1670_s4 = inlined_call_operand.vmem [shape: f32[1,32], index: 4, kind: input, shape index: {}]   ;;  %s1671_s7 = inlined_call_operand.vmem [shape: f32[1,128], index: 7, kind: input, shape index: {}]   ;;  %s1672_s8 = inlined_call_operand.vmem [shape: f32[8,2,32], index: 8, kind: output, shape index: {}]  }
   0x1   :  { %1194 = vmatprep.subr.mxu0 %v1377_v0  ;;  %v33_v1 = vld [vmem:[%s1664_s1 + $0x18] sm:$0xff]  ;;  %v32_v2 = vld [vmem:[%s1664_s1 + $0x10] sm:$0xff]  ;;  %1202 = vmatprep.mubr.msk.f32.mxu0 %vm1378_vm0, %v1377_v0  ;;  %v31_v3 = vld [vmem:[%s1664_s1 + $0x8] sm:$0xff]  ;;  %vm387_vm3 = vcmask 254976  }
   0x2   :  { %1195 = vmatpush3.msra.mxu0 %v33_v1  ;;  %1205 = vmatprep.subr.mxu1 %v1377_v0  ;;  %v30_v4 = vld [vmem:[%s1664_s1] sm:$0xff]  ;;  %v1461_v7 = vld [vmem:[%s1667_s6 + $0x18] sm:$0xff]  ;;  %v1467_v8 = vld [vmem:[%s1667_s6 + $0x10] sm:$0xff] }
   0x3   :  { %1196 = vmatprep.subr.mxu0 %v1377_v0  ;;  %1207 = vmatprep.mubr.msk.f32.mxu1 %vm1378_vm0, %v1377_v0  ;;  %v29_v5 = vld [vmem:[%s1665_s0] sm:$0x3]  ;;  %v200_v12 = vld [vmem:[%s1669_s5 + $0x18] sm:$0xff]  ;;  %v199_v14 = vld [vmem:[%s1669_s5 + $0x10] sm:$0xff] }
   0x4   :  { %1197 = vmatpush3.msra.mxu0 %v32_v2  ;;  %v115_v6 = vld [vmem:[%s1666_s3] sm:$0xff]  ;;  %v198_v15 = vld [vmem:[%s1669_s5 + $0x8] sm:$0xff] }
   0x5   :  { %1198 = vmatprep.subr.mxu0 %v1377_v0  ;;  %1206 = vmatpush3.msra.mxu1 %v115_v6  ;;  %v1114_v9 = vld [vmem:[%s1668_s2] ss:$0 sm:$0xff]  ;;  %v1491_v16 = vld [vmem:[%s1667_s6 + $0x8] sm:$0xff] }
   0x6   :  { %1199 = vmatpush3.msra.mxu0 %v31_v3  ;;  %1210 = vmatprep.subr.mxu1 %v1377_v0  ;;  %v197_v17 = vld [vmem:[%s1669_s5] sm:$0xff] }
   0x7   :  { %1200 = vmatprep.subr.mxu0 %v1377_v0  ;;  %v1502_v18 = vld [vmem:[%s1667_s6] sm:$0xff] }
   0x8   :  { %1201 = vmatpush3.msra.mxu0 %v30_v4  ;;  %v1116_v19 = vld [vmem:[%s1670_s4] ss:$0 sm:$0xff] }
   0x9   :  { %1203 = vmatmul.mubr.msk.f32.vlgmr.msra.gmra.mxu0 %vm41_vm1, %v29_v5  ;;  %1221 = vmatprep.subr.mxu0 %v1377_v0  ;;  %v1118_v25 = vld [vmem:[%s1671_s7] ss:$0 sm:$0xff]  ;;  %s1380_s7 = smov 32  }
   0xa   :  { %1229 = vmatprep.mubr.msk.f32.mxu0 %vm1378_vm0, %v1377_v0  ;;  %1222 = vmatpush3.msra.mxu0 %v1461_v7 }
   0xb   :  { %1223 = vmatprep.subr.mxu0 %v1377_v0 }
   0xc   :  { %1224 = vmatpush3.msra.mxu0 %v1467_v8 }
   0xd   :  { %1225 = vmatprep.subr.mxu0 %v1377_v0 }
   0xe   :  { %1226 = vmatpush3.msra.mxu0 %v1491_v16 }
   0xf   :  { %1227 = vmatprep.subr.mxu0 %v1377_v0 }
  0x10   :  { %1228 = vmatpush3.msra.mxu0 %v1502_v18 }
  0x11   :  { %1230 = vmatmul.mubr.f32.vlgmr.msra.gmra.mxu0 %v1377_v0  ;;  %1243 = vmatprep.subr.mxu0 %v1377_v0 }
  0x12   :  { %1251 = vmatprep.mubr.msk.f32.mxu0 %vm1378_vm0, %v1377_v0  ;;  %1244 = vmatpush3.msra.mxu0 %v1461_v7 }
  0x13   :  { %1245 = vmatprep.subr.mxu0 %v1377_v0 }
  0x14   :  { %1246 = vmatpush3.msra.mxu0 %v1467_v8 }
  0x15   :  { %1247 = vmatprep.subr.mxu0 %v1377_v0 }
  0x16   :  { %1248 = vmatpush3.msra.mxu0 %v1491_v16 }
  0x17   :  { %1249 = vmatprep.subr.mxu0 %v1377_v0 }
  0x18   :  { %1250 = vmatpush3.msra.mxu0 %v1502_v18 }
  0x19   :  { %1265 = vmatprep.subr.mxu0 %v1377_v0 }
  0xc9   :  { %v111_v10 = vpop.f32.mrf.mxu0 }
  0xca   :  { %v112_v11 = vadd.f32 %v1114_v9, %v111_v10 }
  0xcb   :  { %v1204_v13 = vpop.f32.mrf.mxu0 }
  0xcc   :  { %1208 = vmatmul.mubr.msk.f32.vlgmr.msra.gmra.mxu1 %vm123_vm2, %v112_v11 }
  0xcd   :  { %1211 = vmatpush3.msra.mxu1 %v200_v12  ;;  %1218 = vmatprep.mubr.msk.f32.mxu1 %vm1378_vm0, %v1377_v0 }
  0xce   :  { %1212 = vmatprep.subr.mxu1 %v1377_v0 }
  0xcf   :  { %1213 = vmatpush3.msra.mxu1 %v199_v14 }
  0xd0   :  { %1214 = vmatprep.subr.mxu1 %v1377_v0 }
  0xd1   :  { %1215 = vmatpush3.msra.mxu1 %v198_v15  ;;  %v354_v23 = vpop.f32.mrf.mxu0 }
  0xd2   :  { %1216 = vmatprep.subr.mxu1 %v1377_v0 }
  0xd3   :  { %1217 = vmatpush3.msra.mxu1 %v197_v17  ;;  %v1231_v24 = vpop.f32.mrf.mxu0 }
  0xd4   :  { %1232 = vmatprep.subr.mxu1 %v1377_v0 }
 0x18c   :  { %v193_v20 = vpop.f32.mrf.mxu1 }
 0x18d   :  { %v194_v21 = vadd.f32 %v1116_v19, %v193_v20 }
 0x18e   :  { %v1209_v22 = vpop.f32.mrf.mxu1 }
 0x18f   :  { %1219 = vmatmul.mubr.msk.f32.vlgmr.msra.gmra.mxu1 %vm41_vm1, %v194_v21 }
 0x190   :  { %1233 = vmatpush3.msra.mxu1 %v1461_v7  ;;  %1240 = vmatprep.mubr.msk.f32.mxu1 %vm1378_vm0, %v1377_v0 }
 0x191   :  { %1234 = vmatprep.subr.mxu1 %v1377_v0 }
 0x192   :  { %1235 = vmatpush3.msra.mxu1 %v1467_v8 }
 0x193   :  { %1236 = vmatprep.subr.mxu1 %v1377_v0 }
 0x194   :  { %1237 = vmatpush3.msra.mxu1 %v1491_v16 }
 0x195   :  { %1238 = vmatprep.subr.mxu1 %v1377_v0 }
 0x196   :  { %1239 = vmatpush3.msra.mxu1 %v1502_v18 }
 0x197   :  { %1254 = vmatprep.subr.mxu1 %v1377_v0 }
 0x24f   :  { %v277_v26 = vpop.f32.mrf.mxu1 }
 0x250   :  { %v1535_v27 = vadd.f32 %v1118_v25, %v277_v26 }
 0x251   :  { %v1220_v28 = vpop.f32.mrf.mxu1 }
 0x252   :  { %v358_v29 = vadd.f32 %v354_v23, %v1535_v27 }
 0x254   :  { %1313 = vtanh.f32 %v358_v29  ;;  %v1120_v31 = vmul.f32 -1.442695, %v358_v29 }
 0x256   :  { %1315 = vpow2.f32 %v1120_v31 }
 0x261   :  { %v1314_v30 = vpop.eup %1313 }
 0x262   :  { %368 = vrot.lane.b32.xlu0 %v1314_v30, %s1379_s10 }
 0x263   :  { %v1316_v32 = vpop.eup %1315 }
 0x264   :  { %v362_v33 = vadd.f32 1.0, %v1316_v32 }
 0x266   :  { %1317 = vrcp.f32 %v362_v33 }
 0x273   :  { %v1318_v34 = vpop.eup %1317 }
 0x274   :  { %v366_v37 = vmul.f32 0.0, %v1318_v34 }
 0x2d4   :  { %v369_v35 = vpop.permute.xlu0 %368 }
 0x2d5   :  { %v371_v36 = vmul.f32 %v1318_v34, %v369_v35 }
 0x2d7   :  { %373 = vrot.lane.b32.xlu0 %v371_v36, %s1380_s7 }
 0x349   :  { %v374_v38 = vpop.permute.xlu0 %373 }
 0x34a   :  { %v376_v39 = vadd.f32 %v374_v38, %v366_v37 }
 0x34c   :  { %1319 = vtanh.f32 %v376_v39 }
 0x359   :  { %v1320_v40 = vpop.eup %1319 }
 0x35a   :  { %379 = vrot.lane.b32.xlu1 %v1320_v40, %s1379_s10 }
 0x3cc   :  { %v380_v41 = vpop.permute.xlu1 %379 }
 0x3cd   :  { %v382_v42 = vmul.f32 %v1318_v34, %v380_v41 }
 0x3cf   :  { %384 = vrot.lane.b32.xlu1 %v382_v42, %s1380_s7 }
 0x441   :  { %v385_v43 = vpop.permute.xlu1 %384 }
 0x442   :  { %388 = vst.msk [vmem:[%s1672_s8] sm:$0x3] %vm387_vm3, %v385_v43  ;;  %1241 = vmatmul.mubr.msk.f32.vlgmr.msra.gmra.mxu1 %vm41_vm1, %v385_v43 }
 0x443   :  { %1255 = vmatpush3.msra.mxu1 %v1461_v7  ;;  %1262 = vmatprep.mubr.msk.f32.mxu1 %vm1378_vm0, %v1377_v0 }
 0x444   :  { %1256 = vmatprep.subr.mxu1 %v1377_v0 }
 0x445   :  { %1257 = vmatpush3.msra.mxu1 %v1467_v8 }
 0x446   :  { %1258 = vmatprep.subr.mxu1 %v1377_v0 }
 0x447   :  { %1259 = vmatpush3.msra.mxu1 %v1491_v16 }
 0x448   :  { %1260 = vmatprep.subr.mxu1 %v1377_v0 }
 0x449   :  { %1261 = vmatpush3.msra.mxu1 %v1502_v18 }
 0x44a   :  { %1276 = vmatprep.subr.mxu1 %v1377_v0 }
 0x502   :  { %v457_v44 = vpop.f32.mrf.mxu1 }
 0x503   :  { %v461_v45 = vadd.f32 %v457_v44, %v1535_v27 }
 0x504   :  { %v1242_v46 = vpop.f32.mrf.mxu1 }
 0x505   :  { %1321 = vtanh.f32 %v461_v45  ;;  %v1122_v48 = vmul.f32 -1.442695, %v461_v45 }
 0x507   :  { %1323 = vpow2.f32 %v1122_v48 }
 0x512   :  { %v1322_v47 = vpop.eup %1321 }
 0x513   :  { %471 = vrot.lane.b32.xlu0 %v1322_v47, %s1379_s10 }
 0x514   :  { %v1324_v49 = vpop.eup %1323 }
 0x515   :  { %v465_v50 = vadd.f32 1.0, %v1324_v49 }
 0x517   :  { %1325 = vrcp.f32 %v465_v50 }
 0x524   :  { %v1326_v51 = vpop.eup %1325 }
 0x525   :  { %v469_v54 = vmul.f32 %v1326_v51, %v376_v39 }
 0x585   :  { %v472_v52 = vpop.permute.xlu0 %471 }
 0x586   :  { %v474_v53 = vmul.f32 %v1326_v51, %v472_v52 }
 0x588   :  { %476 = vrot.lane.b32.xlu1 %v474_v53, %s1380_s7 }
 0x5fa   :  { %v477_v55 = vpop.permute.xlu1 %476 }
 0x5fb   :  { %v479_v56 = vadd.f32 %v477_v55, %v469_v54 }
 0x5fd   :  { %1327 = vtanh.f32 %v479_v56 }
 0x60a   :  { %v1328_v57 = vpop.eup %1327 }
 0x60b   :  { %482 = vrot.lane.b32.xlu0 %v1328_v57, %s1379_s10 }
 0x67d   :  { %v483_v58 = vpop.permute.xlu0 %482 }
 0x67e   :  { %v485_v59 = vmul.f32 %v1326_v51, %v483_v58 }
 0x680   :  { %487 = vrot.lane.b32.xlu1 %v485_v59, %s1380_s7 }
 0x6f2   :  { %v488_v60 = vpop.permute.xlu1 %487 }
 0x6f3   :  { %1123 = vst.msk [vmem:[%s1672_s8 + $0x2] sm:$0x3] %vm387_vm3, %v488_v60  ;;  %1252 = vmatmul.mubr.msk.f32.vlgmr.msra.gmra.mxu0 %vm41_vm1, %v488_v60 }
 0x6f4   :  { %1266 = vmatpush3.msra.mxu0 %v1461_v7  ;;  %1273 = vmatprep.mubr.msk.f32.mxu0 %vm1378_vm0, %v1377_v0 }
 0x6f5   :  { %1267 = vmatprep.subr.mxu0 %v1377_v0 }
 0x6f6   :  { %1268 = vmatpush3.msra.mxu0 %v1467_v8 }
 0x6f7   :  { %1269 = vmatprep.subr.mxu0 %v1377_v0 }
 0x6f8   :  { %1270 = vmatpush3.msra.mxu0 %v1491_v16 }
 0x6f9   :  { %1271 = vmatprep.subr.mxu0 %v1377_v0 }
 0x6fa   :  { %1272 = vmatpush3.msra.mxu0 %v1502_v18 }
 0x6fb   :  { %1287 = vmatprep.subr.mxu0 %v1377_v0 }
 0x7b3   :  { %v560_v61 = vpop.f32.mrf.mxu0 }
 0x7b4   :  { %v564_v62 = vadd.f32 %v560_v61, %v1535_v27 }
 0x7b5   :  { %v1253_v63 = vpop.f32.mrf.mxu0 }
 0x7b6   :  { %1329 = vtanh.f32 %v564_v62  ;;  %v1125_v2 = vmul.f32 -1.442695, %v564_v62 }
 0x7b8   :  { %1331 = vpow2.f32 %v1125_v2 }
 0x7c3   :  { %v1330_v1 = vpop.eup %1329 }
 0x7c4   :  { %574 = vrot.lane.b32.xlu0 %v1330_v1, %s1379_s10 }
 0x7c5   :  { %v1332_v3 = vpop.eup %1331 }
 0x7c6   :  { %v568_v4 = vadd.f32 1.0, %v1332_v3 }
 0x7c8   :  { %1333 = vrcp.f32 %v568_v4 }
 0x7d5   :  { %v1334_v5 = vpop.eup %1333 }
 0x7d6   :  { %v572_v10 = vmul.f32 %v1334_v5, %v479_v56 }
 0x836   :  { %v575_v6 = vpop.permute.xlu0 %574 }
 0x837   :  { %v577_v9 = vmul.f32 %v1334_v5, %v575_v6 }
 0x839   :  { %579 = vrot.lane.b32.xlu1 %v577_v9, %s1380_s7 }
 0x8ab   :  { %v580_v11 = vpop.permute.xlu1 %579 }
 0x8ac   :  { %v582_v12 = vadd.f32 %v580_v11, %v572_v10 }
 0x8ae   :  { %1335 = vtanh.f32 %v582_v12 }
 0x8bb   :  { %v1336_v13 = vpop.eup %1335 }
 0x8bc   :  { %585 = vrot.lane.b32.xlu0 %v1336_v13, %s1379_s10 }
 0x92e   :  { %v586_v14 = vpop.permute.xlu0 %585 }
 0x92f   :  { %v588_v15 = vmul.f32 %v1334_v5, %v586_v14 }
 0x931   :  { %590 = vrot.lane.b32.xlu1 %v588_v15, %s1380_s7 }
 0x9a3   :  { %v591_v17 = vpop.permute.xlu1 %590 }
 0x9a4   :  { %1126 = vst.msk [vmem:[%s1672_s8 + $0x4] sm:$0x3] %vm387_vm3, %v591_v17  ;;  %1263 = vmatmul.mubr.msk.f32.vlgmr.msra.gmra.mxu1 %vm41_vm1, %v591_v17 }
 0x9a5   :  { %1277 = vmatpush3.msra.mxu1 %v1461_v7  ;;  %1284 = vmatprep.mubr.msk.f32.mxu1 %vm1378_vm0, %v1377_v0 }
 0x9a6   :  { %1278 = vmatprep.subr.mxu1 %v1377_v0 }
 0x9a7   :  { %1279 = vmatpush3.msra.mxu1 %v1467_v8 }
 0x9a8   :  { %1280 = vmatprep.subr.mxu1 %v1377_v0 }
 0x9a9   :  { %1281 = vmatpush3.msra.mxu1 %v1491_v16 }
 0x9aa   :  { %1282 = vmatprep.subr.mxu1 %v1377_v0 }
 0x9ab   :  { %1283 = vmatpush3.msra.mxu1 %v1502_v18 }
 0x9ac   :  { %1298 = vmatprep.subr.mxu1 %v1377_v0 }
 0xa64   :  { %v663_v19 = vpop.f32.mrf.mxu1 }
 0xa65   :  { %v667_v20 = vadd.f32 %v663_v19, %v1535_v27 }
 0xa66   :  { %v1264_v21 = vpop.f32.mrf.mxu1 }
 0xa67   :  { %1337 = vtanh.f32 %v667_v20  ;;  %v1128_v23 = vmul.f32 -1.442695, %v667_v20 }
 0xa69   :  { %1339 = vpow2.f32 %v1128_v23 }
 0xa74   :  { %v1338_v22 = vpop.eup %1337 }
 0xa75   :  { %677 = vrot.lane.b32.xlu0 %v1338_v22, %s1379_s10 }
 0xa76   :  { %v1340_v24 = vpop.eup %1339 }
 0xa77   :  { %v671_v25 = vadd.f32 1.0, %v1340_v24 }
 0xa79   :  { %1341 = vrcp.f32 %v671_v25 }
 0xa86   :  { %v1342_v26 = vpop.eup %1341 }
 0xa87   :  { %v675_v30 = vmul.f32 %v1342_v26, %v582_v12 }
 0xae7   :  { %v678_v28 = vpop.permute.xlu0 %677 }
 0xae8   :  { %v680_v29 = vmul.f32 %v1342_v26, %v678_v28 }
 0xaea   :  { %682 = vrot.lane.b32.xlu1 %v680_v29, %s1380_s7 }
 0xb5c   :  { %v683_v31 = vpop.permute.xlu1 %682 }
 0xb5d   :  { %v685_v32 = vadd.f32 %v683_v31, %v675_v30 }
 0xb5f   :  { %1343 = vtanh.f32 %v685_v32 }
 0xb6c   :  { %v1344_v33 = vpop.eup %1343 }
 0xb6d   :  { %688 = vrot.lane.b32.xlu0 %v1344_v33, %s1379_s10 }
 0xbdf   :  { %v689_v34 = vpop.permute.xlu0 %688 }
 0xbe0   :  { %v691_v35 = vmul.f32 %v1342_v26, %v689_v34 }
 0xbe2   :  { %693 = vrot.lane.b32.xlu1 %v691_v35, %s1380_s7 }
 0xc54   :  { %v694_v36 = vpop.permute.xlu1 %693 }
 0xc55   :  { %1129 = vst.msk [vmem:[%s1672_s8 + $0x6] sm:$0x3] %vm387_vm3, %v694_v36  ;;  %1274 = vmatmul.mubr.msk.f32.vlgmr.msra.gmra.mxu0 %vm41_vm1, %v694_v36 }
 0xc56   :  { %1288 = vmatpush3.msra.mxu0 %v1461_v7  ;;  %1295 = vmatprep.mubr.msk.f32.mxu0 %vm1378_vm0, %v1377_v0 }
 0xc57   :  { %1289 = vmatprep.subr.mxu0 %v1377_v0 }
 0xc58   :  { %1290 = vmatpush3.msra.mxu0 %v1467_v8 }
 0xc59   :  { %1291 = vmatprep.subr.mxu0 %v1377_v0 }
 0xc5a   :  { %1292 = vmatpush3.msra.mxu0 %v1491_v16 }
 0xc5b   :  { %1293 = vmatprep.subr.mxu0 %v1377_v0 }
 0xc5c   :  { %1294 = vmatpush3.msra.mxu0 %v1502_v18 }
 0xd15   :  { %v766_v37 = vpop.f32.mrf.mxu0 }
 0xd16   :  { %v770_v38 = vadd.f32 %v766_v37, %v1535_v27 }
 0xd17   :  { %v1275_v39 = vpop.f32.mrf.mxu0 }
 0xd18   :  { %1345 = vtanh.f32 %v770_v38  ;;  %v1131_v41 = vmul.f32 -1.442695, %v770_v38 }
 0xd1a   :  { %1347 = vpow2.f32 %v1131_v41 }
 0xd25   :  { %v1346_v40 = vpop.eup %1345 }
 0xd26   :  { %780 = vrot.lane.b32.xlu0 %v1346_v40, %s1379_s10 }
 0xd27   :  { %v1348_v42 = vpop.eup %1347 }
 0xd28   :  { %v774_v43 = vadd.f32 1.0, %v1348_v42 }
 0xd2a   :  { %1349 = vrcp.f32 %v774_v43 }
 0xd37   :  { %v1350_v44 = vpop.eup %1349 }
 0xd38   :  { %v778_v47 = vmul.f32 %v1350_v44, %v685_v32 }
 0xd98   :  { %v781_v45 = vpop.permute.xlu0 %780 }
 0xd99   :  { %v783_v46 = vmul.f32 %v1350_v44, %v781_v45 }
 0xd9b   :  { %785 = vrot.lane.b32.xlu1 %v783_v46, %s1380_s7 }
 0xe0d   :  { %v786_v48 = vpop.permute.xlu1 %785 }
 0xe0e   :  { %v788_v49 = vadd.f32 %v786_v48, %v778_v47 }
 0xe10   :  { %1351 = vtanh.f32 %v788_v49 }
 0xe1d   :  { %v1352_v50 = vpop.eup %1351 }
 0xe1e   :  { %791 = vrot.lane.b32.xlu0 %v1352_v50, %s1379_s10 }
 0xe90   :  { %v792_v51 = vpop.permute.xlu0 %791 }
 0xe91   :  { %v794_v52 = vmul.f32 %v1350_v44, %v792_v51 }
 0xe93   :  { %796 = vrot.lane.b32.xlu1 %v794_v52, %s1380_s7 }
 0xf05   :  { %v797_v53 = vpop.permute.xlu1 %796 }
 0xf06   :  { %1132 = vst.msk [vmem:[%s1672_s8 + $0x8] sm:$0x3] %vm387_vm3, %v797_v53  ;;  %1285 = vmatmul.mubr.msk.f32.vlgmr.msra.gmra.mxu1 %vm41_vm1, %v797_v53 }
 0xf07   :  { %1299 = vmatpush3.msra.mxu1 %v1461_v7  ;;  %1306 = vmatprep.mubr.msk.f32.mxu1 %vm1378_vm0, %v1377_v0 }
 0xf08   :  { %1300 = vmatprep.subr.mxu1 %v1377_v0 }
 0xf09   :  { %1301 = vmatpush3.msra.mxu1 %v1467_v8 }
 0xf0a   :  { %1302 = vmatprep.subr.mxu1 %v1377_v0 }
 0xf0b   :  { %1303 = vmatpush3.msra.mxu1 %v1491_v16 }
 0xf0c   :  { %1304 = vmatprep.subr.mxu1 %v1377_v0 }
 0xf0d   :  { %1305 = vmatpush3.msra.mxu1 %v1502_v18 }
 0xfc6   :  { %v869_v54 = vpop.f32.mrf.mxu1 }
 0xfc7   :  { %v873_v55 = vadd.f32 %v869_v54, %v1535_v27 }
 0xfc8   :  { %v1286_v56 = vpop.f32.mrf.mxu1 }
 0xfc9   :  { %1353 = vtanh.f32 %v873_v55  ;;  %v1134_v57 = vmul.f32 -1.442695, %v873_v55 }
 0xfcb   :  { %1355 = vpow2.f32 %v1134_v57 }
 0xfd6   :  { %v1354_v7 = vpop.eup %1353 }
 0xfd7   :  { %883 = vrot.lane.b32.xlu0 %v1354_v7, %s1379_s10 }
 0xfd8   :  { %v1356_v58 = vpop.eup %1355 }
 0xfd9   :  { %v877_v8 = vadd.f32 1.0, %v1356_v58 }
 0xfdb   :  { %1357 = vrcp.f32 %v877_v8 }
 0xfe8   :  { %v1358_v59 = vpop.eup %1357 }
 0xfe9   :  { %v881_v0 = vmul.f32 %v1358_v59, %v788_v49 }
0x1049   :  { %v884_v60 = vpop.permute.xlu0 %883 }
0x104a   :  { %v886_v16 = vmul.f32 %v1358_v59, %v884_v60 }
0x104c   :  { %888 = vrot.lane.b32.xlu1 %v886_v16, %s1380_s7 }
0x10be   :  { %v889_v18 = vpop.permute.xlu1 %888 }
0x10bf   :  { %v891_v61 = vadd.f32 %v889_v18, %v881_v0 }
0x10c1   :  { %1359 = vtanh.f32 %v891_v61 }
0x10ce   :  { %v1360_v62 = vpop.eup %1359 }
0x10cf   :  { %894 = vrot.lane.b32.xlu0 %v1360_v62, %s1379_s10 }
0x1141   :  { %v895_v63 = vpop.permute.xlu0 %894 }
0x1142   :  { %v897_v1 = vmul.f32 %v1358_v59, %v895_v63 }
0x1144   :  { %899 = vrot.lane.b32.xlu1 %v897_v1, %s1380_s7 }
0x11b6   :  { %v900_v2 = vpop.permute.xlu1 %899 }
0x11b7   :  { %1135 = vst.msk [vmem:[%s1672_s8 + $0xa] sm:$0x3] %vm387_vm3, %v900_v2  ;;  %1296 = vmatmul.mubr.msk.f32.vlgmr.msra.gmra.mxu0 %vm41_vm1, %v900_v2 }
0x1277   :  { %v972_v3 = vpop.f32.mrf.mxu0 }
0x1278   :  { %v976_v4 = vadd.f32 %v972_v3, %v1535_v27 }
0x1279   :  { %v1297_v5 = vpop.f32.mrf.mxu0 }
0x127a   :  { %1361 = vtanh.f32 %v976_v4  ;;  %v1137_v9 = vmul.f32 -1.442695, %v976_v4 }
0x127c   :  { %1363 = vpow2.f32 %v1137_v9 }
0x1287   :  { %v1362_v6 = vpop.eup %1361 }
0x1288   :  { %986 = vrot.lane.b32.xlu0 %v1362_v6, %s1379_s10 }
0x1289   :  { %v1364_v10 = vpop.eup %1363 }
0x128a   :  { %v980_v11 = vadd.f32 1.0, %v1364_v10 }
0x128c   :  { %1365 = vrcp.f32 %v980_v11 }
0x1299   :  { %v1366_v12 = vpop.eup %1365 }
0x129a   :  { %v984_v15 = vmul.f32 %v1366_v12, %v891_v61 }
0x12fa   :  { %v987_v13 = vpop.permute.xlu0 %986 }
0x12fb   :  { %v989_v14 = vmul.f32 %v1366_v12, %v987_v13 }
0x12fd   :  { %991 = vrot.lane.b32.xlu1 %v989_v14, %s1380_s7 }
0x136f   :  { %v992_v17 = vpop.permute.xlu1 %991 }
0x1370   :  { %v994_v19 = vadd.f32 %v992_v17, %v984_v15 }
0x1372   :  { %1367 = vtanh.f32 %v994_v19 }
0x137f   :  { %v1368_v20 = vpop.eup %1367 }
0x1380   :  { %997 = vrot.lane.b32.xlu0 %v1368_v20, %s1379_s10 }
0x13f2   :  { %v998_v21 = vpop.permute.xlu0 %997 }
0x13f3   :  { %v1000_v22 = vmul.f32 %v1366_v12, %v998_v21 }
0x13f5   :  { %1002 = vrot.lane.b32.xlu1 %v1000_v22, %s1380_s7 }
0x1467   :  { %v1003_v23 = vpop.permute.xlu1 %1002 }
0x1468   :  { %1138 = vst.msk [vmem:[%s1672_s8 + $0xc] sm:$0x3] %vm387_vm3, %v1003_v23  ;;  %1307 = vmatmul.mubr.msk.f32.vlgmr.msra.gmra.mxu1 %vm41_vm1, %v1003_v23 }
0x1528   :  { %v1075_v24 = vpop.f32.mrf.mxu1 }
0x1529   :  { %v1079_v25 = vadd.f32 %v1075_v24, %v1535_v27 }
0x152a   :  { %v1308_v26 = vpop.f32.mrf.mxu1 }
0x152b   :  { %1369 = vtanh.f32 %v1079_v25  ;;  %v1140_v29 = vmul.f32 -1.442695, %v1079_v25 }
0x152d   :  { %1371 = vpow2.f32 %v1140_v29 }
0x1538   :  { %v1370_v28 = vpop.eup %1369 }
0x1539   :  { %1089 = vrot.lane.b32.xlu0 %v1370_v28, %s1379_s10 }
0x153a   :  { %v1372_v30 = vpop.eup %1371 }
0x153b   :  { %v1083_v31 = vadd.f32 1.0, %v1372_v30 }
0x153d   :  { %1373 = vrcp.f32 %v1083_v31 }
0x154a   :  { %v1374_v32 = vpop.eup %1373 }
0x154b   :  { %v1087_v35 = vmul.f32 %v1374_v32, %v994_v19 }
0x15ab   :  { %v1090_v33 = vpop.permute.xlu0 %1089 }
0x15ac   :  { %v1092_v34 = vmul.f32 %v1374_v32, %v1090_v33 }
0x15ae   :  { %1094 = vrot.lane.b32.xlu1 %v1092_v34, %s1380_s7 }
0x1620   :  { %v1095_v36 = vpop.permute.xlu1 %1094 }
0x1621   :  { %v1097_v37 = vadd.f32 %v1095_v36, %v1087_v35 }
0x1623   :  { %1375 = vtanh.f32 %v1097_v37 }
0x1630   :  { %v1376_v27 = vpop.eup %1375 }
0x1631   :  { %1100 = vrot.lane.b32.xlu0 %v1376_v27, %s1379_s10 }
0x16a3   :  { %v1101_v38 = vpop.permute.xlu0 %1100 }
0x16a4   :  { %v1103_v39 = vmul.f32 %v1374_v32, %v1101_v38 }
0x16a6   :  { %1105 = vrot.lane.b32.xlu1 %v1103_v39, %s1380_s7 }
0x1718   :  { %v1106_v40 = vpop.permute.xlu1 %1105 }
0x1719   :  { %1141 = vst.msk [vmem:[%s1672_s8 + $0xe] sm:$0x3] %vm387_vm3, %v1106_v40 }

// kernel: _lambda_.13
= control target key start
LH: loop header
LB: loop body
LE: loop exit
PB: predicated region body
PF: predicated region fallthrough
CT: control target
= control target key end

     0   :  { %v60_v0 = vlaneseq  ;;  %v2493_v4 = vmov 1983009808   ;;  %vm89_vm0 = vcmask 261120   ;;  %v2494_v31 = vmov 0.0   ;;  %s2498_s22 = smov 32   ;;  %s2499_s23 = smov 80   ;;  %s2996_s1 = inlined_call_operand.vmem [shape: f32[32,64], index: 1, kind: input, shape index: {}]   ;;  %s2997_s4 = inlined_call_operand.vmem [shape: f32[32,64], index: 4, kind: input, shape index: {}]   ;;  %s2998_s0 = inlined_call_operand.vmem [shape: f32[8,2,32], index: 0, kind: input, shape index: {}]   ;;  %s2999_s2 = inlined_call_operand.vmem [shape: f32[16,64], index: 2, kind: input, shape index: {}]   ;;  %s3000_s5 = inlined_call_operand.vmem [shape: f32[16,64], index: 5, kind: input, shape index: {}]   ;;  %s3001_s3 = inlined_call_operand.vmem [shape: f32[1,64], index: 3, kind: input, shape index: {}]   ;;  %s3002_s6 = inlined_call_operand.vmem [shape: f32[1,64], index: 6, kind: input, shape index: {}]   ;;  %s3003_s7 = inlined_call_operand.vmem [shape: f32[8,2,16], index: 7, kind: output, shape index: {0}]   ;;  %s3004_s8 = inlined_call_operand.vmem [shape: f32[8,2,16], index: 8, kind: output, shape index: {1}]  }
   0x1   :  { %v39_v1 = vld [vmem:[%s2996_s1 + $0x18] sm:$0xff]  ;;  %v38_v3 = vld [vmem:[%s2996_s1 + $0x10] sm:$0xff]  ;;  %v58_v5 = vunpack.c.l.s4 %v2493_v4  ;;  %v37_v7 = vld [vmem:[%s2996_s1 + $0x8] sm:$0xff]  ;;  %vm2495_vm1 = vmmov 0   ;;  %vm552_vm2 = vcmask 123904   ;;  %vm347_vm3 = vcmask 130048  }
   0x2   :  { %v216_v2 = vld [vmem:[%s2997_s4 + $0x18] sm:$0xff]  ;;  %2224 = vmatprep.subr.mxu0 %v39_v1  ;;  %v215_v6 = vld [vmem:[%s2997_s4 + $0x10] sm:$0xff]  ;;  %v214_v8 = vld [vmem:[%s2997_s4 + $0x8] sm:$0xff]  ;;  %v61_v9 = vshrl.u32 %v60_v0, 7 }
   0x3   :  { %2235 = vmatprep.subr.mxu1 %v216_v2  ;;  %2225 = vmatpush3.msra.mxu0 %v39_v1  ;;  %v36_v10 = vld [vmem:[%s2996_s1] sm:$0xff]  ;;  %v59_v13 = vunpack.c.0.s8 %v58_v5  ;;  %v32_v20 = vld [vmem:[%s2998_s0 + $0x8] sm:$0x3]  ;;  %v33_v21 = vld [vmem:[%s2998_s0 + $0xa] sm:$0x3] }
   0x4   :  { %2236 = vmatpush3.msra.mxu1 %v216_v2  ;;  %v213_v11 = vld [vmem:[%s2997_s4] sm:$0xff]  ;;  %2226 = vmatprep.subr.mxu0 %v38_v3  ;;  %v34_v22 = vld [vmem:[%s2998_s0 + $0xc] sm:$0x3]  ;;  %v35_v23 = vld [vmem:[%s2998_s0 + $0xe] sm:$0x3]  ;;  %v72_v24 = vcombine.low %v32_v20, %v33_v21 }
   0x5   :  { %v28_v12 = vld [vmem:[%s2998_s0] sm:$0x3]  ;;  %2237 = vmatprep.subr.mxu1 %v215_v6  ;;  %v29_v14 = vld [vmem:[%s2998_s0 + $0x2] sm:$0x3]  ;;  %v30_v15 = vld [vmem:[%s2998_s0 + $0x4] sm:$0x3]  ;;  %2227 = vmatpush3.msra.mxu0 %v38_v3  ;;  %v2581_v19 = vsub.s32 %v59_v13, %v61_v9  ;;  %v73_v27 = vcombine.low %v34_v22, %v35_v23 }
   0x6   :  { %v31_v16 = vld [vmem:[%s2998_s0 + $0x6] sm:$0x3]  ;;  %2238 = vmatpush3.msra.mxu1 %v215_v6  ;;  %v55_v17 = vcombine.low %v28_v12, %v29_v14  ;;  %2228 = vmatprep.subr.mxu0 %v37_v7  ;;  %v2606_v33 = vld [vmem:[%s2999_s2 + $0x8] sm:$0xff]  ;;  %v2114_v37 = vld [vmem:[%s3001_s3] ss:$0 sm:$0xff]  ;;  %s2496_s3 = smov 96  }
   0x7   :  { %v56_v18 = vcombine.low %v30_v15, %v31_v16  ;;  %2239 = vmatprep.subr.mxu1 %v214_v8  ;;  %2229 = vmatpush3.msra.mxu0 %v37_v7  ;;  %v80_v28 = vrot.slane %v72_v24, %v2581_v19  ;;  %v87_v30 = vrot.slane %v73_v27, %v2581_v19  ;;  %v2611_v34 = vld [vmem:[%s3000_s5 + $0x8] sm:$0xff]  ;;  %v2618_v35 = vld [vmem:[%s2999_s2] sm:$0xff] }
   0x8   :  { %2240 = vmatpush3.msra.mxu1 %v214_v8  ;;  %v63_v25 = vrot.slane %v55_v17, %v2581_v19  ;;  %2230 = vmatprep.subr.mxu0 %v36_v10  ;;  %v2626_v36 = vld [vmem:[%s3000_s5] sm:$0xff] }
   0x9   :  { %v70_v26 = vrot.slane %v56_v18, %v2581_v19  ;;  %2241 = vmatprep.subr.mxu1 %v213_v11  ;;  %2231 = vmatpush3.msra.mxu0 %v36_v10  ;;  %v88_v32 = vcombine.low %v80_v28, %v87_v30  ;;  %v2117_v38 = vld [vmem:[%s3002_s6] ss:$0 sm:$0xff]  ;;  %s2497_s6 = smov 16  }
   0xa   :  { %2242 = vmatpush3.msra.mxu1 %v213_v11  ;;  %2246 = vmatprep.subr.mxu0 %v2494_v31 }
   0xb   :  { %v71_v29 = vcombine.low %v63_v25, %v70_v26  ;;  %2253 = vmatprep.subr.mxu1 %v2494_v31 }
   0xd   :  { %2232 = vmatprep.mubr.msk.f32.mxu0 %vm89_vm0, %v71_v29  ;;  %2243 = vmatprep.mubr.msk.f32.mxu1 %vm89_vm0, %v71_v29 }
   0xe   :  { %2233 = vmatmul.mubr.msk.f32.vlgmr.msra.gmra.mxu0 %vm89_vm0, %v88_v32  ;;  %2244 = vmatmul.mubr.msk.f32.vlgmr.msra.gmra.mxu1 %vm89_vm0, %v88_v32 }
   0xf   :  { %2247 = vmatpush3.msra.mxu0 %v2606_v33  ;;  %2250 = vmatprep.mubr.msk.f32.mxu0 %vm2495_vm1, %v2494_v31 }
  0x10   :  { %2248 = vmatprep.subr.mxu0 %v2494_v31  ;;  %2254 = vmatpush3.msra.mxu1 %v2611_v34 }
  0x11   :  { %2249 = vmatpush3.msra.mxu0 %v2618_v35  ;;  %2255 = vmatprep.subr.mxu1 %v2494_v31 }
  0x12   :  { %2251 = vmatmul.mubr.f32.vlgmr.msra.gmra.mxu0 %v2494_v31  ;;  %2256 = vmatpush3.msra.mxu1 %v2626_v36 }
  0x13   :  { %2257 = vmatprep.mubr.msk.f32.mxu1 %vm2495_vm1, %v2494_v31  ;;  %2260 = vmatprep.subr.mxu0 %v2494_v31 }
  0x14   :  { %2258 = vmatmul.mubr.f32.vlgmr.msra.gmra.mxu1 %v2494_v31  ;;  %2261 = vmatpush3.msra.mxu0 %v2606_v33 }
  0x15   :  { %2262 = vmatprep.subr.mxu0 %v2494_v31  ;;  %2264 = vmatprep.mubr.msk.f32.mxu0 %vm2495_vm1, %v2494_v31 }
  0x16   :  { %2263 = vmatpush3.msra.mxu0 %v2618_v35  ;;  %2267 = vmatprep.subr.mxu1 %v2494_v31 }
  0x17   :  { %2268 = vmatpush3.msra.mxu1 %v2611_v34  ;;  %2271 = vmatprep.mubr.msk.f32.mxu1 %vm2495_vm1, %v2494_v31 }
  0x18   :  { %2269 = vmatprep.subr.mxu1 %v2494_v31  ;;  %2274 = vmatprep.subr.mxu0 %v2494_v31 }
  0x19   :  { %2270 = vmatpush3.msra.mxu1 %v2626_v36 }
  0x1a   :  { %2281 = vmatprep.subr.mxu1 %v2494_v31 }
  0xce   :  { %v2234_v39 = vpop.f32.mrf.mxu0  ;;  %v2245_v40 = vpop.f32.mrf.mxu1 }
  0xcf   :  { %v2657_v41 = vadd.f32 %v2234_v39, %v2114_v37  ;;  %v2659_v42 = vadd.f32 %v2245_v40, %v2117_v38 }
  0xd0   :  { %v160_v43 = vpop.f32.mrf.mxu0  ;;  %v290_v44 = vpop.f32.mrf.mxu1 }
  0xd1   :  { %v318_v45 = vcombine.high %v2659_v42, %v2659_v42  ;;  %v2663_v46 = vadd.f32 %v2114_v37, %v160_v43  ;;  %v2665_v47 = vadd.f32 %v2117_v38, %v290_v44 }
  0xd2   :  { %v417_v48 = vpop.f32.mrf.mxu0 }
  0xd3   :  { %v2669_v49 = vrot.slane %v2663_v46, %v2581_v19  ;;  %v2672_v50 = vrot.slane %v318_v45, %v2581_v19 }
  0xd4   :  { %v2252_v51 = vpop.f32.mrf.mxu0  ;;  %v512_v52 = vpop.f32.mrf.mxu1 }
  0xd5   :  { %v421_v53 = vadd.f32 %v417_v48, %v2669_v49  ;;  %v334_v54 = vcombine.high %v2672_v50, %v2672_v50  ;;  %v186_v24 = vcombine.high %v2669_v49, %v2669_v49 }
  0xd6   :  { %v2259_v55 = vpop.f32.mrf.mxu1 }
  0xd7   :  { %2365 = vtanh.f32 %v421_v53  ;;  %v516_v56 = vadd.f32 %v512_v52, %v334_v54  ;;  %v2120_v59 = vmul.f32 -1.442695, %v421_v53 }
  0xd9   :  { %2367 = vtanh.f32 %v516_v56  ;;  %v2121_v60 = vmul.f32 -1.442695, %v516_v56 }
  0xda   :  { %2369 = vpow2.f32 %v2120_v59 }
  0xdb   :  { %2371 = vpow2.f32 %v2121_v60 }
  0xe4   :  { %v2366_v57 = vpop.eup %2365 }
  0xe5   :  { %431 = vrot.lane.b32.xlu0 %v2366_v57, %s2496_s3 }
  0xe6   :  { %v2368_v58 = vpop.eup %2367 }
  0xe7   :  { %v2370_v61 = vpop.eup %2369 }
  0xe8   :  { %v425_v62 = vadd.f32 1.0, %v2370_v61  ;;  %v2372_v63 = vpop.eup %2371 }
  0xe9   :  { %526 = vrot.lane.b32.xlu0 %v2368_v58, %s2496_s3  ;;  %v520_v0 = vadd.f32 1.0, %v2372_v63 }
  0xea   :  { %2373 = vrcp.f32 %v425_v62 }
  0xeb   :  { %2375 = vrcp.f32 %v520_v0 }
  0xf7   :  { %v2374_v1 = vpop.eup %2373 }
  0xf8   :  { %v2376_v4 = vpop.eup %2375  ;;  %v429_v7 = vmul.f32 0.0, %v2374_v1 }
  0xf9   :  { %v524_v10 = vmul.f32 0.0, %v2376_v4 }
 0x157   :  { %v432_v2 = vpop.permute.xlu0 %431 }
 0x158   :  { %v434_v3 = vmul.f32 %v2374_v1, %v432_v2 }
 0x15a   :  { %436 = vrot.lane.b32.xlu1 %v434_v3, %s2497_s6 }
 0x15b   :  { %v527_v5 = vpop.permute.xlu0 %526 }
 0x15c   :  { %v529_v6 = vmul.f32 %v2376_v4, %v527_v5 }
 0x15e   :  { %531 = vrot.lane.b32.xlu1 %v529_v6, %s2497_s6  ;;  %v171_v6 = vcombine.high %v2663_v46, %v2663_v46 }
 0x1cc   :  { %v437_v8 = vpop.permute.xlu1 %436 }
 0x1cd   :  { %v2681_v9 = vadd.f32 %v437_v8, %v429_v7  ;;  %v2762_v7 = vrot.slane %v2659_v42, %v2581_v19  ;;  %v2765_v8 = vrot.slane %v171_v6, %v2581_v19 }
 0x1cf   :  { %2377 = vtanh.f32 %v2681_v9 }
 0x1d0   :  { %v532_v11 = vpop.permute.xlu1 %531 }
 0x1d1   :  { %v2684_v12 = vadd.f32 %v532_v11, %v524_v10 }
 0x1d3   :  { %2379 = vtanh.f32 %v2684_v12 }
 0x1dc   :  { %v2378_v13 = vpop.eup %2377 }
 0x1dd   :  { %442 = vrot.lane.b32.xlu0 %v2378_v13, %s2498_s22 }
 0x1e0   :  { %v2380_v14 = vpop.eup %2379 }
 0x1e1   :  { %537 = vrot.lane.b32.xlu1 %v2380_v14, %s2498_s22 }
 0x24f   :  { %v443_v15 = vpop.permute.xlu0 %442 }
 0x250   :  { %v445_v16 = vmul.f32 %v2374_v1, %v443_v15 }
 0x252   :  { %v548_v17 = vrot.slane %v445_v16, %v2581_v19 }
 0x253   :  { %v538_v18 = vpop.permute.xlu1 %537 }
 0x254   :  { %v540_v20 = vmul.f32 %v2376_v4, %v538_v18  ;;  %549 = vrot.lane.b32.xlu0 %v548_v17, %s2499_s23 }
 0x256   :  { %v561_v21 = vrot.slane %v540_v20, %v2581_v19 }
 0x258   :  { %562 = vrot.lane.b32.xlu1 %v561_v21, %s2499_s23 }
 0x2c6   :  { %v550_v22 = vpop.permute.xlu0 %549 }
 0x2c7   :  { %553 = vst.msk [vmem:[%s3003_s7] sm:$0x3] %vm552_vm2, %v550_v22  ;;  %2265 = vmatmul.mubr.msk.f32.vlgmr.msra.gmra.mxu0 %vm347_vm3, %v550_v22 }
 0x2c8   :  { %2275 = vmatpush3.msra.mxu0 %v2606_v33  ;;  %2278 = vmatprep.mubr.msk.f32.mxu0 %vm2495_vm1, %v2494_v31 }
 0x2c9   :  { %2276 = vmatprep.subr.mxu0 %v2494_v31 }
 0x2ca   :  { %v563_v23 = vpop.permute.xlu1 %562  ;;  %2277 = vmatpush3.msra.mxu0 %v2618_v35 }
 0x2cb   :  { %2122 = vst.msk [vmem:[%s3004_s8 + $0xe] sm:$0x3] %vm552_vm2, %v563_v23  ;;  %2272 = vmatmul.mubr.msk.f32.vlgmr.msra.gmra.mxu1 %vm347_vm3, %v563_v23  ;;  %2288 = vmatprep.subr.mxu0 %v2494_v31 }
 0x2cc   :  { %2282 = vmatpush3.msra.mxu1 %v2611_v34  ;;  %2285 = vmatprep.mubr.msk.f32.mxu1 %vm2495_vm1, %v2494_v31 }
 0x2cd   :  { %2283 = vmatprep.subr.mxu1 %v2494_v31 }
 0x2ce   :  { %2284 = vmatpush3.msra.mxu1 %v2626_v36 }
 0x2cf   :  { %2295 = vmatprep.subr.mxu1 %v2494_v31 }
 0x387   :  { %v635_v25 = vpop.f32.mrf.mxu0 }
 0x388   :  { %v639_v26 = vadd.f32 %v635_v25, %v186_v24 }
 0x389   :  { %v2266_v27 = vpop.f32.mrf.mxu0 }
 0x38a   :  { %2381 = vtanh.f32 %v639_v26  ;;  %v2124_v38 = vmul.f32 -1.442695, %v639_v26 }
 0x38b   :  { %v732_v28 = vpop.f32.mrf.mxu1 }
 0x38c   :  { %v736_v29 = vadd.f32 %v732_v28, %v2672_v50 }
 0x38d   :  { %v2273_v30 = vpop.f32.mrf.mxu1 }
 0x38e   :  { %2383 = vtanh.f32 %v736_v29  ;;  %v2126_v39 = vmul.f32 -1.442695, %v736_v29 }
 0x38f   :  { %2385 = vpow2.f32 %v2124_v38 }
 0x390   :  { %2387 = vpow2.f32 %v2126_v39 }
 0x397   :  { %v2382_v32 = vpop.eup %2381 }
 0x398   :  { %649 = vrot.lane.b32.xlu0 %v2382_v32, %s2496_s3 }
 0x39b   :  { %v2384_v37 = vpop.eup %2383 }
 0x39c   :  { %746 = vrot.lane.b32.xlu1 %v2384_v37, %s2496_s3  ;;  %v2386_v40 = vpop.eup %2385 }
 0x39d   :  { %v643_v43 = vadd.f32 1.0, %v2386_v40  ;;  %v2388_v44 = vpop.eup %2387 }
 0x39e   :  { %v740_v45 = vadd.f32 1.0, %v2388_v44 }
 0x39f   :  { %2389 = vrcp.f32 %v643_v43 }
 0x3a0   :  { %2391 = vrcp.f32 %v740_v45 }
 0x3ac   :  { %v2390_v48 = vpop.eup %2389 }
 0x3ad   :  { %v2392_v51 = vpop.eup %2391  ;;  %v647_v54 = vmul.f32 %v2390_v48, %v2681_v9 }
 0x3ae   :  { %v744_v57 = vmul.f32 %v2392_v51, %v2684_v12  ;;  %v333_v12 = vcombine.high %v2762_v7, %v2762_v7 }
 0x40a   :  { %v650_v49 = vpop.permute.xlu0 %649 }
 0x40b   :  { %v652_v50 = vmul.f32 %v2390_v48, %v650_v49 }
 0x40d   :  { %654 = vrot.lane.b32.xlu0 %v652_v50, %s2497_s6 }
 0x40e   :  { %v747_v52 = vpop.permute.xlu1 %746 }
 0x40f   :  { %v749_v53 = vmul.f32 %v2392_v51, %v747_v52 }
 0x411   :  { %751 = vrot.lane.b32.xlu1 %v749_v53, %s2497_s6 }
 0x47f   :  { %v655_v55 = vpop.permute.xlu0 %654 }
 0x480   :  { %v2723_v56 = vadd.f32 %v655_v55, %v647_v54  ;;  %v187_v54 = vcombine.high %v2765_v8, %v2765_v8 }
 0x482   :  { %2393 = vtanh.f32 %v2723_v56 }
 0x483   :  { %v752_v58 = vpop.permute.xlu1 %751 }
 0x484   :  { %v2727_v59 = vadd.f32 %v752_v58, %v744_v57 }
 0x486   :  { %2395 = vtanh.f32 %v2727_v59 }
 0x48f   :  { %v2394_v60 = vpop.eup %2393 }
 0x490   :  { %660 = vrot.lane.b32.xlu0 %v2394_v60, %s2498_s22 }
 0x493   :  { %v2396_v61 = vpop.eup %2395 }
 0x494   :  { %757 = vrot.lane.b32.xlu1 %v2396_v61, %s2498_s22 }
 0x502   :  { %v661_v62 = vpop.permute.xlu0 %660 }
 0x503   :  { %v663_v63 = vmul.f32 %v2390_v48, %v661_v62 }
 0x505   :  { %v768_v0 = vrot.slane %v663_v63, %v2581_v19 }
 0x506   :  { %v758_v1 = vpop.permute.xlu1 %757 }
 0x507   :  { %v760_v2 = vmul.f32 %v2392_v51, %v758_v1  ;;  %769 = vrot.lane.b32.xlu0 %v768_v0, %s2499_s23 }
 0x509   :  { %v781_v3 = vrot.slane %v760_v2, %v2581_v19 }
 0x50b   :  { %782 = vrot.lane.b32.xlu1 %v781_v3, %s2499_s23 }
 0x579   :  { %v770_v4 = vpop.permute.xlu0 %769 }
 0x57a   :  { %2127 = vst.msk [vmem:[%s3003_s7 + $0x2] sm:$0x3] %vm552_vm2, %v770_v4  ;;  %2279 = vmatmul.mubr.msk.f32.vlgmr.msra.gmra.mxu0 %vm347_vm3, %v770_v4 }
 0x57b   :  { %2289 = vmatpush3.msra.mxu0 %v2606_v33  ;;  %2292 = vmatprep.mubr.msk.f32.mxu0 %vm2495_vm1, %v2494_v31 }
 0x57c   :  { %2290 = vmatprep.subr.mxu0 %v2494_v31 }
 0x57d   :  { %v783_v5 = vpop.permute.xlu1 %782  ;;  %2291 = vmatpush3.msra.mxu0 %v2618_v35 }
 0x57e   :  { %2128 = vst.msk [vmem:[%s3004_s8 + $0xc] sm:$0x3] %vm552_vm2, %v783_v5  ;;  %2286 = vmatmul.mubr.msk.f32.vlgmr.msra.gmra.mxu1 %vm347_vm3, %v783_v5  ;;  %2302 = vmatprep.subr.mxu0 %v2494_v31 }
 0x57f   :  { %2296 = vmatpush3.msra.mxu1 %v2611_v34  ;;  %2299 = vmatprep.mubr.msk.f32.mxu1 %vm2495_vm1, %v2494_v31 }
 0x580   :  { %2297 = vmatprep.subr.mxu1 %v2494_v31 }
 0x581   :  { %2298 = vmatpush3.msra.mxu1 %v2626_v36 }
 0x582   :  { %2309 = vmatprep.subr.mxu1 %v2494_v31 }
 0x63a   :  { %v855_v9 = vpop.f32.mrf.mxu0 }
 0x63b   :  { %v859_v10 = vadd.f32 %v855_v9, %v2765_v8 }
 0x63c   :  { %v2280_v11 = vpop.f32.mrf.mxu0 }
 0x63d   :  { %2397 = vtanh.f32 %v859_v10  ;;  %v2130_v16 = vmul.f32 -1.442695, %v859_v10 }
 0x63e   :  { %v952_v13 = vpop.f32.mrf.mxu1 }
 0x63f   :  { %v956_v14 = vadd.f32 %v952_v13, %v333_v12 }
 0x640   :  { %v2287_v15 = vpop.f32.mrf.mxu1 }
 0x641   :  { %2399 = vtanh.f32 %v956_v14  ;;  %v2132_v17 = vmul.f32 -1.442695, %v956_v14 }
 0x642   :  { %2401 = vpow2.f32 %v2130_v16 }
 0x643   :  { %2403 = vpow2.f32 %v2132_v17 }
 0x64a   :  { %v2398_v46 = vpop.eup %2397 }
 0x64b   :  { %869 = vrot.lane.b32.xlu0 %v2398_v46, %s2496_s3 }
 0x64e   :  { %v2400_v42 = vpop.eup %2399 }
 0x64f   :  { %966 = vrot.lane.b32.xlu1 %v2400_v42, %s2496_s3  ;;  %v2402_v18 = vpop.eup %2401 }
 0x650   :  { %v863_v20 = vadd.f32 1.0, %v2402_v18  ;;  %v2404_v21 = vpop.eup %2403 }
 0x651   :  { %v960_v22 = vadd.f32 1.0, %v2404_v21 }
 0x652   :  { %2405 = vrcp.f32 %v863_v20 }
 0x653   :  { %2407 = vrcp.f32 %v960_v22 }
 0x65f   :  { %v2406_v23 = vpop.eup %2405 }
 0x660   :  { %v2408_v26 = vpop.eup %2407  ;;  %v867_v29 = vmul.f32 %v2406_v23, %v2723_v56 }
 0x661   :  { %v964_v37 = vmul.f32 %v2408_v26, %v2727_v59 }
 0x6bd   :  { %v870_v24 = vpop.permute.xlu0 %869 }
 0x6be   :  { %v872_v25 = vmul.f32 %v2406_v23, %v870_v24 }
 0x6c0   :  { %874 = vrot.lane.b32.xlu0 %v872_v25, %s2497_s6 }
 0x6c1   :  { %v967_v27 = vpop.permute.xlu1 %966 }
 0x6c2   :  { %v969_v28 = vmul.f32 %v2408_v26, %v967_v27  ;;  %v2857_v27 = vrot.slane %v2657_v41, %v2581_v19 }
 0x6c4   :  { %971 = vrot.lane.b32.xlu1 %v969_v28, %s2497_s6 }
 0x732   :  { %v875_v30 = vpop.permute.xlu0 %874 }
 0x733   :  { %v2775_v32 = vadd.f32 %v875_v30, %v867_v29 }
 0x735   :  { %2409 = vtanh.f32 %v2775_v32 }
 0x736   :  { %v972_v38 = vpop.permute.xlu1 %971 }
 0x737   :  { %v2779_v39 = vadd.f32 %v972_v38, %v964_v37 }
 0x739   :  { %2411 = vtanh.f32 %v2779_v39 }
 0x742   :  { %v2410_v40 = vpop.eup %2409 }
 0x743   :  { %880 = vrot.lane.b32.xlu0 %v2410_v40, %s2498_s22 }
 0x746   :  { %v2412_v43 = vpop.eup %2411 }
 0x747   :  { %977 = vrot.lane.b32.xlu1 %v2412_v43, %s2498_s22 }
 0x7b5   :  { %v881_v44 = vpop.permute.xlu0 %880 }
 0x7b6   :  { %v883_v45 = vmul.f32 %v2406_v23, %v881_v44 }
 0x7b8   :  { %v988_v48 = vrot.slane %v883_v45, %v2581_v19 }
 0x7b9   :  { %v978_v49 = vpop.permute.xlu1 %977 }
 0x7ba   :  { %v980_v50 = vmul.f32 %v2408_v26, %v978_v49  ;;  %989 = vrot.lane.b32.xlu0 %v988_v48, %s2499_s23  ;;  %v301_v26 = vcombine.high %v2665_v47, %v2665_v47 }
 0x7bc   :  { %v1001_v51 = vrot.slane %v980_v50, %v2581_v19  ;;  %v2860_v28 = vrot.slane %v301_v26, %v2581_v19 }
 0x7be   :  { %1002 = vrot.lane.b32.xlu1 %v1001_v51, %s2499_s23  ;;  %v317_v37 = vcombine.high %v2860_v28, %v2860_v28 }
 0x82c   :  { %v990_v52 = vpop.permute.xlu0 %989 }
 0x82d   :  { %2133 = vst.msk [vmem:[%s3003_s7 + $0x4] sm:$0x3] %vm552_vm2, %v990_v52  ;;  %2293 = vmatmul.mubr.msk.f32.vlgmr.msra.gmra.mxu0 %vm347_vm3, %v990_v52 }
 0x82e   :  { %2303 = vmatpush3.msra.mxu0 %v2606_v33  ;;  %2306 = vmatprep.mubr.msk.f32.mxu0 %vm2495_vm1, %v2494_v31 }
 0x82f   :  { %2304 = vmatprep.subr.mxu0 %v2494_v31 }
 0x830   :  { %v1003_v53 = vpop.permute.xlu1 %1002  ;;  %2305 = vmatpush3.msra.mxu0 %v2618_v35 }
 0x831   :  { %2134 = vst.msk [vmem:[%s3004_s8 + $0xa] sm:$0x3] %vm552_vm2, %v1003_v53  ;;  %2300 = vmatmul.mubr.msk.f32.vlgmr.msra.gmra.mxu1 %vm347_vm3, %v1003_v53  ;;  %2316 = vmatprep.subr.mxu0 %v2494_v31 }
 0x832   :  { %2310 = vmatpush3.msra.mxu1 %v2611_v34  ;;  %2313 = vmatprep.mubr.msk.f32.mxu1 %vm2495_vm1, %v2494_v31 }
 0x833   :  { %2311 = vmatprep.subr.mxu1 %v2494_v31 }
 0x834   :  { %2312 = vmatpush3.msra.mxu1 %v2626_v36 }
 0x835   :  { %2323 = vmatprep.subr.mxu1 %v2494_v31 }
 0x8ed   :  { %v1075_v55 = vpop.f32.mrf.mxu0 }
 0x8ee   :  { %v1079_v56 = vadd.f32 %v1075_v55, %v187_v54 }
 0x8ef   :  { %v2294_v57 = vpop.f32.mrf.mxu0 }
 0x8f0   :  { %2413 = vtanh.f32 %v1079_v56  ;;  %v2136_v63 = vmul.f32 -1.442695, %v1079_v56 }
 0x8f1   :  { %v1172_v58 = vpop.f32.mrf.mxu1 }
 0x8f2   :  { %v1176_v59 = vadd.f32 %v1172_v58, %v2762_v7 }
 0x8f3   :  { %v2301_v60 = vpop.f32.mrf.mxu1 }
 0x8f4   :  { %2415 = vtanh.f32 %v1176_v59  ;;  %v2138_v0 = vmul.f32 -1.442695, %v1176_v59 }
 0x8f5   :  { %2417 = vpow2.f32 %v2136_v63 }
 0x8f6   :  { %2419 = vpow2.f32 %v2138_v0 }
 0x8fd   :  { %v2414_v61 = vpop.eup %2413 }
 0x8fe   :  { %1089 = vrot.lane.b32.xlu0 %v2414_v61, %s2496_s3 }
 0x901   :  { %v2416_v62 = vpop.eup %2415 }
 0x902   :  { %1186 = vrot.lane.b32.xlu1 %v2416_v62, %s2496_s3  ;;  %v2418_v1 = vpop.eup %2417 }
 0x903   :  { %v1083_v2 = vadd.f32 1.0, %v2418_v1  ;;  %v2420_v3 = vpop.eup %2419 }
 0x904   :  { %v1180_v4 = vadd.f32 1.0, %v2420_v3 }
 0x905   :  { %2421 = vrcp.f32 %v1083_v2 }
 0x906   :  { %2423 = vrcp.f32 %v1180_v4 }
 0x912   :  { %v2422_v5 = vpop.eup %2421 }
 0x913   :  { %v2424_v8 = vpop.eup %2423  ;;  %v1087_v11 = vmul.f32 %v2422_v5, %v2775_v32 }
 0x914   :  { %v1184_v14 = vmul.f32 %v2424_v8, %v2779_v39 }
 0x970   :  { %v1090_v6 = vpop.permute.xlu0 %1089 }
 0x971   :  { %v1092_v7 = vmul.f32 %v2422_v5, %v1090_v6 }
 0x973   :  { %1094 = vrot.lane.b32.xlu0 %v1092_v7, %s2497_s6 }
 0x974   :  { %v1187_v9 = vpop.permute.xlu1 %1186 }
 0x975   :  { %v1189_v10 = vmul.f32 %v2424_v8, %v1187_v9 }
 0x977   :  { %1191 = vrot.lane.b32.xlu1 %v1189_v10, %s2497_s6 }
 0x9e5   :  { %v1095_v12 = vpop.permute.xlu0 %1094 }
 0x9e6   :  { %v2818_v13 = vadd.f32 %v1095_v12, %v1087_v11  ;;  %v203_v11 = vcombine.high %v2857_v27, %v2857_v27 }
 0x9e8   :  { %2425 = vtanh.f32 %v2818_v13 }
 0x9e9   :  { %v1192_v15 = vpop.permute.xlu1 %1191 }
 0x9ea   :  { %v2822_v46 = vadd.f32 %v1192_v15, %v1184_v14 }
 0x9ec   :  { %2427 = vtanh.f32 %v2822_v46 }
 0x9f5   :  { %v2426_v42 = vpop.eup %2425 }
 0x9f6   :  { %1100 = vrot.lane.b32.xlu0 %v2426_v42, %s2498_s22 }
 0x9f9   :  { %v2428_v16 = vpop.eup %2427 }
 0x9fa   :  { %1197 = vrot.lane.b32.xlu1 %v2428_v16, %s2498_s22 }
 0xa68   :  { %v1101_v17 = vpop.permute.xlu0 %1100 }
 0xa69   :  { %v1103_v18 = vmul.f32 %v2422_v5, %v1101_v17 }
 0xa6b   :  { %v1208_v20 = vrot.slane %v1103_v18, %v2581_v19 }
 0xa6c   :  { %v1198_v21 = vpop.permute.xlu1 %1197 }
 0xa6d   :  { %v1200_v22 = vmul.f32 %v2424_v8, %v1198_v21  ;;  %1209 = vrot.lane.b32.xlu0 %v1208_v20, %s2499_s23 }
 0xa6f   :  { %v1221_v23 = vrot.slane %v1200_v22, %v2581_v19 }
 0xa71   :  { %1222 = vrot.lane.b32.xlu1 %v1221_v23, %s2499_s23 }
 0xadf   :  { %v1210_v24 = vpop.permute.xlu0 %1209 }
 0xae0   :  { %2139 = vst.msk [vmem:[%s3003_s7 + $0x6] sm:$0x3] %vm552_vm2, %v1210_v24  ;;  %2307 = vmatmul.mubr.msk.f32.vlgmr.msra.gmra.mxu0 %vm347_vm3, %v1210_v24 }
 0xae1   :  { %2317 = vmatpush3.msra.mxu0 %v2606_v33  ;;  %2320 = vmatprep.mubr.msk.f32.mxu0 %vm2495_vm1, %v2494_v31 }
 0xae2   :  { %2318 = vmatprep.subr.mxu0 %v2494_v31 }
 0xae3   :  { %v1223_v25 = vpop.permute.xlu1 %1222  ;;  %2319 = vmatpush3.msra.mxu0 %v2618_v35 }
 0xae4   :  { %2140 = vst.msk [vmem:[%s3004_s8 + $0x8] sm:$0x3] %vm552_vm2, %v1223_v25  ;;  %2314 = vmatmul.mubr.msk.f32.vlgmr.msra.gmra.mxu1 %vm347_vm3, %v1223_v25  ;;  %2330 = vmatprep.subr.mxu0 %v2494_v31 }
 0xae5   :  { %2324 = vmatpush3.msra.mxu1 %v2611_v34  ;;  %2327 = vmatprep.mubr.msk.f32.mxu1 %vm2495_vm1, %v2494_v31 }
 0xae6   :  { %2325 = vmatprep.subr.mxu1 %v2494_v31 }
 0xae7   :  { %2326 = vmatpush3.msra.mxu1 %v2626_v36 }
 0xae8   :  { %2337 = vmatprep.subr.mxu1 %v2494_v31 }
 0xba0   :  { %v1295_v29 = vpop.f32.mrf.mxu0 }
 0xba1   :  { %v1299_v30 = vadd.f32 %v1295_v29, %v2857_v27 }
 0xba2   :  { %v2308_v32 = vpop.f32.mrf.mxu0 }
 0xba3   :  { %2429 = vtanh.f32 %v1299_v30  ;;  %v2142_v45 = vmul.f32 -1.442695, %v1299_v30 }
 0xba4   :  { %v1392_v38 = vpop.f32.mrf.mxu1 }
 0xba5   :  { %v1396_v39 = vadd.f32 %v1392_v38, %v317_v37 }
 0xba6   :  { %v2315_v40 = vpop.f32.mrf.mxu1 }
 0xba7   :  { %2431 = vtanh.f32 %v1396_v39  ;;  %v2144_v48 = vmul.f32 -1.442695, %v1396_v39 }
 0xba8   :  { %2433 = vpow2.f32 %v2142_v45 }
 0xba9   :  { %2435 = vpow2.f32 %v2144_v48 }
 0xbb0   :  { %v2430_v43 = vpop.eup %2429 }
 0xbb1   :  { %1309 = vrot.lane.b32.xlu0 %v2430_v43, %s2496_s3 }
 0xbb4   :  { %v2432_v44 = vpop.eup %2431 }
 0xbb5   :  { %1406 = vrot.lane.b32.xlu1 %v2432_v44, %s2496_s3  ;;  %v2434_v49 = vpop.eup %2433 }
 0xbb6   :  { %v1303_v50 = vadd.f32 1.0, %v2434_v49  ;;  %v2436_v51 = vpop.eup %2435 }
 0xbb7   :  { %v1400_v52 = vadd.f32 1.0, %v2436_v51 }
 0xbb8   :  { %2437 = vrcp.f32 %v1303_v50 }
 0xbb9   :  { %2439 = vrcp.f32 %v1400_v52 }
 0xbc5   :  { %v2438_v53 = vpop.eup %2437 }
 0xbc6   :  { %v2440_v56 = vpop.eup %2439  ;;  %v1307_v59 = vmul.f32 %v2438_v53, %v2818_v13 }
 0xbc7   :  { %v1404_v62 = vmul.f32 %v2440_v56, %v2822_v46 }
 0xc23   :  { %v1310_v54 = vpop.permute.xlu0 %1309 }
 0xc24   :  { %v1312_v55 = vmul.f32 %v2438_v53, %v1310_v54 }
 0xc26   :  { %1314 = vrot.lane.b32.xlu0 %v1312_v55, %s2497_s6 }
 0xc27   :  { %v1407_v57 = vpop.permute.xlu1 %1406 }
 0xc28   :  { %v1409_v58 = vmul.f32 %v2440_v56, %v1407_v57 }
 0xc2a   :  { %1411 = vrot.lane.b32.xlu1 %v1409_v58, %s2497_s6 }
 0xc98   :  { %v1315_v60 = vpop.permute.xlu0 %1314 }
 0xc99   :  { %v2870_v61 = vadd.f32 %v1315_v60, %v1307_v59 }
 0xc9b   :  { %2441 = vtanh.f32 %v2870_v61 }
 0xc9c   :  { %v1412_v63 = vpop.permute.xlu1 %1411 }
 0xc9d   :  { %v2874_v0 = vadd.f32 %v1412_v63, %v1404_v62 }
 0xc9f   :  { %2443 = vtanh.f32 %v2874_v0 }
 0xca8   :  { %v2442_v1 = vpop.eup %2441 }
 0xca9   :  { %1320 = vrot.lane.b32.xlu0 %v2442_v1, %s2498_s22 }
 0xcac   :  { %v2444_v2 = vpop.eup %2443 }
 0xcad   :  { %1417 = vrot.lane.b32.xlu1 %v2444_v2, %s2498_s22 }
 0xd1b   :  { %v1321_v3 = vpop.permute.xlu0 %1320 }
 0xd1c   :  { %v1323_v4 = vmul.f32 %v2438_v53, %v1321_v3 }
 0xd1e   :  { %v1428_v5 = vrot.slane %v1323_v4, %v2581_v19 }
 0xd1f   :  { %v1418_v6 = vpop.permute.xlu1 %1417 }
 0xd20   :  { %v1420_v7 = vmul.f32 %v2440_v56, %v1418_v6  ;;  %1429 = vrot.lane.b32.xlu0 %v1428_v5, %s2499_s23 }
 0xd22   :  { %v1441_v8 = vrot.slane %v1420_v7, %v2581_v19 }
 0xd24   :  { %1442 = vrot.lane.b32.xlu1 %v1441_v8, %s2499_s23 }
 0xd92   :  { %v1430_v9 = vpop.permute.xlu0 %1429 }
 0xd93   :  { %2145 = vst.msk [vmem:[%s3003_s7 + $0x8] sm:$0x3] %vm552_vm2, %v1430_v9  ;;  %2321 = vmatmul.mubr.msk.f32.vlgmr.msra.gmra.mxu0 %vm347_vm3, %v1430_v9 }
 0xd94   :  { %2331 = vmatpush3.msra.mxu0 %v2606_v33  ;;  %2334 = vmatprep.mubr.msk.f32.mxu0 %vm2495_vm1, %v2494_v31 }
 0xd95   :  { %2332 = vmatprep.subr.mxu0 %v2494_v31 }
 0xd96   :  { %v1443_v10 = vpop.permute.xlu1 %1442  ;;  %2333 = vmatpush3.msra.mxu0 %v2618_v35 }
 0xd97   :  { %2146 = vst.msk [vmem:[%s3004_s8 + $0x6] sm:$0x3] %vm552_vm2, %v1443_v10  ;;  %2328 = vmatmul.mubr.msk.f32.vlgmr.msra.gmra.mxu1 %vm347_vm3, %v1443_v10  ;;  %2344 = vmatprep.subr.mxu0 %v2494_v31 }
 0xd98   :  { %2338 = vmatpush3.msra.mxu1 %v2611_v34  ;;  %2341 = vmatprep.mubr.msk.f32.mxu1 %vm2495_vm1, %v2494_v31 }
 0xd99   :  { %2339 = vmatprep.subr.mxu1 %v2494_v31 }
 0xd9a   :  { %2340 = vmatpush3.msra.mxu1 %v2626_v36 }
 0xd9b   :  { %2351 = vmatprep.subr.mxu1 %v2494_v31 }
 0xe53   :  { %v1515_v12 = vpop.f32.mrf.mxu0 }
 0xe54   :  { %v1519_v13 = vadd.f32 %v1515_v12, %v203_v11 }
 0xe55   :  { %v2322_v14 = vpop.f32.mrf.mxu0 }
 0xe56   :  { %2445 = vtanh.f32 %v1519_v13  ;;  %v2148_v18 = vmul.f32 -1.442695, %v1519_v13 }
 0xe57   :  { %v1612_v15 = vpop.f32.mrf.mxu1 }
 0xe58   :  { %v1616_v46 = vadd.f32 %v1612_v15, %v2860_v28 }
 0xe59   :  { %v2329_v42 = vpop.f32.mrf.mxu1 }
 0xe5a   :  { %2447 = vtanh.f32 %v1616_v46  ;;  %v2150_v20 = vmul.f32 -1.442695, %v1616_v46 }
 0xe5b   :  { %2449 = vpow2.f32 %v2148_v18 }
 0xe5c   :  { %2451 = vpow2.f32 %v2150_v20 }
 0xe63   :  { %v2446_v16 = vpop.eup %2445 }
 0xe64   :  { %1529 = vrot.lane.b32.xlu0 %v2446_v16, %s2496_s3 }
 0xe67   :  { %v2448_v17 = vpop.eup %2447 }
 0xe68   :  { %1626 = vrot.lane.b32.xlu1 %v2448_v17, %s2496_s3  ;;  %v2450_v21 = vpop.eup %2449 }
 0xe69   :  { %v1523_v22 = vadd.f32 1.0, %v2450_v21  ;;  %v2452_v23 = vpop.eup %2451 }
 0xe6a   :  { %v1620_v24 = vadd.f32 1.0, %v2452_v23 }
 0xe6b   :  { %2453 = vrcp.f32 %v1523_v22 }
 0xe6c   :  { %2455 = vrcp.f32 %v1620_v24 }
 0xe78   :  { %v2454_v25 = vpop.eup %2453 }
 0xe79   :  { %v2456_v28 = vpop.eup %2455  ;;  %v1527_v32 = vmul.f32 %v2454_v25, %v2870_v61 }
 0xe7a   :  { %v1624_v39 = vmul.f32 %v2456_v28, %v2874_v0 }
 0xed6   :  { %v1530_v26 = vpop.permute.xlu0 %1529 }
 0xed7   :  { %v1532_v27 = vmul.f32 %v2454_v25, %v1530_v26 }
 0xed9   :  { %1534 = vrot.lane.b32.xlu0 %v1532_v27, %s2497_s6 }
 0xeda   :  { %v1627_v29 = vpop.permute.xlu1 %1626 }
 0xedb   :  { %v1629_v30 = vmul.f32 %v2456_v28, %v1627_v29 }
 0xedd   :  { %1631 = vrot.lane.b32.xlu1 %v1629_v30, %s2497_s6 }
 0xf4b   :  { %v1535_v37 = vpop.permute.xlu0 %1534 }
 0xf4c   :  { %v2913_v38 = vadd.f32 %v1535_v37, %v1527_v32 }
 0xf4e   :  { %2457 = vtanh.f32 %v2913_v38 }
 0xf4f   :  { %v1632_v40 = vpop.permute.xlu1 %1631 }
 0xf50   :  { %v2917_v43 = vadd.f32 %v1632_v40, %v1624_v39 }
 0xf52   :  { %2459 = vtanh.f32 %v2917_v43 }
 0xf5b   :  { %v2458_v44 = vpop.eup %2457 }
 0xf5c   :  { %1540 = vrot.lane.b32.xlu0 %v2458_v44, %s2498_s22 }
 0xf5f   :  { %v2460_v45 = vpop.eup %2459 }
 0xf60   :  { %1637 = vrot.lane.b32.xlu1 %v2460_v45, %s2498_s22 }
 0xfce   :  { %v1541_v48 = vpop.permute.xlu0 %1540 }
 0xfcf   :  { %v1543_v49 = vmul.f32 %v2454_v25, %v1541_v48 }
 0xfd1   :  { %v1648_v50 = vrot.slane %v1543_v49, %v2581_v19 }
 0xfd2   :  { %v1638_v51 = vpop.permute.xlu1 %1637 }
 0xfd3   :  { %v1640_v52 = vmul.f32 %v2456_v28, %v1638_v51  ;;  %1649 = vrot.lane.b32.xlu0 %v1648_v50, %s2499_s23 }
 0xfd5   :  { %v1661_v53 = vrot.slane %v1640_v52, %v2581_v19 }
 0xfd7   :  { %1662 = vrot.lane.b32.xlu1 %v1661_v53, %s2499_s23 }
0x1045   :  { %v1650_v54 = vpop.permute.xlu0 %1649 }
0x1046   :  { %2151 = vst.msk [vmem:[%s3003_s7 + $0xa] sm:$0x3] %vm552_vm2, %v1650_v54  ;;  %2335 = vmatmul.mubr.msk.f32.vlgmr.msra.gmra.mxu0 %vm347_vm3, %v1650_v54 }
0x1047   :  { %2345 = vmatpush3.msra.mxu0 %v2606_v33  ;;  %2348 = vmatprep.mubr.msk.f32.mxu0 %vm2495_vm1, %v2494_v31  ;;  %v188_v33 = vcombine.high %v2657_v41, %v2657_v41 }
0x1048   :  { %2346 = vmatprep.subr.mxu0 %v2494_v31 }
0x1049   :  { %v1663_v55 = vpop.permute.xlu1 %1662  ;;  %2347 = vmatpush3.msra.mxu0 %v2618_v35  ;;  %v2950_v35 = vrot.slane %v2665_v47, %v2581_v19  ;;  %v202_v56 = vrot.slane %v188_v33, %v2581_v19 }
0x104a   :  { %2152 = vst.msk [vmem:[%s3004_s8 + $0x4] sm:$0x3] %vm552_vm2, %v1663_v55  ;;  %2342 = vmatmul.mubr.msk.f32.vlgmr.msra.gmra.mxu1 %vm347_vm3, %v1663_v55 }
0x104b   :  { %2352 = vmatpush3.msra.mxu1 %v2611_v34  ;;  %2355 = vmatprep.mubr.msk.f32.mxu1 %vm2495_vm1, %v2494_v31  ;;  %v316_v34 = vcombine.high %v2950_v35, %v2950_v35  ;;  %v204_v24 = vcombine.high %v202_v56, %v202_v56 }
0x104c   :  { %2353 = vmatprep.subr.mxu1 %v2494_v31 }
0x104d   :  { %2354 = vmatpush3.msra.mxu1 %v2626_v36 }
0x1106   :  { %v1735_v57 = vpop.f32.mrf.mxu0 }
0x1107   :  { %v1739_v58 = vadd.f32 %v1735_v57, %v202_v56 }
0x1108   :  { %v2336_v59 = vpop.f32.mrf.mxu0 }
0x1109   :  { %2461 = vtanh.f32 %v1739_v58  ;;  %v2154_v47 = vmul.f32 -1.442695, %v1739_v58 }
0x110a   :  { %v1832_v60 = vpop.f32.mrf.mxu1 }
0x110b   :  { %v1836_v31 = vadd.f32 %v1832_v60, %v316_v34 }
0x110c   :  { %v2343_v61 = vpop.f32.mrf.mxu1 }
0x110d   :  { %2463 = vtanh.f32 %v1836_v31  ;;  %v2156_v62 = vmul.f32 -1.442695, %v1836_v31 }
0x110e   :  { %2465 = vpow2.f32 %v2154_v47 }
0x110f   :  { %2467 = vpow2.f32 %v2156_v62 }
0x1116   :  { %v2462_v36 = vpop.eup %2461 }
0x1117   :  { %1749 = vrot.lane.b32.xlu0 %v2462_v36, %s2496_s3 }
0x111a   :  { %v2464_v41 = vpop.eup %2463 }
0x111b   :  { %1846 = vrot.lane.b32.xlu1 %v2464_v41, %s2496_s3  ;;  %v2466_v63 = vpop.eup %2465 }
0x111c   :  { %v1743_v0 = vadd.f32 1.0, %v2466_v63  ;;  %v2468_v1 = vpop.eup %2467 }
0x111d   :  { %v1840_v2 = vadd.f32 1.0, %v2468_v1 }
0x111e   :  { %2469 = vrcp.f32 %v1743_v0 }
0x111f   :  { %2471 = vrcp.f32 %v1840_v2 }
0x112b   :  { %v2470_v3 = vpop.eup %2469 }
0x112c   :  { %v2472_v6 = vpop.eup %2471  ;;  %v1747_v9 = vmul.f32 %v2470_v3, %v2913_v38 }
0x112d   :  { %v1844_v12 = vmul.f32 %v2472_v6, %v2917_v43 }
0x1189   :  { %v1750_v4 = vpop.permute.xlu0 %1749 }
0x118a   :  { %v1752_v5 = vmul.f32 %v2470_v3, %v1750_v4 }
0x118c   :  { %1754 = vrot.lane.b32.xlu0 %v1752_v5, %s2497_s6 }
0x118d   :  { %v1847_v7 = vpop.permute.xlu1 %1846 }
0x118e   :  { %v1849_v8 = vmul.f32 %v2472_v6, %v1847_v7 }
0x1190   :  { %1851 = vrot.lane.b32.xlu1 %v1849_v8, %s2497_s6 }
0x11fe   :  { %v1755_v10 = vpop.permute.xlu0 %1754 }
0x11ff   :  { %v1757_v11 = vadd.f32 %v1755_v10, %v1747_v9 }
0x1201   :  { %2473 = vtanh.f32 %v1757_v11 }
0x1202   :  { %v1852_v13 = vpop.permute.xlu1 %1851 }
0x1203   :  { %v1854_v14 = vadd.f32 %v1852_v13, %v1844_v12 }
0x1205   :  { %2475 = vtanh.f32 %v1854_v14 }
0x120e   :  { %v2474_v15 = vpop.eup %2473 }
0x120f   :  { %1760 = vrot.lane.b32.xlu0 %v2474_v15, %s2498_s22 }
0x1212   :  { %v2476_v46 = vpop.eup %2475 }
0x1213   :  { %1857 = vrot.lane.b32.xlu1 %v2476_v46, %s2498_s22 }
0x1281   :  { %v1761_v42 = vpop.permute.xlu0 %1760 }
0x1282   :  { %v1763_v16 = vmul.f32 %v2470_v3, %v1761_v42 }
0x1284   :  { %v1868_v17 = vrot.slane %v1763_v16, %v2581_v19 }
0x1285   :  { %v1858_v18 = vpop.permute.xlu1 %1857 }
0x1286   :  { %v1860_v20 = vmul.f32 %v2472_v6, %v1858_v18  ;;  %1869 = vrot.lane.b32.xlu0 %v1868_v17, %s2499_s23 }
0x1288   :  { %v1881_v21 = vrot.slane %v1860_v20, %v2581_v19 }
0x128a   :  { %1882 = vrot.lane.b32.xlu1 %v1881_v21, %s2499_s23 }
0x12f8   :  { %v1870_v22 = vpop.permute.xlu0 %1869 }
0x12f9   :  { %2157 = vst.msk [vmem:[%s3003_s7 + $0xc] sm:$0x3] %vm552_vm2, %v1870_v22  ;;  %2349 = vmatmul.mubr.msk.f32.vlgmr.msra.gmra.mxu0 %vm347_vm3, %v1870_v22 }
0x12fc   :  { %v1883_v23 = vpop.permute.xlu1 %1882 }
0x12fd   :  { %2158 = vst.msk [vmem:[%s3004_s8 + $0x2] sm:$0x3] %vm552_vm2, %v1883_v23  ;;  %2356 = vmatmul.mubr.msk.f32.vlgmr.msra.gmra.mxu1 %vm347_vm3, %v1883_v23 }
0x13b9   :  { %v1955_v25 = vpop.f32.mrf.mxu0 }
0x13ba   :  { %v1959_v26 = vadd.f32 %v1955_v25, %v204_v24 }
0x13bb   :  { %v2350_v27 = vpop.f32.mrf.mxu0 }
0x13bc   :  { %2477 = vtanh.f32 %v1959_v26  ;;  %v2160_v38 = vmul.f32 -1.442695, %v1959_v26 }
0x13bd   :  { %v2052_v28 = vpop.f32.mrf.mxu1 }
0x13be   :  { %v2056_v29 = vadd.f32 %v2052_v28, %v2950_v35 }
0x13bf   :  { %v2357_v30 = vpop.f32.mrf.mxu1 }
0x13c0   :  { %2479 = vtanh.f32 %v2056_v29  ;;  %v2162_v39 = vmul.f32 -1.442695, %v2056_v29 }
0x13c1   :  { %2481 = vpow2.f32 %v2160_v38 }
0x13c2   :  { %2483 = vpow2.f32 %v2162_v39 }
0x13c9   :  { %v2478_v32 = vpop.eup %2477 }
0x13ca   :  { %1969 = vrot.lane.b32.xlu0 %v2478_v32, %s2496_s3 }
0x13cd   :  { %v2480_v37 = vpop.eup %2479 }
0x13ce   :  { %2066 = vrot.lane.b32.xlu1 %v2480_v37, %s2496_s3  ;;  %v2482_v40 = vpop.eup %2481 }
0x13cf   :  { %v1963_v43 = vadd.f32 1.0, %v2482_v40  ;;  %v2484_v44 = vpop.eup %2483 }
0x13d0   :  { %v2060_v45 = vadd.f32 1.0, %v2484_v44 }
0x13d1   :  { %2485 = vrcp.f32 %v1963_v43 }
0x13d2   :  { %2487 = vrcp.f32 %v2060_v45 }
0x13de   :  { %v2486_v48 = vpop.eup %2485 }
0x13df   :  { %v2488_v51 = vpop.eup %2487  ;;  %v1967_v54 = vmul.f32 %v2486_v48, %v1757_v11 }
0x13e0   :  { %v2064_v35 = vmul.f32 %v2488_v51, %v1854_v14 }
0x143c   :  { %v1970_v49 = vpop.permute.xlu0 %1969 }
0x143d   :  { %v1972_v50 = vmul.f32 %v2486_v48, %v1970_v49 }
0x143f   :  { %1974 = vrot.lane.b32.xlu0 %v1972_v50, %s2497_s6 }
0x1440   :  { %v2067_v52 = vpop.permute.xlu1 %2066 }
0x1441   :  { %v2069_v53 = vmul.f32 %v2488_v51, %v2067_v52 }
0x1443   :  { %2071 = vrot.lane.b32.xlu1 %v2069_v53, %s2497_s6 }
0x14b1   :  { %v1975_v55 = vpop.permute.xlu0 %1974 }
0x14b2   :  { %v1977_v33 = vadd.f32 %v1975_v55, %v1967_v54 }
0x14b4   :  { %2489 = vtanh.f32 %v1977_v33 }
0x14b5   :  { %v2072_v56 = vpop.permute.xlu1 %2071 }
0x14b6   :  { %v2074_v57 = vadd.f32 %v2072_v56, %v2064_v35 }
0x14b8   :  { %2491 = vtanh.f32 %v2074_v57 }
0x14c1   :  { %v2490_v58 = vpop.eup %2489 }
0x14c2   :  { %1980 = vrot.lane.b32.xlu0 %v2490_v58, %s2498_s22 }
0x14c5   :  { %v2492_v59 = vpop.eup %2491 }
0x14c6   :  { %2077 = vrot.lane.b32.xlu1 %v2492_v59, %s2498_s22 }
0x1534   :  { %v1981_v34 = vpop.permute.xlu0 %1980 }
0x1535   :  { %v1983_v60 = vmul.f32 %v2486_v48, %v1981_v34 }
0x1537   :  { %v2088_v31 = vrot.slane %v1983_v60, %v2581_v19 }
0x1538   :  { %v2078_v61 = vpop.permute.xlu1 %2077 }
0x1539   :  { %v2080_v36 = vmul.f32 %v2488_v51, %v2078_v61  ;;  %2089 = vrot.lane.b32.xlu0 %v2088_v31, %s2499_s23 }
0x153b   :  { %v2101_v41 = vrot.slane %v2080_v36, %v2581_v19 }
0x153d   :  { %2102 = vrot.lane.b32.xlu1 %v2101_v41, %s2499_s23 }
0x15ab   :  { %v2090_v47 = vpop.permute.xlu0 %2089 }
0x15ac   :  { %2163 = vst.msk [vmem:[%s3003_s7 + $0xe] sm:$0x3] %vm552_vm2, %v2090_v47 }
0x15af   :  { %v2103_v62 = vpop.permute.xlu1 %2102 }
0x15b0   :  { %2105 = vst.msk [vmem:[%s3004_s8] sm:$0x3] %vm552_vm2, %v2103_v62 }

// kernel: _lambda_.17
= control target key start
LH: loop header
LB: loop body
LE: loop exit
PB: predicated region body
PF: predicated region fallthrough
CT: control target
= control target key end

     0   :  { %vm26_vm0 = vcmask 261120   ;;  %vm94_vm1 = vcmask 7168   ;;  %s169_s0 = inlined_call_operand.vmem [shape: f32[16,32], index: 0, kind: input, shape index: {}]   ;;  %s170_s4 = inlined_call_operand.<no memory space> [shape: f32[1,1], index: 4, kind: input, shape index: {}]   ;;  %s171_s1 = inlined_call_operand.vmem [shape: f32[1,32], index: 1, kind: input, shape index: {}]   ;;  %s172_s2 = inlined_call_operand.vmem [shape: f32[1,32], index: 2, kind: input, shape index: {}]   ;;  %s173_s3 = inlined_call_operand.vmem [shape: f32[1,32], index: 3, kind: input, shape index: {}]   ;;  %s174_s5 = inlined_call_operand.vmem [shape: f32[16,1], index: 5, kind: output, shape index: {}]  }
   0x1   :  { %v22_v0 = vld [vmem:[%s169_s0] sm:$0xff]  ;;  %v23_v1 = vld [vmem:[%s169_s0 + $0x8] sm:$0xff]  ;;  %v10_v14 = vstv %s170_s4 }
   0x2   :  { %v27_v2 = vsel %vm26_vm0, %v22_v0, 0.0  ;;  %v30_v3 = vsel %vm26_vm0, %v23_v1, 0.0  ;;  %11 = vst [vmem:[#allocation2] sm:$0x1] %v10_v14  ;;  %v101_v22 = vld [vmem:[%s171_s1] ss:$0 sm:$0xff] }
   0x3   :  { %28 = vadd.xlane.f32.xlu0 %v27_v2  ;;  %v102_v24 = vld [vmem:[%s172_s2] ss:$0 sm:$0xff] }
   0x4   :  { %v103_v27 = vld [vmem:[%s173_s3] ss:$0 sm:$0xff] }
   0x7   :  { %31 = vadd.xlane.f32.xlu0 %v30_v3 }
   0x9   :  { %v104_v36 = vld [vmem:[#allocation2] ss:$0 sm:$0xff] }
  0x8c   :  { %v29_v4 = vpop.xlane.xlu0 %28 }
  0x8d   :  { %v34_v5 = vmul.f32 0.03125, %v29_v4 }
  0x8f   :  { %v36_v6 = vsub.f32 %v22_v0, %v34_v5 }
  0x90   :  { %v32_v7 = vpop.xlane.xlu0 %31 }
  0x91   :  { %v35_v8 = vmul.f32 0.03125, %v32_v7  ;;  %v38_v9 = vmul.f32 %v36_v6, %v36_v6 }
  0x93   :  { %v37_v10 = vsub.f32 %v23_v1, %v35_v8  ;;  %v40_v11 = vsel %vm26_vm0, %v38_v9, 0.0 }
  0x94   :  { %41 = vadd.xlane.f32.xlu1 %v40_v11 }
  0x95   :  { %v39_v12 = vmul.f32 %v37_v10, %v37_v10 }
  0x97   :  { %v43_v13 = vsel %vm26_vm0, %v39_v12, 0.0 }
  0x98   :  { %44 = vadd.xlane.f32.xlu1 %v43_v13 }
 0x11d   :  { %v42_v15 = vpop.xlane.xlu1 %41 }
 0x11e   :  { %v46_v16 = vmul.f32 0.03125, %v42_v15 }
 0x120   :  { %v48_v17 = vadd.f32 1e-05, %v46_v16 }
 0x121   :  { %v45_v18 = vpop.xlane.xlu1 %44 }
 0x122   :  { %105 = vrsqrt.f32 %v48_v17  ;;  %v47_v19 = vmul.f32 0.03125, %v45_v18 }
 0x124   :  { %v49_v20 = vadd.f32 1e-05, %v47_v19 }
 0x126   :  { %107 = vrsqrt.f32 %v49_v20 }
 0x12f   :  { %v106_v21 = vpop.eup %105 }
 0x130   :  { %v52_v23 = vmul.f32 %v106_v21, %v36_v6 }
 0x132   :  { %v60_v25 = vmul.f32 %v101_v22, %v52_v23 }
 0x133   :  { %v108_v26 = vpop.eup %107 }
 0x134   :  { %v68_v28 = vadd.f32 %v102_v24, %v60_v25  ;;  %v53_v29 = vmul.f32 %v108_v26, %v37_v10 }
 0x136   :  { %v77_v30 = vmul.f32 %v103_v27, %v68_v28  ;;  %v61_v31 = vmul.f32 %v101_v22, %v53_v29 }
 0x138   :  { %v79_v32 = vsel %vm26_vm0, %v77_v30, 0.0  ;;  %v69_v33 = vadd.f32 %v102_v24, %v61_v31 }
 0x139   :  { %80 = vadd.xlane.f32.xlu0 %v79_v32 }
 0x13a   :  { %v78_v34 = vmul.f32 %v103_v27, %v69_v33 }
 0x13c   :  { %v82_v35 = vsel %vm26_vm0, %v78_v34, 0.0 }
 0x13d   :  { %83 = vadd.xlane.f32.xlu1 %v82_v35 }
 0x1c2   :  { %v81_v37 = vpop.xlane.xlu0 %80 }
 0x1c3   :  { %v92_v38 = vadd.f32 %v104_v36, %v81_v37 }
 0x1c5   :  { %95 = vst.msk [vmem:[%s174_s5] sm:$0xff] %vm94_vm1, %v92_v38 }
 0x1c6   :  { %v84_v39 = vpop.xlane.xlu1 %83 }
 0x1c7   :  { %v93_v40 = vadd.f32 %v104_v36, %v84_v39 }
 0x1c9   :  { %96 = vst.msk [vmem:[%s174_s5 + $0x8] sm:$0xff] %vm94_vm1, %v93_v40 }

// kernel: _lambda_.15
= control target key start
LH: loop header
LB: loop body
LE: loop exit
PB: predicated region body
PF: predicated region fallthrough
CT: control target
= control target key end

     0   :  { %s3657_s0 = inlined_call_operand.vmem [shape: f32[2,8,32], index: 0, kind: input, shape index: {}]   ;;  %s3658_s1 = inlined_call_operand.vmem [shape: f32[2,8,32], index: 1, kind: input, shape index: {}]   ;;  %s3659_s2 = inlined_call_operand.vmem [shape: f32[32,96], index: 2, kind: input, shape index: {}]   ;;  %s3660_s3 = inlined_call_operand.vmem [shape: f32[1,96], index: 3, kind: input, shape index: {}]   ;;  %s3661_s4 = inlined_call_operand.vmem [shape: f32[32,32], index: 4, kind: input, shape index: {}]   ;;  %s3662_s5 = inlined_call_operand.vmem [shape: f32[1,32], index: 5, kind: input, shape index: {}]   ;;  %s3663_s6 = inlined_call_operand.vmem [shape: f32[32,32], index: 6, kind: input, shape index: {}]   ;;  %s3664_s7 = inlined_call_operand.vmem [shape: f32[1,32], index: 7, kind: input, shape index: {}]   ;;  %s3665_s8 = inlined_call_operand.vmem [shape: f32[32,64], index: 8, kind: input, shape index: {}]   ;;  %s3666_s9 = inlined_call_operand.vmem [shape: f32[1,64], index: 9, kind: input, shape index: {}]   ;;  %s3667_s10 = inlined_call_operand.vmem [shape: f32[32,32], index: 10, kind: input, shape index: {}]   ;;  %s3668_s11 = inlined_call_operand.vmem [shape: f32[1,32], index: 11, kind: input, shape index: {}]   ;;  %s3669_s12 = inlined_call_operand.vmem [shape: f32[32,64], index: 12, kind: input, shape index: {}]   ;;  %s3670_s13 = inlined_call_operand.vmem [shape: f32[1,64], index: 13, kind: input, shape index: {}]   ;;  %s3671_s14 = inlined_call_operand.vmem [shape: f32[64,32], index: 14, kind: input, shape index: {}]   ;;  %s3672_s15 = inlined_call_operand.vmem [shape: f32[1,32], index: 15, kind: input, shape index: {}]   ;;  %s3673_s16 = inlined_call_operand.vmem [shape: f32[1,32], index: 16, kind: input, shape index: {}]   ;;  %s3674_s17 = inlined_call_operand.vmem [shape: f32[1,32], index: 17, kind: input, shape index: {}]   ;;  %s3675_s18 = inlined_call_operand.vmem [shape: f32[1,32], index: 18, kind: input, shape index: {}]   ;;  %s3676_s19 = inlined_call_operand.vmem [shape: f32[1,32], index: 19, kind: input, shape index: {}]   ;;  %s3677_s20 = inlined_call_operand.vmem [shape: f32[1,32], index: 20, kind: input, shape index: {}]   ;;  %s3678_s21 = inlined_call_operand.vmem [shape: f32[1,32], index: 21, kind: input, shape index: {}]   ;;  %s3679_s22 = inlined_call_operand.vmem [shape: f32[2,8,32], index: 22, kind: output, shape index: {}]  }
   0x1   :  { %3692 = sst [smem:[#allocation2_spill]] %s3657_s0 }
   0x2   :  { %3693 = sst [smem:[#allocation3_spill]] %s3658_s1 }
   0x3   :  { %3694 = sst [smem:[#allocation4_spill]] %s3659_s2 }
   0x4   :  { %3695 = sst [smem:[#allocation5_spill]] %s3660_s3  ;;  %s3287_s3 = smov 0  }
   0x5   :  { %3696 = sst [smem:[#allocation6_spill]] %s3661_s4 }
   0x6   :  { %3697 = sst [smem:[#allocation7_spill]] %s3662_s5 }
   0x7   :  { %3698 = sst [smem:[#allocation8_spill]] %s3663_s6 }
   0x8 LB: > { %s2808_s28 = sadd.s32 4294967295, %s3160_s3   ;;  %p2812_p0 = scmp.ge.s32.totalorder %s3160_s3, 1  ;;  %s3160_s3 = sphi %s3287_s3, %s32_s3  }
   0x9   : > { %p620_p1 = scmp.lt.s32.totalorder %s3160_s3, 3 }
   0xb   : > { %p621_p2 = pnand %p2812_p0, %p620_p1 }
   0xc   : > { %s3699_s4 = sld [smem:[#allocation4_spill]] (!%p621_p2)  ;;  %p684_p3 = scmp.lt.s32.totalorder (!%p621_p2), %s2808_s28, 1 }
   0xd   : > { %624 = sbr.rel (%p621_p2) target bundleno = 4121 (0x1019), region = 108  ;;  %s3700_s27 = sld [smem:[#allocation2_spill]] (!%p621_p2) }
   0xe   : > { %s3701_s0 = sld [smem:[#allocation5_spill]] (!%p621_p2)  ;;  %s3690_s23 = smov (!%p621_p2), 104  }
   0xf   : > { %s3165_s1 = smov (!%p621_p2), 120   ;;  %s3686_s5 = smov (!%p621_p2), 96  }
  0x10   : > { %s3688_s6 = smov (!%p621_p2), 112   ;;  %s3168_s25 = smov (!%p621_p2), 64  }
  0x11   : > { %s3684_s2 = smov (!%p621_p2), 8   ;;  %s3709_s26 = smov (!%p621_p2), 16  }
  0x12   : > { %v701_v0 = vld [vmem:[%s3699_s4 + $0x18] sm:$0xff]  ;;  %v3162_v1 = vmov 0.0   ;;  %v700_v2 = vld [vmem:[%s3699_s4 + $0x10] sm:$0xff]  ;;  %vm3163_vm0 = vmmov 0   ;;  %s3713_s28 = smov (!%p684_p3, %s2808_s28), 1  ;;  %v699_v3 = vld [vmem:[%s3699_s4 + $0x8] sm:$0xff] }
  0x13   : > { %2933 = vmatprep.subr.mxu1 %v3162_v1  ;;  %2941 = vmatprep.mubr.msk.f32.mxu1 %vm3163_vm0, %v3162_v1  ;;  %s3311_s24 = sshll.u32 %s3713_s28, 3  ;;  %v698_v4 = vld [vmem:[%s3699_s4] sm:$0xff]  ;;  %vm709_vm1 = vcmask 261120   ;;  %vm792_vm2 = vcmask 64512   ;;  %s3685_s28 = smov 16   ;;  %vm1460_vm3 = vcmask 130048  }
  0x14   : > { %2934 = vmatpush3.msra.mxu1 %v701_v0  ;;  %2954 = vmatprep.subr.mxu0 %v3162_v1  ;;  %s687_s29 = scalar_lea.vmem %s3700_s27, %s3311_s24  ;;  %v2816_v6 = vld [vmem:[%s3701_s0] ss:$0 sm:$0xff]  ;;  %s3702_s27 = sld [smem:[#allocation6_spill]]  ;;  %vm1462_vm4 = vcmask 195584   ;;  %vm2638_vm5 = vcmask 523264  }
  0x15   : > { %2935 = vmatprep.subr.mxu1 %v3162_v1  ;;  %2956 = vmatprep.mubr.msk.f32.mxu0 %vm3163_vm0, %v3162_v1  ;;  %v3321_v5 = vld [vmem:[%s687_s29] sm:$0xff]  ;;  %s3683_s29 = smov 24   ;;  %s3705_s0 = sld [smem:[#allocation8_spill]] }
  0x16   : > { %2936 = vmatpush3.msra.mxu1 %v700_v2  ;;  %s695_s30 = scalar_lea.vmem %s3679_s22, %s3311_s24 }
  0x17   : > { %2937 = vmatprep.subr.mxu1 %v3162_v1 }
  0x18   : > { %2938 = vmatpush3.msra.mxu1 %v699_v3 }
  0x19   : > { %2939 = vmatprep.subr.mxu1 %v3162_v1 }
  0x1a   : > { %2940 = vmatpush3.msra.mxu1 %v698_v4 }
  0x1b   : > { %2942 = vmatmul.mubr.msk.f32.vlgmr.msra.gmra.mxu1 %vm709_vm1, %v3321_v5  ;;  %2944 = vmatprep.subr.mxu1 %v3162_v1 }
  0x1c   : > { %2946 = vmatprep.mubr.msk.f32.mxu1 %vm3163_vm0, %v3162_v1 }
  0xdb   : > { %v779_v7 = vpop.f32.mrf.mxu1 }
  0xdc   : > { %v780_v8 = vadd.f32 %v2816_v6, %v779_v7  ;;  %v1467_v7 = vld [vmem:[%s3702_s27 + $0x18] sm:$0xff] }
  0xdd   : > { %v2943_v9 = vpop.f32.mrf.mxu1 }
  0xde   : > { %788 = vrot.lane.b32.xlu1 %v780_v8, %s3690_s23  ;;  %784 = vrot.lane.b32.xlu0 %v780_v8, %s3165_s1 }
  0xe2   : > { %790 = vrot.lane.b32.xlu1 %v780_v8, %s3686_s5  ;;  %786 = vrot.lane.b32.xlu0 %v780_v8, %s3688_s6  ;;  %s3704_s6 = sld [smem:[#allocation3_spill]] }
  0xe8   : > { %s691_s23 = scalar_lea.vmem %s3704_s6, %s3311_s24  ;;  %s3707_s6 = smov 112  }
 0x150   : > { %v3336_v10 = vpop.permute.xlu1 %788  ;;  %v785_v11 = vpop.permute.xlu0 %784 }
 0x151   : > { %867 = vrot.lane.b32.xlu0 %v785_v11, %s3686_s5 }
 0x154   : > { %v791_v12 = vpop.permute.xlu1 %790  ;;  %v3339_v13 = vpop.permute.xlu0 %786 }
 0x155   : > { %2945 = vmatpush3.xpose.msk.msra.mxu1 %vm792_vm2, %v791_v12  ;;  %1019 = vrot.lane.b32.xlu0 %v3336_v10, %s3686_s5  ;;  %v1464_v12 = vld [vmem:[%s3702_s27] sm:$0xff] }
 0x156   : > { %943 = vrot.lane.b32.xlu1 %v3339_v13, %s3686_s5  ;;  %2949 = vmatprep.subr.mxu1 %v3162_v1 }
 0x158   : > { %2947 = vmatmul.mubr.msk.f32.vlgmr.msra.gmra.mxu1 %vm792_vm2, %v780_v8 }
 0x159   : > { %2951 = vmatprep.mubr.msk.f32.mxu1 %vm3163_vm0, %v3162_v1 }
 0x1c3   : > { %v868_v14 = vpop.permute.xlu0 %867 }
 0x1c4   : > { %2950 = vmatpush3.xpose.msk.msra.mxu1 %vm792_vm2, %v868_v14 }
 0x1c5   : > { %2959 = vmatprep.subr.mxu1 %v3162_v1 }
 0x1c7   : > { %2952 = vmatmul.mubr.msk.f32.vlgmr.msra.gmra.mxu1 %vm792_vm2, %v785_v11  ;;  %v1020_v15 = vpop.permute.xlu0 %1019 }
 0x1c8   : > { %v944_v16 = vpop.permute.xlu1 %943  ;;  %2960 = vmatpush3.xpose.msk.msra.mxu1 %vm792_vm2, %v1020_v15  ;;  %2961 = vmatprep.mubr.msk.f32.mxu1 %vm3163_vm0, %v3162_v1 }
 0x1c9   : > { %2955 = vmatpush3.xpose.msk.msra.mxu0 %vm792_vm2, %v944_v16  ;;  %2969 = vmatprep.subr.mxu1 %v3162_v1 }
 0x1ca   : > { %2964 = vmatprep.subr.mxu0 %v3162_v1 }
 0x1cb   : > { %2962 = vmatmul.mubr.msk.f32.vlgmr.msra.gmra.mxu1 %vm792_vm2, %v3336_v10 }
 0x1cc   : > { %2957 = vmatmul.mubr.msk.f32.vlgmr.msra.gmra.mxu0 %vm792_vm2, %v3339_v13  ;;  %2971 = vmatprep.mubr.msk.f32.mxu1 %vm3163_vm0, %v3162_v1 }
 0x1cd   : > { %2966 = vmatprep.mubr.msk.f32.mxu0 %vm3163_vm0, %v3162_v1 }
 0x218   : > { %v863_v17 = vpop.f32.mrf.mxu1 }
 0x219   : > { %v1095_v18 = vmul.f32 0.35355338, %v863_v17 }
 0x21a   : > { %v2948_v19 = vpop.f32.mrf.mxu1 }
 0x21b   : > { %v1099_v20 = vsel %vm792_vm2, %v1095_v18, -inf }
 0x21c   : > { %1100 = vmax.xlane.f32.xlu1 %v1099_v20 }
 0x287   : > { %v939_v21 = vpop.f32.mrf.mxu1 }
 0x288   : > { %v1096_v22 = vmul.f32 0.35355338, %v939_v21 }
 0x289   : > { %v2953_v23 = vpop.f32.mrf.mxu1 }
 0x28a   : > { %v1102_v24 = vsel %vm792_vm2, %v1096_v22, -inf }
 0x28b   : > { %1103 = vmax.xlane.f32.xlu0 %v1102_v24  ;;  %v1091_v25 = vpop.f32.mrf.mxu1 }
 0x28c   : > { %v1015_v26 = vpop.f32.mrf.mxu0  ;;  %v1098_v27 = vmul.f32 0.35355338, %v1091_v25 }
 0x28d   : > { %v1097_v28 = vmul.f32 0.35355338, %v1015_v26  ;;  %v2963_v29 = vpop.f32.mrf.mxu1 }
 0x28e   : > { %v2958_v30 = vpop.f32.mrf.mxu0  ;;  %v1108_v31 = vsel %vm792_vm2, %v1098_v27, -inf }
 0x28f   : > { %v1105_v32 = vsel %vm792_vm2, %v1097_v28, -inf  ;;  %1109 = vmax.xlane.f32.xlu1 %v1108_v31 }
 0x290   : > { %1106 = vmax.xlane.f32.xlu0 %v1105_v32 }
 0x2a0   : > { %1219 = vrot.lane.b32.xlu1 %v785_v11, %s3168_s25  ;;  %v1465_v11 = vld [vmem:[%s3702_s27 + $0x8] sm:$0xff] }
 0x2a5   : > { %v1101_v33 = vpop.xlane.xlu1 %1100 }
 0x2a6   : > { %1143 = vrot.lane.b32.xlu0 %v780_v8, %s3168_s25  ;;  %v1111_v34 = vsub.f32 %v1095_v18, %v1101_v33 }
 0x2a8   : > { %v1115_v35 = vmul.f32 1.442695, %v1111_v34 }
 0x2aa   : > { %3116 = vpow2.f32 %v1115_v35 }
 0x2b7   : > { %v3117_v36 = vpop.eup %3116 }
 0x2b8   : > { %v1123_v37 = vsel %vm792_vm2, %v3117_v36, 0.0 }
 0x2c5   : > { %1124 = vadd.xlane.f32.xlu0 %v1123_v37  ;;  %v1664_v37 = vld [vmem:[%s3665_s8 + $0x8] sm:$0xff] }
 0x314   : > { %v1104_v38 = vpop.xlane.xlu0 %1103 }
 0x315   : > { %v1112_v39 = vsub.f32 %v1096_v22, %v1104_v38  ;;  %v1663_v38 = vld [vmem:[%s3665_s8] sm:$0xff] }
 0x317   : > { %v1117_v40 = vmul.f32 1.442695, %v1112_v39  ;;  %v697_v39 = vld [vmem:[%s691_s23] sm:$0xff]  ;;  %s3706_s23 = smov 104  }
 0x318   : > { %v1110_v41 = vpop.xlane.xlu1 %1109 }
 0x319   : > { %3118 = vpow2.f32 %v1117_v40  ;;  %v1107_v42 = vpop.xlane.xlu0 %1106  ;;  %v1114_v43 = vsub.f32 %v1098_v27, %v1110_v41  ;;  %v1582_v40 = vld [vmem:[%s3705_s0 + $0x18] sm:$0xff]  ;;  %v1581_v41 = vld [vmem:[%s3705_s0 + $0x10] sm:$0xff] }
 0x31a   : > { %v1113_v44 = vsub.f32 %v1097_v28, %v1107_v42  ;;  %v1580_v42 = vld [vmem:[%s3705_s0 + $0x8] sm:$0xff] }
 0x31b   : > { %v1121_v45 = vmul.f32 1.442695, %v1114_v43  ;;  %v1579_v43 = vld [vmem:[%s3705_s0] sm:$0xff] }
 0x31c   : > { %v1119_v46 = vmul.f32 1.442695, %v1113_v44  ;;  %v1220_v47 = vpop.permute.xlu1 %1219 }
 0x31d   : > { %3120 = vpow2.f32 %v1121_v45  ;;  %v1144_v48 = vpop.permute.xlu0 %1143  ;;  %2970 = vmatpush3.msra.mxu1 %v1220_v47 }
 0x31e   : > { %3122 = vpow2.f32 %v1119_v46  ;;  %2965 = vmatpush3.msra.mxu0 %v1144_v48  ;;  %2979 = vmatprep.subr.mxu1 %v3162_v1  ;;  %v2832_v48 = vld [vmem:[%s3673_s16] ss:$0 sm:$0xff] }
 0x31f   : > { %2974 = vmatprep.subr.mxu0 %v3162_v1 }
 0x326   : > { %v3119_v49 = vpop.eup %3118 }
 0x327   : > { %v1126_v50 = vsel %vm792_vm2, %v3119_v49, 0.0 }
 0x328   : > { %1127 = vadd.xlane.f32.xlu1 %v1126_v50  ;;  %v2833_v50 = vld [vmem:[%s3674_s17] ss:$0 sm:$0xff] }
 0x32a   : > { %v3121_v51 = vpop.eup %3120 }
 0x32b   : > { %v3123_v52 = vpop.eup %3122  ;;  %v1132_v53 = vsel %vm792_vm2, %v3121_v51, 0.0 }
 0x32c   : > { %v1129_v54 = vsel %vm792_vm2, %v3123_v52, 0.0  ;;  %1133 = vadd.xlane.f32.xlu1 %v1132_v53  ;;  %v2836_v53 = vld [vmem:[%s3666_s9] ss:$0 sm:$0xff] }
 0x32d   : > { %1130 = vadd.xlane.f32.xlu0 %v1129_v54 }
 0x33d   : > { %1295 = vrot.lane.b32.xlu1 %v3339_v13, %s3168_s25 }
 0x343   : > { %1371 = vrot.lane.b32.xlu0 %v3336_v10, %s3168_s25  ;;  %v1466_v10 = vld [vmem:[%s3702_s27 + $0x10] sm:$0xff]  ;;  %s3703_s25 = sld [smem:[#allocation7_spill]] }
 0x349   : > { %v2830_v25 = vld [vmem:[%s3703_s25] ss:$0 sm:$0xff] }
 0x34e   : > { %v1125_v55 = vpop.xlane.xlu0 %1124 }
 0x34f   : > { %3124 = vrcp.f32 %v1125_v55 }
 0x35c   : > { %v3125_v56 = vpop.eup %3124 }
 0x35d   : > { %v1139_v57 = vmul.f32 %v3125_v56, %v3117_v36  ;;  %v1666_v36 = vld [vmem:[%s3665_s8 + $0x18] sm:$0xff] }
 0x35f   : > { %2967 = vmatmul.mubr.msk.f32.vlgmr.msra.gmra.mxu0 %vm792_vm2, %v1139_v57 }
 0x360   : > { %2976 = vmatprep.mubr.msk.f32.mxu0 %vm3163_vm0, %v3162_v1 }
 0x3b1   : > { %v1128_v58 = vpop.xlane.xlu1 %1127 }
 0x3b2   : > { %3126 = vrcp.f32 %v1128_v58 }
 0x3b5   : > { %v1134_v59 = vpop.xlane.xlu1 %1133 }
 0x3b6   : > { %v1131_v60 = vpop.xlane.xlu0 %1130  ;;  %3128 = vrcp.f32 %v1134_v59  ;;  %v2834_v59 = vld [vmem:[%s3664_s7] ss:$0 sm:$0xff] }
 0x3b7   : > { %3130 = vrcp.f32 %v1131_v60 }
 0x3b9   : > { %v1296_v61 = vpop.permute.xlu1 %1295 }
 0x3ba   : > { %2975 = vmatpush3.msra.mxu0 %v1296_v61  ;;  %v1372_v0 = vpop.permute.xlu0 %1371 }
 0x3bb   : > { %2984 = vmatprep.subr.mxu0 %v3162_v1 }
 0x3bf   : > { %v3127_v62 = vpop.eup %3126 }
 0x3c0   : > { %v1140_v63 = vmul.f32 %v3127_v62, %v3119_v49 }
 0x3c2   : > { %2972 = vmatmul.mubr.msk.f32.vlgmr.msra.gmra.mxu1 %vm792_vm2, %v1140_v63 }
 0x3c3   : > { %v3129_v2 = vpop.eup %3128  ;;  %2980 = vmatpush3.msra.mxu1 %v1372_v0  ;;  %2981 = vmatprep.mubr.msk.f32.mxu1 %vm3163_vm0, %v3162_v1 }
 0x3c4   : > { %v3131_v3 = vpop.eup %3130  ;;  %v1142_v4 = vmul.f32 %v3129_v2, %v3121_v51  ;;  %2995 = vmatprep.subr.mxu1 %v3162_v1 }
 0x3c5   : > { %v1141_v6 = vmul.f32 %v3131_v3, %v3123_v52 }
 0x3c6   : > { %2982 = vmatmul.mubr.msk.f32.vlgmr.msra.gmra.mxu1 %vm792_vm2, %v1142_v4 }
 0x3c7   : > { %2977 = vmatmul.mubr.msk.f32.vlgmr.msra.gmra.mxu0 %vm792_vm2, %v1141_v6  ;;  %3003 = vmatprep.mubr.msk.f32.mxu1 %vm3163_vm0, %v3162_v1 }
 0x3c8   : > { %2992 = vmatprep.mubr.msk.f32.mxu0 %vm3163_vm0, %v3162_v1  ;;  %2985 = vmatpush3.msra.mxu0 %v1467_v7 }
 0x3c9   : > { %2986 = vmatprep.subr.mxu0 %v3162_v1  ;;  %2996 = vmatpush3.msra.mxu1 %v1582_v40 }
 0x3ca   : > { %2987 = vmatpush3.msra.mxu0 %v1466_v10  ;;  %2997 = vmatprep.subr.mxu1 %v3162_v1 }
 0x3cb   : > { %2988 = vmatprep.subr.mxu0 %v3162_v1  ;;  %2998 = vmatpush3.msra.mxu1 %v1581_v41 }
 0x3cc   : > { %2989 = vmatpush3.msra.mxu0 %v1465_v11  ;;  %2999 = vmatprep.subr.mxu1 %v3162_v1 }
 0x3cd   : > { %2990 = vmatprep.subr.mxu0 %v3162_v1  ;;  %3000 = vmatpush3.msra.mxu1 %v1580_v42 }
 0x3ce   : > { %2991 = vmatpush3.msra.mxu0 %v1464_v12  ;;  %3001 = vmatprep.subr.mxu1 %v3162_v1 }
 0x3cf   : > { %3006 = vmatprep.subr.mxu0 %v3162_v1  ;;  %3002 = vmatpush3.msra.mxu1 %v1579_v43 }
 0x3d0   : > { %3017 = vmatprep.subr.mxu1 %v3162_v1 }
 0x41f   : > { %v1215_v8 = vpop.f32.mrf.mxu0 }
 0x421   : > { %v2968_v9 = vpop.f32.mrf.mxu0 }
 0x482   : > { %v1291_v13 = vpop.f32.mrf.mxu1 }
 0x483   : > { %1448 = vrot.lane.b32.xlu1 %v1291_v13, %s3684_s2  ;;  %s3711_s2 = smov 24  }
 0x484   : > { %v2973_v14 = vpop.f32.mrf.mxu1 }
 0x486   : > { %v1443_v15 = vpop.f32.mrf.mxu1 }
 0x487   : > { %v1367_v16 = vpop.f32.mrf.mxu0  ;;  %1456 = vrot.lane.b32.xlu1 %v1443_v15, %s3683_s29 }
 0x488   : > { %1452 = vrot.lane.b32.xlu0 %v1367_v16, %s3685_s28  ;;  %v2983_v17 = vpop.f32.mrf.mxu1 }
 0x489   : > { %v2978_v18 = vpop.f32.mrf.mxu0 }
 0x4f5   : > { %v1449_v19 = vpop.permute.xlu1 %1448 }
 0x4f6   : > { %v1459_v21 = vsel %vm792_vm2, %v1215_v8, %v1449_v19 }
 0x4f9   : > { %v1457_v20 = vpop.permute.xlu1 %1456 }
 0x4fa   : > { %v1453_v22 = vpop.permute.xlu0 %1452 }
 0x4fb   : > { %v1461_v23 = vsel %vm1460_vm3, %v1459_v21, %v1453_v22 }
 0x4fc   : > { %v1463_v24 = vsel %vm1462_vm4, %v1461_v23, %v1457_v20 }
 0x4fd   : > { %2993 = vmatmul.mubr.msk.f32.vlgmr.msra.gmra.mxu0 %vm709_vm1, %v1463_v24 }
 0x4fe   : > { %3014 = vmatprep.mubr.msk.f32.mxu0 %vm3163_vm0, %v3162_v1  ;;  %3007 = vmatpush3.msra.mxu0 %v1666_v36 }
 0x4ff   : > { %3008 = vmatprep.subr.mxu0 %v3162_v1 }
 0x5bd   : > { %v1544_v26 = vpop.f32.mrf.mxu0 }
 0x5be   : > { %v1545_v27 = vadd.f32 %v2830_v25, %v1544_v26 }
 0x5bf   : > { %v2994_v28 = vpop.f32.mrf.mxu0 }
 0x5c0   : > { %v1548_v29 = vadd.f32 %v1545_v27, %v3321_v5  ;;  %v1665_v5 = vld [vmem:[%s3665_s8 + $0x10] sm:$0xff] }
 0x5c1   : > { %3009 = vmatpush3.msra.mxu0 %v1665_v5 }
 0x5c2   : > { %v1551_v30 = vsel %vm709_vm1, %v1548_v29, 0.0  ;;  %3010 = vmatprep.subr.mxu0 %v3162_v1 }
 0x5c3   : > { %1552 = vadd.xlane.f32.xlu0 %v1551_v30  ;;  %3011 = vmatpush3.msra.mxu0 %v1664_v37 }
 0x5c4   : > { %3012 = vmatprep.subr.mxu0 %v3162_v1 }
 0x5c5   : > { %3013 = vmatpush3.msra.mxu0 %v1663_v38 }
 0x5c6   : > { %3015 = vmatmul.mubr.msk.f32.vlgmr.msra.gmra.mxu0 %vm709_vm1, %v697_v39  ;;  %3027 = vmatprep.subr.mxu0 %v3162_v1 }
 0x5c7   : > { %3029 = vmatprep.mubr.msk.f32.mxu0 %vm3163_vm0, %v3162_v1 }
 0x64c   : > { %v1553_v31 = vpop.xlane.xlu0 %1552 }
 0x64d   : > { %v1555_v32 = vmul.f32 0.03125, %v1553_v31 }
 0x64f   : > { %v1556_v33 = vsub.f32 %v1548_v29, %v1555_v32 }
 0x651   : > { %v1557_v34 = vmul.f32 %v1556_v33, %v1556_v33 }
 0x653   : > { %v1558_v35 = vsel %vm709_vm1, %v1557_v34, 0.0 }
 0x654   : > { %1559 = vadd.xlane.f32.xlu1 %v1558_v35 }
 0x686   : > { %v1743_v54 = vpop.f32.mrf.mxu0 }
 0x687   : > { %v1744_v55 = vadd.f32 %v2836_v53, %v1743_v54 }
 0x688   : > { %v3016_v56 = vpop.f32.mrf.mxu0 }
 0x689   : > { %1755 = vrot.lane.b32.xlu0 %v1744_v55, %s3165_s1  ;;  %1759 = vrot.lane.b32.xlu1 %v1744_v55, %s3706_s23 }
 0x68d   : > { %1757 = vrot.lane.b32.xlu0 %v1744_v55, %s3707_s6 }
 0x6dd   : > { %v1560_v44 = vpop.xlane.xlu1 %1559 }
 0x6de   : > { %v1561_v45 = vmul.f32 0.03125, %v1560_v44 }
 0x6e0   : > { %v1562_v46 = vadd.f32 1e-05, %v1561_v45 }
 0x6e2   : > { %3132 = vrsqrt.f32 %v1562_v46 }
 0x6ef   : > { %v3133_v47 = vpop.eup %3132 }
 0x6f0   : > { %v1564_v49 = vmul.f32 %v3133_v47, %v1556_v33 }
 0x6f2   : > { %v1571_v51 = vmul.f32 %v2832_v48, %v1564_v49 }
 0x6f4   : > { %v3473_v52 = vadd.f32 %v2833_v50, %v1571_v51 }
 0x6f6   : > { %3004 = vmatmul.mubr.msk.f32.vlgmr.msra.gmra.mxu1 %vm709_vm1, %v3473_v52 }
 0x6f7   : > { %3019 = vmatprep.mubr.msk.f32.mxu1 %vm3163_vm0, %v3162_v1  ;;  %3018 = vmatpush3.xpose.msk.msra.mxu1 %vm792_vm2, %v1744_v55 }
 0x6f8   : > { %3022 = vmatprep.subr.mxu1 %v3162_v1 }
 0x6fb   : > { %v3487_v57 = vpop.permute.xlu0 %1755  ;;  %v3506_v63 = vpop.permute.xlu1 %1759 }
 0x6ff   : > { %v3489_v58 = vpop.permute.xlu0 %1757 }
 0x700   : > { %3028 = vmatpush3.xpose.msk.msra.mxu0 %vm792_vm2, %v3489_v58 }
 0x701   : > { %3037 = vmatprep.subr.mxu0 %v3162_v1 }
 0x7b6   : > { %v1659_v60 = vpop.f32.mrf.mxu1 }
 0x7b7   : > { %v1660_v61 = vadd.f32 %v2834_v59, %v1659_v60  ;;  %v2426_v60 = vld [vmem:[%s3667_s10 + $0x10] sm:$0xff] }
 0x7b8   : > { %v3005_v62 = vpop.f32.mrf.mxu1 }
 0x7b9   : > { %1750 = vrot.lane.b32.xlu0 %v1660_v61, %s3707_s6  ;;  %1748 = vrot.lane.b32.xlu1 %v1660_v61, %s3165_s1  ;;  %s3708_s1 = smov 96   ;;  %v2424_v62 = vld [vmem:[%s3667_s10] sm:$0xff] }
 0x7ba   : > { %3020 = vmatmul.mubr.msk.f32.vlgmr.msra.gmra.mxu1 %vm792_vm2, %v1660_v61 }
 0x7bb   : > { %3023 = vmatpush3.xpose.msk.msra.mxu1 %vm792_vm2, %v3487_v57  ;;  %3024 = vmatprep.mubr.msk.f32.mxu1 %vm3163_vm0, %v3162_v1 }
 0x7bc   : > { %3032 = vmatprep.subr.mxu1 %v3162_v1 }
 0x7bd   : > { %1752 = vrot.lane.b32.xlu1 %v1660_v61, %s3706_s23  ;;  %v2425_v61 = vld [vmem:[%s3667_s10 + $0x8] sm:$0xff] }
 0x82b   : > { %v1751_v0 = vpop.permute.xlu0 %1750  ;;  %v1749_v2 = vpop.permute.xlu1 %1748 }
 0x82c   : > { %3025 = vmatmul.mubr.msk.f32.vlgmr.msra.gmra.mxu1 %vm792_vm2, %v1749_v2  ;;  %3030 = vmatmul.mubr.msk.f32.vlgmr.msra.gmra.mxu0 %vm792_vm2, %v1751_v0 }
 0x82d   : > { %3033 = vmatpush3.xpose.msk.msra.mxu1 %vm792_vm2, %v3506_v63  ;;  %3034 = vmatprep.mubr.msk.f32.mxu1 %vm3163_vm0, %v3162_v1 }
 0x82e   : > { %3039 = vmatprep.mubr.msk.f32.mxu0 %vm3163_vm0, %v3162_v1  ;;  %3042 = vmatprep.subr.mxu1 %v3162_v1 }
 0x82f   : > { %v1753_v3 = vpop.permute.xlu1 %1752 }
 0x830   : > { %3035 = vmatmul.mubr.msk.f32.vlgmr.msra.gmra.mxu1 %vm792_vm2, %v1753_v3 }
 0x831   : > { %3044 = vmatprep.mubr.msk.f32.mxu1 %vm3163_vm0, %v3162_v1 }
 0x87a   : > { %v1831_v4 = vpop.f32.mrf.mxu1 }
 0x87b   : > { %v2057_v6 = vmul.f32 0.35355338, %v1831_v4 }
 0x87c   : > { %v3021_v7 = vpop.f32.mrf.mxu1 }
 0x87d   : > { %v2061_v8 = vsel %vm792_vm2, %v2057_v6, -inf }
 0x87e   : > { %2062 = vmax.xlane.f32.xlu0 %v2061_v8 }
 0x8ec   : > { %v1905_v9 = vpop.f32.mrf.mxu1  ;;  %v1979_v10 = vpop.f32.mrf.mxu0 }
 0x8ed   : > { %v2058_v11 = vmul.f32 0.35355338, %v1905_v9  ;;  %v2059_v12 = vmul.f32 0.35355338, %v1979_v10 }
 0x8ee   : > { %v3026_v13 = vpop.f32.mrf.mxu1  ;;  %v3031_v14 = vpop.f32.mrf.mxu0 }
 0x8ef   : > { %v2067_v15 = vsel %vm792_vm2, %v2059_v12, -inf  ;;  %v2064_v16 = vsel %vm792_vm2, %v2058_v11, -inf  ;;  %v2850_v13 = vld [vmem:[%s3668_s11] ss:$0 sm:$0xff] }
 0x8f0   : > { %2068 = vmax.xlane.f32.xlu0 %v2067_v15  ;;  %2065 = vmax.xlane.f32.xlu1 %v2064_v16  ;;  %v2053_v17 = vpop.f32.mrf.mxu1 }
 0x8f1   : > { %v2060_v18 = vmul.f32 0.35355338, %v2053_v17 }
 0x8f2   : > { %v3036_v19 = vpop.f32.mrf.mxu1 }
 0x8f3   : > { %v2070_v20 = vsel %vm792_vm2, %v2060_v18, -inf }
 0x8f4   : > { %2071 = vmax.xlane.f32.xlu0 %v2070_v20 }
 0x901   : > { %2105 = vrot.lane.b32.xlu1 %v1744_v55, %s3708_s1 }
 0x907   : > { %v2063_v21 = vpop.xlane.xlu0 %2062 }
 0x908   : > { %v2073_v22 = vsub.f32 %v2057_v6, %v2063_v21 }
 0x90a   : > { %v2077_v23 = vmul.f32 1.442695, %v2073_v22 }
 0x90c   : > { %3134 = vpow2.f32 %v2077_v23 }
 0x919   : > { %v3135_v24 = vpop.eup %3134 }
 0x91a   : > { %v2085_v25 = vsel %vm792_vm2, %v3135_v24, 0.0 }
 0x925   : > { %2086 = vadd.xlane.f32.xlu1 %v2085_v25  ;;  %v2540_v25 = vld [vmem:[%s3669_s12 + $0x10] sm:$0xff] }
 0x979   : > { %v2069_v26 = vpop.xlane.xlu0 %2068  ;;  %v2066_v27 = vpop.xlane.xlu1 %2065 }
 0x97a   : > { %v2075_v28 = vsub.f32 %v2059_v12, %v2069_v26  ;;  %v2074_v29 = vsub.f32 %v2058_v11, %v2066_v27  ;;  %v2538_v26 = vld [vmem:[%s3669_s12] sm:$0xff]  ;;  %v2630_v27 = vld [vmem:[%s3671_s14 + $0x38] sm:$0xff] }
 0x97c   : > { %v2081_v30 = vmul.f32 1.442695, %v2075_v28  ;;  %v2079_v31 = vmul.f32 1.442695, %v2074_v29  ;;  %v2629_v28 = vld [vmem:[%s3671_s14 + $0x30] sm:$0xff]  ;;  %v2628_v29 = vld [vmem:[%s3671_s14 + $0x28] sm:$0xff] }
 0x97d   : > { %v2106_v32 = vpop.permute.xlu1 %2105  ;;  %v2072_v33 = vpop.xlane.xlu0 %2071 }
 0x97e   : > { %3136 = vpow2.f32 %v2081_v30  ;;  %v2076_v34 = vsub.f32 %v2060_v18, %v2072_v33  ;;  %3038 = vmatpush3.msra.mxu0 %v2106_v32  ;;  %v2627_v30 = vld [vmem:[%s3671_s14 + $0x20] sm:$0xff] }
 0x97f   : > { %3138 = vpow2.f32 %v2079_v31  ;;  %3047 = vmatprep.subr.mxu0 %v3162_v1  ;;  %v2626_v31 = vld [vmem:[%s3671_s14 + $0x18] sm:$0xff] }
 0x980   : > { %v2083_v35 = vmul.f32 1.442695, %v2076_v34 }
 0x982   : > { %3140 = vpow2.f32 %v2083_v35 }
 0x98b   : > { %v3137_v36 = vpop.eup %3136 }
 0x98c   : > { %v3139_v5 = vpop.eup %3138  ;;  %v2091_v37 = vsel %vm792_vm2, %v3137_v36, 0.0 }
 0x98d   : > { %2092 = vadd.xlane.f32.xlu1 %v2091_v37  ;;  %v2088_v38 = vsel %vm792_vm2, %v3139_v5, 0.0  ;;  %v2853_v37 = vld [vmem:[%s3676_s19] ss:$0 sm:$0xff] }
 0x98e   : > { %2089 = vadd.xlane.f32.xlu0 %v2088_v38 }
 0x98f   : > { %v3141_v39 = vpop.eup %3140 }
 0x990   : > { %v2094_v40 = vsel %vm792_vm2, %v3141_v39, 0.0 }
 0x992   : > { %2095 = vadd.xlane.f32.xlu0 %v2094_v40  ;;  %v2625_v40 = vld [vmem:[%s3671_s14 + $0x10] sm:$0xff] }
 0x99e   : > { %2257 = vrot.lane.b32.xlu1 %v3489_v58, %s3708_s1 }
 0x9a2   : > { %2333 = vrot.lane.b32.xlu1 %v3506_v63, %s3708_s1 }
 0x9a8   : > { %2181 = vrot.lane.b32.xlu0 %v3487_v57, %s3708_s1  ;;  %v2427_v57 = vld [vmem:[%s3667_s10 + $0x18] sm:$0xff]  ;;  %s3710_s1 = smov 8  }
 0x9ae   : > { %v2087_v41 = vpop.xlane.xlu1 %2086 }
 0x9af   : > { %3142 = vrcp.f32 %v2087_v41  ;;  %v2624_v41 = vld [vmem:[%s3671_s14 + $0x8] sm:$0xff] }
 0x9bc   : > { %v3143_v42 = vpop.eup %3142 }
 0x9bd   : > { %v2101_v43 = vmul.f32 %v3143_v42, %v3135_v24  ;;  %v2541_v24 = vld [vmem:[%s3669_s12 + $0x18] sm:$0xff]  ;;  %v2623_v42 = vld [vmem:[%s3671_s14] sm:$0xff] }
 0x9bf   : > { %3040 = vmatmul.mubr.msk.f32.vlgmr.msra.gmra.mxu0 %vm792_vm2, %v2101_v43  ;;  %v2854_v43 = vld [vmem:[%s3670_s13] ss:$0 sm:$0xff] }
 0x9c0   : > { %3049 = vmatprep.mubr.msk.f32.mxu0 %vm3163_vm0, %v3162_v1 }
 0xa16   : > { %v2093_v44 = vpop.xlane.xlu1 %2092 }
 0xa17   : > { %3144 = vrcp.f32 %v2093_v44  ;;  %v2090_v45 = vpop.xlane.xlu0 %2089 }
 0xa18   : > { %3146 = vrcp.f32 %v2090_v45 }
 0xa1a   : > { %v2258_v46 = vpop.permute.xlu1 %2257 }
 0xa1b   : > { %v2096_v47 = vpop.xlane.xlu0 %2095  ;;  %3048 = vmatpush3.msra.mxu0 %v2258_v46 }
 0xa1c   : > { %3148 = vrcp.f32 %v2096_v47  ;;  %3057 = vmatprep.subr.mxu0 %v3162_v1 }
 0xa1e   : > { %v2334_v54 = vpop.permute.xlu1 %2333 }
 0xa1f   : > { %v2182_v48 = vpop.permute.xlu0 %2181 }
 0xa20   : > { %3043 = vmatpush3.msra.mxu1 %v2182_v48  ;;  %v2856_v48 = vld [vmem:[%s3672_s15] ss:$0 sm:$0xff] }
 0xa21   : > { %3052 = vmatprep.subr.mxu1 %v3162_v1 }
 0xa24   : > { %v3145_v49 = vpop.eup %3144 }
 0xa25   : > { %v3147_v50 = vpop.eup %3146  ;;  %v2103_v51 = vmul.f32 %v3145_v49, %v3137_v36  ;;  %v2852_v36 = vld [vmem:[%s3675_s18] ss:$0 sm:$0xff] }
 0xa26   : > { %v2102_v53 = vmul.f32 %v3147_v50, %v3139_v5 }
 0xa27   : > { %3050 = vmatmul.mubr.msk.f32.vlgmr.msra.gmra.mxu0 %vm792_vm2, %v2103_v51 }
 0xa28   : > { %3045 = vmatmul.mubr.msk.f32.vlgmr.msra.gmra.mxu1 %vm792_vm2, %v2102_v53  ;;  %3065 = vmatprep.mubr.msk.f32.mxu0 %vm3163_vm0, %v3162_v1 }
 0xa29   : > { %v3149_v55 = vpop.eup %3148  ;;  %3053 = vmatpush3.msra.mxu1 %v2334_v54  ;;  %3054 = vmatprep.mubr.msk.f32.mxu1 %vm3163_vm0, %v3162_v1 }
 0xa2a   : > { %v2104_v56 = vmul.f32 %v3149_v55, %v3141_v39  ;;  %3068 = vmatprep.subr.mxu1 %v3162_v1  ;;  %3058 = vmatpush3.msra.mxu0 %v2427_v57 }
 0xa2b   : > { %3059 = vmatprep.subr.mxu0 %v3162_v1 }
 0xa2c   : > { %3055 = vmatmul.mubr.msk.f32.vlgmr.msra.gmra.mxu1 %vm792_vm2, %v2104_v56  ;;  %3060 = vmatpush3.msra.mxu0 %v2426_v60 }
 0xa2d   : > { %3076 = vmatprep.mubr.msk.f32.mxu1 %vm3163_vm0, %v3162_v1  ;;  %3061 = vmatprep.subr.mxu0 %v3162_v1 }
 0xa2e   : > { %3062 = vmatpush3.msra.mxu0 %v2425_v61  ;;  %3069 = vmatpush3.msra.mxu1 %v2541_v24 }
 0xa2f   : > { %3063 = vmatprep.subr.mxu0 %v3162_v1  ;;  %3070 = vmatprep.subr.mxu1 %v3162_v1 }
 0xa30   : > { %3064 = vmatpush3.msra.mxu0 %v2424_v62  ;;  %3071 = vmatpush3.msra.mxu1 %v2540_v25 }
 0xa31   : > { %3079 = vmatprep.subr.mxu0 %v3162_v1  ;;  %3072 = vmatprep.subr.mxu1 %v3162_v1 }
 0xa7f   : > { %v2177_v58 = vpop.f32.mrf.mxu0 }
 0xa81   : > { %v3041_v59 = vpop.f32.mrf.mxu0 }
 0xae7   : > { %v2329_v63 = vpop.f32.mrf.mxu0 }
 0xae8   : > { %v2253_v0 = vpop.f32.mrf.mxu1  ;;  %2414 = vrot.lane.b32.xlu1 %v2329_v63, %s3709_s26  ;;  %v2858_v63 = vld [vmem:[%s3677_s20] ss:$0 sm:$0xff] }
 0xae9   : > { %2410 = vrot.lane.b32.xlu0 %v2253_v0, %s3710_s1  ;;  %v3051_v2 = vpop.f32.mrf.mxu0 }
 0xaea   : > { %v3046_v3 = vpop.f32.mrf.mxu1  ;;  %v2859_v2 = vld [vmem:[%s3678_s21] ss:$0 sm:$0xff] }
 0xaec   : > { %v2405_v4 = vpop.f32.mrf.mxu1 }
 0xaed   : > { %2418 = vrot.lane.b32.xlu0 %v2405_v4, %s3711_s2 }
 0xaee   : > { %v3056_v6 = vpop.f32.mrf.mxu1 }
 0xb5a   : > { %v2415_v8 = vpop.permute.xlu1 %2414 }
 0xb5b   : > { %v2411_v7 = vpop.permute.xlu0 %2410 }
 0xb5c   : > { %v2421_v9 = vsel %vm792_vm2, %v2177_v58, %v2411_v7 }
 0xb5d   : > { %v2422_v10 = vsel %vm1460_vm3, %v2421_v9, %v2415_v8 }
 0xb5f   : > { %v2419_v11 = vpop.permute.xlu0 %2418 }
 0xb60   : > { %v2423_v12 = vsel %vm1462_vm4, %v2422_v10, %v2419_v11 }
 0xb61   : > { %3066 = vmatmul.mubr.msk.f32.vlgmr.msra.gmra.mxu0 %vm709_vm1, %v2423_v12 }
 0xb62   : > { %3095 = vmatprep.mubr.msk.f32.mxu0 %vm3163_vm0, %v3162_v1  ;;  %3080 = vmatpush3.msra.mxu0 %v2630_v27 }
 0xb63   : > { %3081 = vmatprep.subr.mxu0 %v3162_v1 }
 0xb64   : > { %3082 = vmatpush3.msra.mxu0 %v2629_v28 }
 0xb65   : > { %3083 = vmatprep.subr.mxu0 %v3162_v1 }
 0xb66   : > { %3084 = vmatpush3.msra.mxu0 %v2628_v29 }
 0xb67   : > { %3085 = vmatprep.subr.mxu0 %v3162_v1 }
 0xb68   : > { %3086 = vmatpush3.msra.mxu0 %v2627_v30 }
 0xb69   : > { %3087 = vmatprep.subr.mxu0 %v3162_v1 }
 0xb6a   : > { %3088 = vmatpush3.msra.mxu0 %v2626_v31 }
 0xb6b   : > { %3089 = vmatprep.subr.mxu0 %v3162_v1 }
 0xb6c   : > { %3090 = vmatpush3.msra.mxu0 %v2625_v40 }
 0xb6d   : > { %3091 = vmatprep.subr.mxu0 %v3162_v1 }
 0xb6e   : > { %3092 = vmatpush3.msra.mxu0 %v2624_v41 }
 0xb6f   : > { %3093 = vmatprep.subr.mxu0 %v3162_v1 }
 0xb70   : > { %3094 = vmatpush3.msra.mxu0 %v2623_v42 }
 0xc21   : > { %v2504_v14 = vpop.f32.mrf.mxu0 }
 0xc22   : > { %v2505_v15 = vadd.f32 %v2850_v13, %v2504_v14 }
 0xc23   : > { %v3067_v16 = vpop.f32.mrf.mxu0 }
 0xc24   : > { %v2508_v17 = vadd.f32 %v2505_v15, %v3473_v52  ;;  %v2539_v52 = vld [vmem:[%s3669_s12 + $0x8] sm:$0xff] }
 0xc25   : > { %3073 = vmatpush3.msra.mxu1 %v2539_v52 }
 0xc26   : > { %v2511_v18 = vsel %vm709_vm1, %v2508_v17, 0.0  ;;  %3074 = vmatprep.subr.mxu1 %v3162_v1 }
 0xc27   : > { %2512 = vadd.xlane.f32.xlu1 %v2511_v18  ;;  %3075 = vmatpush3.msra.mxu1 %v2538_v26 }
 0xcb0   : > { %v2513_v19 = vpop.xlane.xlu1 %2512 }
 0xcb1   : > { %v2514_v20 = vmul.f32 0.03125, %v2513_v19 }
 0xcb3   : > { %v2515_v21 = vsub.f32 %v2508_v17, %v2514_v20 }
 0xcb5   : > { %v2516_v22 = vmul.f32 %v2515_v21, %v2515_v21 }
 0xcb7   : > { %v2517_v23 = vsel %vm709_vm1, %v2516_v22, 0.0 }
 0xcb8   : > { %2518 = vadd.xlane.f32.xlu0 %v2517_v23 }
 0xd41   : > { %v2519_v32 = vpop.xlane.xlu0 %2518 }
 0xd42   : > { %v2520_v33 = vmul.f32 0.03125, %v2519_v32 }
 0xd44   : > { %v2521_v34 = vadd.f32 1e-05, %v2520_v33 }
 0xd46   : > { %3150 = vrsqrt.f32 %v2521_v34 }
 0xd53   : > { %v3151_v35 = vpop.eup %3150 }
 0xd54   : > { %v2523_v5 = vmul.f32 %v3151_v35, %v2515_v21 }
 0xd56   : > { %v2530_v38 = vmul.f32 %v2852_v36, %v2523_v5 }
 0xd58   : > { %v2537_v39 = vadd.f32 %v2853_v37, %v2530_v38 }
 0xd5a   : > { %3077 = vmatmul.mubr.msk.f32.vlgmr.msra.gmra.mxu1 %vm709_vm1, %v2537_v39 }
 0xe1a   : > { %v2618_v44 = vpop.f32.mrf.mxu1 }
 0xe1b   : > { %v2619_v45 = vadd.f32 %v2854_v43, %v2618_v44 }
 0xe1c   : > { %v3078_v46 = vpop.f32.mrf.mxu1 }
 0xe1d   : > { %v2622_v47 = vmax.f32 %v2619_v45, 0.0 }
 0xe1f   : > { %3096 = vmatmul.mubr.msk.f32.vlgmr.msra.gmra.mxu0 %vm2638_vm5, %v2622_v47 }
 0xedf   : > { %v2708_v49 = vpop.f32.mrf.mxu0 }
 0xee0   : > { %v2709_v50 = vadd.f32 %v2856_v48, %v2708_v49 }
 0xee1   : > { %v3097_v51 = vpop.f32.mrf.mxu0 }
 0xee2   : > { %v2712_v53 = vadd.f32 %v2709_v50, %v2537_v39 }
 0xee4   : > { %v2715_v1 = vsel %vm709_vm1, %v2712_v53, 0.0 }
 0xee5   : > { %2716 = vadd.xlane.f32.xlu0 %v2715_v1 }
 0xf6e   : > { %v2717_v54 = vpop.xlane.xlu0 %2716 }
 0xf6f   : > { %v2718_v55 = vmul.f32 0.03125, %v2717_v54 }
 0xf71   : > { %v2719_v56 = vsub.f32 %v2712_v53, %v2718_v55 }
 0xf73   : > { %v2720_v57 = vmul.f32 %v2719_v56, %v2719_v56 }
 0xf75   : > { %v2721_v58 = vsel %vm709_vm1, %v2720_v57, 0.0 }
 0xf76   : > { %2722 = vadd.xlane.f32.xlu1 %v2721_v58 }
 0xfff   : > { %v2723_v59 = vpop.xlane.xlu1 %2722 }
0x1000   : > { %v2724_v60 = vmul.f32 0.03125, %v2723_v59 }
0x1002   : > { %v2725_v61 = vadd.f32 1e-05, %v2724_v60 }
0x1004   : > { %3152 = vrsqrt.f32 %v2725_v61 }
0x1011   : > { %v3153_v62 = vpop.eup %3152 }
0x1012   : > { %v2727_v0 = vmul.f32 %v3153_v62, %v2719_v56 }
0x1014   : > { %v2734_v3 = vmul.f32 %v2858_v63, %v2727_v0 }
0x1016   : > { %v2741_v4 = vadd.f32 %v2859_v2, %v2734_v3 }
0x1018   : > { %2742 = vst.msk [vmem:[%s695_s30] sm:$0xff] %vm709_vm1, %v2741_v4 }
0x1019 PF: > { %s32_s3 = sadd.s32 1, %s3160_s3  }
0x101a   : > { %p29_p4 = scmp.ge.s32.totalorder %s32_s3, 4  }
0x101c   :  { %31 = sbr.rel (!%p29_p4) target bundleno = 8 (0x8), region = 141 }

// kernel: _lambda_.16
= control target key start
LH: loop header
LB: loop body
LE: loop exit
PB: predicated region body
PF: predicated region fallthrough
CT: control target
= control target key end

     0   :  { %s3745_s0 = inlined_call_operand.vmem [shape: f32[2,8,32], index: 0, kind: input, shape index: {}]   ;;  %s3746_s1 = inlined_call_operand.vmem [shape: f32[2,8,32], index: 1, kind: input, shape index: {}]   ;;  %s3747_s2 = inlined_call_operand.vmem [shape: f32[32,96], index: 2, kind: input, shape index: {}]   ;;  %s3748_s3 = inlined_call_operand.vmem [shape: f32[1,96], index: 3, kind: input, shape index: {}]   ;;  %s3749_s4 = inlined_call_operand.vmem [shape: f32[32,32], index: 4, kind: input, shape index: {}]   ;;  %s3750_s5 = inlined_call_operand.vmem [shape: f32[1,32], index: 5, kind: input, shape index: {}]   ;;  %s3751_s6 = inlined_call_operand.vmem [shape: f32[32,32], index: 6, kind: input, shape index: {}]   ;;  %s3752_s7 = inlined_call_operand.vmem [shape: f32[1,32], index: 7, kind: input, shape index: {}]   ;;  %s3753_s8 = inlined_call_operand.vmem [shape: f32[32,64], index: 8, kind: input, shape index: {}]   ;;  %s3754_s9 = inlined_call_operand.vmem [shape: f32[1,64], index: 9, kind: input, shape index: {}]   ;;  %s3755_s10 = inlined_call_operand.vmem [shape: f32[32,32], index: 10, kind: input, shape index: {}]   ;;  %s3756_s11 = inlined_call_operand.vmem [shape: f32[1,32], index: 11, kind: input, shape index: {}]   ;;  %s3757_s12 = inlined_call_operand.vmem [shape: f32[32,64], index: 12, kind: input, shape index: {}]   ;;  %s3758_s13 = inlined_call_operand.vmem [shape: f32[1,64], index: 13, kind: input, shape index: {}]   ;;  %s3759_s14 = inlined_call_operand.vmem [shape: f32[64,32], index: 14, kind: input, shape index: {}]   ;;  %s3760_s15 = inlined_call_operand.vmem [shape: f32[1,32], index: 15, kind: input, shape index: {}]   ;;  %s3761_s16 = inlined_call_operand.vmem [shape: f32[1,32], index: 16, kind: input, shape index: {}]   ;;  %s3762_s17 = inlined_call_operand.vmem [shape: f32[1,32], index: 17, kind: input, shape index: {}]   ;;  %s3763_s18 = inlined_call_operand.vmem [shape: f32[1,32], index: 18, kind: input, shape index: {}]   ;;  %s3764_s19 = inlined_call_operand.vmem [shape: f32[1,32], index: 19, kind: input, shape index: {}]   ;;  %s3765_s20 = inlined_call_operand.vmem [shape: f32[1,32], index: 20, kind: input, shape index: {}]   ;;  %s3766_s21 = inlined_call_operand.hbm [shape: f32[1,32], index: 21, kind: input, shape index: {}]   ;;  %s3767_s22 = inlined_call_operand.vmem [shape: f32[2,8,32], index: 22, kind: output, shape index: {}]  }
   0x1   :  { %3780 = sst [smem:[#allocation5_spill]] %s3745_s0 }
   0x2   :  { %3781 = sst [smem:[#allocation6_spill]] %s3746_s1 }
   0x3   :  { %3782 = sst [smem:[#allocation7_spill]] %s3747_s2 }
   0x4   :  { %3783 = sst [smem:[#allocation8_spill]] %s3748_s3 }
   0x5   :  { %3784 = sst [smem:[#allocation9_spill]] %s3749_s4 }
   0x6   :  { %3785 = sst [smem:[#allocation10_spill]] %s3750_s5 }
   0x7   :  { %3786 = sst [smem:[#allocation11_spill]] %s3751_s6 }
   0x8   :  { %27 = vsyncpa [#allocation3], 0  ;;  %s3356_s3 = smov 0  }
   0x9 LB: > { %s3362_s28 = sadd.s32 4294967295, %s3228_s3   ;;  %p2835_p0 = scmp.ge.s32.totalorder %s3228_s3, 1  ;;  %s3228_s3 = sphi %s3356_s3, %s33_s3  }
   0xa   : > { %p536_p1 = scmp.lt.s32.totalorder %s3228_s3, 3  ;;  %p3133_p3 = scmp.eq.s32.totalorder %s3362_s28, 0 }
   0xb   : > { %s3230_s30 = smov [#allocation2]  }
   0xc   : > { %p3366_p2 = pnand %p2835_p0, %p536_p1  ;;  %s606_s4 = sshll.u32 %s3230_s30, 4  ;;  %s607_s4 = int_to_ptr.vmem [resolvable:$true] %s606_s4 }
   0xd   : > { %s3203_s0 = scalar_lea.vmem %s607_s4, 16  ;;  %s3210_s23 = scalar_lea.vmem %s607_s4, 32 }
   0xe   : > { %p3129_p4 = pneg %p3366_p2  ;;  %p3204_p7 = scmp.ne.s32.totalorder %s607_s4, %s3203_s0 }
   0xf   : > { %p3211_p10 = scmp.lt.s32.totalorder %s607_s4, %s607_s4  ;;  %p3212_p11 = scmp.lt.s32.totalorder %s3210_s23, %s3203_s0 }
  0x10   : > { %p3130_p5 = pnand %p3133_p3, %p3129_p4 }
  0x11   : > { %p3213_p12 = por %p3212_p11, %p3211_p10 }
  0x12   : > { %p3194_p6 = pneg %p3130_p5 }
  0x14   : > { %p3206_p8 = pnand %p3204_p7, %p3194_p6 }
  0x16   : > { %p3207_p9 = pneg %p3206_p8 }
  0x18   : > { %p3214_p13 = pnand %p3213_p12, %p3207_p9 }
  0x1a   : > { %3217 = shalt.err (!%p3214_p13)
}
  0x1b   : > { %3132 = dma.hbm_to_vmem [thread:$0]  (!%p3130_p5), %s3766_s21, 16, %s607_s4, [#allocation3]  }
  0x1c   : > { %633 = sbr.rel (%p3366_p2) target bundleno = 4142 (0x102e), region = 108 }
  0x21   : > { %3223 = dma.done.wait (%p3133_p3), [#allocation3], 16  }
  0x22   : > { %3225 = vsyncadd (%p3133_p3), [#allocation3], 4294967280  ;;  %p697_p0 = scmp.lt.s32.totalorder %s3362_s28, 1  ;;  %v3231_v0 = vmov 0.0   ;;  %vm3232_vm0 = vmmov 0   ;;  %s3788_s26 = sld [smem:[#allocation7_spill]] }
  0x23   : > { %2960 = vmatprep.subr.mxu1 %v3231_v0  ;;  %2968 = vmatprep.mubr.msk.f32.mxu1 %vm3232_vm0, %v3231_v0  ;;  %vm722_vm1 = vcmask 261120   ;;  %s3790_s2 = sld [smem:[#allocation8_spill]]  ;;  %s3778_s27 = smov 104   ;;  %vm805_vm2 = vcmask 64512   ;;  %vm1473_vm3 = vcmask 130048   ;;  %vm1475_vm4 = vcmask 195584  }
  0x24   : > { %s3802_s28 = smov (!%p697_p0, %s3362_s28), 1  ;;  %2981 = vmatprep.subr.mxu0 %v3231_v0  ;;  %2983 = vmatprep.mubr.msk.f32.mxu0 %vm3232_vm0, %v3231_v0  ;;  %s3234_s29 = smov 120   ;;  %vm2651_vm5 = vcmask 523264  }
  0x25   : > { %s3392_s24 = sshll.u32 %s3802_s28, 3  ;;  %s3789_s28 = sld [smem:[#allocation5_spill]] }
  0x26   : > { %s3774_s30 = smov 96   ;;  %s3776_s4 = smov 112  }
  0x27   : > { %s3237_s0 = smov 64   ;;  %s3791_s1 = sld [smem:[#allocation9_spill]] }
  0x28   : > { %v714_v1 = vld [vmem:[%s3788_s26 + $0x18] sm:$0xff]  ;;  %v713_v2 = vld [vmem:[%s3788_s26 + $0x10] sm:$0xff]  ;;  %v712_v3 = vld [vmem:[%s3788_s26 + $0x8] sm:$0xff]  ;;  %s3771_s5 = smov 24   ;;  %s3773_s6 = smov 16  }
  0x29   : > { %2961 = vmatpush3.msra.mxu1 %v714_v1  ;;  %v711_v4 = vld [vmem:[%s3788_s26] sm:$0xff] }
  0x2a   : > { %2962 = vmatprep.subr.mxu1 %v3231_v0  ;;  %v2843_v6 = vld [vmem:[%s3790_s2] ss:$0 sm:$0xff]  ;;  %s3794_s2 = sld [smem:[#allocation11_spill]] }
  0x2b   : > { %s700_s23 = scalar_lea.vmem %s3789_s28, %s3392_s24  ;;  %2963 = vmatpush3.msra.mxu1 %v713_v2  ;;  %s3798_s28 = smov 16  }
  0x2c   : > { %2964 = vmatprep.subr.mxu1 %v3231_v0  ;;  %v3412_v5 = vld [vmem:[%s700_s23] sm:$0xff]  ;;  %s3772_s23 = smov 8  }
  0x2d   : > { %2965 = vmatpush3.msra.mxu1 %v712_v3 }
  0x2e   : > { %2966 = vmatprep.subr.mxu1 %v3231_v0 }
  0x2f   : > { %2967 = vmatpush3.msra.mxu1 %v711_v4 }
  0x30   : > { %2969 = vmatmul.mubr.msk.f32.vlgmr.msra.gmra.mxu1 %vm722_vm1, %v3412_v5  ;;  %2971 = vmatprep.subr.mxu1 %v3231_v0 }
  0x31   : > { %2973 = vmatprep.mubr.msk.f32.mxu1 %vm3232_vm0, %v3231_v0 }
  0xf0   : > { %v792_v7 = vpop.f32.mrf.mxu1 }
  0xf1   : > { %v793_v8 = vadd.f32 %v2843_v6, %v792_v7  ;;  %v1480_v7 = vld [vmem:[%s3791_s1 + $0x18] sm:$0xff] }
  0xf2   : > { %v2970_v9 = vpop.f32.mrf.mxu1 }
  0xf3   : > { %801 = vrot.lane.b32.xlu1 %v793_v8, %s3778_s27  ;;  %797 = vrot.lane.b32.xlu0 %v793_v8, %s3234_s29 }
  0xf7   : > { %803 = vrot.lane.b32.xlu1 %v793_v8, %s3774_s30  ;;  %799 = vrot.lane.b32.xlu0 %v793_v8, %s3776_s4  ;;  %s3793_s4 = sld [smem:[#allocation6_spill]] }
  0xfd   : > { %s704_s27 = scalar_lea.vmem %s3793_s4, %s3392_s24  ;;  %s3796_s4 = smov 112  }
 0x165   : > { %v3427_v10 = vpop.permute.xlu1 %801  ;;  %v798_v11 = vpop.permute.xlu0 %797 }
 0x166   : > { %880 = vrot.lane.b32.xlu0 %v798_v11, %s3774_s30 }
 0x169   : > { %v804_v12 = vpop.permute.xlu1 %803  ;;  %v3430_v13 = vpop.permute.xlu0 %799 }
 0x16a   : > { %2972 = vmatpush3.xpose.msk.msra.mxu1 %vm805_vm2, %v804_v12  ;;  %1032 = vrot.lane.b32.xlu0 %v3427_v10, %s3774_s30  ;;  %v1477_v12 = vld [vmem:[%s3791_s1] sm:$0xff] }
 0x16b   : > { %956 = vrot.lane.b32.xlu1 %v3430_v13, %s3774_s30  ;;  %2976 = vmatprep.subr.mxu1 %v3231_v0 }
 0x16d   : > { %2974 = vmatmul.mubr.msk.f32.vlgmr.msra.gmra.mxu1 %vm805_vm2, %v793_v8 }
 0x16e   : > { %2978 = vmatprep.mubr.msk.f32.mxu1 %vm3232_vm0, %v3231_v0 }
 0x1d8   : > { %v881_v14 = vpop.permute.xlu0 %880 }
 0x1d9   : > { %2977 = vmatpush3.xpose.msk.msra.mxu1 %vm805_vm2, %v881_v14 }
 0x1da   : > { %2986 = vmatprep.subr.mxu1 %v3231_v0 }
 0x1dc   : > { %2979 = vmatmul.mubr.msk.f32.vlgmr.msra.gmra.mxu1 %vm805_vm2, %v798_v11  ;;  %v1033_v15 = vpop.permute.xlu0 %1032 }
 0x1dd   : > { %v957_v16 = vpop.permute.xlu1 %956  ;;  %2987 = vmatpush3.xpose.msk.msra.mxu1 %vm805_vm2, %v1033_v15  ;;  %2988 = vmatprep.mubr.msk.f32.mxu1 %vm3232_vm0, %v3231_v0 }
 0x1de   : > { %2982 = vmatpush3.xpose.msk.msra.mxu0 %vm805_vm2, %v957_v16  ;;  %2996 = vmatprep.subr.mxu1 %v3231_v0 }
 0x1df   : > { %2991 = vmatprep.subr.mxu0 %v3231_v0 }
 0x1e0   : > { %2989 = vmatmul.mubr.msk.f32.vlgmr.msra.gmra.mxu1 %vm805_vm2, %v3427_v10 }
 0x1e1   : > { %2984 = vmatmul.mubr.msk.f32.vlgmr.msra.gmra.mxu0 %vm805_vm2, %v3430_v13  ;;  %2998 = vmatprep.mubr.msk.f32.mxu1 %vm3232_vm0, %v3231_v0 }
 0x1e2   : > { %2993 = vmatprep.mubr.msk.f32.mxu0 %vm3232_vm0, %v3231_v0 }
 0x22d   : > { %v876_v17 = vpop.f32.mrf.mxu1 }
 0x22e   : > { %v1108_v18 = vmul.f32 0.35355338, %v876_v17 }
 0x22f   : > { %v2975_v19 = vpop.f32.mrf.mxu1 }
 0x230   : > { %v1112_v20 = vsel %vm805_vm2, %v1108_v18, -inf }
 0x231   : > { %1113 = vmax.xlane.f32.xlu1 %v1112_v20 }
 0x29c   : > { %v952_v21 = vpop.f32.mrf.mxu1 }
 0x29d   : > { %v1109_v22 = vmul.f32 0.35355338, %v952_v21 }
 0x29e   : > { %v2980_v23 = vpop.f32.mrf.mxu1 }
 0x29f   : > { %v1115_v24 = vsel %vm805_vm2, %v1109_v22, -inf }
 0x2a0   : > { %1116 = vmax.xlane.f32.xlu0 %v1115_v24  ;;  %v1104_v25 = vpop.f32.mrf.mxu1 }
 0x2a1   : > { %v1028_v26 = vpop.f32.mrf.mxu0  ;;  %v1111_v27 = vmul.f32 0.35355338, %v1104_v25 }
 0x2a2   : > { %v1110_v28 = vmul.f32 0.35355338, %v1028_v26  ;;  %v2990_v29 = vpop.f32.mrf.mxu1 }
 0x2a3   : > { %v2985_v30 = vpop.f32.mrf.mxu0  ;;  %v1121_v31 = vsel %vm805_vm2, %v1111_v27, -inf }
 0x2a4   : > { %v1118_v32 = vsel %vm805_vm2, %v1110_v28, -inf  ;;  %1122 = vmax.xlane.f32.xlu1 %v1121_v31 }
 0x2a5   : > { %1119 = vmax.xlane.f32.xlu0 %v1118_v32 }
 0x2b5   : > { %1232 = vrot.lane.b32.xlu1 %v798_v11, %s3237_s0  ;;  %v1478_v11 = vld [vmem:[%s3791_s1 + $0x8] sm:$0xff] }
 0x2ba   : > { %v1114_v33 = vpop.xlane.xlu1 %1113 }
 0x2bb   : > { %1156 = vrot.lane.b32.xlu0 %v793_v8, %s3237_s0  ;;  %v1124_v34 = vsub.f32 %v1108_v18, %v1114_v33 }
 0x2bd   : > { %v1128_v35 = vmul.f32 1.442695, %v1124_v34 }
 0x2bf   : > { %3154 = vpow2.f32 %v1128_v35 }
 0x2cc   : > { %v3155_v36 = vpop.eup %3154 }
 0x2cd   : > { %v1136_v37 = vsel %vm805_vm2, %v3155_v36, 0.0 }
 0x2da   : > { %1137 = vadd.xlane.f32.xlu0 %v1136_v37  ;;  %v1677_v37 = vld [vmem:[%s3753_s8 + $0x8] sm:$0xff] }
 0x329   : > { %v1117_v38 = vpop.xlane.xlu0 %1116 }
 0x32a   : > { %v1125_v39 = vsub.f32 %v1109_v22, %v1117_v38  ;;  %v1676_v38 = vld [vmem:[%s3753_s8] sm:$0xff] }
 0x32c   : > { %v1130_v40 = vmul.f32 1.442695, %v1125_v39  ;;  %v710_v39 = vld [vmem:[%s704_s27] sm:$0xff]  ;;  %s3795_s27 = smov 104  }
 0x32d   : > { %v1123_v41 = vpop.xlane.xlu1 %1122 }
 0x32e   : > { %3156 = vpow2.f32 %v1130_v40  ;;  %v1120_v42 = vpop.xlane.xlu0 %1119  ;;  %v1127_v43 = vsub.f32 %v1111_v27, %v1123_v41  ;;  %v1595_v40 = vld [vmem:[%s3794_s2 + $0x18] sm:$0xff]  ;;  %v1594_v41 = vld [vmem:[%s3794_s2 + $0x10] sm:$0xff] }
 0x32f   : > { %v1126_v44 = vsub.f32 %v1110_v28, %v1120_v42  ;;  %v1593_v42 = vld [vmem:[%s3794_s2 + $0x8] sm:$0xff] }
 0x330   : > { %v1134_v45 = vmul.f32 1.442695, %v1127_v43  ;;  %v1592_v43 = vld [vmem:[%s3794_s2] sm:$0xff] }
 0x331   : > { %v1132_v46 = vmul.f32 1.442695, %v1126_v44  ;;  %v1233_v47 = vpop.permute.xlu1 %1232 }
 0x332   : > { %3158 = vpow2.f32 %v1134_v45  ;;  %v1157_v48 = vpop.permute.xlu0 %1156  ;;  %2997 = vmatpush3.msra.mxu1 %v1233_v47 }
 0x333   : > { %3160 = vpow2.f32 %v1132_v46  ;;  %2992 = vmatpush3.msra.mxu0 %v1157_v48  ;;  %3006 = vmatprep.subr.mxu1 %v3231_v0  ;;  %v2859_v48 = vld [vmem:[%s3761_s16] ss:$0 sm:$0xff] }
 0x334   : > { %3001 = vmatprep.subr.mxu0 %v3231_v0 }
 0x33b   : > { %v3157_v49 = vpop.eup %3156 }
 0x33c   : > { %v1139_v50 = vsel %vm805_vm2, %v3157_v49, 0.0 }
 0x33d   : > { %1140 = vadd.xlane.f32.xlu1 %v1139_v50  ;;  %v2860_v50 = vld [vmem:[%s3762_s17] ss:$0 sm:$0xff] }
 0x33f   : > { %v3159_v51 = vpop.eup %3158 }
 0x340   : > { %v3161_v52 = vpop.eup %3160  ;;  %v1145_v53 = vsel %vm805_vm2, %v3159_v51, 0.0 }
 0x341   : > { %v1142_v54 = vsel %vm805_vm2, %v3161_v52, 0.0  ;;  %1146 = vadd.xlane.f32.xlu1 %v1145_v53  ;;  %v2863_v53 = vld [vmem:[%s3754_s9] ss:$0 sm:$0xff] }
 0x342   : > { %1143 = vadd.xlane.f32.xlu0 %v1142_v54 }
 0x352   : > { %1308 = vrot.lane.b32.xlu1 %v3430_v13, %s3237_s0 }
 0x358   : > { %1384 = vrot.lane.b32.xlu0 %v3427_v10, %s3237_s0  ;;  %v1479_v10 = vld [vmem:[%s3791_s1 + $0x10] sm:$0xff]  ;;  %s3792_s0 = sld [smem:[#allocation10_spill]] }
 0x35e   : > { %v2857_v25 = vld [vmem:[%s3792_s0] ss:$0 sm:$0xff] }
 0x363   : > { %v1138_v55 = vpop.xlane.xlu0 %1137 }
 0x364   : > { %3162 = vrcp.f32 %v1138_v55 }
 0x371   : > { %v3163_v56 = vpop.eup %3162 }
 0x372   : > { %v1152_v57 = vmul.f32 %v3163_v56, %v3155_v36  ;;  %v1679_v36 = vld [vmem:[%s3753_s8 + $0x18] sm:$0xff] }
 0x374   : > { %2994 = vmatmul.mubr.msk.f32.vlgmr.msra.gmra.mxu0 %vm805_vm2, %v1152_v57 }
 0x375   : > { %3003 = vmatprep.mubr.msk.f32.mxu0 %vm3232_vm0, %v3231_v0 }
 0x3c6   : > { %v1141_v58 = vpop.xlane.xlu1 %1140 }
 0x3c7   : > { %3164 = vrcp.f32 %v1141_v58 }
 0x3ca   : > { %v1147_v59 = vpop.xlane.xlu1 %1146 }
 0x3cb   : > { %v1144_v60 = vpop.xlane.xlu0 %1143  ;;  %3166 = vrcp.f32 %v1147_v59  ;;  %v2861_v59 = vld [vmem:[%s3752_s7] ss:$0 sm:$0xff] }
 0x3cc   : > { %3168 = vrcp.f32 %v1144_v60 }
 0x3ce   : > { %v1309_v61 = vpop.permute.xlu1 %1308 }
 0x3cf   : > { %3002 = vmatpush3.msra.mxu0 %v1309_v61  ;;  %v1385_v1 = vpop.permute.xlu0 %1384 }
 0x3d0   : > { %3011 = vmatprep.subr.mxu0 %v3231_v0 }
 0x3d4   : > { %v3165_v62 = vpop.eup %3164 }
 0x3d5   : > { %v1153_v63 = vmul.f32 %v3165_v62, %v3157_v49 }
 0x3d7   : > { %2999 = vmatmul.mubr.msk.f32.vlgmr.msra.gmra.mxu1 %vm805_vm2, %v1153_v63 }
 0x3d8   : > { %v3167_v2 = vpop.eup %3166  ;;  %3007 = vmatpush3.msra.mxu1 %v1385_v1  ;;  %3008 = vmatprep.mubr.msk.f32.mxu1 %vm3232_vm0, %v3231_v0 }
 0x3d9   : > { %v3169_v3 = vpop.eup %3168  ;;  %v1155_v4 = vmul.f32 %v3167_v2, %v3159_v51  ;;  %3022 = vmatprep.subr.mxu1 %v3231_v0 }
 0x3da   : > { %v1154_v6 = vmul.f32 %v3169_v3, %v3161_v52 }
 0x3db   : > { %3009 = vmatmul.mubr.msk.f32.vlgmr.msra.gmra.mxu1 %vm805_vm2, %v1155_v4 }
 0x3dc   : > { %3004 = vmatmul.mubr.msk.f32.vlgmr.msra.gmra.mxu0 %vm805_vm2, %v1154_v6  ;;  %3030 = vmatprep.mubr.msk.f32.mxu1 %vm3232_vm0, %v3231_v0 }
 0x3dd   : > { %3019 = vmatprep.mubr.msk.f32.mxu0 %vm3232_vm0, %v3231_v0  ;;  %3012 = vmatpush3.msra.mxu0 %v1480_v7 }
 0x3de   : > { %3013 = vmatprep.subr.mxu0 %v3231_v0  ;;  %3023 = vmatpush3.msra.mxu1 %v1595_v40 }
 0x3df   : > { %3014 = vmatpush3.msra.mxu0 %v1479_v10  ;;  %3024 = vmatprep.subr.mxu1 %v3231_v0 }
 0x3e0   : > { %3015 = vmatprep.subr.mxu0 %v3231_v0  ;;  %3025 = vmatpush3.msra.mxu1 %v1594_v41 }
 0x3e1   : > { %3016 = vmatpush3.msra.mxu0 %v1478_v11  ;;  %3026 = vmatprep.subr.mxu1 %v3231_v0 }
 0x3e2   : > { %3017 = vmatprep.subr.mxu0 %v3231_v0  ;;  %3027 = vmatpush3.msra.mxu1 %v1593_v42 }
 0x3e3   : > { %3018 = vmatpush3.msra.mxu0 %v1477_v12  ;;  %3028 = vmatprep.subr.mxu1 %v3231_v0 }
 0x3e4   : > { %3033 = vmatprep.subr.mxu0 %v3231_v0  ;;  %3029 = vmatpush3.msra.mxu1 %v1592_v43 }
 0x3e5   : > { %3044 = vmatprep.subr.mxu1 %v3231_v0 }
 0x434   : > { %v1228_v8 = vpop.f32.mrf.mxu0 }
 0x436   : > { %v2995_v9 = vpop.f32.mrf.mxu0 }
 0x497   : > { %v1304_v13 = vpop.f32.mrf.mxu1 }
 0x498   : > { %1461 = vrot.lane.b32.xlu1 %v1304_v13, %s3772_s23  ;;  %s3800_s23 = smov 24  }
 0x499   : > { %v3000_v14 = vpop.f32.mrf.mxu1 }
 0x49b   : > { %v1456_v15 = vpop.f32.mrf.mxu1 }
 0x49c   : > { %v1380_v16 = vpop.f32.mrf.mxu0  ;;  %1469 = vrot.lane.b32.xlu1 %v1456_v15, %s3771_s5 }
 0x49d   : > { %1465 = vrot.lane.b32.xlu0 %v1380_v16, %s3773_s6  ;;  %v3010_v17 = vpop.f32.mrf.mxu1 }
 0x49e   : > { %v3005_v18 = vpop.f32.mrf.mxu0 }
 0x50a   : > { %v1462_v19 = vpop.permute.xlu1 %1461 }
 0x50b   : > { %v1472_v21 = vsel %vm805_vm2, %v1228_v8, %v1462_v19 }
 0x50e   : > { %v1470_v20 = vpop.permute.xlu1 %1469 }
 0x50f   : > { %v1466_v22 = vpop.permute.xlu0 %1465 }
 0x510   : > { %v1474_v23 = vsel %vm1473_vm3, %v1472_v21, %v1466_v22 }
 0x511   : > { %v1476_v24 = vsel %vm1475_vm4, %v1474_v23, %v1470_v20 }
 0x512   : > { %3020 = vmatmul.mubr.msk.f32.vlgmr.msra.gmra.mxu0 %vm722_vm1, %v1476_v24 }
 0x513   : > { %3041 = vmatprep.mubr.msk.f32.mxu0 %vm3232_vm0, %v3231_v0  ;;  %3034 = vmatpush3.msra.mxu0 %v1679_v36 }
 0x514   : > { %3035 = vmatprep.subr.mxu0 %v3231_v0 }
 0x5d2   : > { %v1557_v26 = vpop.f32.mrf.mxu0 }
 0x5d3   : > { %v1558_v27 = vadd.f32 %v2857_v25, %v1557_v26 }
 0x5d4   : > { %v3021_v28 = vpop.f32.mrf.mxu0 }
 0x5d5   : > { %v1561_v29 = vadd.f32 %v1558_v27, %v3412_v5  ;;  %v1678_v5 = vld [vmem:[%s3753_s8 + $0x10] sm:$0xff] }
 0x5d6   : > { %3036 = vmatpush3.msra.mxu0 %v1678_v5 }
 0x5d7   : > { %v1564_v30 = vsel %vm722_vm1, %v1561_v29, 0.0  ;;  %3037 = vmatprep.subr.mxu0 %v3231_v0 }
 0x5d8   : > { %1565 = vadd.xlane.f32.xlu0 %v1564_v30  ;;  %3038 = vmatpush3.msra.mxu0 %v1677_v37 }
 0x5d9   : > { %3039 = vmatprep.subr.mxu0 %v3231_v0 }
 0x5da   : > { %3040 = vmatpush3.msra.mxu0 %v1676_v38 }
 0x5db   : > { %3042 = vmatmul.mubr.msk.f32.vlgmr.msra.gmra.mxu0 %vm722_vm1, %v710_v39  ;;  %3054 = vmatprep.subr.mxu0 %v3231_v0 }
 0x5dc   : > { %3056 = vmatprep.mubr.msk.f32.mxu0 %vm3232_vm0, %v3231_v0 }
 0x661   : > { %v1566_v31 = vpop.xlane.xlu0 %1565 }
 0x662   : > { %v1568_v32 = vmul.f32 0.03125, %v1566_v31 }
 0x664   : > { %v1569_v33 = vsub.f32 %v1561_v29, %v1568_v32 }
 0x666   : > { %v1570_v34 = vmul.f32 %v1569_v33, %v1569_v33 }
 0x668   : > { %v1571_v35 = vsel %vm722_vm1, %v1570_v34, 0.0 }
 0x669   : > { %1572 = vadd.xlane.f32.xlu1 %v1571_v35 }
 0x69b   : > { %v1756_v54 = vpop.f32.mrf.mxu0 }
 0x69c   : > { %v1757_v55 = vadd.f32 %v2863_v53, %v1756_v54 }
 0x69d   : > { %v3043_v56 = vpop.f32.mrf.mxu0 }
 0x69e   : > { %1768 = vrot.lane.b32.xlu0 %v1757_v55, %s3234_s29  ;;  %1772 = vrot.lane.b32.xlu1 %v1757_v55, %s3795_s27 }
 0x6a2   : > { %1770 = vrot.lane.b32.xlu0 %v1757_v55, %s3796_s4 }
 0x6f2   : > { %v1573_v44 = vpop.xlane.xlu1 %1572 }
 0x6f3   : > { %v1574_v45 = vmul.f32 0.03125, %v1573_v44 }
 0x6f5   : > { %v1575_v46 = vadd.f32 1e-05, %v1574_v45 }
 0x6f7   : > { %3170 = vrsqrt.f32 %v1575_v46 }
 0x704   : > { %v3171_v47 = vpop.eup %3170 }
 0x705   : > { %v1577_v49 = vmul.f32 %v3171_v47, %v1569_v33 }
 0x707   : > { %v1584_v51 = vmul.f32 %v2859_v48, %v1577_v49 }
 0x709   : > { %v3564_v52 = vadd.f32 %v2860_v50, %v1584_v51 }
 0x70b   : > { %3031 = vmatmul.mubr.msk.f32.vlgmr.msra.gmra.mxu1 %vm722_vm1, %v3564_v52 }
 0x70c   : > { %3046 = vmatprep.mubr.msk.f32.mxu1 %vm3232_vm0, %v3231_v0  ;;  %3045 = vmatpush3.xpose.msk.msra.mxu1 %vm805_vm2, %v1757_v55 }
 0x70d   : > { %3049 = vmatprep.subr.mxu1 %v3231_v0 }
 0x710   : > { %v3578_v57 = vpop.permute.xlu0 %1768  ;;  %v3597_v63 = vpop.permute.xlu1 %1772 }
 0x714   : > { %v3580_v58 = vpop.permute.xlu0 %1770 }
 0x715   : > { %3055 = vmatpush3.xpose.msk.msra.mxu0 %vm805_vm2, %v3580_v58 }
 0x716   : > { %3064 = vmatprep.subr.mxu0 %v3231_v0 }
 0x7cb   : > { %v1672_v60 = vpop.f32.mrf.mxu1 }
 0x7cc   : > { %v1673_v61 = vadd.f32 %v2861_v59, %v1672_v60  ;;  %v2439_v60 = vld [vmem:[%s3755_s10 + $0x10] sm:$0xff] }
 0x7cd   : > { %v3032_v62 = vpop.f32.mrf.mxu1 }
 0x7ce   : > { %1763 = vrot.lane.b32.xlu0 %v1673_v61, %s3796_s4  ;;  %1761 = vrot.lane.b32.xlu1 %v1673_v61, %s3234_s29  ;;  %s3797_s29 = smov 96   ;;  %v2437_v62 = vld [vmem:[%s3755_s10] sm:$0xff] }
 0x7cf   : > { %3047 = vmatmul.mubr.msk.f32.vlgmr.msra.gmra.mxu1 %vm805_vm2, %v1673_v61 }
 0x7d0   : > { %3050 = vmatpush3.xpose.msk.msra.mxu1 %vm805_vm2, %v3578_v57  ;;  %3051 = vmatprep.mubr.msk.f32.mxu1 %vm3232_vm0, %v3231_v0 }
 0x7d1   : > { %3059 = vmatprep.subr.mxu1 %v3231_v0 }
 0x7d2   : > { %1765 = vrot.lane.b32.xlu1 %v1673_v61, %s3795_s27  ;;  %v2438_v61 = vld [vmem:[%s3755_s10 + $0x8] sm:$0xff] }
 0x840   : > { %v1764_v1 = vpop.permute.xlu0 %1763  ;;  %v1762_v2 = vpop.permute.xlu1 %1761 }
 0x841   : > { %3052 = vmatmul.mubr.msk.f32.vlgmr.msra.gmra.mxu1 %vm805_vm2, %v1762_v2  ;;  %3057 = vmatmul.mubr.msk.f32.vlgmr.msra.gmra.mxu0 %vm805_vm2, %v1764_v1 }
 0x842   : > { %3060 = vmatpush3.xpose.msk.msra.mxu1 %vm805_vm2, %v3597_v63  ;;  %3061 = vmatprep.mubr.msk.f32.mxu1 %vm3232_vm0, %v3231_v0 }
 0x843   : > { %3066 = vmatprep.mubr.msk.f32.mxu0 %vm3232_vm0, %v3231_v0  ;;  %3069 = vmatprep.subr.mxu1 %v3231_v0 }
 0x844   : > { %v1766_v3 = vpop.permute.xlu1 %1765 }
 0x845   : > { %3062 = vmatmul.mubr.msk.f32.vlgmr.msra.gmra.mxu1 %vm805_vm2, %v1766_v3 }
 0x846   : > { %3071 = vmatprep.mubr.msk.f32.mxu1 %vm3232_vm0, %v3231_v0 }
 0x88f   : > { %v1844_v4 = vpop.f32.mrf.mxu1 }
 0x890   : > { %v2070_v6 = vmul.f32 0.35355338, %v1844_v4 }
 0x891   : > { %v3048_v7 = vpop.f32.mrf.mxu1 }
 0x892   : > { %v2074_v8 = vsel %vm805_vm2, %v2070_v6, -inf }
 0x893   : > { %2075 = vmax.xlane.f32.xlu0 %v2074_v8 }
 0x901   : > { %v1918_v9 = vpop.f32.mrf.mxu1  ;;  %v1992_v10 = vpop.f32.mrf.mxu0 }
 0x902   : > { %v2071_v11 = vmul.f32 0.35355338, %v1918_v9  ;;  %v2072_v12 = vmul.f32 0.35355338, %v1992_v10 }
 0x903   : > { %v3053_v13 = vpop.f32.mrf.mxu1  ;;  %v3058_v14 = vpop.f32.mrf.mxu0 }
 0x904   : > { %v2080_v15 = vsel %vm805_vm2, %v2072_v12, -inf  ;;  %v2077_v16 = vsel %vm805_vm2, %v2071_v11, -inf  ;;  %v2877_v13 = vld [vmem:[%s3756_s11] ss:$0 sm:$0xff] }
 0x905   : > { %2081 = vmax.xlane.f32.xlu0 %v2080_v15  ;;  %2078 = vmax.xlane.f32.xlu1 %v2077_v16  ;;  %v2066_v17 = vpop.f32.mrf.mxu1 }
 0x906   : > { %v2073_v18 = vmul.f32 0.35355338, %v2066_v17 }
 0x907   : > { %v3063_v19 = vpop.f32.mrf.mxu1 }
 0x908   : > { %v2083_v20 = vsel %vm805_vm2, %v2073_v18, -inf }
 0x909   : > { %2084 = vmax.xlane.f32.xlu0 %v2083_v20 }
 0x916   : > { %2118 = vrot.lane.b32.xlu1 %v1757_v55, %s3797_s29 }
 0x91c   : > { %v2076_v21 = vpop.xlane.xlu0 %2075 }
 0x91d   : > { %v2086_v22 = vsub.f32 %v2070_v6, %v2076_v21 }
 0x91f   : > { %v2090_v23 = vmul.f32 1.442695, %v2086_v22 }
 0x921   : > { %3172 = vpow2.f32 %v2090_v23 }
 0x92e   : > { %v3173_v24 = vpop.eup %3172 }
 0x92f   : > { %v2098_v25 = vsel %vm805_vm2, %v3173_v24, 0.0 }
 0x93a   : > { %2099 = vadd.xlane.f32.xlu1 %v2098_v25  ;;  %v2553_v25 = vld [vmem:[%s3757_s12 + $0x10] sm:$0xff] }
 0x98e   : > { %v2082_v26 = vpop.xlane.xlu0 %2081  ;;  %v2079_v27 = vpop.xlane.xlu1 %2078 }
 0x98f   : > { %v2088_v28 = vsub.f32 %v2072_v12, %v2082_v26  ;;  %v2087_v29 = vsub.f32 %v2071_v11, %v2079_v27  ;;  %v2551_v26 = vld [vmem:[%s3757_s12] sm:$0xff]  ;;  %v2643_v27 = vld [vmem:[%s3759_s14 + $0x38] sm:$0xff] }
 0x991   : > { %v2094_v30 = vmul.f32 1.442695, %v2088_v28  ;;  %v2092_v31 = vmul.f32 1.442695, %v2087_v29  ;;  %v2642_v28 = vld [vmem:[%s3759_s14 + $0x30] sm:$0xff]  ;;  %v2641_v29 = vld [vmem:[%s3759_s14 + $0x28] sm:$0xff] }
 0x992   : > { %v2119_v32 = vpop.permute.xlu1 %2118  ;;  %v2085_v33 = vpop.xlane.xlu0 %2084 }
 0x993   : > { %3174 = vpow2.f32 %v2094_v30  ;;  %v2089_v34 = vsub.f32 %v2073_v18, %v2085_v33  ;;  %3065 = vmatpush3.msra.mxu0 %v2119_v32  ;;  %v2640_v30 = vld [vmem:[%s3759_s14 + $0x20] sm:$0xff] }
 0x994   : > { %3176 = vpow2.f32 %v2092_v31  ;;  %3074 = vmatprep.subr.mxu0 %v3231_v0  ;;  %v2639_v31 = vld [vmem:[%s3759_s14 + $0x18] sm:$0xff] }
 0x995   : > { %v2096_v35 = vmul.f32 1.442695, %v2089_v34 }
 0x997   : > { %3178 = vpow2.f32 %v2096_v35 }
 0x9a0   : > { %v3175_v36 = vpop.eup %3174 }
 0x9a1   : > { %v3177_v5 = vpop.eup %3176  ;;  %v2104_v37 = vsel %vm805_vm2, %v3175_v36, 0.0 }
 0x9a2   : > { %2105 = vadd.xlane.f32.xlu1 %v2104_v37  ;;  %v2101_v38 = vsel %vm805_vm2, %v3177_v5, 0.0  ;;  %v2880_v37 = vld [vmem:[%s3764_s19] ss:$0 sm:$0xff] }
 0x9a3   : > { %2102 = vadd.xlane.f32.xlu0 %v2101_v38 }
 0x9a4   : > { %v3179_v39 = vpop.eup %3178 }
 0x9a5   : > { %v2107_v40 = vsel %vm805_vm2, %v3179_v39, 0.0 }
 0x9a7   : > { %2108 = vadd.xlane.f32.xlu0 %v2107_v40  ;;  %v2638_v40 = vld [vmem:[%s3759_s14 + $0x10] sm:$0xff] }
 0x9b3   : > { %2270 = vrot.lane.b32.xlu1 %v3580_v58, %s3797_s29 }
 0x9b7   : > { %2346 = vrot.lane.b32.xlu1 %v3597_v63, %s3797_s29 }
 0x9bd   : > { %2194 = vrot.lane.b32.xlu0 %v3578_v57, %s3797_s29  ;;  %v2440_v57 = vld [vmem:[%s3755_s10 + $0x18] sm:$0xff]  ;;  %s3799_s29 = smov 8  }
 0x9c3   : > { %v2100_v41 = vpop.xlane.xlu1 %2099 }
 0x9c4   : > { %3180 = vrcp.f32 %v2100_v41  ;;  %v2637_v41 = vld [vmem:[%s3759_s14 + $0x8] sm:$0xff] }
 0x9d1   : > { %v3181_v42 = vpop.eup %3180 }
 0x9d2   : > { %v2114_v43 = vmul.f32 %v3181_v42, %v3173_v24  ;;  %v2554_v24 = vld [vmem:[%s3757_s12 + $0x18] sm:$0xff]  ;;  %v2636_v42 = vld [vmem:[%s3759_s14] sm:$0xff] }
 0x9d4   : > { %3067 = vmatmul.mubr.msk.f32.vlgmr.msra.gmra.mxu0 %vm805_vm2, %v2114_v43  ;;  %v2881_v43 = vld [vmem:[%s3758_s13] ss:$0 sm:$0xff] }
 0x9d5   : > { %3076 = vmatprep.mubr.msk.f32.mxu0 %vm3232_vm0, %v3231_v0 }
 0xa2b   : > { %v2106_v44 = vpop.xlane.xlu1 %2105 }
 0xa2c   : > { %3182 = vrcp.f32 %v2106_v44  ;;  %v2103_v45 = vpop.xlane.xlu0 %2102 }
 0xa2d   : > { %3184 = vrcp.f32 %v2103_v45 }
 0xa2f   : > { %v2271_v46 = vpop.permute.xlu1 %2270 }
 0xa30   : > { %v2109_v47 = vpop.xlane.xlu0 %2108  ;;  %3075 = vmatpush3.msra.mxu0 %v2271_v46 }
 0xa31   : > { %3186 = vrcp.f32 %v2109_v47  ;;  %3084 = vmatprep.subr.mxu0 %v3231_v0 }
 0xa33   : > { %v2347_v54 = vpop.permute.xlu1 %2346 }
 0xa34   : > { %v2195_v48 = vpop.permute.xlu0 %2194 }
 0xa35   : > { %3070 = vmatpush3.msra.mxu1 %v2195_v48  ;;  %v2883_v48 = vld [vmem:[%s3760_s15] ss:$0 sm:$0xff] }
 0xa36   : > { %3079 = vmatprep.subr.mxu1 %v3231_v0 }
 0xa39   : > { %v3183_v49 = vpop.eup %3182 }
 0xa3a   : > { %v3185_v50 = vpop.eup %3184  ;;  %v2116_v51 = vmul.f32 %v3183_v49, %v3175_v36  ;;  %v2879_v36 = vld [vmem:[%s3763_s18] ss:$0 sm:$0xff] }
 0xa3b   : > { %v2115_v53 = vmul.f32 %v3185_v50, %v3177_v5 }
 0xa3c   : > { %3077 = vmatmul.mubr.msk.f32.vlgmr.msra.gmra.mxu0 %vm805_vm2, %v2116_v51 }
 0xa3d   : > { %3072 = vmatmul.mubr.msk.f32.vlgmr.msra.gmra.mxu1 %vm805_vm2, %v2115_v53  ;;  %3092 = vmatprep.mubr.msk.f32.mxu0 %vm3232_vm0, %v3231_v0 }
 0xa3e   : > { %v3187_v55 = vpop.eup %3186  ;;  %3080 = vmatpush3.msra.mxu1 %v2347_v54  ;;  %3081 = vmatprep.mubr.msk.f32.mxu1 %vm3232_vm0, %v3231_v0 }
 0xa3f   : > { %v2117_v56 = vmul.f32 %v3187_v55, %v3179_v39  ;;  %3095 = vmatprep.subr.mxu1 %v3231_v0  ;;  %3085 = vmatpush3.msra.mxu0 %v2440_v57 }
 0xa40   : > { %3086 = vmatprep.subr.mxu0 %v3231_v0 }
 0xa41   : > { %3082 = vmatmul.mubr.msk.f32.vlgmr.msra.gmra.mxu1 %vm805_vm2, %v2117_v56  ;;  %3087 = vmatpush3.msra.mxu0 %v2439_v60 }
 0xa42   : > { %3103 = vmatprep.mubr.msk.f32.mxu1 %vm3232_vm0, %v3231_v0  ;;  %3088 = vmatprep.subr.mxu0 %v3231_v0 }
 0xa43   : > { %3089 = vmatpush3.msra.mxu0 %v2438_v61  ;;  %3096 = vmatpush3.msra.mxu1 %v2554_v24 }
 0xa44   : > { %3090 = vmatprep.subr.mxu0 %v3231_v0  ;;  %3097 = vmatprep.subr.mxu1 %v3231_v0 }
 0xa45   : > { %3091 = vmatpush3.msra.mxu0 %v2437_v62  ;;  %3098 = vmatpush3.msra.mxu1 %v2553_v25 }
 0xa46   : > { %3106 = vmatprep.subr.mxu0 %v3231_v0  ;;  %3099 = vmatprep.subr.mxu1 %v3231_v0 }
 0xa94   : > { %v2190_v58 = vpop.f32.mrf.mxu0 }
 0xa96   : > { %v3068_v59 = vpop.f32.mrf.mxu0 }
 0xafc   : > { %v2342_v63 = vpop.f32.mrf.mxu0 }
 0xafd   : > { %v2266_v1 = vpop.f32.mrf.mxu1  ;;  %2427 = vrot.lane.b32.xlu1 %v2342_v63, %s3798_s28  ;;  %v2885_v63 = vld [vmem:[%s3765_s20] ss:$0 sm:$0xff] }
 0xafe   : > { %2423 = vrot.lane.b32.xlu0 %v2266_v1, %s3799_s29  ;;  %v3078_v2 = vpop.f32.mrf.mxu0  ;;  %s708_s29 = scalar_lea.vmem %s3767_s22, %s3392_s24 }
 0xaff   : > { %v3073_v3 = vpop.f32.mrf.mxu1  ;;  %v2886_v2 = vld [vmem:[#allocation2] ss:$0 sm:$0xff] }
 0xb01   : > { %v2418_v4 = vpop.f32.mrf.mxu1 }
 0xb02   : > { %2431 = vrot.lane.b32.xlu0 %v2418_v4, %s3800_s23 }
 0xb03   : > { %v3083_v6 = vpop.f32.mrf.mxu1 }
 0xb6f   : > { %v2428_v8 = vpop.permute.xlu1 %2427 }
 0xb70   : > { %v2424_v7 = vpop.permute.xlu0 %2423 }
 0xb71   : > { %v2434_v9 = vsel %vm805_vm2, %v2190_v58, %v2424_v7 }
 0xb72   : > { %v2435_v10 = vsel %vm1473_vm3, %v2434_v9, %v2428_v8 }
 0xb74   : > { %v2432_v11 = vpop.permute.xlu0 %2431 }
 0xb75   : > { %v2436_v12 = vsel %vm1475_vm4, %v2435_v10, %v2432_v11 }
 0xb76   : > { %3093 = vmatmul.mubr.msk.f32.vlgmr.msra.gmra.mxu0 %vm722_vm1, %v2436_v12 }
 0xb77   : > { %3122 = vmatprep.mubr.msk.f32.mxu0 %vm3232_vm0, %v3231_v0  ;;  %3107 = vmatpush3.msra.mxu0 %v2643_v27 }
 0xb78   : > { %3108 = vmatprep.subr.mxu0 %v3231_v0 }
 0xb79   : > { %3109 = vmatpush3.msra.mxu0 %v2642_v28 }
 0xb7a   : > { %3110 = vmatprep.subr.mxu0 %v3231_v0 }
 0xb7b   : > { %3111 = vmatpush3.msra.mxu0 %v2641_v29 }
 0xb7c   : > { %3112 = vmatprep.subr.mxu0 %v3231_v0 }
 0xb7d   : > { %3113 = vmatpush3.msra.mxu0 %v2640_v30 }
 0xb7e   : > { %3114 = vmatprep.subr.mxu0 %v3231_v0 }
 0xb7f   : > { %3115 = vmatpush3.msra.mxu0 %v2639_v31 }
 0xb80   : > { %3116 = vmatprep.subr.mxu0 %v3231_v0 }
 0xb81   : > { %3117 = vmatpush3.msra.mxu0 %v2638_v40 }
 0xb82   : > { %3118 = vmatprep.subr.mxu0 %v3231_v0 }
 0xb83   : > { %3119 = vmatpush3.msra.mxu0 %v2637_v41 }
 0xb84   : > { %3120 = vmatprep.subr.mxu0 %v3231_v0 }
 0xb85   : > { %3121 = vmatpush3.msra.mxu0 %v2636_v42 }
 0xc36   : > { %v2517_v14 = vpop.f32.mrf.mxu0 }
 0xc37   : > { %v2518_v15 = vadd.f32 %v2877_v13, %v2517_v14 }
 0xc38   : > { %v3094_v16 = vpop.f32.mrf.mxu0 }
 0xc39   : > { %v2521_v17 = vadd.f32 %v2518_v15, %v3564_v52  ;;  %v2552_v52 = vld [vmem:[%s3757_s12 + $0x8] sm:$0xff] }
 0xc3a   : > { %3100 = vmatpush3.msra.mxu1 %v2552_v52 }
 0xc3b   : > { %v2524_v18 = vsel %vm722_vm1, %v2521_v17, 0.0  ;;  %3101 = vmatprep.subr.mxu1 %v3231_v0 }
 0xc3c   : > { %2525 = vadd.xlane.f32.xlu1 %v2524_v18  ;;  %3102 = vmatpush3.msra.mxu1 %v2551_v26 }
 0xcc5   : > { %v2526_v19 = vpop.xlane.xlu1 %2525 }
 0xcc6   : > { %v2527_v20 = vmul.f32 0.03125, %v2526_v19 }
 0xcc8   : > { %v2528_v21 = vsub.f32 %v2521_v17, %v2527_v20 }
 0xcca   : > { %v2529_v22 = vmul.f32 %v2528_v21, %v2528_v21 }
 0xccc   : > { %v2530_v23 = vsel %vm722_vm1, %v2529_v22, 0.0 }
 0xccd   : > { %2531 = vadd.xlane.f32.xlu0 %v2530_v23 }
 0xd56   : > { %v2532_v32 = vpop.xlane.xlu0 %2531 }
 0xd57   : > { %v2533_v33 = vmul.f32 0.03125, %v2532_v32 }
 0xd59   : > { %v2534_v34 = vadd.f32 1e-05, %v2533_v33 }
 0xd5b   : > { %3188 = vrsqrt.f32 %v2534_v34 }
 0xd68   : > { %v3189_v35 = vpop.eup %3188 }
 0xd69   : > { %v2536_v5 = vmul.f32 %v3189_v35, %v2528_v21 }
 0xd6b   : > { %v2543_v38 = vmul.f32 %v2879_v36, %v2536_v5 }
 0xd6d   : > { %v2550_v39 = vadd.f32 %v2880_v37, %v2543_v38 }
 0xd6f   : > { %3104 = vmatmul.mubr.msk.f32.vlgmr.msra.gmra.mxu1 %vm722_vm1, %v2550_v39 }
 0xe2f   : > { %v2631_v44 = vpop.f32.mrf.mxu1 }
 0xe30   : > { %v2632_v45 = vadd.f32 %v2881_v43, %v2631_v44 }
 0xe31   : > { %v3105_v46 = vpop.f32.mrf.mxu1 }
 0xe32   : > { %v2635_v47 = vmax.f32 %v2632_v45, 0.0 }
 0xe34   : > { %3123 = vmatmul.mubr.msk.f32.vlgmr.msra.gmra.mxu0 %vm2651_vm5, %v2635_v47 }
 0xef4   : > { %v2721_v49 = vpop.f32.mrf.mxu0 }
 0xef5   : > { %v2722_v50 = vadd.f32 %v2883_v48, %v2721_v49 }
 0xef6   : > { %v3124_v51 = vpop.f32.mrf.mxu0 }
 0xef7   : > { %v2725_v53 = vadd.f32 %v2722_v50, %v2550_v39 }
 0xef9   : > { %v2728_v0 = vsel %vm722_vm1, %v2725_v53, 0.0 }
 0xefa   : > { %2729 = vadd.xlane.f32.xlu0 %v2728_v0 }
 0xf83   : > { %v2730_v54 = vpop.xlane.xlu0 %2729 }
 0xf84   : > { %v2731_v55 = vmul.f32 0.03125, %v2730_v54 }
 0xf86   : > { %v2732_v56 = vsub.f32 %v2725_v53, %v2731_v55 }
 0xf88   : > { %v2733_v57 = vmul.f32 %v2732_v56, %v2732_v56 }
 0xf8a   : > { %v2734_v58 = vsel %vm722_vm1, %v2733_v57, 0.0 }
 0xf8b   : > { %2735 = vadd.xlane.f32.xlu1 %v2734_v58 }
0x1014   : > { %v2736_v59 = vpop.xlane.xlu1 %2735 }
0x1015   : > { %v2737_v60 = vmul.f32 0.03125, %v2736_v59 }
0x1017   : > { %v2738_v61 = vadd.f32 1e-05, %v2737_v60 }
0x1019   : > { %3190 = vrsqrt.f32 %v2738_v61 }
0x1026   : > { %v3191_v62 = vpop.eup %3190 }
0x1027   : > { %v2740_v1 = vmul.f32 %v3191_v62, %v2732_v56 }
0x1029   : > { %v2747_v3 = vmul.f32 %v2885_v63, %v2740_v1 }
0x102b   : > { %v2754_v4 = vadd.f32 %v2886_v2, %v2747_v3 }
0x102d   : > { %2755 = vst.msk [vmem:[%s708_s29] sm:$0xff] %vm722_vm1, %v2754_v4 }
0x102e PF: > { %s33_s3 = sadd.s32 1, %s3228_s3  }
0x102f   : > { %p30_p1 = scmp.ge.s32.totalorder %s33_s3, 4  }
0x1031   :  { %32 = sbr.rel (!%p30_p1) target bundleno = 9 (0x9), region = 146 }
0x1036   :  { %2775 = vsyncpa [#allocation3], 1 }
0x1037   :  { %2777 = vsyncpa [#allocation3 + $0x1], 1 }

</bundles_post_ra>
